<compile_context>
chip_gen: v7x
topology: tpu7x:2x2x1
jax: 0.10.0
libtpu: 0.0.40
codegen_flags: <defaults>
</compile_context>

<pallas_src>
import functools

import jax
import jax.numpy as jnp
from jax import lax
from jax.experimental import pallas as pl
from jax.experimental.pallas import tpu as pltpu


# --------------------------------------------------------------------------- #
# Stage 1: dense GATConv per meta-path + fused semantic-score accumulation.
#          grid = (P, N // TM)    (meta-path  x  destination-node tile)
# --------------------------------------------------------------------------- #
def gat_kernel(h_ref, adj_ref, w_ref, alT_ref, ar_ref, b_ref,
               w1_ref, b1_ref, w2_ref,
               zp_ref, score_ref,
               feat_ref, elT_ref, acc_ref):
    t = pl.program_id(1)
    tm = adj_ref.shape[1]
    hd = ar_ref.shape[1]
    n_heads = ar_ref.shape[2]
    d = hd // n_heads

    # Once per meta-path: project features (bf16 MXU) and precompute the
    # per-head *source* logits in lane-major [H, N_src] layout (one transposed
    # block-diagonal matmul -> no XLU transpose in the per-tile hot path).
    @pl.when(t == 0)
    def _project():
        feat = jnp.dot(h_ref[...], w_ref[0],
                       preferred_element_type=jnp.float32)            # [N, HD] f32
        feat_ref[...] = feat
        elT_ref[...] = lax.dot_general(                                # [H, N]
            alT_ref[0], feat, (((1,), (1,)), ((), ())),
            preferred_element_type=jnp.float32)

    # ----- per destination-node tile ------------------------------------- #
    row0 = pl.multiple_of(t * tm, tm)
    feat_dst = feat_ref[pl.ds(row0, tm), :]                            # [TM, HD]
    er_all = jnp.dot(feat_dst, ar_ref[0],
                     preferred_element_type=jnp.float32)               # [TM, H]
    mask = adj_ref[0].astype(jnp.float32) > 0.0                        # [TM, N]

    for hidx in range(n_heads):
        lo = hidx * d
        er_h = er_all[:, hidx:hidx + 1]                                # [TM, 1]
        el_h = elT_ref[hidx:hidx + 1, :]                               # [1, N]
        e = er_h + el_h                                                # [TM, N]
        e = jnp.where(e > 0, e, 0.2 * e)                               # LeakyReLU(0.2)
        e = jnp.where(mask, e, -1e9)
        emax = jnp.max(e, axis=1, keepdims=True)                       # [TM, 1]
        p = jnp.exp(e - emax)               # masked edges underflow to exactly 0
        den = jnp.sum(p, axis=1, keepdims=True)
        has_edge = emax > -1e8                                         # zero in-degree rows
        alpha = jnp.where(has_edge, p / den, 0.0)
        acc_ref[:, lo:lo + d] = jnp.dot(alpha, feat_ref[:, lo:lo + d],
                                        preferred_element_type=jnp.float32)

    rst = acc_ref[...] + b_ref[0]                                      # [TM, HD]
    out_tile = jnp.where(rst > 0, rst,
                         jnp.exp(jnp.minimum(rst, 0.0)) - 1.0)         # ELU
    zp_ref[0] = out_tile                                               # lane-dense store

    # Fused semantic score: sum_n tanh(zp @ W1 + b1) @ W2, accumulated over
    # dst tiles so stage 2 never re-reads zp for the scoring pass.
    proj = jnp.tanh(jnp.dot(out_tile, w1_ref[...],
                            preferred_element_type=jnp.float32) + b1_ref[...])
    wcol = jnp.dot(proj, w2_ref[...], preferred_element_type=jnp.float32)  # [TM, 1]
    ts = jnp.broadcast_to(jnp.sum(wcol, axis=0, keepdims=True),
                          score_ref.shape[1:])                         # [8, 128]

    @pl.when(t == 0)
    def _init_score():
        score_ref[0] = ts

    @pl.when(t != 0)
    def _acc_score():
        score_ref[0] = score_ref[0] + ts


# --------------------------------------------------------------------------- #
# Stage 2: softmax over meta-paths + weighted sum of zp + predict Linear.
#          grid = (N // TM,)   (tiled over nodes, fully pipelined)
# --------------------------------------------------------------------------- #
def semantic_predict_kernel(score_ref, zp_ref, wp_ref, bp_ref, out_ref, *, inv_n):
    n_paths = zp_ref.shape[0]
    s = score_ref[...] * inv_n                       # mean over nodes, [P, 8, 128]
    m = jnp.max(s, axis=0, keepdims=True)
    e = jnp.exp(s - m)
    beta = e / jnp.sum(e, axis=0, keepdims=True)     # softmax over meta-paths

    z = beta[0, 0:1, 0:1] * zp_ref[0]
    for p in range(1, n_paths):
        z = z + beta[p, 0:1, 0:1] * zp_ref[p]
    out_ref[...] = (jnp.dot(z, wp_ref[...], preferred_element_type=jnp.float32)
                    + bp_ref[...])


# ------------------------------ Python wrapper ------------------------------ #
def _block_diag(a):
    # a: [P, H, D] -> [P, H, H*D]  with out[p, h, h*D + d] = a[p, h, d]
    P, H, D = a.shape
    eye = jnp.eye(H, dtype=a.dtype)
    return jnp.einsum('phd,hg->phgd', a, eye).reshape(P, H, H * D)


def han_forward(h, adj, Wg, al, ar, bg, W1, b1, W2, Wp, bp, *, tile_m=128):
    N, f_in = h.shape
    P = adj.shape[0]
    H, D = al.shape[1], al.shape[2]
    HD = H * D
    hidden = W1.shape[1]
    n_cls = Wp.shape[1]

    assert N % tile_m == 0, "N must be a multiple of tile_m"
    assert HD % 128 == 0, "H * out_size must be a multiple of 128 (lane-dense zp)"
    # TODO(synk): zero-pad HD / N inside the wrapper for configs violating the asserts.
    n_tiles = N // tile_m

    # bf16 MXU operands for the projection; int8 adjacency (mask only).
    h_b = h.astype(jnp.bfloat16)
    Wg_b = Wg.astype(jnp.bfloat16)
    adj_i8 = adj.astype(jnp.int8)
    # Block-diagonal attention matrices so el/er become MXU matmuls.
    AlT = _block_diag(al.astype(jnp.float32))                          # [P, H, HD]
    Ar = jnp.swapaxes(_block_diag(ar.astype(jnp.float32)), 1, 2)       # [P, HD, H]
    bflat = bg.reshape(P, 1, HD).astype(jnp.float32)                   # [P, 1, HD]

    zp, scores = pl.pallas_call(
        gat_kernel,
        out_shape=(jax.ShapeDtypeStruct((P, N, HD), jnp.float32),
                   jax.ShapeDtypeStruct((P, 8, 128), jnp.float32)),
        grid=(P, n_tiles),
        in_specs=[
            pl.BlockSpec((N, f_in), lambda p, t: (0, 0)),          # h (resident)
            pl.BlockSpec((1, tile_m, N), lambda p, t: (p, t, 0)),  # adj dst-tile (int8)
            pl.BlockSpec((1, f_in, HD), lambda p, t: (p, 0, 0)),   # GAT weight
            pl.BlockSpec((1, H, HD), lambda p, t: (p, 0, 0)),      # attn_l (blockdiag^T)
            pl.BlockSpec((1, HD, H), lambda p, t: (p, 0, 0)),      # attn_r (blockdiag)
            pl.BlockSpec((1, 1, HD), lambda p, t: (p, 0, 0)),      # bias
            pl.BlockSpec((HD, hidden), lambda p, t: (0, 0)),       # semantic W1
            pl.BlockSpec((1, hidden), lambda p, t: (0, 0)),        # semantic b1
            pl.BlockSpec((hidden, 1), lambda p, t: (0, 0)),        # semantic W2
        ],
        out_specs=(
            pl.BlockSpec((1, tile_m, HD), lambda p, t: (p, t, 0)),  # zp
            pl.BlockSpec((1, 8, 128), lambda p, t: (p, 0, 0)),      # per-path score acc
        ),
        scratch_shapes=[
            pltpu.VMEM((N, HD), jnp.float32),       # projected features (per path)
            pltpu.VMEM((H, N), jnp.float32),        # source logits, lane-major
            pltpu.VMEM((tile_m, HD), jnp.float32),  # per-tile head accumulator
        ],
        compiler_params=pltpu.CompilerParams(
            dimension_semantics=("parallel", "arbitrary"),
            vmem_limit_bytes=48 * 1024 * 1024),
    )(h_b, adj_i8, Wg_b, AlT, Ar, bflat, W1, b1, W2)

    out = pl.pallas_call(
        functools.partial(semantic_predict_kernel, inv_n=1.0 / N),
        out_shape=jax.ShapeDtypeStruct((N, n_cls), jnp.float32),
        grid=(n_tiles,),
        in_specs=[
            pl.BlockSpec((P, 8, 128), lambda t: (0, 0, 0)),        # fused scores
            pl.BlockSpec((P, tile_m, HD), lambda t: (0, t, 0)),    # zp tile (all paths)
            pl.BlockSpec((HD, n_cls), lambda t: (0, 0)),           # predict weight
            pl.BlockSpec((1, n_cls), lambda t: (0, 0)),            # predict bias
        ],
        out_specs=pl.BlockSpec((tile_m, n_cls), lambda t: (t, 0)),
        compiler_params=pltpu.CompilerParams(
            dimension_semantics=("parallel",),
            vmem_limit_bytes=48 * 1024 * 1024),
    )(scores, zp, Wp, bp)
    return out


# ----------------------------- pure-JAX reference --------------------------- #
def han_ref(h, adj, Wg, al, ar, bg, W1, b1, W2, Wp, bp):
    P, N = adj.shape[0], h.shape[0]
    H, D = al.shape[1], al.shape[2]
    adj_f = adj.astype(jnp.float32)
    h_b = h.astype(jnp.bfloat16)
    zp_list = []
    for p in range(P):
        feat = jnp.dot(h_b, Wg[p].astype(jnp.bfloat16),
                       preferred_element_type=jnp.float32).reshape(N, H, D)
        el = (feat * al[p][None]).sum(-1)                    # [N, H] source scores
        er = (feat * ar[p][None]).sum(-1)                    # [N, H] dest scores
        e = er[:, None, :] + el[None, :, :]                  # [dst, src, H]
        e = jnp.where(e > 0, e, 0.2 * e)
        mask = adj_f[p][:, :, None] > 0
        e = jnp.where(mask, e, -1e9)
        emax = e.max(axis=1, keepdims=True)
        pa = jnp.exp(e - emax) * adj_f[p][:, :, None]
        den = pa.sum(axis=1, keepdims=True)
        alpha = pa / jnp.where(den > 0, den, 1.0)
        rst = jnp.einsum('ijh,jhd->ihd', alpha, feat) + bg[p][None]
        out = jnp.where(rst > 0, rst, jnp.exp(jnp.minimum(rst, 0.0)) - 1.0)
        zp_list.append(out.reshape(N, H * D))
    zp = jnp.stack(zp_list, 0)                               # [P, N, H*D]
    w = jnp.stack([(jnp.tanh(zp[p] @ W1 + b1) @ W2).mean() for p in range(P)])
    beta = jax.nn.softmax(w)
    z = jnp.einsum('p,pnf->nf', beta, zp)
    return z @ Wp + bp


# ---------------------------------- main ------------------------------------ #
if __name__ == "__main__":
    # HAN(num_meta_paths=3, in_size=64, hidden_size=32, out_size=8, num_heads=4)
    P, N, F_IN, D_OUT, H = 3, 256, 64, 32, 4     # H * D_OUT = 128 (lane-dense)
    HIDDEN, N_CLS = 128, 8
    TM = 128

    key = jax.random.PRNGKey(0)
    ks = jax.random.split(key, 12)

    h = jax.random.normal(ks[0], (N, F_IN), jnp.float32)
    adj = (jax.random.uniform(ks[1], (P, N, N)) < 0.05).astype(jnp.float32)
    adj = jnp.maximum(adj, jnp.eye(N, dtype=jnp.float32)[None])   # self loops
    adj = adj.at[0, :4, :].set(0.0)    # a few zero-in-degree rows (allow_zero_in_degree)

    Wg = 0.1 * jax.random.normal(ks[2], (P, F_IN, H * D_OUT), jnp.float32)
    al = 0.1 * jax.random.normal(ks[3], (P, H, D_OUT), jnp.float32)
    ar = 0.1 * jax.random.normal(ks[4], (P, H, D_OUT), jnp.float32)
    bg = 0.1 * jax.random.normal(ks[5], (P, H, D_OUT), jnp.float32)

    W1 = 0.1 * jax.random.normal(ks[6], (H * D_OUT, HIDDEN), jnp.float32)
    b1 = 0.1 * jax.random.normal(ks[7], (1, HIDDEN), jnp.float32)
    W2 = 0.1 * jax.random.normal(ks[8], (HIDDEN, 1), jnp.float32)

    Wp = 0.1 * jax.random.normal(ks[9], (H * D_OUT, N_CLS), jnp.float32)
    bp = 0.1 * jax.random.normal(ks[10], (1, N_CLS), jnp.float32)

    fwd = jax.jit(functools.partial(han_forward, tile_m=TM))
    out = jax.block_until_ready(fwd(h, adj, Wg, al, ar, bg, W1, b1, W2, Wp, bp))

    out_ref = han_ref(h, adj, Wg, al, ar, bg, W1, b1, W2, Wp, bp)
    assert out.shape == (N, N_CLS)
    assert jnp.allclose(out, out_ref, atol=3e-2, rtol=3e-2), "mismatch vs reference"

    print("KERNEL_OK")
</pallas_src>

<mosaic_0001>
module attributes {stable_mosaic.version = 11 : i64} {
  func.func @semantic_predict_kernel(%arg0: i32, %arg1: memref<3x8x128xf32, #tpu.memory_space<vmem>>, %arg2: memref<3x128x128xf32, #tpu.memory_space<vmem>>, %arg3: memref<128x8xf32, #tpu.memory_space<vmem>>, %arg4: memref<1x8xf32, #tpu.memory_space<vmem>>, %arg5: memref<128x8xf32, #tpu.memory_space<vmem>>) attributes {dimension_semantics = [#tpu.dimension_semantics<parallel>], iteration_bounds = array<i64: 2>, scalar_prefetch = 0 : i64, scratch_operands = 0 : i64, tpu.core_type = #tpu.core_type<tc>, window_params = [{pipeline_mode = #tpu.pipeline_mode<synchronous>, transform_indices = @transform_0, window_bounds = array<i64: 3, 8, 128>}, {transform_indices = @transform_1, window_bounds = array<i64: 3, 128, 128>}, {pipeline_mode = #tpu.pipeline_mode<synchronous>, transform_indices = @transform_2, window_bounds = array<i64: 128, 8>}, {pipeline_mode = #tpu.pipeline_mode<synchronous>, transform_indices = @transform_3, window_bounds = array<i64: 1, 8>}, {transform_indices = @transform_4, window_bounds = array<i64: 128, 8>}]} {
    %c0 = arith.constant 0 : index
    %c0_0 = arith.constant 0 : index
    %c0_1 = arith.constant 0 : index
    %0 = vector.load %arg1[%c0, %c0_0, %c0_1] : memref<3x8x128xf32, #tpu.memory_space<vmem>>, vector<3x8x128xf32>
    %cst = arith.constant 3.906250e-03 : f32
    %1 = vector.broadcast %cst : f32 to vector<3x8x128xf32>
    %2 = arith.mulf %0, %1 : vector<3x8x128xf32>
    %cst_2 = arith.constant dense<0xFF800000> : vector<8x128xf32>
    %3 = vector.multi_reduction <maximumf>, %2, %cst_2 [0] : vector<3x8x128xf32> to vector<8x128xf32>
    %4 = vector.shape_cast %3 : vector<8x128xf32> to vector<1x8x128xf32>
    %5 = vector.broadcast %4 : vector<1x8x128xf32> to vector<3x8x128xf32>
    %6 = arith.subf %2, %5 : vector<3x8x128xf32>
    %7 = math.exp %6 : vector<3x8x128xf32>
    %cst_3 = arith.constant dense<0.000000e+00> : vector<8x128xf32>
    %8 = vector.multi_reduction <add>, %7, %cst_3 [0] : vector<3x8x128xf32> to vector<8x128xf32>
    %9 = vector.shape_cast %8 : vector<8x128xf32> to vector<1x8x128xf32>
    %10 = vector.broadcast %9 : vector<1x8x128xf32> to vector<3x8x128xf32>
    %11 = arith.divf %7, %10 : vector<3x8x128xf32>
    %12 = vector.extract_strided_slice %11 {offsets = [0, 0, 0], sizes = [1, 1, 1], strides = [1, 1, 1]} : vector<3x8x128xf32> to vector<1x1x1xf32>
    %13 = vector.shape_cast %12 : vector<1x1x1xf32> to vector<1x1xf32>
    %c0_4 = arith.constant 0 : index
    %c0_5 = arith.constant 0 : index
    %c0_6 = arith.constant 0 : index
    %14 = vector.load %arg2[%c0_4, %c0_5, %c0_6] : memref<3x128x128xf32, #tpu.memory_space<vmem>>, vector<1x128x128xf32>
    %15 = vector.shape_cast %14 : vector<1x128x128xf32> to vector<128x128xf32>
    %16 = vector.broadcast %13 : vector<1x1xf32> to vector<128x128xf32>
    %17 = arith.mulf %16, %15 : vector<128x128xf32>
    %18 = vector.extract_strided_slice %11 {offsets = [1, 0, 0], sizes = [1, 1, 1], strides = [1, 1, 1]} : vector<3x8x128xf32> to vector<1x1x1xf32>
    %19 = vector.shape_cast %18 : vector<1x1x1xf32> to vector<1x1xf32>
    %c1 = arith.constant 1 : index
    %c0_7 = arith.constant 0 : index
    %c0_8 = arith.constant 0 : index
    %20 = vector.load %arg2[%c1, %c0_7, %c0_8] : memref<3x128x128xf32, #tpu.memory_space<vmem>>, vector<1x128x128xf32>
    %21 = vector.shape_cast %20 : vector<1x128x128xf32> to vector<128x128xf32>
    %22 = vector.broadcast %19 : vector<1x1xf32> to vector<128x128xf32>
    %23 = arith.mulf %22, %21 : vector<128x128xf32>
    %24 = arith.addf %17, %23 : vector<128x128xf32>
    %25 = vector.extract_strided_slice %11 {offsets = [2, 0, 0], sizes = [1, 1, 1], strides = [1, 1, 1]} : vector<3x8x128xf32> to vector<1x1x1xf32>
    %26 = vector.shape_cast %25 : vector<1x1x1xf32> to vector<1x1xf32>
    %c2 = arith.constant 2 : index
    %c0_9 = arith.constant 0 : index
    %c0_10 = arith.constant 0 : index
    %27 = vector.load %arg2[%c2, %c0_9, %c0_10] : memref<3x128x128xf32, #tpu.memory_space<vmem>>, vector<1x128x128xf32>
    %28 = vector.shape_cast %27 : vector<1x128x128xf32> to vector<128x128xf32>
    %29 = vector.broadcast %26 : vector<1x1xf32> to vector<128x128xf32>
    %30 = arith.mulf %29, %28 : vector<128x128xf32>
    %31 = arith.addf %24, %30 : vector<128x128xf32>
    %c0_11 = arith.constant 0 : index
    %c0_12 = arith.constant 0 : index
    %32 = vector.load %arg3[%c0_11, %c0_12] : memref<128x8xf32, #tpu.memory_space<vmem>>, vector<128x8xf32>
    %cst_13 = arith.constant dense<0.000000e+00> : vector<128x8xf32>
    %33 = tpu.matmul %31, %32, %cst_13 {dimension_numbers = #tpu.dot_dimension_numbers<[1], [0], [0], [1], [0, 0, 1, 1], [], []>} : vector<128x128xf32>, vector<128x8xf32>, vector<128x8xf32> -> vector<128x8xf32>
    %c0_14 = arith.constant 0 : index
    %c0_15 = arith.constant 0 : index
    %34 = vector.load %arg4[%c0_14, %c0_15] : memref<1x8xf32, #tpu.memory_space<vmem>>, vector<1x8xf32>
    %35 = vector.broadcast %34 : vector<1x8xf32> to vector<128x8xf32>
    %36 = arith.addf %33, %35 : vector<128x8xf32>
    %c0_16 = arith.constant 0 : index
    %c0_17 = arith.constant 0 : index
    %37 = vector.load %arg5[%c0_16, %c0_17] : memref<128x8xf32, #tpu.memory_space<vmem>>, vector<128x8xf32>
    tpu.vector_store %arg5[%c0_16, %c0_17], %36 {strides = array<i32>} : memref<128x8xf32, #tpu.memory_space<vmem>>, vector<128x8xf32>,
    return
  }
  func.func @transform_0(%arg0: i32) -> (i32, i32, i32) {
    %c0_i32 = arith.constant 0 : i32
    %c0_i32_0 = arith.constant 0 : i32
    %c0_i32_1 = arith.constant 0 : i32
    %c0_i32_2 = arith.constant 0 : i32
    return %c0_i32, %c0_i32_0, %c0_i32_1 : i32, i32, i32
  }
  func.func @transform_1(%arg0: i32) -> (i32, i32, i32) {
    %c0_i32 = arith.constant 0 : i32
    %c0_i32_0 = arith.constant 0 : i32
    %c0_i32_1 = arith.constant 0 : i32
    return %c0_i32, %arg0, %c0_i32_0 : i32, i32, i32
  }
  func.func @transform_2(%arg0: i32) -> (i32, i32) {
    %c0_i32 = arith.constant 0 : i32
    %c0_i32_0 = arith.constant 0 : i32
    %c0_i32_1 = arith.constant 0 : i32
    return %c0_i32, %c0_i32_0 : i32, i32
  }
  func.func @transform_3(%arg0: i32) -> (i32, i32) {
    %c0_i32 = arith.constant 0 : i32
    %c0_i32_0 = arith.constant 0 : i32
    %c0_i32_1 = arith.constant 0 : i32
    return %c0_i32, %c0_i32_0 : i32, i32
  }
  func.func @transform_4(%arg0: i32) -> (i32, i32) {
    %c0_i32 = arith.constant 0 : i32
    %c0_i32_0 = arith.constant 0 : i32
    return %arg0, %c0_i32 : i32, i32
  }
}

module attributes {stable_mosaic.version = 11 : i64} {
  func.func @gat_kernel(%arg0: i32, %arg1: i32, %arg2: memref<256x64xbf16, #tpu.memory_space<vmem>>, %arg3: memref<1x128x256xi8, #tpu.memory_space<vmem>>, %arg4: memref<1x64x128xbf16, #tpu.memory_space<vmem>>, %arg5: memref<1x4x128xf32, #tpu.memory_space<vmem>>, %arg6: memref<1x128x4xf32, #tpu.memory_space<vmem>>, %arg7: memref<1x1x128xf32, #tpu.memory_space<vmem>>, %arg8: memref<128x128xf32, #tpu.memory_space<vmem>>, %arg9: memref<1x128xf32, #tpu.memory_space<vmem>>, %arg10: memref<128x1xf32, #tpu.memory_space<vmem>>, %arg11: memref<1x128x128xf32, #tpu.memory_space<vmem>>, %arg12: memref<1x8x128xf32, #tpu.memory_space<vmem>>, %arg13: memref<256x128xf32, #tpu.memory_space<vmem>>, %arg14: memref<4x256xf32, #tpu.memory_space<vmem>>, %arg15: memref<128x128xf32, #tpu.memory_space<vmem>>) attributes {dimension_semantics = [#tpu.dimension_semantics<parallel>, #tpu.dimension_semantics<arbitrary>], iteration_bounds = array<i64: 3, 2>, scalar_prefetch = 0 : i64, scratch_operands = 3 : i64, tpu.core_type = #tpu.core_type<tc>, window_params = [{pipeline_mode = #tpu.pipeline_mode<synchronous>, transform_indices = @transform_0, window_bounds = array<i64: 256, 64>}, {transform_indices = @transform_1, window_bounds = array<i64: 1, 128, 256>}, {transform_indices = @transform_2, window_bounds = array<i64: 1, 64, 128>}, {transform_indices = @transform_3, window_bounds = array<i64: 1, 4, 128>}, {transform_indices = @transform_4, window_bounds = array<i64: 1, 128, 4>}, {transform_indices = @transform_5, window_bounds = array<i64: 1, 1, 128>}, {pipeline_mode = #tpu.pipeline_mode<synchronous>, transform_indices = @transform_6, window_bounds = array<i64: 128, 128>}, {pipeline_mode = #tpu.pipeline_mode<synchronous>, transform_indices = @transform_7, window_bounds = array<i64: 1, 128>}, {pipeline_mode = #tpu.pipeline_mode<synchronous>, transform_indices = @transform_8, window_bounds = array<i64: 128, 1>}, {transform_indices = @transform_9, window_bounds = array<i64: 1, 128, 128>}, {transform_indices = @transform_10, window_bounds = array<i64: 1, 8, 128>}]} {
    %c0_i32 = arith.constant 0 : i32
    %0 = arith.cmpi eq, %arg1, %c0_i32 : i32
    %1 = arith.extui %0 : i1 to i32
    %c0_i32_0 = arith.constant 0 : i32
    %2 = arith.cmpi ne, %1, %c0_i32_0 : i32
    scf.if %2 {
      %c0_82 = arith.constant 0 : index
      %c0_83 = arith.constant 0 : index
      %169 = vector.load %arg2[%c0_82, %c0_83] : memref<256x64xbf16, #tpu.memory_space<vmem>>, vector<256x64xbf16>
      %c0_84 = arith.constant 0 : index
      %c0_85 = arith.constant 0 : index
      %c0_86 = arith.constant 0 : index
      %170 = vector.load %arg4[%c0_84, %c0_85, %c0_86] : memref<1x64x128xbf16, #tpu.memory_space<vmem>>, vector<1x64x128xbf16>
      %171 = vector.shape_cast %170 : vector<1x64x128xbf16> to vector<64x128xbf16>
      %cst_87 = arith.constant dense<0.000000e+00> : vector<256x128xf32>
      %172 = tpu.matmul %169, %171, %cst_87 {dimension_numbers = #tpu.dot_dimension_numbers<[1], [0], [0], [1], [0, 0, 1, 1], [], []>} : vector<256x64xbf16>, vector<64x128xbf16>, vector<256x128xf32> -> vector<256x128xf32>
      %c0_88 = arith.constant 0 : index
      %c0_89 = arith.constant 0 : index
      %173 = vector.load %arg13[%c0_88, %c0_89] : memref<256x128xf32, #tpu.memory_space<vmem>>, vector<256x128xf32>
      tpu.vector_store %arg13[%c0_88, %c0_89], %172 {strides = array<i32>} : memref<256x128xf32, #tpu.memory_space<vmem>>, vector<256x128xf32>,
      %c0_90 = arith.constant 0 : index
      %c0_91 = arith.constant 0 : index
      %c0_92 = arith.constant 0 : index
      %174 = vector.load %arg5[%c0_90, %c0_91, %c0_92] : memref<1x4x128xf32, #tpu.memory_space<vmem>>, vector<1x4x128xf32>
      %175 = vector.shape_cast %174 : vector<1x4x128xf32> to vector<4x128xf32>
      %cst_93 = arith.constant dense<0.000000e+00> : vector<4x256xf32>
      %176 = tpu.matmul %175, %172, %cst_93 {dimension_numbers = #tpu.dot_dimension_numbers<[1], [1], [0], [0], [0, 0, 1, 0], [], []>} : vector<4x128xf32>, vector<256x128xf32>, vector<4x256xf32> -> vector<4x256xf32>
      %c0_94 = arith.constant 0 : index
      %c0_95 = arith.constant 0 : index
      %177 = vector.load %arg14[%c0_94, %c0_95] : memref<4x256xf32, #tpu.memory_space<vmem>>, vector<4x256xf32>
      tpu.vector_store %arg14[%c0_94, %c0_95], %176 {strides = array<i32>} : memref<4x256xf32, #tpu.memory_space<vmem>>, vector<4x256xf32>,
    } else {
    }
    %c128_i32 = arith.constant 128 : i32
    %3 = arith.muli %arg1, %c128_i32 : i32
    %4 = tpu.assume_multiple %3, 128 : i32
    %5 = arith.index_cast %4 : i32 to index
    %c0 = arith.constant 0 : index
    %6 = vector.load %arg13[%5, %c0] : memref<256x128xf32, #tpu.memory_space<vmem>>, vector<128x128xf32>
    %c0_1 = arith.constant 0 : index
    %c0_2 = arith.constant 0 : index
    %c0_3 = arith.constant 0 : index
    %7 = vector.load %arg6[%c0_1, %c0_2, %c0_3] : memref<1x128x4xf32, #tpu.memory_space<vmem>>, vector<1x128x4xf32>
    %8 = vector.shape_cast %7 : vector<1x128x4xf32> to vector<128x4xf32>
    %cst = arith.constant dense<0.000000e+00> : vector<128x4xf32>
    %9 = tpu.matmul %6, %8, %cst {dimension_numbers = #tpu.dot_dimension_numbers<[1], [0], [0], [1], [0, 0, 1, 1], [], []>} : vector<128x128xf32>, vector<128x4xf32>, vector<128x4xf32> -> vector<128x4xf32>
    %c0_4 = arith.constant 0 : index
    %c0_5 = arith.constant 0 : index
    %c0_6 = arith.constant 0 : index
    %10 = vector.load %arg3[%c0_4, %c0_5, %c0_6] : memref<1x128x256xi8, #tpu.memory_space<vmem>>, vector<1x128x256xi8>
    %11 = vector.shape_cast %10 : vector<1x128x256xi8> to vector<128x256xi8>
    %12 = arith.sitofp %11 : vector<128x256xi8> to vector<128x256xf32>
    %cst_7 = arith.constant 0.000000e+00 : f32
    %13 = vector.broadcast %cst_7 : f32 to vector<128x256xf32>
    %14 = arith.cmpf ogt, %12, %13 : vector<128x256xf32>
    %15 = vector.extract_strided_slice %9 {offsets = [0, 0], sizes = [128, 1], strides = [1, 1]} : vector<128x4xf32> to vector<128x1xf32>
    %c0_8 = arith.constant 0 : index
    %c0_9 = arith.constant 0 : index
    %16 = vector.load %arg14[%c0_8, %c0_9] : memref<4x256xf32, #tpu.memory_space<vmem>>, vector<1x256xf32>
    %17 = vector.broadcast %15 : vector<128x1xf32> to vector<128x256xf32>
    %18 = vector.broadcast %16 : vector<1x256xf32> to vector<128x256xf32>
    %19 = arith.addf %17, %18 : vector<128x256xf32>
    %cst_10 = arith.constant 0.000000e+00 : f32
    %20 = vector.broadcast %cst_10 : f32 to vector<128x256xf32>
    %21 = arith.cmpf ogt, %19, %20 : vector<128x256xf32>
    %cst_11 = arith.constant 2.000000e-01 : f32
    %22 = vector.broadcast %cst_11 : f32 to vector<128x256xf32>
    %23 = arith.mulf %22, %19 : vector<128x256xf32>
    %24 = arith.select %21, %19, %23 : vector<128x256xi1>, vector<128x256xf32>
    %cst_12 = arith.constant -1.000000e+09 : f32
    %25 = vector.broadcast %cst_12 : f32 to vector<128x256xf32>
    %26 = arith.select %14, %24, %25 : vector<128x256xi1>, vector<128x256xf32>
    %cst_13 = arith.constant dense<0xFF800000> : vector<128xf32>
    %27 = vector.multi_reduction <maximumf>, %26, %cst_13 [1] : vector<128x256xf32> to vector<128xf32>
    %28 = vector.shape_cast %27 : vector<128xf32> to vector<128x1xf32>
    %29 = vector.broadcast %28 : vector<128x1xf32> to vector<128x256xf32>
    %30 = arith.subf %26, %29 : vector<128x256xf32>
    %31 = math.exp %30 : vector<128x256xf32>
    %cst_14 = arith.constant dense<0.000000e+00> : vector<128xf32>
    %32 = vector.multi_reduction <add>, %31, %cst_14 [1] : vector<128x256xf32> to vector<128xf32>
    %33 = vector.shape_cast %32 : vector<128xf32> to vector<128x1xf32>
    %cst_15 = arith.constant -1.000000e+08 : f32
    %34 = vector.broadcast %cst_15 : f32 to vector<128x1xf32>
    %35 = arith.cmpf ogt, %28, %34 : vector<128x1xf32>
    %36 = vector.broadcast %33 : vector<128x1xf32> to vector<128x256xf32>
    %37 = arith.divf %31, %36 : vector<128x256xf32>
    %cst_16 = arith.constant 0.000000e+00 : f32
    %38 = vector.shape_cast %35 : vector<128x1xi1> to vector<128x1xi1>
    %39 = vector.broadcast %38 : vector<128x1xi1> to vector<128x256xi1>
    %40 = vector.broadcast %cst_16 : f32 to vector<128x256xf32>
    %41 = arith.select %39, %37, %40 : vector<128x256xi1>, vector<128x256xf32>
    %c0_17 = arith.constant 0 : index
    %c0_18 = arith.constant 0 : index
    %42 = vector.load %arg13[%c0_17, %c0_18] : memref<256x128xf32, #tpu.memory_space<vmem>>, vector<256x32xf32>
    %cst_19 = arith.constant dense<0.000000e+00> : vector<128x32xf32>
    %43 = tpu.matmul %41, %42, %cst_19 {dimension_numbers = #tpu.dot_dimension_numbers<[1], [0], [0], [1], [0, 0, 1, 1], [], []>} : vector<128x256xf32>, vector<256x32xf32>, vector<128x32xf32> -> vector<128x32xf32>
    %c0_20 = arith.constant 0 : index
    %c0_21 = arith.constant 0 : index
    %44 = vector.load %arg15[%c0_20, %c0_21] : memref<128x128xf32, #tpu.memory_space<vmem>>, vector<128x32xf32>
    tpu.vector_store %arg15[%c0_20, %c0_21], %43 {strides = array<i32>} : memref<128x128xf32, #tpu.memory_space<vmem>>, vector<128x32xf32>,
    %45 = vector.extract_strided_slice %9 {offsets = [0, 1], sizes = [128, 1], strides = [1, 1]} : vector<128x4xf32> to vector<128x1xf32>
    %c1 = arith.constant 1 : index
    %c0_22 = arith.constant 0 : index
    %46 = vector.load %arg14[%c1, %c0_22] : memref<4x256xf32, #tpu.memory_space<vmem>>, vector<1x256xf32>
    %47 = vector.broadcast %45 : vector<128x1xf32> to vector<128x256xf32>
    %48 = vector.broadcast %46 : vector<1x256xf32> to vector<128x256xf32>
    %49 = arith.addf %47, %48 : vector<128x256xf32>
    %cst_23 = arith.constant 0.000000e+00 : f32
    %50 = vector.broadcast %cst_23 : f32 to vector<128x256xf32>
    %51 = arith.cmpf ogt, %49, %50 : vector<128x256xf32>
    %cst_24 = arith.constant 2.000000e-01 : f32
    %52 = vector.broadcast %cst_24 : f32 to vector<128x256xf32>
    %53 = arith.mulf %52, %49 : vector<128x256xf32>
    %54 = arith.select %51, %49, %53 : vector<128x256xi1>, vector<128x256xf32>
    %cst_25 = arith.constant -1.000000e+09 : f32
    %55 = vector.broadcast %cst_25 : f32 to vector<128x256xf32>
    %56 = arith.select %14, %54, %55 : vector<128x256xi1>, vector<128x256xf32>
    %cst_26 = arith.constant dense<0xFF800000> : vector<128xf32>
    %57 = vector.multi_reduction <maximumf>, %56, %cst_26 [1] : vector<128x256xf32> to vector<128xf32>
    %58 = vector.shape_cast %57 : vector<128xf32> to vector<128x1xf32>
    %59 = vector.broadcast %58 : vector<128x1xf32> to vector<128x256xf32>
    %60 = arith.subf %56, %59 : vector<128x256xf32>
    %61 = math.exp %60 : vector<128x256xf32>
    %cst_27 = arith.constant dense<0.000000e+00> : vector<128xf32>
    %62 = vector.multi_reduction <add>, %61, %cst_27 [1] : vector<128x256xf32> to vector<128xf32>
    %63 = vector.shape_cast %62 : vector<128xf32> to vector<128x1xf32>
    %cst_28 = arith.constant -1.000000e+08 : f32
    %64 = vector.broadcast %cst_28 : f32 to vector<128x1xf32>
    %65 = arith.cmpf ogt, %58, %64 : vector<128x1xf32>
    %66 = vector.broadcast %63 : vector<128x1xf32> to vector<128x256xf32>
    %67 = arith.divf %61, %66 : vector<128x256xf32>
    %cst_29 = arith.constant 0.000000e+00 : f32
    %68 = vector.shape_cast %65 : vector<128x1xi1> to vector<128x1xi1>
    %69 = vector.broadcast %68 : vector<128x1xi1> to vector<128x256xi1>
    %70 = vector.broadcast %cst_29 : f32 to vector<128x256xf32>
    %71 = arith.select %69, %67, %70 : vector<128x256xi1>, vector<128x256xf32>
    %c0_30 = arith.constant 0 : index
    %c32 = arith.constant 32 : index
    %72 = vector.load %arg13[%c0_30, %c32] : memref<256x128xf32, #tpu.memory_space<vmem>>, vector<256x32xf32>
    %cst_31 = arith.constant dense<0.000000e+00> : vector<128x32xf32>
    %73 = tpu.matmul %71, %72, %cst_31 {dimension_numbers = #tpu.dot_dimension_numbers<[1], [0], [0], [1], [0, 0, 1, 1], [], []>} : vector<128x256xf32>, vector<256x32xf32>, vector<128x32xf32> -> vector<128x32xf32>
    %c0_32 = arith.constant 0 : index
    %c32_33 = arith.constant 32 : index
    %74 = vector.load %arg15[%c0_32, %c32_33] : memref<128x128xf32, #tpu.memory_space<vmem>>, vector<128x32xf32>
    tpu.vector_store %arg15[%c0_32, %c32_33], %73 {strides = array<i32>} : memref<128x128xf32, #tpu.memory_space<vmem>>, vector<128x32xf32>,
    %75 = vector.extract_strided_slice %9 {offsets = [0, 2], sizes = [128, 1], strides = [1, 1]} : vector<128x4xf32> to vector<128x1xf32>
    %c2 = arith.constant 2 : index
    %c0_34 = arith.constant 0 : index
    %76 = vector.load %arg14[%c2, %c0_34] : memref<4x256xf32, #tpu.memory_space<vmem>>, vector<1x256xf32>
    %77 = vector.broadcast %75 : vector<128x1xf32> to vector<128x256xf32>
    %78 = vector.broadcast %76 : vector<1x256xf32> to vector<128x256xf32>
    %79 = arith.addf %77, %78 : vector<128x256xf32>
    %cst_35 = arith.constant 0.000000e+00 : f32
    %80 = vector.broadcast %cst_35 : f32 to vector<128x256xf32>
    %81 = arith.cmpf ogt, %79, %80 : vector<128x256xf32>
    %cst_36 = arith.constant 2.000000e-01 : f32
    %82 = vector.broadcast %cst_36 : f32 to vector<128x256xf32>
    %83 = arith.mulf %82, %79 : vector<128x256xf32>
    %84 = arith.select %81, %79, %83 : vector<128x256xi1>, vector<128x256xf32>
    %cst_37 = arith.constant -1.000000e+09 : f32
    %85 = vector.broadcast %cst_37 : f32 to vector<128x256xf32>
    %86 = arith.select %14, %84, %85 : vector<128x256xi1>, vector<128x256xf32>
    %cst_38 = arith.constant dense<0xFF800000> : vector<128xf32>
    %87 = vector.multi_reduction <maximumf>, %86, %cst_38 [1] : vector<128x256xf32> to vector<128xf32>
    %88 = vector.shape_cast %87 : vector<128xf32> to vector<128x1xf32>
    %89 = vector.broadcast %88 : vector<128x1xf32> to vector<128x256xf32>
    %90 = arith.subf %86, %89 : vector<128x256xf32>
    %91 = math.exp %90 : vector<128x256xf32>
    %cst_39 = arith.constant dense<0.000000e+00> : vector<128xf32>
    %92 = vector.multi_reduction <add>, %91, %cst_39 [1] : vector<128x256xf32> to vector<128xf32>
    %93 = vector.shape_cast %92 : vector<128xf32> to vector<128x1xf32>
    %cst_40 = arith.constant -1.000000e+08 : f32
    %94 = vector.broadcast %cst_40 : f32 to vector<128x1xf32>
    %95 = arith.cmpf ogt, %88, %94 : vector<128x1xf32>
    %96 = vector.broadcast %93 : vector<128x1xf32> to vector<128x256xf32>
    %97 = arith.divf %91, %96 : vector<128x256xf32>
    %cst_41 = arith.constant 0.000000e+00 : f32
    %98 = vector.shape_cast %95 : vector<128x1xi1> to vector<128x1xi1>
    %99 = vector.broadcast %98 : vector<128x1xi1> to vector<128x256xi1>
    %100 = vector.broadcast %cst_41 : f32 to vector<128x256xf32>
    %101 = arith.select %99, %97, %100 : vector<128x256xi1>, vector<128x256xf32>
    %c0_42 = arith.constant 0 : index
    %c64 = arith.constant 64 : index
    %102 = vector.load %arg13[%c0_42, %c64] : memref<256x128xf32, #tpu.memory_space<vmem>>, vector<256x32xf32>
    %cst_43 = arith.constant dense<0.000000e+00> : vector<128x32xf32>
    %103 = tpu.matmul %101, %102, %cst_43 {dimension_numbers = #tpu.dot_dimension_numbers<[1], [0], [0], [1], [0, 0, 1, 1], [], []>} : vector<128x256xf32>, vector<256x32xf32>, vector<128x32xf32> -> vector<128x32xf32>
    %c0_44 = arith.constant 0 : index
    %c64_45 = arith.constant 64 : index
    %104 = vector.load %arg15[%c0_44, %c64_45] : memref<128x128xf32, #tpu.memory_space<vmem>>, vector<128x32xf32>
    tpu.vector_store %arg15[%c0_44, %c64_45], %103 {strides = array<i32>} : memref<128x128xf32, #tpu.memory_space<vmem>>, vector<128x32xf32>,
    %105 = vector.extract_strided_slice %9 {offsets = [0, 3], sizes = [128, 1], strides = [1, 1]} : vector<128x4xf32> to vector<128x1xf32>
    %c3 = arith.constant 3 : index
    %c0_46 = arith.constant 0 : index
    %106 = vector.load %arg14[%c3, %c0_46] : memref<4x256xf32, #tpu.memory_space<vmem>>, vector<1x256xf32>
    %107 = vector.broadcast %105 : vector<128x1xf32> to vector<128x256xf32>
    %108 = vector.broadcast %106 : vector<1x256xf32> to vector<128x256xf32>
    %109 = arith.addf %107, %108 : vector<128x256xf32>
    %cst_47 = arith.constant 0.000000e+00 : f32
    %110 = vector.broadcast %cst_47 : f32 to vector<128x256xf32>
    %111 = arith.cmpf ogt, %109, %110 : vector<128x256xf32>
    %cst_48 = arith.constant 2.000000e-01 : f32
    %112 = vector.broadcast %cst_48 : f32 to vector<128x256xf32>
    %113 = arith.mulf %112, %109 : vector<128x256xf32>
    %114 = arith.select %111, %109, %113 : vector<128x256xi1>, vector<128x256xf32>
    %cst_49 = arith.constant -1.000000e+09 : f32
    %115 = vector.broadcast %cst_49 : f32 to vector<128x256xf32>
    %116 = arith.select %14, %114, %115 : vector<128x256xi1>, vector<128x256xf32>
    %cst_50 = arith.constant dense<0xFF800000> : vector<128xf32>
    %117 = vector.multi_reduction <maximumf>, %116, %cst_50 [1] : vector<128x256xf32> to vector<128xf32>
    %118 = vector.shape_cast %117 : vector<128xf32> to vector<128x1xf32>
    %119 = vector.broadcast %118 : vector<128x1xf32> to vector<128x256xf32>
    %120 = arith.subf %116, %119 : vector<128x256xf32>
    %121 = math.exp %120 : vector<128x256xf32>
    %cst_51 = arith.constant dense<0.000000e+00> : vector<128xf32>
    %122 = vector.multi_reduction <add>, %121, %cst_51 [1] : vector<128x256xf32> to vector<128xf32>
    %123 = vector.shape_cast %122 : vector<128xf32> to vector<128x1xf32>
    %cst_52 = arith.constant -1.000000e+08 : f32
    %124 = vector.broadcast %cst_52 : f32 to vector<128x1xf32>
    %125 = arith.cmpf ogt, %118, %124 : vector<128x1xf32>
    %126 = vector.broadcast %123 : vector<128x1xf32> to vector<128x256xf32>
    %127 = arith.divf %121, %126 : vector<128x256xf32>
    %cst_53 = arith.constant 0.000000e+00 : f32
    %128 = vector.shape_cast %125 : vector<128x1xi1> to vector<128x1xi1>
    %129 = vector.broadcast %128 : vector<128x1xi1> to vector<128x256xi1>
    %130 = vector.broadcast %cst_53 : f32 to vector<128x256xf32>
    %131 = arith.select %129, %127, %130 : vector<128x256xi1>, vector<128x256xf32>
    %c0_54 = arith.constant 0 : index
    %c96 = arith.constant 96 : index
    %132 = vector.load %arg13[%c0_54, %c96] : memref<256x128xf32, #tpu.memory_space<vmem>>, vector<256x32xf32>
    %cst_55 = arith.constant dense<0.000000e+00> : vector<128x32xf32>
    %133 = tpu.matmul %131, %132, %cst_55 {dimension_numbers = #tpu.dot_dimension_numbers<[1], [0], [0], [1], [0, 0, 1, 1], [], []>} : vector<128x256xf32>, vector<256x32xf32>, vector<128x32xf32> -> vector<128x32xf32>
    %c0_56 = arith.constant 0 : index
    %c96_57 = arith.constant 96 : index
    %134 = vector.load %arg15[%c0_56, %c96_57] : memref<128x128xf32, #tpu.memory_space<vmem>>, vector<128x32xf32>
    tpu.vector_store %arg15[%c0_56, %c96_57], %133 {strides = array<i32>} : memref<128x128xf32, #tpu.memory_space<vmem>>, vector<128x32xf32>,
    %c0_58 = arith.constant 0 : index
    %c0_59 = arith.constant 0 : index
    %135 = vector.load %arg15[%c0_58, %c0_59] : memref<128x128xf32, #tpu.memory_space<vmem>>, vector<128x128xf32>
    %c0_60 = arith.constant 0 : index
    %c0_61 = arith.constant 0 : index
    %c0_62 = arith.constant 0 : index
    %136 = vector.load %arg7[%c0_60, %c0_61, %c0_62] : memref<1x1x128xf32, #tpu.memory_space<vmem>>, vector<1x1x128xf32>
    %137 = vector.shape_cast %136 : vector<1x1x128xf32> to vector<1x128xf32>
    %138 = vector.broadcast %137 : vector<1x128xf32> to vector<128x128xf32>
    %139 = arith.addf %135, %138 : vector<128x128xf32>
    %cst_63 = arith.constant 0.000000e+00 : f32
    %140 = vector.broadcast %cst_63 : f32 to vector<128x128xf32>
    %141 = arith.cmpf ogt, %139, %140 : vector<128x128xf32>
    %cst_64 = arith.constant 0.000000e+00 : f32
    %142 = vector.broadcast %cst_64 : f32 to vector<128x128xf32>
    %143 = arith.minimumf %139, %142 : vector<128x128xf32>
    %144 = math.exp %143 : vector<128x128xf32>
    %cst_65 = arith.constant 1.000000e+00 : f32
    %145 = vector.broadcast %cst_65 : f32 to vector<128x128xf32>
    %146 = arith.subf %144, %145 : vector<128x128xf32>
    %147 = arith.select %141, %139, %146 : vector<128x128xi1>, vector<128x128xf32>
    %c0_66 = arith.constant 0 : index
    %c0_67 = arith.constant 0 : index
    %c0_68 = arith.constant 0 : index
    %148 = vector.load %arg11[%c0_66, %c0_67, %c0_68] : memref<1x128x128xf32, #tpu.memory_space<vmem>>, vector<1x128x128xf32>
    %149 = vector.shape_cast %148 : vector<1x128x128xf32> to vector<128x128xf32>
    %150 = vector.shape_cast %147 : vector<128x128xf32> to vector<1x128x128xf32>
    tpu.vector_store %arg11[%c0_66, %c0_67, %c0_68], %150 {strides = array<i32>} : memref<1x128x128xf32, #tpu.memory_space<vmem>>, vector<1x128x128xf32>,
    %c0_69 = arith.constant 0 : index
    %c0_70 = arith.constant 0 : index
    %151 = vector.load %arg8[%c0_69, %c0_70] : memref<128x128xf32, #tpu.memory_space<vmem>>, vector<128x128xf32>
    %cst_71 = arith.constant dense<0.000000e+00> : vector<128x128xf32>
    %152 = tpu.matmul %147, %151, %cst_71 {dimension_numbers = #tpu.dot_dimension_numbers<[1], [0], [0], [1], [0, 0, 1, 1], [], []>} : vector<128x128xf32>, vector<128x128xf32>, vector<128x128xf32> -> vector<128x128xf32>
    %c0_72 = arith.constant 0 : index
    %c0_73 = arith.constant 0 : index
    %153 = vector.load %arg9[%c0_72, %c0_73] : memref<1x128xf32, #tpu.memory_space<vmem>>, vector<1x128xf32>
    %154 = vector.broadcast %153 : vector<1x128xf32> to vector<128x128xf32>
    %155 = arith.addf %152, %154 : vector<128x128xf32>
    %156 = math.tanh %155 : vector<128x128xf32>
    %c0_74 = arith.constant 0 : index
    %c0_75 = arith.constant 0 : index
    %157 = vector.load %arg10[%c0_74, %c0_75] : memref<128x1xf32, #tpu.memory_space<vmem>>, vector<128x1xf32>
    %cst_76 = arith.constant dense<0.000000e+00> : vector<128x1xf32>
    %158 = tpu.matmul %156, %157, %cst_76 {dimension_numbers = #tpu.dot_dimension_numbers<[1], [0], [0], [1], [0, 0, 1, 1], [], []>} : vector<128x128xf32>, vector<128x1xf32>, vector<128x1xf32> -> vector<128x1xf32>
    %cst_77 = arith.constant dense<0.000000e+00> : vector<1xf32>
    %159 = vector.multi_reduction <add>, %158, %cst_77 [0] : vector<128x1xf32> to vector<1xf32>
    %160 = vector.shape_cast %159 : vector<1xf32> to vector<1x1xf32>
    %161 = vector.shape_cast %160 : vector<1x1xf32> to vector<1x1xf32>
    %162 = vector.broadcast %161 : vector<1x1xf32> to vector<8x128xf32>
    %c0_i32_78 = arith.constant 0 : i32
    %163 = arith.cmpi eq, %arg1, %c0_i32_78 : i32
    %164 = arith.extui %163 : i1 to i32
    %c0_i32_79 = arith.constant 0 : i32
    %165 = arith.cmpi ne, %164, %c0_i32_79 : i32
    scf.if %165 {
      %c0_82 = arith.constant 0 : index
      %c0_83 = arith.constant 0 : index
      %c0_84 = arith.constant 0 : index
      %169 = vector.load %arg12[%c0_82, %c0_83, %c0_84] : memref<1x8x128xf32, #tpu.memory_space<vmem>>, vector<1x8x128xf32>
      %170 = vector.shape_cast %169 : vector<1x8x128xf32> to vector<8x128xf32>
      %171 = vector.shape_cast %162 : vector<8x128xf32> to vector<1x8x128xf32>
      tpu.vector_store %arg12[%c0_82, %c0_83, %c0_84], %171 {strides = array<i32>} : memref<1x8x128xf32, #tpu.memory_space<vmem>>, vector<1x8x128xf32>,
    } else {
    }
    %c0_i32_80 = arith.constant 0 : i32
    %166 = arith.cmpi ne, %arg1, %c0_i32_80 : i32
    %167 = arith.extui %166 : i1 to i32
    %c0_i32_81 = arith.constant 0 : i32
    %168 = arith.cmpi ne, %167, %c0_i32_81 : i32
    scf.if %168 {
      %c0_82 = arith.constant 0 : index
      %c0_83 = arith.constant 0 : index
      %c0_84 = arith.constant 0 : index
      %169 = vector.load %arg12[%c0_82, %c0_83, %c0_84] : memref<1x8x128xf32, #tpu.memory_space<vmem>>, vector<1x8x128xf32>
      %170 = vector.shape_cast %169 : vector<1x8x128xf32> to vector<8x128xf32>
      %171 = arith.addf %170, %162 : vector<8x128xf32>
      %c0_85 = arith.constant 0 : index
      %c0_86 = arith.constant 0 : index
      %c0_87 = arith.constant 0 : index
      %172 = vector.load %arg12[%c0_85, %c0_86, %c0_87] : memref<1x8x128xf32, #tpu.memory_space<vmem>>, vector<1x8x128xf32>
      %173 = vector.shape_cast %172 : vector<1x8x128xf32> to vector<8x128xf32>
      %174 = vector.shape_cast %171 : vector<8x128xf32> to vector<1x8x128xf32>
      tpu.vector_store %arg12[%c0_85, %c0_86, %c0_87], %174 {strides = array<i32>} : memref<1x8x128xf32, #tpu.memory_space<vmem>>, vector<1x8x128xf32>,
    } else {
    }
    return
  }
  func.func @transform_0(%arg0: i32, %arg1: i32) -> (i32, i32) {
    %c0_i32 = arith.constant 0 : i32
    %c0_i32_0 = arith.constant 0 : i32
    %c0_i32_1 = arith.constant 0 : i32
    return %c0_i32, %c0_i32_0 : i32, i32
  }
  func.func @transform_1(%arg0: i32, %arg1: i32) -> (i32, i32, i32) {
    %c0_i32 = arith.constant 0 : i32
    %c0_i32_0 = arith.constant 0 : i32
    return %arg0, %arg1, %c0_i32 : i32, i32, i32
  }
  func.func @transform_2(%arg0: i32, %arg1: i32) -> (i32, i32, i32) {
    %c0_i32 = arith.constant 0 : i32
    %c0_i32_0 = arith.constant 0 : i32
    %c0_i32_1 = arith.constant 0 : i32
    return %arg0, %c0_i32, %c0_i32_0 : i32, i32, i32
  }
  func.func @transform_3(%arg0: i32, %arg1: i32) -> (i32, i32, i32) {
    %c0_i32 = arith.constant 0 : i32
    %c0_i32_0 = arith.constant 0 : i32
    %c0_i32_1 = arith.constant 0 : i32
    return %arg0, %c0_i32, %c0_i32_0 : i32, i32, i32
  }
  func.func @transform_4(%arg0: i32, %arg1: i32) -> (i32, i32, i32) {
    %c0_i32 = arith.constant 0 : i32
    %c0_i32_0 = arith.constant 0 : i32
    %c0_i32_1 = arith.constant 0 : i32
    return %arg0, %c0_i32, %c0_i32_0 : i32, i32, i32
  }
  func.func @transform_5(%arg0: i32, %arg1: i32) -> (i32, i32, i32) {
    %c0_i32 = arith.constant 0 : i32
    %c0_i32_0 = arith.constant 0 : i32
    %c0_i32_1 = arith.constant 0 : i32
    return %arg0, %c0_i32, %c0_i32_0 : i32, i32, i32
  }
  func.func @transform_6(%arg0: i32, %arg1: i32) -> (i32, i32) {
    %c0_i32 = arith.constant 0 : i32
    %c0_i32_0 = arith.constant 0 : i32
    %c0_i32_1 = arith.constant 0 : i32
    return %c0_i32, %c0_i32_0 : i32, i32
  }
  func.func @transform_7(%arg0: i32, %arg1: i32) -> (i32, i32) {
    %c0_i32 = arith.constant 0 : i32
    %c0_i32_0 = arith.constant 0 : i32
    %c0_i32_1 = arith.constant 0 : i32
    return %c0_i32, %c0_i32_0 : i32, i32
  }
  func.func @transform_8(%arg0: i32, %arg1: i32) -> (i32, i32) {
    %c0_i32 = arith.constant 0 : i32
    %c0_i32_0 = arith.constant 0 : i32
    %c0_i32_1 = arith.constant 0 : i32
    return %c0_i32, %c0_i32_0 : i32, i32
  }
  func.func @transform_9(%arg0: i32, %arg1: i32) -> (i32, i32, i32) {
    %c0_i32 = arith.constant 0 : i32
    %c0_i32_0 = arith.constant 0 : i32
    return %arg0, %arg1, %c0_i32 : i32, i32, i32
  }
  func.func @transform_10(%arg0: i32, %arg1: i32) -> (i32, i32, i32) {
    %c0_i32 = arith.constant 0 : i32
    %c0_i32_0 = arith.constant 0 : i32
    %c0_i32_1 = arith.constant 0 : i32
    return %arg0, %c0_i32, %c0_i32_0 : i32, i32, i32
  }
}

</mosaic_0001>

<bundles_post_ra>
// kernel: han_forward.3
= control target key start
LH: loop header
LB: loop body
LE: loop exit
PB: predicated region body
PF: predicated region fallthrough
CT: control target
= control target key end

     0   :  { %s1105_s15 = smov 0   ;;  %s1107_s16 = smov 0   ;;  %s1455_s0 = inlined_call_operand.vmem [shape: f32[3,8,128], index: 0, kind: input, shape index: {}]   ;;  %s1456_s1 = inlined_call_operand.vmem [shape: f32[3,256,128], index: 1, kind: input, shape index: {}]   ;;  %s1457_s2 = inlined_call_operand.vmem [shape: f32[128,8], index: 2, kind: input, shape index: {}]   ;;  %s1458_s3 = inlined_call_operand.vmem [shape: f32[1,8], index: 3, kind: input, shape index: {}]   ;;  %s1459_s4 = inlined_call_operand.vmem [shape: f32[256,8], index: 4, kind: output, shape index: {}]  }
   0x1   :  { %s1109_s17 = smov 0  }
   0x2 LB: > { %s835_s18 = sadd.s32 4294967295, %s1078_s17   ;;  %s1122_s19 = sadd.s32 1, %s1078_s17   ;;  %s1078_s17 = sphi %s1109_s17, %s1462_s17   ;;  %s1074_s16 = sphi %s1107_s16, %s1461_s16   ;;  %s1070_s15 = sphi %s1105_s15, %s1460_s15  }
   0x3   : > { %s39_s20 = ssub.s32 %s1078_s17, %s1122_s19  ;;  %s42_s21 = sadd.s32 1, %s1074_s16 }
   0x4   : > { %p40_p0 = scmp.eq.s32.totalorder %s39_s20, 0  ;;  %p49_p1 = scmp.ne.s32.totalorder %s1074_s16, %s1070_s15 }
   0x5   : > { %p50_p2 = scmp.eq.s32.totalorder %s1078_s17, 0  ;;  %p838_p4 = scmp.ge.s32.totalorder %s1078_s17, 2 }
   0x6   : > { %s1131_s22 = scalar_select %p40_p0, %s1074_s16, %s42_s21  }
   0x7   : > { %p51_p3 = por %p50_p2, %p49_p1  ;;  %152 = sbr.rel (%p838_p4) target bundleno = 43 (0x2b), region = 28 }
   0xe   : > { %155 = sbr.rel (!%p51_p3) target bundleno = 43 (0x2b), region = 32  ;;  %s157_s23 = sand.u32 (%p51_p3), 1, %s1074_s16  }
   0xf   : > { %s879_s24 = sshll.u32 (%p51_p3), %s1078_s17, 7  ;;  %s1016_s25 = smul.u32 (%p51_p3), 384, %s157_s23 }
  0x10   : > { %s1139_s28 = scalar_lea.vmem (%p51_p3), %s1456_s1, %s879_s24 }
  0x11   : > { %v284_v0 = vld [vmem:[%s1139_s28] sm:$0xff] (%p51_p3)  ;;  %v286_v1 = vld [vmem:[%s1139_s28 + $0x8] sm:$0xff] (%p51_p3)  ;;  %v288_v2 = vld [vmem:[%s1139_s28 + $0x10] sm:$0xff] (%p51_p3)  ;;  %s1147_s29 = scalar_lea.vmem (%p51_p3), [#allocation2], %s1016_s25 }
  0x12   : > { %v290_v3 = vld [vmem:[%s1139_s28 + $0x18] sm:$0xff] (%p51_p3)  ;;  %v292_v4 = vld [vmem:[%s1139_s28 + $0x20] sm:$0xff] (%p51_p3)  ;;  %v294_v5 = vld [vmem:[%s1139_s28 + $0x28] sm:$0xff] (%p51_p3)  ;;  %285 = vst [vmem:[%s1147_s29] sm:$0xff] (%p51_p3), %v284_v0 }
  0x13   : > { %287 = vst [vmem:[%s1147_s29 + $0x8] sm:$0xff] (%p51_p3), %v286_v1  ;;  %289 = vst [vmem:[%s1147_s29 + $0x10] sm:$0xff] (%p51_p3), %v288_v2  ;;  %v296_v6 = vld [vmem:[%s1139_s28 + $0x30] sm:$0xff] (%p51_p3)  ;;  %v298_v7 = vld [vmem:[%s1139_s28 + $0x38] sm:$0xff] (%p51_p3) }
  0x14   : > { %291 = vst [vmem:[%s1147_s29 + $0x18] sm:$0xff] (%p51_p3), %v290_v3  ;;  %293 = vst [vmem:[%s1147_s29 + $0x20] sm:$0xff] (%p51_p3), %v292_v4  ;;  %v300_v8 = vld [vmem:[%s1139_s28 + $0x40] sm:$0xff] (%p51_p3)  ;;  %v302_v9 = vld [vmem:[%s1139_s28 + $0x48] sm:$0xff] (%p51_p3) }
  0x15   : > { %295 = vst [vmem:[%s1147_s29 + $0x28] sm:$0xff] %v294_v5  ;;  %297 = vst [vmem:[%s1147_s29 + $0x30] sm:$0xff] %v296_v6  ;;  %v304_v10 = vld [vmem:[%s1139_s28 + $0x50] sm:$0xff]  ;;  %v306_v11 = vld [vmem:[%s1139_s28 + $0x58] sm:$0xff] }
  0x16   : > { %299 = vst [vmem:[%s1147_s29 + $0x38] sm:$0xff] %v298_v7  ;;  %301 = vst [vmem:[%s1147_s29 + $0x40] sm:$0xff] %v300_v8  ;;  %v308_v12 = vld [vmem:[%s1139_s28 + $0x60] sm:$0xff]  ;;  %v310_v13 = vld [vmem:[%s1139_s28 + $0x68] sm:$0xff] }
  0x17   : > { %303 = vst [vmem:[%s1147_s29 + $0x48] sm:$0xff] %v302_v9  ;;  %305 = vst [vmem:[%s1147_s29 + $0x50] sm:$0xff] %v304_v10  ;;  %v312_v14 = vld [vmem:[%s1139_s28 + $0x70] sm:$0xff]  ;;  %v314_v15 = vld [vmem:[%s1139_s28 + $0x78] sm:$0xff] }
  0x18   : > { %307 = vst [vmem:[%s1147_s29 + $0x58] sm:$0xff] %v306_v11  ;;  %309 = vst [vmem:[%s1147_s29 + $0x60] sm:$0xff] %v308_v12  ;;  %v316_v16 = vld [vmem:[%s1139_s28 + $0x100] sm:$0xff]  ;;  %v318_v17 = vld [vmem:[%s1139_s28 + $0x108] sm:$0xff] }
  0x19   : > { %311 = vst [vmem:[%s1147_s29 + $0x68] sm:$0xff] %v310_v13  ;;  %313 = vst [vmem:[%s1147_s29 + $0x70] sm:$0xff] %v312_v14  ;;  %v320_v18 = vld [vmem:[%s1139_s28 + $0x110] sm:$0xff]  ;;  %v322_v19 = vld [vmem:[%s1139_s28 + $0x118] sm:$0xff] }
  0x1a   : > { %315 = vst [vmem:[%s1147_s29 + $0x78] sm:$0xff] %v314_v15  ;;  %317 = vst [vmem:[%s1147_s29 + $0x80] sm:$0xff] %v316_v16  ;;  %v324_v20 = vld [vmem:[%s1139_s28 + $0x120] sm:$0xff]  ;;  %v326_v21 = vld [vmem:[%s1139_s28 + $0x128] sm:$0xff] }
  0x1b   : > { %319 = vst [vmem:[%s1147_s29 + $0x88] sm:$0xff] %v318_v17  ;;  %321 = vst [vmem:[%s1147_s29 + $0x90] sm:$0xff] %v320_v18  ;;  %v328_v22 = vld [vmem:[%s1139_s28 + $0x130] sm:$0xff]  ;;  %v330_v23 = vld [vmem:[%s1139_s28 + $0x138] sm:$0xff] }
  0x1c   : > { %323 = vst [vmem:[%s1147_s29 + $0x98] sm:$0xff] %v322_v19  ;;  %325 = vst [vmem:[%s1147_s29 + $0xa0] sm:$0xff] %v324_v20  ;;  %v332_v24 = vld [vmem:[%s1139_s28 + $0x140] sm:$0xff]  ;;  %v334_v25 = vld [vmem:[%s1139_s28 + $0x148] sm:$0xff] }
  0x1d   : > { %327 = vst [vmem:[%s1147_s29 + $0xa8] sm:$0xff] %v326_v21  ;;  %329 = vst [vmem:[%s1147_s29 + $0xb0] sm:$0xff] %v328_v22  ;;  %v336_v26 = vld [vmem:[%s1139_s28 + $0x150] sm:$0xff]  ;;  %v338_v27 = vld [vmem:[%s1139_s28 + $0x158] sm:$0xff] }
  0x1e   : > { %331 = vst [vmem:[%s1147_s29 + $0xb8] sm:$0xff] %v330_v23  ;;  %333 = vst [vmem:[%s1147_s29 + $0xc0] sm:$0xff] %v332_v24  ;;  %v340_v28 = vld [vmem:[%s1139_s28 + $0x160] sm:$0xff]  ;;  %v342_v29 = vld [vmem:[%s1139_s28 + $0x168] sm:$0xff] }
  0x1f   : > { %335 = vst [vmem:[%s1147_s29 + $0xc8] sm:$0xff] %v334_v25  ;;  %337 = vst [vmem:[%s1147_s29 + $0xd0] sm:$0xff] %v336_v26  ;;  %v344_v30 = vld [vmem:[%s1139_s28 + $0x170] sm:$0xff]  ;;  %v346_v31 = vld [vmem:[%s1139_s28 + $0x178] sm:$0xff] }
  0x20   : > { %339 = vst [vmem:[%s1147_s29 + $0xd8] sm:$0xff] %v338_v27  ;;  %341 = vst [vmem:[%s1147_s29 + $0xe0] sm:$0xff] %v340_v28  ;;  %v348_v32 = vld [vmem:[%s1139_s28 + $0x200] sm:$0xff]  ;;  %v350_v33 = vld [vmem:[%s1139_s28 + $0x208] sm:$0xff] }
  0x21   : > { %343 = vst [vmem:[%s1147_s29 + $0xe8] sm:$0xff] %v342_v29  ;;  %345 = vst [vmem:[%s1147_s29 + $0xf0] sm:$0xff] %v344_v30  ;;  %v352_v34 = vld [vmem:[%s1139_s28 + $0x210] sm:$0xff]  ;;  %v354_v35 = vld [vmem:[%s1139_s28 + $0x218] sm:$0xff] }
  0x22   : > { %347 = vst [vmem:[%s1147_s29 + $0xf8] sm:$0xff] %v346_v31  ;;  %349 = vst [vmem:[%s1147_s29 + $0x100] sm:$0xff] %v348_v32  ;;  %v356_v36 = vld [vmem:[%s1139_s28 + $0x220] sm:$0xff]  ;;  %v358_v37 = vld [vmem:[%s1139_s28 + $0x228] sm:$0xff] }
  0x23   : > { %351 = vst [vmem:[%s1147_s29 + $0x108] sm:$0xff] %v350_v33  ;;  %353 = vst [vmem:[%s1147_s29 + $0x110] sm:$0xff] %v352_v34  ;;  %v360_v38 = vld [vmem:[%s1139_s28 + $0x230] sm:$0xff]  ;;  %v362_v39 = vld [vmem:[%s1139_s28 + $0x238] sm:$0xff] }
  0x24   : > { %355 = vst [vmem:[%s1147_s29 + $0x118] sm:$0xff] %v354_v35  ;;  %357 = vst [vmem:[%s1147_s29 + $0x120] sm:$0xff] %v356_v36  ;;  %v364_v40 = vld [vmem:[%s1139_s28 + $0x240] sm:$0xff]  ;;  %v366_v41 = vld [vmem:[%s1139_s28 + $0x248] sm:$0xff] }
  0x25   : > { %359 = vst [vmem:[%s1147_s29 + $0x128] sm:$0xff] %v358_v37  ;;  %361 = vst [vmem:[%s1147_s29 + $0x130] sm:$0xff] %v360_v38  ;;  %v368_v42 = vld [vmem:[%s1139_s28 + $0x250] sm:$0xff]  ;;  %v370_v43 = vld [vmem:[%s1139_s28 + $0x258] sm:$0xff] }
  0x26   : > { %363 = vst [vmem:[%s1147_s29 + $0x138] sm:$0xff] %v362_v39  ;;  %365 = vst [vmem:[%s1147_s29 + $0x140] sm:$0xff] %v364_v40  ;;  %v372_v44 = vld [vmem:[%s1139_s28 + $0x260] sm:$0xff]  ;;  %v374_v45 = vld [vmem:[%s1139_s28 + $0x268] sm:$0xff] }
  0x27   : > { %367 = vst [vmem:[%s1147_s29 + $0x148] sm:$0xff] %v366_v41  ;;  %369 = vst [vmem:[%s1147_s29 + $0x150] sm:$0xff] %v368_v42  ;;  %v376_v46 = vld [vmem:[%s1139_s28 + $0x270] sm:$0xff]  ;;  %v378_v47 = vld [vmem:[%s1139_s28 + $0x278] sm:$0xff] }
  0x28   : > { %371 = vst [vmem:[%s1147_s29 + $0x158] sm:$0xff] %v370_v43  ;;  %373 = vst [vmem:[%s1147_s29 + $0x160] sm:$0xff] %v372_v44 }
  0x29   : > { %375 = vst [vmem:[%s1147_s29 + $0x168] sm:$0xff] %v374_v45  ;;  %377 = vst [vmem:[%s1147_s29 + $0x170] sm:$0xff] %v376_v46 }
  0x2a   : > { %379 = vst [vmem:[%s1147_s29 + $0x178] sm:$0xff] %v378_v47 }
  0x2b PF: > { %p841_p5 = scmp.ge.s32.totalorder %s1078_s17, 1  ;;  %p384_p6 = scmp.lt.s32.totalorder %s1078_s17, 3 }
  0x2d   : > { %p385_p7 = pnand %p841_p5, %p384_p6 }
  0x2e   : > { %v423_v48 = vld [vmem:[%s1455_s0] sm:$0xff] (!%p385_p7)  ;;  %v424_v49 = vld [vmem:[%s1455_s0 + $0x8] sm:$0xff] (!%p385_p7)  ;;  %v425_v50 = vld [vmem:[%s1455_s0 + $0x10] sm:$0xff] (!%p385_p7)  ;;  %s391_s28 = sand.u32 (!%p385_p7), 1, %s1070_s15   ;;  %s842_s7 = sshll.u32 (!%p385_p7), %s835_s18, 4  ;;  %vm756_vm0 = vcmask (!%p385_p7), 64512  }
  0x2f   : > { %388 = sbr.rel (%p385_p7) target bundleno = 377 (0x179), region = 70  ;;  %v426_v51 = vmul.f32 (!%p385_p7), 0.00390625, %v423_v48  ;;  %v427_v52 = vmul.f32 (!%p385_p7), 0.00390625, %v424_v49  ;;  %v428_v53 = vmul.f32 (!%p385_p7), 0.00390625, %v425_v50  ;;  %v588_v54 = vld [vmem:[%s1457_s2] sm:$0xff] (!%p385_p7)  ;;  %v589_v55 = vld [vmem:[%s1457_s2 + $0x8] sm:$0xff] (!%p385_p7) }
  0x30   : > { %v590_v56 = vld [vmem:[%s1457_s2 + $0x10] sm:$0xff] (!%p385_p7)  ;;  %v968_v57 = vpack.c.bf16 (!%p385_p7), %v589_v55, %v588_v54  ;;  %v591_v58 = vld [vmem:[%s1457_s2 + $0x18] sm:$0xff] (!%p385_p7)  ;;  %v592_v61 = vld [vmem:[%s1457_s2 + $0x20] sm:$0xff] (!%p385_p7)  ;;  %s1017_s29 = smul.u32 (!%p385_p7), 384, %s391_s28  ;;  %p418_p8 = scmp.lt.s32.totalorder (!%p385_p7), %s842_s7, 31 }
  0x31   : > { %v429_v59 = vmax.f32 (!%p385_p7), %v426_v51, %v427_v52  ;;  %v972_v60 = vpack.c.bf16 (!%p385_p7), %v591_v58, %v590_v56  ;;  %v593_v62 = vld [vmem:[%s1457_s2 + $0x28] sm:$0xff] (!%p385_p7)  ;;  %v594_v4 = vld [vmem:[%s1457_s2 + $0x30] sm:$0xff] (!%p385_p7)  ;;  %v595_v5 = vld [vmem:[%s1457_s2 + $0x38] sm:$0xff] (!%p385_p7) }
  0x32   : > { %969 = vmatprep.subr.bf16.mxu0 (!%p385_p7), %v968_v57  ;;  %1000 = vmatprep.subr.bf16.mxu1 (!%p385_p7), %v968_v57  ;;  %v976_v0 = vpack.c.bf16 (!%p385_p7), %v593_v62, %v592_v61  ;;  %v980_v9 = vpack.c.bf16 (!%p385_p7), %v595_v5, %v594_v4  ;;  %v596_v10 = vld [vmem:[%s1457_s2 + $0x40] sm:$0xff] (!%p385_p7)  ;;  %v597_v11 = vld [vmem:[%s1457_s2 + $0x48] sm:$0xff] (!%p385_p7)  ;;  %v598_v13 = vld [vmem:[%s1457_s2 + $0x50] sm:$0xff] (!%p385_p7)  ;;  %s1299_s30 = scalar_lea.vmem (!%p385_p7), [#allocation2], %s1017_s29 }
  0x33   : > { %v430_v63 = vmax.f32 (!%p385_p7), %v429_v59, %v428_v53  ;;  %971 = vmatpush3.bf16.msra.mxu0 (!%p385_p7), %v968_v57  ;;  %1008 = vmatpush3.bf16.msra.mxu1 (!%p385_p7), %v968_v57  ;;  %v984_v12 = vpack.c.bf16 (!%p385_p7), %v597_v11, %v596_v10  ;;  %v599_v14 = vld [vmem:[%s1457_s2 + $0x58] sm:$0xff] (!%p385_p7)  ;;  %v600_v16 = vld [vmem:[%s1457_s2 + $0x60] sm:$0xff] (!%p385_p7)  ;;  %v601_v17 = vld [vmem:[%s1457_s2 + $0x68] sm:$0xff] (!%p385_p7) }
  0x34   : > { %973 = vmatprep.subr.bf16.mxu0 (!%p385_p7), %v972_v60  ;;  %1001 = vmatprep.subr.bf16.mxu1 (!%p385_p7), %v972_v60  ;;  %v988_v15 = vpack.c.bf16 (!%p385_p7), %v599_v14, %v598_v13  ;;  %v992_v20 = vpack.c.bf16 (!%p385_p7), %v601_v17, %v600_v16  ;;  %v602_v23 = vld [vmem:[%s1457_s2 + $0x70] sm:$0xff] (!%p385_p7)  ;;  %v603_v24 = vld [vmem:[%s1457_s2 + $0x78] sm:$0xff] (!%p385_p7)  ;;  %v446_v31 = vld [vmem:[%s1299_s30] sm:$0xff] (!%p385_p7) }
  0x35   : > { %v431_v1 = vsub.f32 (!%p385_p7), %v426_v51, %v430_v63  ;;  %v432_v2 = vsub.f32 (!%p385_p7), %v427_v52, %v430_v63  ;;  %v433_v3 = vsub.f32 (!%p385_p7), %v428_v53, %v430_v63  ;;  %v996_v26 = vpack.c.bf16 (!%p385_p7), %v603_v24, %v602_v23  ;;  %v844_v32 = vld [vmem:[%s1299_s30 + $0x80] sm:$0xff] (!%p385_p7)  ;;  %v447_v34 = vld [vmem:[%s1299_s30 + $0x8] sm:$0xff] (!%p385_p7)  ;;  %v448_v52 = vld [vmem:[%s1299_s30 + $0x10] sm:$0xff] (!%p385_p7) }
  0x36   : > { %v454_v33 = vld [vmem:[%s1299_s30 + $0x40] sm:$0xff]  ;;  %v845_v37 = vld [vmem:[%s1299_s30 + $0x88] sm:$0xff]  ;;  %v846_v53 = vld [vmem:[%s1299_s30 + $0x90] sm:$0xff]  ;;  %s1464_s7 = smov (!%p418_p8, %s842_s7), 31 }
  0x37   : > { %v434_v6 = vmul.f32 1.442695, %v431_v1  ;;  %v436_v7 = vmul.f32 1.442695, %v432_v2  ;;  %v438_v8 = vmul.f32 1.442695, %v433_v3  ;;  %975 = vmatpush3.bf16.msra.mxu0 %v972_v60  ;;  %1009 = vmatpush3.bf16.msra.mxu1 %v972_v60 }
  0x38   : > { %977 = vmatprep.subr.bf16.mxu0 %v976_v0  ;;  %1002 = vmatprep.subr.bf16.mxu1 %v976_v0  ;;  %v860_v35 = vld [vmem:[%s1299_s30 + $0x100] sm:$0xff]  ;;  %v861_v40 = vld [vmem:[%s1299_s30 + $0x108] sm:$0xff]  ;;  %v862_v54 = vld [vmem:[%s1299_s30 + $0x110] sm:$0xff]  ;;  %s843_s8 = sshll.u32 %s1464_s7, 3 }
  0x39   : > { %1048 = vpow2.f32 %v434_v6  ;;  %v852_v36 = vld [vmem:[%s1299_s30 + $0xc0] sm:$0xff]  ;;  %v455_v41 = vld [vmem:[%s1299_s30 + $0x48] sm:$0xff]  ;;  %v456_v63 = vld [vmem:[%s1299_s30 + $0x50] sm:$0xff]  ;;  %s1411_s13 = scalar_lea.vmem %s1459_s4, %s843_s8 }
  0x3a   : > { %1050 = vpow2.f32 %v436_v7  ;;  %v868_v39 = vld [vmem:[%s1299_s30 + $0x140] sm:$0xff]  ;;  %v853_v46 = vld [vmem:[%s1299_s30 + $0xc8] sm:$0xff]  ;;  %v870_v1 = vld [vmem:[%s1299_s30 + $0x150] sm:$0xff] }
  0x3b   : > { %1052 = vpow2.f32 %v438_v8  ;;  %979 = vmatpush3.bf16.msra.mxu0 %v976_v0  ;;  %1010 = vmatpush3.bf16.msra.mxu1 %v976_v0  ;;  %v869_v47 = vld [vmem:[%s1299_s30 + $0x148] sm:$0xff]  ;;  %v854_v0 = vld [vmem:[%s1299_s30 + $0xd0] sm:$0xff]  ;;  %v449_v6 = vld [vmem:[%s1299_s30 + $0x18] sm:$0xff] }
  0x3c   : > { %981 = vmatprep.subr.bf16.mxu0 %v980_v9  ;;  %1003 = vmatprep.subr.bf16.mxu1 %v980_v9  ;;  %v847_v7 = vld [vmem:[%s1299_s30 + $0x98] sm:$0xff]  ;;  %v848_v24 = vld [vmem:[%s1299_s30 + $0xa0] sm:$0xff] }
  0x3d   : > { %v457_v13 = vld [vmem:[%s1299_s30 + $0x58] sm:$0xff] }
  0x3f   : > { %983 = vmatpush3.bf16.msra.mxu0 %v980_v9  ;;  %1011 = vmatpush3.bf16.msra.mxu1 %v980_v9 }
  0x40   : > { %985 = vmatprep.subr.bf16.mxu0 %v984_v12  ;;  %1004 = vmatprep.subr.bf16.mxu1 %v984_v12 }
  0x43   : > { %v1049_v18 = vpop.eup %1048  ;;  %987 = vmatpush3.bf16.msra.mxu0 %v984_v12  ;;  %1012 = vmatpush3.bf16.msra.mxu1 %v984_v12  ;;  %v863_v12 = vld [vmem:[%s1299_s30 + $0x118] sm:$0xff] }
  0x44   : > { %v1051_v19 = vpop.eup %1050  ;;  %989 = vmatprep.subr.bf16.mxu0 %v988_v15  ;;  %1005 = vmatprep.subr.bf16.mxu1 %v988_v15 }
  0x45   : > { %v1053_v21 = vpop.eup %1052  ;;  %v440_v22 = vadd.f32 %v1051_v19, %v1049_v18 }
  0x47   : > { %v441_v25 = vadd.f32 %v1053_v21, %v440_v22  ;;  %991 = vmatpush3.bf16.msra.mxu0 %v988_v15  ;;  %1013 = vmatpush3.bf16.msra.mxu1 %v988_v15 }
  0x48   : > { %993 = vmatprep.subr.bf16.mxu0 %v992_v20  ;;  %1006 = vmatprep.subr.bf16.mxu1 %v992_v20 }
  0x49   : > { %1054 = vrcp.f32 %v441_v25  ;;  %v864_v25 = vld [vmem:[%s1299_s30 + $0x120] sm:$0xff] }
  0x4b   : > { %995 = vmatpush3.bf16.msra.mxu0 %v992_v20  ;;  %1014 = vmatpush3.bf16.msra.mxu1 %v992_v20  ;;  %v450_v20 = vld [vmem:[%s1299_s30 + $0x20] sm:$0xff] }
  0x4c   : > { %997 = vmatprep.subr.bf16.mxu0 %v996_v26  ;;  %1007 = vmatprep.subr.bf16.mxu1 %v996_v26 }
  0x4f   : > { %999 = vmatpush3.bf16.msra.mxu0 %v996_v26  ;;  %1015 = vmatpush3.bf16.msra.mxu1 %v996_v26  ;;  %v458_v26 = vld [vmem:[%s1299_s30 + $0x60] sm:$0xff] }
  0x53   : > { %v1055_v27 = vpop.eup %1054 }
  0x54   : > { %v443_v28 = vmul.f32 %v1055_v27, %v1049_v18  ;;  %v444_v29 = vmul.f32 %v1055_v27, %v1051_v19  ;;  %v445_v30 = vmul.f32 %v1055_v27, %v1053_v21  ;;  %v855_v18 = vld [vmem:[%s1299_s30 + $0xd8] sm:$0xff] }
  0x55   : > { %v871_v19 = vld [vmem:[%s1299_s30 + $0x158] sm:$0xff] }
  0x56   : > { %1018 = vpush %v443_v28 }
  0x57   : > { %1020 = vpush %v444_v29 }
  0x58   : > { %1022 = vpush %v445_v30 }
  0x87   : > { %s1019_s15 = spop %1018 }
  0x88   : > { %v1308_v38 = vstv %s1019_s15  ;;  %s1021_s5 = spop %1020 }
  0x89   : > { %v1313_v42 = vstv %s1021_s5  ;;  %s1023_s6 = spop %1022  ;;  %v466_v43 = vmul.f32 %v1308_v38, %v446_v31  ;;  %v474_v44 = vmul.f32 %v1308_v38, %v454_v33  ;;  %v467_v45 = vmul.f32 %v1308_v38, %v447_v34  ;;  %v856_v31 = vld [vmem:[%s1299_s30 + $0xe0] sm:$0xff] }
  0x8a   : > { %v1320_v48 = vstv %s1023_s6  ;;  %v503_v49 = vmul.f32 %v844_v32, %v1313_v42  ;;  %v511_v50 = vmul.f32 %v852_v36, %v1313_v42  ;;  %v504_v51 = vmul.f32 %v845_v37, %v1313_v42  ;;  %v872_v32 = vld [vmem:[%s1299_s30 + $0x160] sm:$0xff]  ;;  %v451_v37 = vld [vmem:[%s1299_s30 + $0x28] sm:$0xff] }
  0x8b   : > { %v556_v55 = vmul.f32 %v860_v35, %v1320_v48  ;;  %v564_v56 = vmul.f32 %v868_v39, %v1320_v48  ;;  %v557_v57 = vmul.f32 %v861_v40, %v1320_v48  ;;  %v475_v58 = vmul.f32 %v1308_v38, %v455_v41  ;;  %v849_v39 = vld [vmem:[%s1299_s30 + $0xa8] sm:$0xff] }
  0x8c   : > { %v519_v59 = vadd.f32 %v503_v49, %v466_v43  ;;  %v527_v60 = vadd.f32 %v511_v50, %v474_v44  ;;  %v520_v61 = vadd.f32 %v504_v51, %v467_v45  ;;  %v512_v62 = vmul.f32 %v853_v46, %v1313_v42  ;;  %v865_v40 = vld [vmem:[%s1299_s30 + $0x128] sm:$0xff] }
  0x8d   : > { %v565_v2 = vmul.f32 %v869_v47, %v1320_v48  ;;  %v468_v3 = vmul.f32 %v1308_v38, %v448_v52  ;;  %v505_v4 = vmul.f32 %v846_v53, %v1313_v42  ;;  %v558_v5 = vmul.f32 %v862_v54, %v1320_v48  ;;  %v459_v46 = vld [vmem:[%s1299_s30 + $0x68] sm:$0xff]  ;;  %v452_v54 = vld [vmem:[%s1299_s30 + $0x30] sm:$0xff] }
  0x8e   : > { %v572_v8 = vadd.f32 %v556_v55, %v519_v59  ;;  %v580_v9 = vadd.f32 %v564_v56, %v527_v60  ;;  %v573_v10 = vadd.f32 %v557_v57, %v520_v61  ;;  %v528_v11 = vadd.f32 %v512_v62, %v475_v58  ;;  %v857_v47 = vld [vmem:[%s1299_s30 + $0xe8] sm:$0xff]  ;;  %v850_v59 = vld [vmem:[%s1299_s30 + $0xb0] sm:$0xff] }
  0x8f   : > { %v521_v14 = vadd.f32 %v505_v4, %v468_v3  ;;  %v476_v15 = vmul.f32 %v1308_v38, %v456_v63  ;;  %v513_v16 = vmul.f32 %v854_v0, %v1313_v42  ;;  %v566_v17 = vmul.f32 %v870_v1, %v1320_v48  ;;  %v873_v53 = vld [vmem:[%s1299_s30 + $0x168] sm:$0xff]  ;;  %v866_v60 = vld [vmem:[%s1299_s30 + $0x130] sm:$0xff] }
  0x90   : > { %944 = vmatprep.mubr.f32.mxu0 %v572_v8  ;;  %956 = vmatprep.mubr.f32.mxu1 %v580_v9  ;;  %v581_v21 = vadd.f32 %v565_v2, %v528_v11  ;;  %v469_v22 = vmul.f32 %v1308_v38, %v449_v6  ;;  %v506_v23 = vmul.f32 %v847_v7, %v1313_v42  ;;  %v460_v1 = vld [vmem:[%s1299_s30 + $0x70] sm:$0xff]  ;;  %v453_v8 = vld [vmem:[%s1299_s30 + $0x38] sm:$0xff] }
  0x91   : > { %945 = vmatmul.mubr.f32.vlgmr.msra.gmra.mrb[0].mxu0 %v573_v10  ;;  %v574_v27 = vadd.f32 %v558_v5, %v521_v14  ;;  %v529_v28 = vadd.f32 %v513_v16, %v476_v15  ;;  %v559_v29 = vmul.f32 %v863_v12, %v1320_v48  ;;  %v477_v30 = vmul.f32 %v1308_v38, %v457_v13  ;;  %v858_v2 = vld [vmem:[%s1299_s30 + $0xf0] sm:$0xff]  ;;  %v851_v9 = vld [vmem:[%s1299_s30 + $0xb8] sm:$0xff] }
  0x92   : > { %957 = vmatmul.mubr.f32.vlgmr.msra.gmra.mrb[0].mxu1 %v581_v21  ;;  %v522_v33 = vadd.f32 %v506_v23, %v469_v22  ;;  %v514_v34 = vmul.f32 %v855_v18, %v1313_v42  ;;  %v567_v35 = vmul.f32 %v871_v19, %v1320_v48  ;;  %v470_v36 = vmul.f32 %v1308_v38, %v450_v20  ;;  %v874_v3 = vld [vmem:[%s1299_s30 + $0x170] sm:$0xff]  ;;  %v867_v14 = vld [vmem:[%s1299_s30 + $0x138] sm:$0xff] }
  0x93   : > { %947 = vmatprep.mubr.f32.mxu0 %v574_v27  ;;  %v582_v41 = vadd.f32 %v566_v17, %v529_v28  ;;  %v507_v43 = vmul.f32 %v848_v24, %v1313_v42  ;;  %v560_v44 = vmul.f32 %v864_v25, %v1320_v48  ;;  %v478_v45 = vmul.f32 %v1308_v38, %v458_v26  ;;  %v461_v15 = vld [vmem:[%s1299_s30 + $0x78] sm:$0xff] }
  0x94   : > { %v575_v49 = vadd.f32 %v559_v29, %v522_v33  ;;  %v530_v50 = vadd.f32 %v514_v34, %v477_v30  ;;  %v515_v51 = vmul.f32 %v856_v31, %v1313_v42  ;;  %v568_v52 = vmul.f32 %v872_v32, %v1320_v48  ;;  %v859_v16 = vld [vmem:[%s1299_s30 + $0xf8] sm:$0xff] }
  0x95   : > { %959 = vmatprep.mubr.f32.mxu1 %v582_v41  ;;  %v523_v55 = vadd.f32 %v507_v43, %v470_v36  ;;  %v471_v56 = vmul.f32 %v1308_v38, %v451_v37  ;;  %v508_v57 = vmul.f32 %v849_v39, %v1313_v42  ;;  %v561_v58 = vmul.f32 %v865_v40, %v1320_v48  ;;  %v875_v21 = vld [vmem:[%s1299_s30 + $0x178] sm:$0xff] }
  0x96   : > { %948 = vmatmul.mubr.f32.gmra.mrb[2].mxu0 %v575_v49  ;;  %v583_v61 = vadd.f32 %v567_v35, %v530_v50  ;;  %v531_v62 = vadd.f32 %v515_v51, %v478_v45  ;;  %v479_v63 = vmul.f32 %v1308_v38, %v459_v46  ;;  %v516_v0 = vmul.f32 %v857_v47, %v1313_v42 }
  0x97   : > { %v576_v4 = vadd.f32 %v560_v44, %v523_v55  ;;  %v524_v5 = vadd.f32 %v508_v57, %v471_v56  ;;  %v569_v6 = vmul.f32 %v873_v53, %v1320_v48  ;;  %v472_v7 = vmul.f32 %v1308_v38, %v452_v54 }
  0x98   : > { %960 = vmatmul.mubr.f32.gmra.mrb[2].mxu1 %v583_v61  ;;  %v584_v10 = vadd.f32 %v568_v52, %v531_v62  ;;  %v532_v11 = vadd.f32 %v516_v0, %v479_v63  ;;  %v509_v12 = vmul.f32 %v850_v59, %v1313_v42  ;;  %v562_v13 = vmul.f32 %v866_v60, %v1320_v48 }
  0x99   : > { %950 = vmatprep.mubr.f32.mxu0 %v576_v4  ;;  %v577_v17 = vadd.f32 %v561_v58, %v524_v5  ;;  %v480_v18 = vmul.f32 %v1308_v38, %v460_v1  ;;  %v517_v19 = vmul.f32 %v858_v2, %v1313_v42  ;;  %v570_v20 = vmul.f32 %v874_v3, %v1320_v48 }
  0x9a   : > { %962 = vmatprep.mubr.f32.mxu1 %v584_v10  ;;  %v585_v22 = vadd.f32 %v569_v6, %v532_v11  ;;  %v525_v23 = vadd.f32 %v509_v12, %v472_v7  ;;  %v473_v24 = vmul.f32 %v1308_v38, %v453_v8  ;;  %v510_v25 = vmul.f32 %v851_v9, %v1313_v42 }
  0x9b   : > { %951 = vmatmul.mubr.f32.gmra.mrb[4].mxu0 %v577_v17  ;;  %v533_v26 = vadd.f32 %v517_v19, %v480_v18  ;;  %v563_v27 = vmul.f32 %v867_v14, %v1320_v48  ;;  %v481_v28 = vmul.f32 %v1308_v38, %v461_v15  ;;  %v518_v29 = vmul.f32 %v859_v16, %v1313_v42  ;;  %v876_v38 = vld [vmem:[%s1458_s3] ss:$0 sm:$0xff] }
  0x9c   : > { %963 = vmatmul.mubr.f32.gmra.mrb[4].mxu1 %v585_v22  ;;  %v578_v30 = vadd.f32 %v562_v13, %v525_v23  ;;  %v526_v31 = vadd.f32 %v510_v25, %v473_v24  ;;  %v571_v32 = vmul.f32 %v875_v21, %v1320_v48 }
  0x9d   : > { %v586_v33 = vadd.f32 %v570_v20, %v533_v26  ;;  %v534_v34 = vadd.f32 %v518_v29, %v481_v28 }
  0x9e   : > { %953 = vmatprep.mubr.f32.mxu0 %v578_v30  ;;  %v579_v35 = vadd.f32 %v563_v27, %v526_v31 }
  0x9f   : > { %965 = vmatprep.mubr.f32.mxu1 %v586_v33  ;;  %v587_v36 = vadd.f32 %v571_v32, %v534_v34 }
  0xa0   : > { %954 = vmatmul.mubr.f32.gmra.mrb[6].mxu0 %v579_v35 }
  0xa1   : > { %966 = vmatmul.mubr.f32.gmra.mrb[6].mxu1 %v587_v36 }
 0x164   : > { %v946_v42 = vpop.f32.mrb[0].mxu0 }
 0x165   : > { %v683_v48 = vadd.f32 %v946_v42, %v876_v38  ;;  %v958_v37 = vpop.f32.mrb[0].mxu1  ;;  %v677_v39 = vpop.f32.mrb[1].mxu0 }
 0x166   : > { %v723_v40 = vadd.f32 %v958_v37, %v876_v38  ;;  %v678_v41 = vadd.f32 %v876_v38, %v677_v39  ;;  %v717_v43 = vpop.f32.mrb[1].mxu1 }
 0x167   : > { %758 = vst.msk [vmem:[%s1411_s13 + $0x8] sm:$0xff] %vm756_vm0, %v683_v48  ;;  %v718_v44 = vadd.f32 %v876_v38, %v717_v43 }
 0x168   : > { %766 = vst.msk [vmem:[%s1411_s13 + $0x48] sm:$0xff] %vm756_vm0, %v723_v40  ;;  %757 = vst.msk [vmem:[%s1411_s13] sm:$0xff] %vm756_vm0, %v678_v41 }
 0x169   : > { %765 = vst.msk [vmem:[%s1411_s13 + $0x40] sm:$0xff] %vm756_vm0, %v718_v44  ;;  %v949_v45 = vpop.f32.mrb[2].mxu0 }
 0x16a   : > { %v693_v46 = vadd.f32 %v949_v45, %v876_v38  ;;  %v687_v47 = vpop.f32.mrb[3].mxu0 }
 0x16b   : > { %v961_v49 = vpop.f32.mrb[2].mxu1  ;;  %v688_v50 = vadd.f32 %v876_v38, %v687_v47 }
 0x16c   : > { %760 = vst.msk [vmem:[%s1411_s13 + $0x18] sm:$0xff] %vm756_vm0, %v693_v46  ;;  %v733_v51 = vadd.f32 %v961_v49, %v876_v38  ;;  %v727_v52 = vpop.f32.mrb[3].mxu1 }
 0x16d   : > { %759 = vst.msk [vmem:[%s1411_s13 + $0x10] sm:$0xff] %vm756_vm0, %v688_v50  ;;  %v728_v53 = vadd.f32 %v876_v38, %v727_v52 }
 0x16e   : > { %768 = vst.msk [vmem:[%s1411_s13 + $0x58] sm:$0xff] %vm756_vm0, %v733_v51  ;;  %v952_v54 = vpop.f32.mrb[4].mxu0 }
 0x16f   : > { %767 = vst.msk [vmem:[%s1411_s13 + $0x50] sm:$0xff] %vm756_vm0, %v728_v53  ;;  %v703_v55 = vadd.f32 %v952_v54, %v876_v38  ;;  %v964_v56 = vpop.f32.mrb[4].mxu1  ;;  %v697_v57 = vpop.f32.mrb[5].mxu0 }
 0x170   : > { %v743_v58 = vadd.f32 %v964_v56, %v876_v38  ;;  %v698_v59 = vadd.f32 %v876_v38, %v697_v57  ;;  %v737_v60 = vpop.f32.mrb[5].mxu1 }
 0x171   : > { %762 = vst.msk [vmem:[%s1411_s13 + $0x28] sm:$0xff] %vm756_vm0, %v703_v55  ;;  %v738_v61 = vadd.f32 %v876_v38, %v737_v60 }
 0x172   : > { %770 = vst.msk [vmem:[%s1411_s13 + $0x68] sm:$0xff] %vm756_vm0, %v743_v58  ;;  %761 = vst.msk [vmem:[%s1411_s13 + $0x20] sm:$0xff] %vm756_vm0, %v698_v59 }
 0x173   : > { %769 = vst.msk [vmem:[%s1411_s13 + $0x60] sm:$0xff] %vm756_vm0, %v738_v61  ;;  %v955_v62 = vpop.f32.mrb[6].mxu0 }
 0x174   : > { %v713_v63 = vadd.f32 %v955_v62, %v876_v38  ;;  %v967_v0 = vpop.f32.mrb[6].mxu1  ;;  %v707_v1 = vpop.f32.mrb[7].mxu0 }
 0x175   : > { %v753_v2 = vadd.f32 %v967_v0, %v876_v38  ;;  %v708_v3 = vadd.f32 %v876_v38, %v707_v1  ;;  %v747_v4 = vpop.f32.mrb[7].mxu1 }
 0x176   : > { %764 = vst.msk [vmem:[%s1411_s13 + $0x38] sm:$0xff] %vm756_vm0, %v713_v63  ;;  %v748_v5 = vadd.f32 %v876_v38, %v747_v4 }
 0x177   : > { %772 = vst.msk [vmem:[%s1411_s13 + $0x78] sm:$0xff] %vm756_vm0, %v753_v2  ;;  %763 = vst.msk [vmem:[%s1411_s13 + $0x30] sm:$0xff] %vm756_vm0, %v708_v3 }
 0x178   : > { %771 = vst.msk [vmem:[%s1411_s13 + $0x70] sm:$0xff] %vm756_vm0, %v748_v5 }
 0x179 PF: > { %p11_p9 = scmp.ge.s32.totalorder %s1122_s19, 4   ;;  %s1460_s15 = smov %s1074_s16 }
 0x17a   : > { %s1461_s16 = smov %s1131_s22  ;;  %s1462_s17 = smov %s1122_s19 }
 0x17b   :  { %13 = sbr.rel (!%p11_p9) target bundleno = 2 (0x2), region = 111 }

// kernel: han_forward.2
= control target key start
LH: loop header
LB: loop body
LE: loop exit
PB: predicated region body
PF: predicated region fallthrough
CT: control target
= control target key end

     0   :  { %s7584_s13 = smov 0   ;;  %s7586_s14 = smov 0   ;;  %s10580_s0 = inlined_call_operand.vmem [shape: bf16[256,64], index: 0, kind: input, shape index: {}]   ;;  %s10581_s1 = inlined_call_operand.vmem [shape: s8[3,256,256], index: 1, kind: input, shape index: {}]   ;;  %s10582_s2 = inlined_call_operand.vmem [shape: bf16[3,64,128], index: 2, kind: input, shape index: {}]   ;;  %s10583_s3 = inlined_call_operand.vmem [shape: f32[3,4,128], index: 3, kind: input, shape index: {}]   ;;  %s10584_s4 = inlined_call_operand.vmem [shape: f32[3,128,4], index: 4, kind: input, shape index: {}]   ;;  %s10585_s5 = inlined_call_operand.vmem [shape: f32[3,1,128], index: 5, kind: input, shape index: {}]   ;;  %s10586_s6 = inlined_call_operand.vmem [shape: f32[128,128], index: 6, kind: input, shape index: {}]   ;;  %s10587_s7 = inlined_call_operand.vmem [shape: f32[1,128], index: 7, kind: input, shape index: {}]   ;;  %s10588_s8 = inlined_call_operand.vmem [shape: f32[128,1], index: 8, kind: input, shape index: {}]   ;;  %s10589_s9 = inlined_call_operand.vmem [shape: f32[3,256,128], index: 9, kind: output, shape index: {0}]   ;;  %s10590_s10 = inlined_call_operand.vmem [shape: f32[3,8,128], index: 10, kind: output, shape index: {1}]  }
   0x1   :  { %10942 = sst [smem:[#allocation163_spill]] %s10587_s7  ;;  %s7588_s15 = smov 0  }
   0x2   :  { %10943 = sst [smem:[#allocation164_spill]] %s10588_s8  ;;  %s7590_s16 = smov 0  }
   0x3   :  { %s7592_s17 = smov 0  }
   0x4 LB: > { %10944 = sst [smem:[#allocation5_spill]] %s7512_s15  ;;  %s30_s18 = sadd.s32 1, %s7512_s15  ;;  %s7520_s17 = sphi %s7592_s17, %s21_s17   ;;  %s7516_s16 = sphi %s7590_s16, %s11602_s16   ;;  %s7512_s15 = sphi %s7588_s15, %s11601_s15   ;;  %s7508_s14 = sphi %s7586_s14, %s11600_s14   ;;  %s7504_s13 = sphi %s7584_s13, %s11599_s13  }
   0x5   : > { %10945 = sst [smem:[#allocation6_spill]] %s7516_s16  ;;  %s33_s19 = sadd.s32 1, %s7516_s16 }
   0x6   : > { %10946 = sst [smem:[#allocation7_spill]] %s7520_s17  ;;  %p31_p0 = scmp.ge.s32.totalorder %s30_s18, 2 }
   0x7   : > { %p5555_p1 = scmp.ge.s32.totalorder %s7520_s17, 1  ;;  %p374_p2 = scmp.lt.s32.totalorder %s7520_s17, 7 }
   0x8   : > { %s11604_s18 = smov (%p31_p0, %s30_s18), 0  ;;  %s11606_s19 = smov (!%p31_p0, %s33_s19), %s7516_s16 }
   0x9   : > { %10947 = sst [smem:[#allocation8_spill]] %s11604_s18  ;;  %p375_p3 = pnand %p5555_p1, %p374_p2 }
   0xa   : > { %p35_p4 = scmp.ge.s32.totalorder %s11606_s19, 3 }
   0xb   : > { %378 = sbr.rel (%p375_p3) target bundleno = 3310 (0xcee), region = 56 }
   0xc   : > { %s11608_s19 = smov (%p35_p4, %s11606_s19), 0 }
   0xd   : > { %10948 = sst [smem:[#allocation9_spill]] %s11608_s19 }
  0x12   : > { %s5556_s20 = sshll.u32 %s7504_s13, 2  ;;  %p443_p5 = scmp.lt.s32.totalorder %s7508_s14, 2 }
  0x13   : > { %p445_p6 = scmp.lt.s32.totalorder %s5556_s20, 7  ;;  %s5565_s21 = sshll.u32 %s7504_s13, 4 }
  0x14   : > { %s11610_s14 = smov (!%p443_p5, %s7508_s14), 2  ;;  %p473_p7 = scmp.lt.s32.totalorder %s5565_s21, 31 }
  0x15   : > { %s11612_s20 = smov (!%p445_p6, %s5556_s20), 7  ;;  %s5558_s22 = sshll.u32 %s11610_s14, 4 }
  0x16   : > { %s5757_s23 = sshll.u32 %s11610_s14, 5  ;;  %s5557_s24 = sshll.u32 %s11612_s20, 1 }
  0x17   : > { %s457_s27 = scalar_lea.vmem %s10582_s2, %s5757_s23  ;;  %s449_s28 = sadd.s32 %s5558_s22, %s5557_s24 }
  0x18   : > { %s5562_s29 = sshll.u32 %s11610_s14, 2  ;;  %s5559_s30 = sshll.u32 %s449_s28, 3 }
  0x19   : > { %s7629_s19 = scalar_lea.vmem %s10583_s3, %s5562_s29  ;;  %s7634_s15 = scalar_lea.vmem %s10581_s1, %s5559_s30 }
  0x1a   : > { %s5758_s17 = sshll.u32 %s11610_s14, 7  ;;  %s469_s24 = scalar_lea.vmem %s10585_s5, %s11610_s14 }
  0x1b   : > { %s7640_s8 = scalar_lea.vmem %s10584_s4, %s5758_s17  ;;  %s5568_s26 = sshll.u32 %s11610_s14, 3 }
  0x1c   : > { %s7650_s11 = scalar_lea.vmem %s10590_s10, %s5568_s26  ;;  %s11614_s21 = smov (!%p473_p7, %s5565_s21), 31 }
  0x1d   : > { %s476_s16 = sadd.s32 %s5757_s23, %s11614_s21  ;;  %p5569_p8 = scmp.ne.s32.totalorder %s7504_s13, 0 }
  0x1e   : > { %s5567_s18 = sshll.u32 %s476_s16, 3  ;;  %v6756_v0 = vld [vmem:[%s457_s27] sm:$0xff] (!%p5569_p8)   ;;  %v6757_v1 = vld [vmem:[%s457_s27 + $0x8] sm:$0xff] (!%p5569_p8)   ;;  %v6758_v2 = vld [vmem:[%s457_s27 + $0x10] sm:$0xff] (!%p5569_p8)   ;;  %vm633_vm0 = vcmask (!%p5569_p8), 523264  }
  0x1f   : > { %s7655_s7 = scalar_lea.vmem %s10589_s9, %s5567_s18  ;;  %488 = sbr.rel (%p5569_p8) target bundleno = 576 (0x240), region = 60  ;;  %6229 = vmatprep.subr.bf16.mxu0 (!%p5569_p8), %v6756_v0  ;;  %v6760_v3 = vld [vmem:[%s10580_s0] sm:$0xff] (!%p5569_p8)   ;;  %v6759_v4 = vld [vmem:[%s457_s27 + $0x18] sm:$0xff] (!%p5569_p8)   ;;  %v6761_v5 = vld [vmem:[%s10580_s0 + $0x8] sm:$0xff] (!%p5569_p8)  }
  0x20   : > { %6230 = vmatpush3.bf16.msra.mxu0 (!%p5569_p8), %v6756_v0  ;;  %6237 = vmatprep.mubr.msk.bf16.mxu0 (!%p5569_p8), %vm633_vm0, %v6760_v3  ;;  %v6762_v6 = vld [vmem:[%s10580_s0 + $0x10] sm:$0xff] (!%p5569_p8)   ;;  %v6763_v7 = vld [vmem:[%s10580_s0 + $0x18] sm:$0xff] (!%p5569_p8)   ;;  %v6764_v8 = vld [vmem:[%s10580_s0 + $0x20] sm:$0xff] (!%p5569_p8)  }
  0x21   : > { %6231 = vmatprep.subr.bf16.mxu0 (!%p5569_p8), %v6757_v1  ;;  %v6765_v9 = vld [vmem:[%s10580_s0 + $0x28] sm:$0xff] (!%p5569_p8)   ;;  %v6766_v10 = vld [vmem:[%s10580_s0 + $0x30] sm:$0xff] (!%p5569_p8)   ;;  %v6767_v11 = vld [vmem:[%s10580_s0 + $0x38] sm:$0xff] (!%p5569_p8)  }
  0x22   : > { %v6768_v12 = vld [vmem:[%s10580_s0 + $0x40] sm:$0xff] (!%p5569_p8)   ;;  %v6769_v13 = vld [vmem:[%s10580_s0 + $0x48] sm:$0xff] (!%p5569_p8)   ;;  %v6770_v14 = vld [vmem:[%s10580_s0 + $0x50] sm:$0xff] (!%p5569_p8)  }
  0x23   : > { %v6771_v15 = vld [vmem:[%s10580_s0 + $0x58] sm:$0xff] (!%p5569_p8)   ;;  %v6772_v16 = vld [vmem:[%s10580_s0 + $0x60] sm:$0xff] (!%p5569_p8)   ;;  %v6773_v17 = vld [vmem:[%s10580_s0 + $0x68] sm:$0xff] (!%p5569_p8)  }
  0x24   : > { %6232 = vmatpush3.bf16.msra.mxu0 (!%p5569_p8), %v6757_v1  ;;  %v6774_v18 = vld [vmem:[%s10580_s0 + $0x70] sm:$0xff] (!%p5569_p8)   ;;  %v6775_v19 = vld [vmem:[%s10580_s0 + $0x78] sm:$0xff] (!%p5569_p8)   ;;  %v7725_v20 = vld [vmem:[%s7629_s19] sm:$0xf] (!%p5569_p8) }
  0x25   : > { %6233 = vmatprep.subr.bf16.mxu0 (!%p5569_p8), %v6758_v2  ;;  %5811 = vmatprep.mubr.f32.mxu1 (!%p5569_p8), %v7725_v20 }
  0x28   : > { %6234 = vmatpush3.bf16.msra.mxu0 %v6758_v2 }
  0x29   : > { %6235 = vmatprep.subr.bf16.mxu0 %v6759_v4 }
  0x2c   : > { %6236 = vmatpush3.bf16.msra.mxu0 %v6759_v4 }
  0x2f   : > { %6238 = vmatmul.mubr.msk.bf16.vlgmr.msra.gmra.mrb[0].mxu0 %vm633_vm0, %v6761_v5 }
  0x30   : > { %6241 = vmatprep.mubr.msk.bf16.mxu0 %vm633_vm0, %v6762_v6 }
  0x37   : > { %6242 = vmatmul.mubr.msk.bf16.gmra.mrb[4].mxu0 %vm633_vm0, %v6763_v7 }
  0x38   : > { %6245 = vmatprep.mubr.msk.bf16.mxu0 %vm633_vm0, %v6764_v8 }
  0x3f   : > { %6246 = vmatmul.mubr.msk.bf16.gmra.mrb[8].mxu0 %vm633_vm0, %v6765_v9 }
  0x40   : > { %6249 = vmatprep.mubr.msk.bf16.mxu0 %vm633_vm0, %v6766_v10 }
  0x47   : > { %6250 = vmatmul.mubr.msk.bf16.gmra.mrb[12].mxu0 %vm633_vm0, %v6767_v11 }
  0x48   : > { %6253 = vmatprep.mubr.msk.bf16.mxu0 %vm633_vm0, %v6768_v12 }
  0x4f   : > { %6254 = vmatmul.mubr.msk.bf16.gmra.mrb[16].mxu0 %vm633_vm0, %v6769_v13 }
  0x50   : > { %6257 = vmatprep.mubr.msk.bf16.mxu0 %vm633_vm0, %v6770_v14 }
  0x57   : > { %6258 = vmatmul.mubr.msk.bf16.gmra.mrb[20].mxu0 %vm633_vm0, %v6771_v15 }
  0x58   : > { %6261 = vmatprep.mubr.msk.bf16.mxu0 %vm633_vm0, %v6772_v16 }
  0x5f   : > { %6262 = vmatmul.mubr.msk.bf16.gmra.mrb[24].mxu0 %vm633_vm0, %v6773_v17 }
  0x60   : > { %6265 = vmatprep.mubr.msk.bf16.mxu0 %vm633_vm0, %v6774_v18 }
  0x67   : > { %6266 = vmatmul.mubr.msk.bf16.gmra.mrb[28].mxu0 %vm633_vm0, %v6775_v19 }
 0x102   : > { %v7728_v21 = vpop.f32.mrb[0].mxu0 }
 0x103   : > { %845 = vst [vmem:[#allocation2 + $0x10] sm:$0xff] %v7728_v21  ;;  %v716_v22 = vpop.f32.mrb[1].mxu0 }
 0x104   : > { %843 = vst [vmem:[#allocation2] sm:$0xff] %v716_v22  ;;  %v6240_v23 = vpop.f32.mrb[2].mxu0 }
 0x105   : > { %846 = vst [vmem:[#allocation2 + $0x18] sm:$0xff] %v6240_v23  ;;  %v6443_v24 = vpack.c.bf16 %v6240_v23, %v7728_v21  ;;  %v719_v25 = vpop.f32.mrb[3].mxu0 }
 0x106   : > { %844 = vst [vmem:[#allocation2 + $0x8] sm:$0xff] %v719_v25  ;;  %v6439_v26 = vpack.c.bf16 %v719_v25, %v716_v22 }
 0x10a   : > { %v7732_v27 = vpop.f32.mrb[4].mxu0 }
 0x10b   : > { %849 = vst [vmem:[#allocation2 + $0x30] sm:$0xff] %v7732_v27  ;;  %v7735_v28 = vpop.f32.mrb[5].mxu0 }
 0x10c   : > { %847 = vst [vmem:[#allocation2 + $0x20] sm:$0xff] %v7735_v28  ;;  %v7738_v29 = vpop.f32.mrb[6].mxu0 }
 0x10d   : > { %850 = vst [vmem:[#allocation2 + $0x38] sm:$0xff] %v7738_v29  ;;  %v6451_v30 = vpack.c.bf16 %v7738_v29, %v7732_v27  ;;  %v735_v31 = vpop.f32.mrb[7].mxu0 }
 0x10e   : > { %848 = vst [vmem:[#allocation2 + $0x28] sm:$0xff] %v735_v31  ;;  %v6447_v32 = vpack.c.bf16 %v735_v31, %v7735_v28 }
 0x112   : > { %v7744_v33 = vpop.f32.mrb[8].mxu0 }
 0x113   : > { %853 = vst [vmem:[#allocation2 + $0x50] sm:$0xff] %v7744_v33  ;;  %v7747_v34 = vpop.f32.mrb[9].mxu0 }
 0x114   : > { %851 = vst [vmem:[#allocation2 + $0x40] sm:$0xff] %v7747_v34  ;;  %v7750_v35 = vpop.f32.mrb[10].mxu0 }
 0x115   : > { %854 = vst [vmem:[#allocation2 + $0x58] sm:$0xff] %v7750_v35  ;;  %v6459_v36 = vpack.c.bf16 %v7750_v35, %v7744_v33  ;;  %v751_v37 = vpop.f32.mrb[11].mxu0 }
 0x116   : > { %852 = vst [vmem:[#allocation2 + $0x48] sm:$0xff] %v751_v37  ;;  %v6455_v38 = vpack.c.bf16 %v751_v37, %v7747_v34 }
 0x11a   : > { %v7756_v39 = vpop.f32.mrb[12].mxu0 }
 0x11b   : > { %857 = vst [vmem:[#allocation2 + $0x70] sm:$0xff] %v7756_v39  ;;  %v764_v40 = vpop.f32.mrb[13].mxu0 }
 0x11c   : > { %855 = vst [vmem:[#allocation2 + $0x60] sm:$0xff] %v764_v40  ;;  %v6252_v41 = vpop.f32.mrb[14].mxu0 }
 0x11d   : > { %858 = vst [vmem:[#allocation2 + $0x78] sm:$0xff] %v6252_v41  ;;  %v6467_v42 = vpack.c.bf16 %v6252_v41, %v7756_v39  ;;  %v767_v43 = vpop.f32.mrb[15].mxu0 }
 0x11e   : > { %856 = vst [vmem:[#allocation2 + $0x68] sm:$0xff] %v767_v43  ;;  %v6463_v44 = vpack.c.bf16 %v767_v43, %v764_v40 }
 0x122   : > { %v6255_v45 = vpop.f32.mrb[16].mxu0 }
 0x123   : > { %861 = vst [vmem:[#allocation2 + $0x90] sm:$0xff] %v6255_v45  ;;  %v780_v46 = vpop.f32.mrb[17].mxu0 }
 0x124   : > { %859 = vst [vmem:[#allocation2 + $0x80] sm:$0xff] %v780_v46  ;;  %v6256_v47 = vpop.f32.mrb[18].mxu0 }
 0x125   : > { %862 = vst [vmem:[#allocation2 + $0x98] sm:$0xff] %v6256_v47  ;;  %v6441_v48 = vpack.c.bf16 %v6256_v47, %v6255_v45  ;;  %v783_v49 = vpop.f32.mrb[19].mxu0 }
 0x126   : > { %860 = vst [vmem:[#allocation2 + $0x88] sm:$0xff] %v783_v49  ;;  %v6437_v50 = vpack.c.bf16 %v783_v49, %v780_v46 }
 0x128   : > { %6438 = vmatprep.subr.bf16.mxu1 %v6437_v50 }
 0x129   : > { %6440 = vmatpush3.bf16.xpose.msra.mxu1 %v6439_v26 }
 0x12a   : > { %6442 = vmatprep.subr.bf16.mxu1 %v6441_v48  ;;  %v6259_v51 = vpop.f32.mrb[20].mxu0 }
 0x12b   : > { %865 = vst [vmem:[#allocation2 + $0xb0] sm:$0xff] %v6259_v51  ;;  %v796_v52 = vpop.f32.mrb[21].mxu0 }
 0x12c   : > { %863 = vst [vmem:[#allocation2 + $0xa0] sm:$0xff] %v796_v52  ;;  %v6260_v53 = vpop.f32.mrb[22].mxu0 }
 0x12d   : > { %866 = vst [vmem:[#allocation2 + $0xb8] sm:$0xff] %v6260_v53  ;;  %v6449_v54 = vpack.c.bf16 %v6260_v53, %v6259_v51  ;;  %v799_v55 = vpop.f32.mrb[23].mxu0 }
 0x12e   : > { %864 = vst [vmem:[#allocation2 + $0xa8] sm:$0xff] %v799_v55  ;;  %v6445_v56 = vpack.c.bf16 %v799_v55, %v796_v52 }
 0x131   : > { %6444 = vmatpush3.bf16.xpose.msra.mxu1 %v6443_v24 }
 0x132   : > { %6446 = vmatprep.subr.bf16.mxu1 %v6445_v56  ;;  %v6263_v57 = vpop.f32.mrb[24].mxu0 }
 0x133   : > { %869 = vst [vmem:[#allocation2 + $0xd0] sm:$0xff] %v6263_v57  ;;  %v812_v58 = vpop.f32.mrb[25].mxu0 }
 0x134   : > { %867 = vst [vmem:[#allocation2 + $0xc0] sm:$0xff] %v812_v58  ;;  %v6264_v59 = vpop.f32.mrb[26].mxu0 }
 0x135   : > { %870 = vst [vmem:[#allocation2 + $0xd8] sm:$0xff] %v6264_v59  ;;  %v6457_v60 = vpack.c.bf16 %v6264_v59, %v6263_v57  ;;  %v815_v61 = vpop.f32.mrb[27].mxu0 }
 0x136   : > { %868 = vst [vmem:[#allocation2 + $0xc8] sm:$0xff] %v815_v61  ;;  %v6453_v62 = vpack.c.bf16 %v815_v61, %v812_v58 }
 0x139   : > { %6448 = vmatpush3.bf16.xpose.msra.mxu1 %v6447_v32 }
 0x13a   : > { %6450 = vmatprep.subr.bf16.mxu1 %v6449_v54  ;;  %v6267_v63 = vpop.f32.mrb[28].mxu0 }
 0x13b   : > { %873 = vst [vmem:[#allocation2 + $0xf0] sm:$0xff] %v6267_v63  ;;  %v828_v0 = vpop.f32.mrb[29].mxu0 }
 0x13c   : > { %871 = vst [vmem:[#allocation2 + $0xe0] sm:$0xff] %v828_v0  ;;  %v6268_v1 = vpop.f32.mrb[30].mxu0 }
 0x13d   : > { %874 = vst [vmem:[#allocation2 + $0xf8] sm:$0xff] %v6268_v1  ;;  %v6465_v2 = vpack.c.bf16 %v6268_v1, %v6267_v63  ;;  %v831_v3 = vpop.f32.mrb[31].mxu0 }
 0x13e   : > { %872 = vst [vmem:[#allocation2 + $0xe8] sm:$0xff] %v831_v3  ;;  %v6461_v4 = vpack.c.bf16 %v831_v3, %v828_v0 }
 0x141   : > { %6452 = vmatpush3.bf16.xpose.msra.mxu1 %v6451_v30 }
 0x142   : > { %6454 = vmatprep.subr.bf16.mxu1 %v6453_v62 }
 0x149   : > { %6456 = vmatpush3.bf16.xpose.msra.mxu1 %v6455_v38 }
 0x14a   : > { %6458 = vmatprep.subr.bf16.mxu1 %v6457_v60 }
 0x151   : > { %6460 = vmatpush3.bf16.xpose.msra.mxu1 %v6459_v36 }
 0x152   : > { %6462 = vmatprep.subr.bf16.mxu1 %v6461_v4 }
 0x159   : > { %6464 = vmatpush3.bf16.xpose.msra.mxu1 %v6463_v44 }
 0x15a   : > { %6466 = vmatprep.subr.bf16.mxu1 %v6465_v2 }
 0x161   : > { %6468 = vmatpush3.bf16.xpose.msra.mxu1 %v6467_v42 }
 0x168   : > { %5812 = vmatmul.mubr.f32.vlgmr.msra.gmra.mrb[0].mxu1 %v7725_v20 }
 0x23b   : > { %v942_v5 = vpop.f32.mrb[0].mxu1 }
 0x23c   : > { %v944_v6 = vpop.f32.mrb[1].mxu1 }
 0x23d   : > { %v949_v7 = vcombine.low %v942_v5, %v944_v6 }
 0x23f   : > { %951 = vst [vmem:[#allocation3] sm:$0xff] %v949_v7 }
 0x240 PF: > { %v970_v8 = vld [vmem:[%s7640_s8] sm:$0xff]  ;;  %v971_v9 = vld [vmem:[%s7640_s8 + $0x8] sm:$0xff]  ;;  %v972_v10 = vld [vmem:[%s7640_s8 + $0x10] sm:$0xff]  ;;  %s5606_s19 = sshll.u32 %s7504_s13, 7  ;;  %v10595_v13 = vmov 0   ;;  %v7523_v52 = vmov 1   ;;  %v1317_v4 = vlaneseq }
 0x241   : > { %v6469_v11 = vpack.c.bf16 %v971_v9, %v970_v8  ;;  %v973_v12 = vld [vmem:[%s7640_s8 + $0x18] sm:$0xff]  ;;  %6776 = vset.pattern.permute.xlu1 %v10595_v13  ;;  %6779 = vset.pattern.permute.xlu0 %v10595_v13  ;;  %v974_v15 = vld [vmem:[%s7640_s8 + $0x20] sm:$0xff]  ;;  %v975_v16 = vld [vmem:[%s7640_s8 + $0x28] sm:$0xff]  ;;  %s7776_s25 = scalar_lea.vmem [#allocation2], %s5606_s19  ;;  %v7524_v56 = vmov 2   ;;  %v7525_v57 = vmov 3  }
 0x242   : > { %v6473_v14 = vpack.c.bf16 %v973_v12, %v972_v10  ;;  %v6477_v17 = vpack.c.bf16 %v975_v16, %v974_v15  ;;  %v954_v18 = vld [vmem:[%s7776_s25] sm:$0xff]  ;;  %v976_v19 = vld [vmem:[%s7640_s8 + $0x30] sm:$0xff]  ;;  %v977_v20 = vld [vmem:[%s7640_s8 + $0x38] sm:$0xff]  ;;  %v1318_v5 = vshrl.u32 %v1317_v4, 7  ;;  %s7528_s22 = smov 32   ;;  %s11596_s18 = sld [smem:[#allocation164_spill]] }
 0x243   : > { %6470 = vmatprep.subr.bf16.mxu0 %v6469_v11  ;;  %6301 = vmatprep.mubr.f32.mxu0 %v954_v18  ;;  %v6481_v21 = vpack.c.bf16 %v977_v20, %v976_v19  ;;  %v978_v22 = vld [vmem:[%s7640_s8 + $0x40] sm:$0xff]  ;;  %v979_v23 = vld [vmem:[%s7640_s8 + $0x48] sm:$0xff]  ;;  %v980_v25 = vld [vmem:[%s7640_s8 + $0x50] sm:$0xff] }
 0x244   : > { %6472 = vmatpush3.bf16.msra.mxu0 %v6469_v11  ;;  %v6485_v24 = vpack.c.bf16 %v979_v23, %v978_v22  ;;  %v981_v26 = vld [vmem:[%s7640_s8 + $0x58] sm:$0xff]  ;;  %v982_v28 = vld [vmem:[%s7640_s8 + $0x60] sm:$0xff]  ;;  %v983_v29 = vld [vmem:[%s7640_s8 + $0x68] sm:$0xff]  ;;  %v7870_v8 = vsub.s32 0, %v1318_v5  ;;  %v7872_v9 = vsub.s32 1, %v1318_v5 }
 0x245   : > { %6474 = vmatprep.subr.bf16.mxu0 %v6473_v14  ;;  %v6489_v27 = vpack.c.bf16 %v981_v26, %v980_v25  ;;  %v6493_v30 = vpack.c.bf16 %v983_v29, %v982_v28  ;;  %v984_v31 = vld [vmem:[%s7640_s8 + $0x70] sm:$0xff]  ;;  %v985_v32 = vld [vmem:[%s7640_s8 + $0x78] sm:$0xff]  ;;  %v955_v34 = vld [vmem:[%s7776_s25 + $0x8] sm:$0xff]  ;;  %s7526_s8 = smov 96  }
 0x246   : > { %v6497_v33 = vpack.c.bf16 %v985_v32, %v984_v31  ;;  %v956_v35 = vld [vmem:[%s7776_s25 + $0x10] sm:$0xff]  ;;  %v957_v36 = vld [vmem:[%s7776_s25 + $0x18] sm:$0xff]  ;;  %v958_v37 = vld [vmem:[%s7776_s25 + $0x20] sm:$0xff] }
 0x247   : > { %v959_v38 = vld [vmem:[%s7776_s25 + $0x28] sm:$0xff]  ;;  %v960_v39 = vld [vmem:[%s7776_s25 + $0x30] sm:$0xff]  ;;  %v961_v40 = vld [vmem:[%s7776_s25 + $0x38] sm:$0xff] }
 0x248   : > { %6476 = vmatpush3.bf16.msra.mxu0 %v6473_v14  ;;  %v962_v41 = vld [vmem:[%s7776_s25 + $0x40] sm:$0xff]  ;;  %v963_v42 = vld [vmem:[%s7776_s25 + $0x48] sm:$0xff]  ;;  %v964_v43 = vld [vmem:[%s7776_s25 + $0x50] sm:$0xff] }
 0x249   : > { %6478 = vmatprep.subr.bf16.mxu0 %v6477_v17  ;;  %v965_v44 = vld [vmem:[%s7776_s25 + $0x58] sm:$0xff]  ;;  %v966_v45 = vld [vmem:[%s7776_s25 + $0x60] sm:$0xff]  ;;  %v967_v46 = vld [vmem:[%s7776_s25 + $0x68] sm:$0xff] }
 0x24a   : > { %v968_v47 = vld [vmem:[%s7776_s25 + $0x70] sm:$0xff]  ;;  %v969_v48 = vld [vmem:[%s7776_s25 + $0x78] sm:$0xff]  ;;  %v7865_v6 = vld [vmem:[%s7634_s15] sm:$0xff] }
 0x24b   : > { %v7868_v7 = vld [vmem:[%s7634_s15 + $0x8] sm:$0xff]  ;;  %v1235_v10 = vld [vmem:[#allocation3] ss:$4 sm:$0x3]  ;;  %v1141_v11 = vunpack.c.1.s8 %v7865_v6  ;;  %v1139_v20 = vunpack.c.0.s8 %v7865_v6 }
 0x24c   : > { %6480 = vmatpush3.bf16.msra.mxu0 %v6477_v17  ;;  %v1142_v12 = vunpack.c.1.s8 %v7868_v7  ;;  %v7877_v14 = vrot.slane %v1235_v10, %v7870_v8  ;;  %v7880_v15 = vrot.slane %v1235_v10, %v7872_v9  ;;  %v2002_v16 = vld [vmem:[#allocation3 + $0x1] ss:$4 sm:$0x3]  ;;  %v1140_v25 = vunpack.c.0.s8 %v7868_v7 }
 0x24d   : > { %6482 = vmatprep.subr.bf16.mxu0 %v6481_v21  ;;  %v7882_v17 = vcvt.s32.f32 %v1141_v11 }
 0x24e   : > { %v7884_v18 = vcvt.s32.f32 %v1142_v12 }
 0x24f   : > { %vm1205_vm1 = vcmp.gt.f32.partialorder %v7882_v17, 0.0 }
 0x250   : > { %6484 = vmatpush3.bf16.msra.mxu0 %v6481_v21  ;;  %vm1206_vm2 = vcmp.gt.f32.partialorder %v7884_v18, 0.0 }
 0x251   : > { %6486 = vmatprep.subr.bf16.mxu0 %v6485_v24 }
 0x254   : > { %6488 = vmatpush3.bf16.msra.mxu0 %v6485_v24  ;;  %v7890_v24 = vrot.slane %v2002_v16, %v7870_v8 }
 0x255   : > { %6490 = vmatprep.subr.bf16.mxu0 %v6489_v27 }
 0x258   : > { %6492 = vmatpush3.bf16.msra.mxu0 %v6489_v27  ;;  %v7895_v27 = vrot.slane %v2002_v16, %v7872_v9 }
 0x259   : > { %6494 = vmatprep.subr.bf16.mxu0 %v6493_v30 }
 0x25c   : > { %6496 = vmatpush3.bf16.msra.mxu0 %v6493_v30  ;;  %v7899_v30 = vcvt.s32.f32 %v1139_v20  ;;  %v1146_v20 = vunpack.c.3.s8 %v7868_v7 }
 0x25d   : > { %6498 = vmatprep.subr.bf16.mxu0 %v6497_v33 }
 0x25e   : > { %vm1203_vm9 = vcmp.gt.f32.partialorder %v7899_v30, 0.0 }
 0x260   : > { %6500 = vmatpush3.bf16.msra.mxu0 %v6497_v33 }
 0x263   : > { %6302 = vmatmul.mubr.f32.vlgmr.msra.gmra.mrb[0].mxu0 %v955_v34 }
 0x264   : > { %6304 = vmatprep.mubr.f32.mxu0 %v956_v35  ;;  %v7902_v35 = vcvt.s32.f32 %v1140_v25 }
 0x266   : > { %vm1204_vm12 = vcmp.gt.f32.partialorder %v7902_v35, 0.0 }
 0x267   : > { %6305 = vmatmul.mubr.f32.gmra.mrb[2].mxu0 %v957_v36 }
 0x268   : > { %6307 = vmatprep.mubr.f32.mxu0 %v958_v37 }
 0x26b   : > { %6308 = vmatmul.mubr.f32.gmra.mrb[4].mxu0 %v959_v38 }
 0x26c   : > { %6310 = vmatprep.mubr.f32.mxu0 %v960_v39 }
 0x26f   : > { %6311 = vmatmul.mubr.f32.gmra.mrb[6].mxu0 %v961_v40 }
 0x270   : > { %6313 = vmatprep.mubr.f32.mxu0 %v962_v41 }
 0x273   : > { %6314 = vmatmul.mubr.f32.gmra.mrb[8].mxu0 %v963_v42 }
 0x274   : > { %6316 = vmatprep.mubr.f32.mxu0 %v964_v43 }
 0x277   : > { %6317 = vmatmul.mubr.f32.gmra.mrb[10].mxu0 %v965_v44 }
 0x278   : > { %6319 = vmatprep.mubr.f32.mxu0 %v966_v45 }
 0x27b   : > { %6320 = vmatmul.mubr.f32.gmra.mrb[12].mxu0 %v967_v46 }
 0x27c   : > { %6322 = vmatprep.mubr.f32.mxu0 %v968_v47 }
 0x27f   : > { %6323 = vmatmul.mubr.f32.gmra.mrb[14].mxu0 %v969_v48 }
 0x336   : > { %v7804_v49 = vpop.f32.mrb[0].mxu0 }
 0x337   : > { %1243 = vperm.xlu1 %6776, %v7804_v49   ;;  %v1052_v50 = vpop.f32.mrb[1].mxu0 }
 0x338   : > { %1238 = vperm.xlu0 %6779, %v1052_v50  }
 0x33a   : > { %v6306_v51 = vpop.f32.mrb[2].mxu0 }
 0x33b   : > { %6777 = vset.pattern.permute.xlu1 %v7523_v52  ;;  %v7807_v53 = vpop.f32.mrb[3].mxu0 }
 0x33c   : > { %2008 = vperm.xlu1 %6777, %v7804_v49   ;;  %6780 = vset.pattern.permute.xlu0 %v7523_v52 }
 0x33d   : > { %2004 = vperm.xlu0 %6780, %v1052_v50  }
 0x33e   : > { %v7810_v54 = vpop.f32.mrb[4].mxu0 }
 0x33f   : > { %v7812_v55 = vpop.f32.mrb[5].mxu0 }
 0x340   : > { %6778 = vset.pattern.permute.xlu1 %v7524_v56 }
 0x341   : > { %2951 = vperm.xlu1 %6778, %v7804_v49   ;;  %6781 = vset.pattern.permute.xlu0 %v7525_v57 }
 0x342   : > { %3890 = vperm.xlu0 %6781, %v1052_v50   ;;  %v7815_v58 = vpop.f32.mrb[6].mxu0 }
 0x343   : > { %v7817_v59 = vpop.f32.mrb[7].mxu0 }
 0x345   : > { %2947 = vperm.xlu1 %6778, %v1052_v50  }
 0x346   : > { %6783 = vset.pattern.permute.xlu0 %v7523_v52  ;;  %v7819_v60 = vpop.f32.mrb[8].mxu0 }
 0x347   : > { %2016 = vperm.xlu0 %6783, %v6306_v51   ;;  %v7821_v61 = vpop.f32.mrb[9].mxu0 }
 0x349   : > { %6782 = vset.pattern.permute.xlu1 %v10595_v13 }
 0x34a   : > { %1253 = vperm.xlu1 %6782, %v6306_v51   ;;  %v7824_v62 = vpop.f32.mrb[10].mxu0 }
 0x34b   : > { %6785 = vset.pattern.permute.xlu0 %v7525_v57  ;;  %v7826_v63 = vpop.f32.mrb[11].mxu0 }
 0x34c   : > { %3902 = vperm.xlu0 %6785, %v6306_v51  }
 0x34e   : > { %6784 = vset.pattern.permute.xlu1 %v7524_v56  ;;  %v7828_v0 = vpop.f32.mrb[12].mxu0 }
 0x34f   : > { %2959 = vperm.xlu1 %6784, %v6306_v51   ;;  %v7830_v1 = vpop.f32.mrb[13].mxu0 }
 0x350   : > { %6787 = vset.pattern.permute.xlu0 %v7523_v52 }
 0x351   : > { %2012 = vperm.xlu0 %6787, %v7807_v53  }
 0x352   : > { %v7833_v2 = vpop.f32.mrb[14].mxu0 }
 0x353   : > { %6786 = vset.pattern.permute.xlu1 %v10595_v13  ;;  %v7836_v3 = vpop.f32.mrb[15].mxu0 }
 0x354   : > { %1248 = vperm.xlu1 %6786, %v7807_v53  }
 0x355   : > { %6788 = vset.pattern.permute.xlu0 %v7525_v57 }
 0x356   : > { %3898 = vperm.xlu0 %6788, %v7807_v53  }
 0x358   : > { %1263 = vperm.xlu1 %6786, %v7810_v54  }
 0x35a   : > { %6789 = vset.pattern.permute.xlu0 %v7523_v52 }
 0x35b   : > { %2024 = vperm.xlu0 %6789, %v7810_v54  }
 0x35c   : > { %1258 = vperm.xlu1 %6786, %v7812_v55  }
 0x35f   : > { %2020 = vperm.xlu0 %6789, %v7812_v55  }
 0x360   : > { %1273 = vperm.xlu1 %6786, %v7815_v58  }
 0x363   : > { %2032 = vperm.xlu0 %6789, %v7815_v58  }
 0x364   : > { %1268 = vperm.xlu1 %6786, %v7817_v59  }
 0x367   : > { %2028 = vperm.xlu0 %6789, %v7817_v59  }
 0x368   : > { %1283 = vperm.xlu1 %6786, %v7819_v60  }
 0x36b   : > { %2040 = vperm.xlu0 %6789, %v7819_v60  }
 0x36c   : > { %1278 = vperm.xlu1 %6786, %v7821_v61  }
 0x36f   : > { %2036 = vperm.xlu0 %6789, %v7821_v61  }
 0x370   : > { %1293 = vperm.xlu1 %6786, %v7824_v62  }
 0x373   : > { %2048 = vperm.xlu0 %6789, %v7824_v62  }
 0x374   : > { %1288 = vperm.xlu1 %6786, %v7826_v63  }
 0x377   : > { %2044 = vperm.xlu0 %6789, %v7826_v63  }
 0x378   : > { %1303 = vperm.xlu1 %6786, %v7828_v0  }
 0x37b   : > { %2056 = vperm.xlu0 %6789, %v7828_v0  }
 0x37c   : > { %1298 = vperm.xlu1 %6786, %v7830_v1  }
 0x37f   : > { %2052 = vperm.xlu0 %6789, %v7830_v1  }
 0x380   : > { %1313 = vperm.xlu1 %6786, %v7833_v2  }
 0x383   : > { %2064 = vperm.xlu0 %6789, %v7833_v2  }
 0x384   : > { %1308 = vperm.xlu1 %6786, %v7836_v3  }
 0x387   : > { %2060 = vperm.xlu0 %6789, %v7836_v3  }
 0x388   : > { %6791 = vset.pattern.permute.xlu1 %v7525_v57 }
 0x38b   : > { %6790 = vset.pattern.permute.xlu0 %v7524_v56 }
 0x3b6   : > { %v1244_v19 = vpop.permute.xlu1 %1243 }
 0x3b7   : > { %v1329_v21 = vadd.f32 %v7877_v14, %v1244_v19  ;;  %v1330_v22 = vadd.f32 %v7880_v15, %v1244_v19  ;;  %v1239_v23 = vpop.permute.xlu0 %1238  ;;  %v1145_v19 = vunpack.c.3.s8 %v7865_v6 }
 0x3b8   : > { %v1327_v26 = vadd.f32 %v7877_v14, %v1239_v23  ;;  %v1328_v31 = vadd.f32 %v7880_v15, %v1239_v23 }
 0x3b9   : > { %vm1361_vm3 = vcmp.gt.f32.partialorder %v1329_v21, 0.0  ;;  %vm1362_vm4 = vcmp.gt.f32.partialorder %v1330_v22, 0.0  ;;  %v1393_v28 = vmul.f32 0.2, %v1329_v21  ;;  %v1394_v29 = vmul.f32 0.2, %v1330_v22 }
 0x3ba   : > { %v1391_v44 = vmul.f32 0.2, %v1327_v26  ;;  %vm1359_vm8 = vcmp.gt.f32.partialorder %v1327_v26, 0.0  ;;  %v1392_v48 = vmul.f32 0.2, %v1328_v31  ;;  %vm1360_vm10 = vcmp.gt.f32.partialorder %v1328_v31, 0.0 }
 0x3bb   : > { %v2009_v32 = vpop.permute.xlu1 %2008  ;;  %v1425_v33 = vsel %vm1361_vm3, %v1329_v21, %v1393_v28  ;;  %v1426_v34 = vsel %vm1362_vm4, %v1330_v22, %v1394_v29  ;;  %v1143_v22 = vunpack.c.2.s8 %v7865_v6  ;;  %v1144_v28 = vunpack.c.2.s8 %v7868_v7  ;;  %v7957_v6 = vld [vmem:[%s7634_s15 + $0x10] sm:$0xff] }
 0x3bc   : > { %v2080_v36 = vadd.f32 %v7890_v24, %v2009_v32  ;;  %v2081_v37 = vadd.f32 %v7895_v27, %v2009_v32  ;;  %v2005_v38 = vpop.permute.xlu0 %2004  ;;  %v7908_v39 = vsel %vm1205_vm1, %v1425_v33, -1e+09  ;;  %v7912_v40 = vsel %vm1206_vm2, %v1426_v34, -1e+09 }
 0x3bd   : > { %10949 = vst [vmem:[#allocation10_spill] sm:$0xff] %v7908_v39  ;;  %10950 = vst [vmem:[#allocation11_spill] sm:$0xff] %v7912_v40  ;;  %v2078_v41 = vadd.f32 %v7890_v24, %v2005_v38  ;;  %v2079_v42 = vadd.f32 %v7895_v27, %v2005_v38  ;;  %v1490_v43 = vmax.f32 %v7908_v39, %v7912_v40  ;;  %v7959_v33 = vcvt.s32.f32 %v1145_v19 }
 0x3be   : > { %vm2112_vm5 = vcmp.gt.f32.partialorder %v2080_v36, 0.0  ;;  %vm2113_vm6 = vcmp.gt.f32.partialorder %v2081_v37, 0.0  ;;  %v2144_v45 = vmul.f32 0.2, %v2080_v36  ;;  %v2145_v46 = vmul.f32 0.2, %v2081_v37 }
 0x3bf   : > { %1491 = vmax.xlane.f32.xlu0 %v1490_v43  ;;  %vm2110_vm7 = vcmp.gt.f32.partialorder %v2078_v41, 0.0  ;;  %v2142_v47 = vmul.f32 0.2, %v2078_v41  ;;  %v2143_v5 = vmul.f32 0.2, %v2079_v42  ;;  %vm2111_vm11 = vcmp.gt.f32.partialorder %v2079_v42, 0.0 }
 0x3c0   : > { %v7918_v50 = vpop.permute.xlu1 %2951  ;;  %v2176_v51 = vsel %vm2112_vm5, %v2080_v36, %v2144_v45  ;;  %v2177_v52 = vsel %vm2113_vm6, %v2081_v37, %v2145_v46  ;;  %v1423_v12 = vsel %vm1359_vm8, %v1327_v26, %v1391_v44  ;;  %v1424_v16 = vsel %vm1360_vm10, %v1328_v31, %v1392_v48  ;;  %10957 = vst [vmem:[#allocation18_spill] sm:$0xff] %v7959_v33 }
 0x3c1   : > { %v7921_v56 = vpop.permute.xlu0 %3890  ;;  %v7925_v57 = vsel %vm1205_vm1, %v2176_v51, -1e+09  ;;  %v7929_v4 = vsel %vm1206_vm2, %v2177_v52, -1e+09  ;;  %v2174_v11 = vsel %vm2110_vm7, %v2078_v41, %v2142_v47  ;;  %v2175_v23 = vsel %vm2111_vm11, %v2079_v42, %v2143_v5  ;;  %v7970_v41 = vld [vmem:[%s7634_s15 + $0x18] sm:$0xff] }
 0x3c2   : > { %10951 = vst [vmem:[#allocation12_spill] sm:$0xff] %v7925_v57  ;;  %10952 = vst [vmem:[#allocation13_spill] sm:$0xff] %v7929_v4  ;;  %v2241_v10 = vmax.f32 %v7925_v57, %v7929_v4  ;;  %v7941_v25 = vsel %vm1203_vm9, %v2174_v11, -1e+09  ;;  %v7945_v26 = vsel %vm1203_vm9, %v1423_v12, -1e+09  ;;  %v7961_v34 = vcvt.s32.f32 %v1146_v20 }
 0x3c3   : > { %10953 = vst [vmem:[#allocation14_spill] sm:$0xff] %v7941_v25  ;;  %10954 = vst [vmem:[#allocation15_spill] sm:$0xff] %v7945_v26  ;;  %v7950_v29 = vsel %vm1204_vm12, %v2175_v23, -1e+09  ;;  %v7954_v32 = vsel %vm1204_vm12, %v1424_v16, -1e+09  ;;  %v7972_v43 = vcvt.s32.f32 %v1143_v22  ;;  %v7974_v44 = vcvt.s32.f32 %v1144_v28 }
 0x3c4   : > { %v7936_v21 = vpop.permute.xlu1 %2947  ;;  %2242 = vmax.xlane.f32.xlu1 %v2241_v10  ;;  %10955 = vst [vmem:[#allocation16_spill] sm:$0xff] %v7950_v29  ;;  %10956 = vst [vmem:[#allocation17_spill] sm:$0xff] %v7954_v32  ;;  %v2238_v36 = vmax.f32 %v7941_v25, %v7950_v29  ;;  %v1487_v38 = vmax.f32 %v7945_v26, %v7954_v32  ;;  %v1149_v45 = vunpack.c.1.s8 %v7957_v6  ;;  %v1150_v5 = vunpack.c.1.s8 %v7970_v41 }
 0x3c5   : > { %10958 = vst [vmem:[#allocation19_spill] sm:$0xff] %v7961_v34  ;;  %10959 = vst [vmem:[#allocation20_spill] sm:$0xff] %v7972_v43  ;;  %vm10623_vm15 = vcmp.gt.f32.partialorder %v7959_v33, 0.0  ;;  %vm10619_vm0 = vcmp.gt.f32.partialorder %v7961_v34, 0.0  ;;  %vm1207_vm5 = vcmp.gt.f32.partialorder %v7972_v43, 0.0  ;;  %vm10654_vm6 = vcmp.gt.f32.partialorder %v7974_v44, 0.0 }
 0x3c6   : > { %v2017_v31 = vpop.permute.xlu0 %2016  ;;  %10960 = vst [vmem:[#allocation21_spill] sm:$0xff] %v7974_v44  ;;  %2239 = vmax.xlane.f32.xlu0 %v2238_v36  ;;  %v7988_v20 = vcvt.s32.f32 %v1149_v45  ;;  %v1147_v22 = vunpack.c.0.s8 %v7957_v6  ;;  %v1148_v36 = vunpack.c.0.s8 %v7970_v41  ;;  %v1153_v45 = vunpack.c.3.s8 %v7957_v6 }
 0x3c7   : > { %v2084_v7 = vadd.f32 %v7890_v24, %v2017_v31  ;;  %v2085_v37 = vadd.f32 %v7895_v27, %v2017_v31  ;;  %v7999_v31 = vcvt.s32.f32 %v1150_v5 }
 0x3c8   : > { %1488 = vmax.xlane.f32.xlu1 %v1487_v38  ;;  %10962 = vst [vmem:[#allocation23_spill] sm:$0xff] %v7988_v20  ;;  %vm10631_vm10 = vcmp.gt.f32.partialorder %v7988_v20, 0.0  ;;  %v8037_v4 = vcvt.s32.f32 %v1148_v36  ;;  %v8039_v57 = vcvt.s32.f32 %v1153_v45 }
 0x3c9   : > { %v1254_v42 = vpop.permute.xlu1 %1253  ;;  %vm2116_vm13 = vcmp.gt.f32.partialorder %v2084_v7, 0.0  ;;  %vm2117_vm14 = vcmp.gt.f32.partialorder %v2085_v37, 0.0  ;;  %v2148_v51 = vmul.f32 0.2, %v2084_v7  ;;  %v2149_v52 = vmul.f32 0.2, %v2085_v37 }
 0x3ca   : > { %v1333_v46 = vadd.f32 %v7877_v14, %v1254_v42  ;;  %v1334_v47 = vadd.f32 %v7880_v15, %v1254_v42  ;;  %10965 = vst [vmem:[#allocation26_spill] sm:$0xff] %v7999_v31  ;;  %vm10630_vm11 = vcmp.gt.f32.partialorder %v7999_v31, 0.0  ;;  %10970 = vst [vmem:[#allocation31_spill] sm:$0xff] %v8037_v4 }
 0x3cb   : > { %v7979_v48 = vpop.permute.xlu0 %3902  ;;  %v2180_v10 = vsel %vm2116_vm13, %v2084_v7, %v2148_v51  ;;  %v2181_v11 = vsel %vm2117_vm14, %v2085_v37, %v2149_v52  ;;  %10971 = vst [vmem:[#allocation32_spill] sm:$0xff] %v8039_v57 }
 0x3cc   : > { %vm1365_vm3 = vcmp.gt.f32.partialorder %v1333_v46, 0.0  ;;  %vm1366_vm4 = vcmp.gt.f32.partialorder %v1334_v47, 0.0  ;;  %v1397_v12 = vmul.f32 0.2, %v1333_v46  ;;  %v1398_v16 = vmul.f32 0.2, %v1334_v47 }
 0x3cd   : > { %v7993_v23 = vsel %vm10623_vm15, %v2180_v10, -1e+09  ;;  %v7997_v28 = vsel %vm10619_vm0, %v2181_v11, -1e+09  ;;  %v8018_v11 = vld [vmem:[%s7634_s15 + $0x20] sm:$0xff] }
 0x3ce   : > { %v7984_v19 = vpop.permute.xlu1 %2959  ;;  %10963 = vst [vmem:[#allocation24_spill] sm:$0xff] %v7993_v23  ;;  %10964 = vst [vmem:[#allocation25_spill] sm:$0xff] %v7997_v28  ;;  %v2247_v7 = vmax.f32 %v7993_v23, %v7997_v28  ;;  %v1429_v38 = vsel %vm1365_vm3, %v1333_v46, %v1397_v12  ;;  %v1430_v42 = vsel %vm1366_vm4, %v1334_v47, %v1398_v16  ;;  %v8022_v47 = vcvt.s32.f32 %v1147_v22 }
 0x3cf   : > { %10961 = vst [vmem:[#allocation22_spill] sm:$0xff] %v7984_v19  ;;  %v8011_v5 = vsel %vm10623_vm15, %v1429_v38, -1e+09  ;;  %v8015_v10 = vsel %vm10619_vm0, %v1430_v42, -1e+09  ;;  %v1154_v12 = vunpack.c.3.s8 %v7970_v41  ;;  %v1151_v16 = vunpack.c.2.s8 %v7957_v6 }
 0x3d0   : > { %v2013_v37 = vpop.permute.xlu0 %2012  ;;  %10966 = vst [vmem:[#allocation27_spill] sm:$0xff] %v8011_v5  ;;  %10967 = vst [vmem:[#allocation28_spill] sm:$0xff] %v8015_v10  ;;  %2248 = vmax.xlane.f32.xlu1 %v2247_v7  ;;  %v1496_v46 = vmax.f32 %v8011_v5, %v8015_v10  ;;  %v1152_v23 = vunpack.c.2.s8 %v7970_v41  ;;  %v1157_v22 = vunpack.c.1.s8 %v8018_v11  ;;  %vm10641_vm3 = vcmp.gt.f32.partialorder %v8022_v47, 0.0 }
 0x3d1   : > { %v2082_v51 = vadd.f32 %v7890_v24, %v2013_v37  ;;  %v2083_v52 = vadd.f32 %v7895_v27, %v2013_v37  ;;  %10968 = vst [vmem:[#allocation29_spill] sm:$0xff] %v8022_v47  ;;  %v8027_v37 = vld [vmem:[%s7634_s15 + $0x28] sm:$0xff]  ;;  %v8053_v45 = vcvt.s32.f32 %v1154_v12  ;;  %vm10640_vm4 = vcmp.gt.f32.partialorder %v8037_v4, 0.0 }
 0x3d2   : > { %1497 = vmax.xlane.f32.xlu0 %v1496_v46  ;;  %v8059_v40 = vcvt.s32.f32 %v1157_v22  ;;  %v1156_v12 = vunpack.c.0.s8 %v8027_v37 }
 0x3d3   : > { %v1249_v38 = vpop.permute.xlu1 %1248  ;;  %vm2114_vm7 = vcmp.gt.f32.partialorder %v2082_v51, 0.0  ;;  %vm2115_vm8 = vcmp.gt.f32.partialorder %v2083_v52, 0.0  ;;  %v2146_v13 = vmul.f32 0.2, %v2082_v51  ;;  %v2147_v42 = vmul.f32 0.2, %v2083_v52 }
 0x3d4   : > { %v1331_v28 = vadd.f32 %v7877_v14, %v1249_v38  ;;  %v1332_v7 = vadd.f32 %v7880_v15, %v1249_v38  ;;  %v1155_v38 = vunpack.c.0.s8 %v8018_v11  ;;  %10974 = vst [vmem:[#allocation35_spill] sm:$0xff] %v8053_v45  ;;  %vm10648_vm15 = vcmp.gt.f32.partialorder %v8053_v45, 0.0 }
 0x3d5   : > { %v8033_v10 = vpop.permute.xlu0 %3898  ;;  %v2178_v5 = vsel %vm2114_vm7, %v2082_v51, %v2146_v13  ;;  %v2179_v6 = vsel %vm2115_vm8, %v2083_v52, %v2147_v42  ;;  %v1158_v13 = vunpack.c.1.s8 %v8027_v37  ;;  %v8055_v42 = vcvt.s32.f32 %v1151_v16 }
 0x3d6   : > { %10969 = vst [vmem:[#allocation30_spill] sm:$0xff] %v8033_v10  ;;  %v8043_v46 = vsel %vm1207_vm5, %v2178_v5, -1e+09  ;;  %v8047_v41 = vsel %vm10654_vm6, %v2179_v6, -1e+09  ;;  %vm1363_vm13 = vcmp.gt.f32.partialorder %v1331_v28, 0.0  ;;  %v8057_v5 = vcvt.s32.f32 %v1152_v23 }
 0x3d7   : > { %10972 = vst [vmem:[#allocation33_spill] sm:$0xff] %v8043_v46  ;;  %10973 = vst [vmem:[#allocation34_spill] sm:$0xff] %v8047_v41  ;;  %v1264_v51 = vpop.permute.xlu1 %1263  ;;  %v2244_v52 = vmax.f32 %v8043_v46, %v8047_v41  ;;  %v1395_v36 = vmul.f32 0.2, %v1331_v28  ;;  %vm1364_vm14 = vcmp.gt.f32.partialorder %v1332_v7, 0.0  ;;  %v8069_v23 = vcvt.s32.f32 %v1155_v38 }
 0x3d8   : > { %10975 = vst [vmem:[#allocation36_spill] sm:$0xff] %v8055_v42  ;;  %10976 = vst [vmem:[#allocation37_spill] sm:$0xff] %v8057_v5  ;;  %v1337_v6 = vadd.f32 %v7877_v14, %v1264_v51  ;;  %v1338_v39 = vadd.f32 %v7880_v15, %v1264_v51  ;;  %v1396_v29 = vmul.f32 0.2, %v1332_v7  ;;  %v8071_v16 = vcvt.s32.f32 %v1158_v13 }
 0x3d9   : > { %2245 = vmax.xlane.f32.xlu1 %v2244_v52  ;;  %v1427_v25 = vsel %vm1363_vm13, %v1331_v28, %v1395_v36 }
 0x3da   : > { %v2025_v32 = vpop.permute.xlu0 %2024  ;;  %v8065_v41 = vsel %vm1207_vm5, %v1427_v25, -1e+09  ;;  %v1428_v28 = vsel %vm1364_vm14, %v1332_v7, %v1396_v29  ;;  %v1161_v25 = vunpack.c.3.s8 %v8018_v11  ;;  %vm1369_vm7 = vcmp.gt.f32.partialorder %v1337_v6, 0.0 }
 0x3db   : > { %10977 = vst [vmem:[#allocation38_spill] sm:$0xff] %v8065_v41  ;;  %v2088_v22 = vadd.f32 %v7890_v24, %v2025_v32  ;;  %v2089_v51 = vadd.f32 %v7895_v27, %v2025_v32  ;;  %v1259_v52 = vpop.permute.xlu1 %1258  ;;  %v8081_v46 = vsel %vm10654_vm6, %v1428_v28, -1e+09  ;;  %vm1370_vm8 = vcmp.gt.f32.partialorder %v1338_v39, 0.0 }
 0x3dc   : > { %v1335_v36 = vadd.f32 %v7877_v14, %v1259_v52  ;;  %10978 = vst [vmem:[#allocation39_spill] sm:$0xff] %v8081_v46  ;;  %v1336_v38 = vadd.f32 %v7880_v15, %v1259_v52  ;;  %v1493_v32 = vmax.f32 %v8065_v41, %v8081_v46  ;;  %v1401_v13 = vmul.f32 0.2, %v1337_v6 }
 0x3dd   : > { %v1402_v26 = vmul.f32 0.2, %v1338_v39  ;;  %vm2120_vm13 = vcmp.gt.f32.partialorder %v2088_v22, 0.0  ;;  %vm2121_vm14 = vcmp.gt.f32.partialorder %v2089_v51, 0.0  ;;  %v2152_v7 = vmul.f32 0.2, %v2088_v22 }
 0x3de   : > { %v2021_v29 = vpop.permute.xlu0 %2020  ;;  %v2153_v34 = vmul.f32 0.2, %v2089_v51  ;;  %1494 = vmax.xlane.f32.xlu0 %v1493_v32  ;;  %v1433_v43 = vsel %vm1369_vm7, %v1337_v6, %v1401_v13  ;;  %vm1367_vm0 = vcmp.gt.f32.partialorder %v1335_v36, 0.0  ;;  %v1162_v28 = vunpack.c.3.s8 %v8027_v37 }
 0x3df   : > { %v1274_v33 = vpop.permute.xlu1 %1273  ;;  %v1434_v44 = vsel %vm1370_vm8, %v1338_v39, %v1402_v26  ;;  %v2086_v19 = vadd.f32 %v7890_v24, %v2021_v29  ;;  %v2087_v52 = vadd.f32 %v7895_v27, %v2021_v29  ;;  %v8091_v46 = vsel %vm10631_vm10, %v1433_v43, -1e+09 }
 0x3e0   : > { %10979 = vst [vmem:[#allocation40_spill] sm:$0xff] %v8091_v46  ;;  %v8095_v41 = vsel %vm10630_vm11, %v1434_v44, -1e+09  ;;  %v2184_v6 = vsel %vm2120_vm13, %v2088_v22, %v2152_v7  ;;  %v2185_v39 = vsel %vm2121_vm14, %v2089_v51, %v2153_v34  ;;  %vm1368_vm7 = vcmp.gt.f32.partialorder %v1336_v38, 0.0 }
 0x3e1   : > { %10980 = vst [vmem:[#allocation41_spill] sm:$0xff] %v8095_v41  ;;  %v1502_v32 = vmax.f32 %v8091_v46, %v8095_v41  ;;  %vm10653_vm8 = vcmp.gt.f32.partialorder %v8039_v57, 0.0  ;;  %v8103_v13 = vsel %vm10631_vm10, %v2184_v6, -1e+09  ;;  %v8107_v43 = vsel %vm10630_vm11, %v2185_v39, -1e+09 }
 0x3e2   : > { %v2033_v26 = vpop.permute.xlu0 %2032  ;;  %10981 = vst [vmem:[#allocation42_spill] sm:$0xff] %v8103_v13  ;;  %10982 = vst [vmem:[#allocation43_spill] sm:$0xff] %v8107_v43  ;;  %v1399_v44 = vmul.f32 0.2, %v1335_v36  ;;  %v8109_v29 = vcvt.s32.f32 %v1156_v12  ;;  %v2253_v34 = vmax.f32 %v8103_v13, %v8107_v43  ;;  %v1400_v51 = vmul.f32 0.2, %v1336_v38 }
 0x3e3   : > { %1503 = vmax.xlane.f32.xlu0 %v1502_v32  ;;  %v1269_v22 = vpop.permute.xlu1 %1268  ;;  %v8113_v7 = vcvt.s32.f32 %v1161_v25  ;;  %v8115_v41 = vcvt.s32.f32 %v1162_v28  ;;  %v1341_v6 = vadd.f32 %v7877_v14, %v1274_v33  ;;  %v1342_v46 = vadd.f32 %v7880_v15, %v1274_v33 }
 0x3e4   : > { %v1431_v39 = vsel %vm1367_vm0, %v1335_v36, %v1399_v44  ;;  %vm2118_vm13 = vcmp.gt.f32.partialorder %v2086_v19, 0.0  ;;  %2254 = vmax.xlane.f32.xlu1 %v2253_v34  ;;  %v1432_v12 = vsel %vm1368_vm7, %v1336_v38, %v1400_v51  ;;  %vm2119_vm14 = vcmp.gt.f32.partialorder %v2087_v52, 0.0 }
 0x3e5   : > { %10983 = vst [vmem:[#allocation44_spill] sm:$0xff] %v8113_v7  ;;  %10984 = vst [vmem:[#allocation45_spill] sm:$0xff] %v8115_v41  ;;  %v8123_v32 = vsel %vm10641_vm3, %v1431_v39, -1e+09  ;;  %v2150_v43 = vmul.f32 0.2, %v2086_v19  ;;  %v2092_v25 = vadd.f32 %v7890_v24, %v2033_v26  ;;  %v1159_v36 = vunpack.c.2.s8 %v8018_v11 }
 0x3e6   : > { %10985 = vst [vmem:[#allocation46_spill] sm:$0xff] %v8123_v32  ;;  %v8128_v28 = vsel %vm10640_vm4, %v1432_v12, -1e+09  ;;  %v2029_v13 = vpop.permute.xlu0 %2028  ;;  %v2151_v33 = vmul.f32 0.2, %v2087_v52  ;;  %vm1215_vm0 = vcmp.gt.f32.partialorder %v8055_v42, 0.0  ;;  %v2093_v38 = vadd.f32 %v7895_v27, %v2033_v26 }
 0x3e7   : > { %10986 = vst [vmem:[#allocation47_spill] sm:$0xff] %v8128_v28  ;;  %v1499_v44 = vmax.f32 %v8123_v32, %v8128_v28  ;;  %v8135_v34 = vpop.permute.xlu1 %1283  ;;  %v2182_v51 = vsel %vm2118_vm13, %v2086_v19, %v2150_v43  ;;  %vm10666_vm7 = vcmp.gt.f32.partialorder %v8057_v5, 0.0  ;;  %v1160_v39 = vunpack.c.2.s8 %v8027_v37 }
 0x3e8   : > { %v2183_v12 = vsel %vm2119_vm14, %v2087_v52, %v2151_v33  ;;  %v8141_v31 = vsel %vm10641_vm3, %v2182_v51, -1e+09  ;;  %vm1373_vm11 = vcmp.gt.f32.partialorder %v1341_v6, 0.0  ;;  %vm1374_vm10 = vcmp.gt.f32.partialorder %v1342_v46, 0.0 }
 0x3e9   : > { %10987 = vst [vmem:[#allocation48_spill] sm:$0xff] %v8141_v31  ;;  %v1339_v11 = vadd.f32 %v7877_v14, %v1269_v22  ;;  %1500 = vmax.xlane.f32.xlu0 %v1499_v44  ;;  %v8146_v26 = vsel %vm10640_vm4, %v2183_v12, -1e+09  ;;  %v1405_v28 = vmul.f32 0.2, %v1341_v6  ;;  %v1340_v43 = vadd.f32 %v7880_v15, %v1269_v22 }
 0x3ea   : > { %10988 = vst [vmem:[#allocation49_spill] sm:$0xff] %v8146_v26  ;;  %v1406_v19 = vmul.f32 0.2, %v1342_v46  ;;  %v2250_v37 = vmax.f32 %v8141_v31, %v8146_v26  ;;  %v8151_v52 = vpop.permute.xlu0 %2040  ;;  %vm2124_vm13 = vcmp.gt.f32.partialorder %v2092_v25, 0.0  ;;  %v2156_v33 = vmul.f32 0.2, %v2092_v25 }
 0x3eb   : > { %v2090_v51 = vadd.f32 %v7890_v24, %v2029_v13  ;;  %v1437_v32 = vsel %vm1373_vm11, %v1341_v6, %v1405_v28  ;;  %v1279_v44 = vpop.permute.xlu1 %1278  ;;  %v8154_v47 = vcvt.s32.f32 %v1159_v36  ;;  %v2091_v12 = vadd.f32 %v7895_v27, %v2029_v13 }
 0x3ec   : > { %v1438_v20 = vsel %vm1374_vm10, %v1342_v46, %v1406_v19  ;;  %2251 = vmax.xlane.f32.xlu1 %v2250_v37  ;;  %v8159_v22 = vsel %vm10653_vm8, %v1437_v32, -1e+09  ;;  %vm2125_vm14 = vcmp.gt.f32.partialorder %v2093_v38, 0.0  ;;  %v2157_v6 = vmul.f32 0.2, %v2093_v38 }
 0x3ed   : > { %10989 = vst [vmem:[#allocation50_spill] sm:$0xff] %v8159_v22  ;;  %v8163_v26 = vsel %vm10648_vm15, %v1438_v20, -1e+09  ;;  %v2188_v46 = vsel %vm2124_vm13, %v2092_v25, %v2156_v33  ;;  %vm1371_vm10 = vcmp.gt.f32.partialorder %v1339_v11, 0.0  ;;  %vm1372_vm11 = vcmp.gt.f32.partialorder %v1340_v43, 0.0 }
 0x3ee   : > { %10990 = vst [vmem:[#allocation51_spill] sm:$0xff] %v8163_v26  ;;  %v1508_v31 = vmax.f32 %v8159_v22, %v8163_v26  ;;  %v8169_v28 = vsel %vm10653_vm8, %v2188_v46, -1e+09  ;;  %v1403_v13 = vmul.f32 0.2, %v1339_v11  ;;  %v2037_v36 = vpop.permute.xlu0 %2036  ;;  %vm10665_vm4 = vcmp.gt.f32.partialorder %v8069_v23, 0.0 }
 0x3ef   : > { %10991 = vst [vmem:[#allocation52_spill] sm:$0xff] %v8169_v28  ;;  %vm10664_vm3 = vcmp.gt.f32.partialorder %v8109_v29, 0.0  ;;  %v8173_v20 = vcvt.s32.f32 %v1160_v39  ;;  %v1343_v32 = vadd.f32 %v7877_v14, %v1279_v44  ;;  %v1344_v25 = vadd.f32 %v7880_v15, %v1279_v44  ;;  %v8177_v33 = vpop.permute.xlu1 %1293 }
 0x3f0   : > { %1509 = vmax.xlane.f32.xlu0 %v1508_v31  ;;  %v2189_v19 = vsel %vm2125_vm14, %v2093_v38, %v2157_v6  ;;  %v1404_v37 = vmul.f32 0.2, %v1340_v43  ;;  %v1435_v26 = vsel %vm1371_vm10, %v1339_v11, %v1403_v13  ;;  %v2094_v22 = vadd.f32 %v7890_v24, %v2037_v36  ;;  %v8192_v38 = vld [vmem:[%s7634_s15 + $0x30] sm:$0xff]  ;;  %v8195_v6 = vld [vmem:[%s7634_s15 + $0x38] sm:$0xff]  ;;  %s7527_s15 = smov 64  }
 0x3f1   : > { %v8181_v46 = vsel %vm10648_vm15, %v2189_v19, -1e+09  ;;  %vm2122_vm13 = vcmp.gt.f32.partialorder %v2090_v51, 0.0  ;;  %v8189_v44 = vsel %vm1215_vm0, %v1435_v26, -1e+09  ;;  %vm2123_vm14 = vcmp.gt.f32.partialorder %v2091_v12, 0.0 }
 0x3f2   : > { %10992 = vst [vmem:[#allocation53_spill] sm:$0xff] %v8181_v46  ;;  %v2259_v39 = vmax.f32 %v8169_v28, %v8181_v46  ;;  %v1436_v31 = vsel %vm1372_vm11, %v1340_v43, %v1404_v37  ;;  %10993 = vst [vmem:[#allocation54_spill] sm:$0xff] %v8189_v44  ;;  %v2095_v13 = vadd.f32 %v7895_v27, %v2037_v36  ;;  %v2154_v19 = vmul.f32 0.2, %v2090_v51 }
 0x3f3   : > { %v8199_v11 = vsel %vm10666_vm7, %v1436_v31, -1e+09  ;;  %v2155_v45 = vmul.f32 0.2, %v2091_v12  ;;  %v1345_v43 = vadd.f32 %v7877_v14, %v8135_v34  ;;  %vm10691_vm10 = vcmp.gt.f32.partialorder %v8059_v40, 0.0  ;;  %v1289_v57 = vpop.permute.xlu1 %1288 }
 0x3f4   : > { %10994 = vst [vmem:[#allocation55_spill] sm:$0xff] %v8199_v11  ;;  %2260 = vmax.xlane.f32.xlu1 %v2259_v39  ;;  %v1505_v26 = vmax.f32 %v8189_v44, %v8199_v11  ;;  %vm10690_vm11 = vcmp.gt.f32.partialorder %v8071_v16, 0.0  ;;  %v1163_v37 = vunpack.c.0.s8 %v8192_v38  ;;  %v1164_v31 = vunpack.c.0.s8 %v8195_v6  ;;  %v2049_v44 = vpop.permute.xlu0 %2048 }
 0x3f5   : > { %v1346_v36 = vadd.f32 %v7880_v15, %v8135_v34  ;;  %v2186_v46 = vsel %vm2122_vm13, %v2090_v51, %v2154_v19  ;;  %v2187_v28 = vsel %vm2123_vm14, %v2091_v12, %v2155_v45  ;;  %vm1375_vm15 = vcmp.gt.f32.partialorder %v1343_v32, 0.0 }
 0x3f6   : > { %1506 = vmax.xlane.f32.xlu0 %v1505_v26  ;;  %v8216_v39 = vsel %vm1215_vm0, %v2186_v46, -1e+09  ;;  %v8220_v11 = vsel %vm10666_vm7, %v2187_v28, -1e+09  ;;  %vm1376_vm8 = vcmp.gt.f32.partialorder %v1344_v25, 0.0  ;;  %vm2126_vm6 = vcmp.gt.f32.partialorder %v2094_v22, 0.0 }
 0x3f7   : > { %10995 = vst [vmem:[#allocation56_spill] sm:$0xff] %v8216_v39  ;;  %10996 = vst [vmem:[#allocation57_spill] sm:$0xff] %v8220_v11  ;;  %v2256_v34 = vmax.f32 %v8216_v39, %v8220_v11  ;;  %v1407_v51 = vmul.f32 0.2, %v1343_v32  ;;  %v1408_v19 = vmul.f32 0.2, %v1344_v25  ;;  %v2096_v45 = vadd.f32 %v7890_v24, %v8151_v52 }
 0x3f8   : > { %vm2127_vm13 = vcmp.gt.f32.partialorder %v2095_v13, 0.0  ;;  %v2097_v12 = vadd.f32 %v7895_v27, %v8151_v52  ;;  %v2158_v46 = vmul.f32 0.2, %v2094_v22  ;;  %v2159_v26 = vmul.f32 0.2, %v2095_v13 }
 0x3f9   : > { %2257 = vmax.xlane.f32.xlu1 %v2256_v34  ;;  %v1347_v28 = vadd.f32 %v7877_v14, %v1289_v57  ;;  %v1348_v5 = vadd.f32 %v7880_v15, %v1289_v57  ;;  %v1439_v42 = vsel %vm1375_vm15, %v1343_v32, %v1407_v51  ;;  %v1440_v4 = vsel %vm1376_vm8, %v1344_v25, %v1408_v19 }
 0x3fa   : > { %vm10678_vm14 = vcmp.gt.f32.partialorder %v8154_v47, 0.0  ;;  %v8234_v11 = vsel %vm10665_vm4, %v1439_v42, -1e+09  ;;  %v8238_v39 = vsel %vm10664_vm3, %v1440_v4, -1e+09  ;;  %v2190_v52 = vsel %vm2126_vm6, %v2094_v22, %v2158_v46  ;;  %v2045_v42 = vpop.permute.xlu0 %2044  ;;  %v8260_v46 = vpop.permute.xlu1 %1303 }
 0x3fb   : > { %10997 = vst [vmem:[#allocation58_spill] sm:$0xff] %v8234_v11  ;;  %10998 = vst [vmem:[#allocation59_spill] sm:$0xff] %v8238_v39  ;;  %v2191_v34 = vsel %vm2127_vm13, %v2095_v13, %v2159_v26  ;;  %v1511_v10 = vmax.f32 %v8234_v11, %v8238_v39  ;;  %v8245_v57 = vsel %vm10665_vm4, %v2190_v52, -1e+09  ;;  %vm1377_vm15 = vcmp.gt.f32.partialorder %v1345_v43, 0.0 }
 0x3fc   : > { %10999 = vst [vmem:[#allocation60_spill] sm:$0xff] %v8245_v57  ;;  %v8249_v32 = vsel %vm10664_vm3, %v2191_v34, -1e+09  ;;  %vm1378_vm8 = vcmp.gt.f32.partialorder %v1346_v36, 0.0  ;;  %v1409_v25 = vmul.f32 0.2, %v1345_v43  ;;  %v1349_v13 = vadd.f32 %v7877_v14, %v8177_v33 }
 0x3fd   : > { %11000 = vst [vmem:[#allocation61_spill] sm:$0xff] %v8249_v32  ;;  %v2262_v4 = vmax.f32 %v8245_v57, %v8249_v32  ;;  %v1410_v22 = vmul.f32 0.2, %v1346_v36  ;;  %1512 = vmax.xlane.f32.xlu0 %v1511_v10  ;;  %vm10677_vm6 = vcmp.gt.f32.partialorder %v8173_v20, 0.0  ;;  %v8256_v51 = vcvt.s32.f32 %v1163_v37 }
 0x3fe   : > { %v8258_v19 = vcvt.s32.f32 %v1164_v31  ;;  %v1441_v26 = vsel %vm1377_vm15, %v1345_v43, %v1409_v25  ;;  %vm2128_vm13 = vcmp.gt.f32.partialorder %v2096_v45, 0.0  ;;  %vm2129_vm3 = vcmp.gt.f32.partialorder %v2097_v12, 0.0 }
 0x3ff   : > { %11001 = vst [vmem:[#allocation62_spill] sm:$0xff] %v8256_v51  ;;  %2263 = vmax.xlane.f32.xlu1 %v2262_v4  ;;  %v1442_v52 = vsel %vm1378_vm8, %v1346_v36, %v1410_v22  ;;  %vm10688_vm4 = vcmp.gt.f32.partialorder %v8113_v7, 0.0  ;;  %vm10687_vm7 = vcmp.gt.f32.partialorder %v8115_v41, 0.0  ;;  %v2098_v34 = vadd.f32 %v7890_v24, %v2045_v42  ;;  %v11134_v41 = vld [vmem:[#allocation32_spill] sm:$0xff] }
 0x400   : > { %11002 = vst [vmem:[#allocation63_spill] sm:$0xff] %v8258_v19  ;;  %v8267_v10 = vsel %vm10691_vm10, %v1441_v26, -1e+09  ;;  %v8271_v37 = vsel %vm10690_vm11, %v1442_v52, -1e+09  ;;  %vm1379_vm15 = vcmp.gt.f32.partialorder %v1347_v28, 0.0  ;;  %v2099_v4 = vadd.f32 %v7895_v27, %v2045_v42 }
 0x401   : > { %11003 = vst [vmem:[#allocation64_spill] sm:$0xff] %v8267_v10  ;;  %11004 = vst [vmem:[#allocation65_spill] sm:$0xff] %v8271_v37  ;;  %v2160_v31 = vmul.f32 0.2, %v2096_v45  ;;  %v1514_v43 = vmax.f32 %v8267_v10, %v8271_v37  ;;  %v2161_v36 = vmul.f32 0.2, %v2097_v12  ;;  %v1350_v26 = vadd.f32 %v7880_v15, %v8177_v33  ;;  %v8285_v10 = vpop.permute.xlu0 %2056  ;;  %v1299_v33 = vpop.permute.xlu1 %1298 }
 0x402   : > { %vm1380_vm8 = vcmp.gt.f32.partialorder %v1348_v5, 0.0  ;;  %v1411_v22 = vmul.f32 0.2, %v1347_v28  ;;  %v1412_v32 = vmul.f32 0.2, %v1348_v5  ;;  %v2100_v57 = vadd.f32 %v7890_v24, %v2049_v44 }
 0x403   : > { %v2192_v25 = vsel %vm2128_vm13, %v2096_v45, %v2160_v31  ;;  %1515 = vmax.xlane.f32.xlu0 %v1514_v43  ;;  %v2193_v52 = vsel %vm2129_vm3, %v2097_v12, %v2161_v36  ;;  %v2101_v37 = vadd.f32 %v7895_v27, %v2049_v44  ;;  %vm2130_vm3 = vcmp.gt.f32.partialorder %v2098_v34, 0.0 }
 0x404   : > { %v8282_v39 = vsel %vm10691_vm10, %v2192_v25, -1e+09  ;;  %v8289_v45 = vsel %vm10690_vm11, %v2193_v52, -1e+09  ;;  %v1443_v42 = vsel %vm1379_vm15, %v1347_v28, %v1411_v22  ;;  %v1444_v31 = vsel %vm1380_vm8, %v1348_v5, %v1412_v32 }
 0x405   : > { %11005 = vst [vmem:[#allocation66_spill] sm:$0xff] %v8282_v39  ;;  %11006 = vst [vmem:[#allocation67_spill] sm:$0xff] %v8289_v45  ;;  %v2265_v43 = vmax.f32 %v8282_v39, %v8289_v45  ;;  %v8295_v12 = vsel %vm10678_vm14, %v1443_v42, -1e+09  ;;  %v8299_v36 = vsel %vm10677_vm6, %v1444_v31, -1e+09  ;;  %v1351_v22 = vadd.f32 %v7877_v14, %v1299_v33  ;;  %v2053_v39 = vpop.permute.xlu0 %2052 }
 0x406   : > { %11007 = vst [vmem:[#allocation68_spill] sm:$0xff] %v8295_v12  ;;  %11008 = vst [vmem:[#allocation69_spill] sm:$0xff] %v8299_v36  ;;  %v1517_v44 = vmax.f32 %v8295_v12, %v8299_v36  ;;  %vm2131_vm13 = vcmp.gt.f32.partialorder %v2099_v4, 0.0  ;;  %v2162_v25 = vmul.f32 0.2, %v2098_v34  ;;  %vm1381_vm15 = vcmp.gt.f32.partialorder %v1349_v13, 0.0 }
 0x407   : > { %v2163_v28 = vmul.f32 0.2, %v2099_v4  ;;  %2266 = vmax.xlane.f32.xlu1 %v2265_v43  ;;  %vm1382_vm8 = vcmp.gt.f32.partialorder %v1350_v26, 0.0  ;;  %v1413_v5 = vmul.f32 0.2, %v1349_v13  ;;  %v1352_v52 = vadd.f32 %v7880_v15, %v1299_v33 }
 0x408   : > { %v1414_v32 = vmul.f32 0.2, %v1350_v26  ;;  %1518 = vmax.xlane.f32.xlu0 %v1517_v44  ;;  %v2194_v42 = vsel %vm2130_vm3, %v2098_v34, %v2162_v25  ;;  %vm10680_vm3 = vcmp.gt.f32.partialorder %v8256_v51, 0.0  ;;  %v2102_v44 = vadd.f32 %v7890_v24, %v2053_v39  ;;  %v8857_v51 = vld [vmem:[#allocation2 + $0x68] sm:$0xff] }
 0x409   : > { %v2195_v31 = vsel %vm2131_vm13, %v2099_v4, %v2163_v28  ;;  %v8307_v45 = vsel %vm10678_vm14, %v2194_v42, -1e+09  ;;  %v1445_v43 = vsel %vm1381_vm15, %v1349_v13, %v1413_v5  ;;  %vm10679_vm13 = vcmp.gt.f32.partialorder %v8258_v19, 0.0  ;;  %11123 = vst [vmem:[#allocation135_spill] sm:$0xff] %v8857_v51 }
 0x40a   : > { %11009 = vst [vmem:[#allocation70_spill] sm:$0xff] %v8307_v45  ;;  %v8311_v36 = vsel %vm10677_vm6, %v2195_v31, -1e+09  ;;  %v1446_v12 = vsel %vm1382_vm8, %v1350_v26, %v1414_v32  ;;  %v8317_v33 = vsel %vm10688_vm4, %v1445_v43, -1e+09  ;;  %vm2132_vm15 = vcmp.gt.f32.partialorder %v2100_v57, 0.0 }
 0x40b   : > { %11010 = vst [vmem:[#allocation71_spill] sm:$0xff] %v8311_v36  ;;  %v2268_v11 = vmax.f32 %v8307_v45, %v8311_v36  ;;  %11011 = vst [vmem:[#allocation72_spill] sm:$0xff] %v8317_v33  ;;  %v8321_v34 = vsel %vm10687_vm7, %v1446_v12, -1e+09  ;;  %vm2133_vm8 = vcmp.gt.f32.partialorder %v2101_v37, 0.0  ;;  %v2103_v25 = vadd.f32 %v7895_v27, %v2053_v39 }
 0x40c   : > { %11012 = vst [vmem:[#allocation73_spill] sm:$0xff] %v8321_v34  ;;  %v1520_v4 = vmax.f32 %v8317_v33, %v8321_v34  ;;  %v2164_v13 = vmul.f32 0.2, %v2100_v57  ;;  %v2165_v26 = vmul.f32 0.2, %v2101_v37  ;;  %vm1383_vm6 = vcmp.gt.f32.partialorder %v1351_v22, 0.0 }
 0x40d   : > { %2269 = vmax.xlane.f32.xlu1 %v2268_v11  ;;  %vm1384_vm14 = vcmp.gt.f32.partialorder %v1352_v52, 0.0  ;;  %v1415_v5 = vmul.f32 0.2, %v1351_v22  ;;  %v1416_v32 = vmul.f32 0.2, %v1352_v52 }
 0x40e   : > { %1521 = vmax.xlane.f32.xlu0 %v1520_v4  ;;  %v2196_v12 = vsel %vm2132_vm15, %v2100_v57, %v2164_v13  ;;  %v2197_v28 = vsel %vm2133_vm8, %v2101_v37, %v2165_v26  ;;  %vm2134_vm15 = vcmp.gt.f32.partialorder %v2102_v44, 0.0  ;;  %vm2135_vm8 = vcmp.gt.f32.partialorder %v2103_v25, 0.0 }
 0x40f   : > { %v8331_v42 = vsel %vm10688_vm4, %v2196_v12, -1e+09  ;;  %v8335_v11 = vsel %vm10687_vm7, %v2197_v28, -1e+09  ;;  %v1447_v43 = vsel %vm1383_vm6, %v1351_v22, %v1415_v5  ;;  %v1448_v39 = vsel %vm1384_vm14, %v1352_v52, %v1416_v32 }
 0x410   : > { %11013 = vst [vmem:[#allocation74_spill] sm:$0xff] %v8331_v42  ;;  %11014 = vst [vmem:[#allocation75_spill] sm:$0xff] %v8335_v11  ;;  %v2271_v31 = vmax.f32 %v8331_v42, %v8335_v11  ;;  %v8341_v4 = vsel %vm10680_vm3, %v1447_v43, -1e+09  ;;  %v8345_v57 = vsel %vm10679_vm13, %v1448_v39, -1e+09  ;;  %v1168_v32 = vunpack.c.2.s8 %v8195_v6 }
 0x411   : > { %11015 = vst [vmem:[#allocation76_spill] sm:$0xff] %v8341_v4  ;;  %11016 = vst [vmem:[#allocation77_spill] sm:$0xff] %v8345_v57  ;;  %v1523_v37 = vmax.f32 %v8341_v4, %v8345_v57  ;;  %v2166_v13 = vmul.f32 0.2, %v2102_v44  ;;  %v2167_v26 = vmul.f32 0.2, %v2103_v25  ;;  %v2104_v43 = vadd.f32 %v7890_v24, %v8285_v10 }
 0x412   : > { %2272 = vmax.xlane.f32.xlu1 %v2271_v31  ;;  %v2105_v39 = vadd.f32 %v7895_v27, %v8285_v10 }
 0x413   : > { %1524 = vmax.xlane.f32.xlu0 %v1523_v37  ;;  %v2198_v12 = vsel %vm2134_vm15, %v2102_v44, %v2166_v13  ;;  %v2199_v22 = vsel %vm2135_vm8, %v2103_v25, %v2167_v26  ;;  %v1167_v25 = vunpack.c.2.s8 %v8192_v38 }
 0x414   : > { %v8351_v52 = vsel %vm10680_vm3, %v2198_v12, -1e+09  ;;  %v8355_v28 = vsel %vm10679_vm13, %v2199_v22, -1e+09  ;;  %vm2136_vm13 = vcmp.gt.f32.partialorder %v2104_v43, 0.0  ;;  %vm2137_vm3 = vcmp.gt.f32.partialorder %v2105_v39, 0.0 }
 0x415   : > { %11017 = vst [vmem:[#allocation78_spill] sm:$0xff] %v8351_v52  ;;  %11018 = vst [vmem:[#allocation79_spill] sm:$0xff] %v8355_v28  ;;  %v2274_v5 = vmax.f32 %v8351_v52, %v8355_v28  ;;  %v2169_v28 = vmul.f32 0.2, %v2105_v39 }
 0x417   : > { %2275 = vmax.xlane.f32.xlu1 %v2274_v5 }
 0x428   : > { %3894 = vperm.xlu1 %6791, %v7804_v49   ;;  %v8385_v49 = vpop.permute.xlu0 %2064 }
 0x429   : > { %2955 = vperm.xlu0 %6790, %v7807_v53   ;;  %v1314_v53 = vpop.permute.xlu1 %1313 }
 0x42a   : > { %v1358_v34 = vadd.f32 %v7880_v15, %v1314_v53 }
 0x42c   : > { %3906 = vperm.xlu1 %6791, %v7812_v55  }
 0x42d   : > { %2963 = vperm.xlu0 %6790, %v7812_v55   ;;  %v2061_v55 = vpop.permute.xlu0 %2060 }
 0x42e   : > { %v2106_v5 = vadd.f32 %v7890_v24, %v2061_v55  ;;  %v2107_v10 = vadd.f32 %v7895_v27, %v2061_v55  ;;  %v1169_v55 = vunpack.c.3.s8 %v8192_v38 }
 0x430   : > { %3910 = vperm.xlu1 %6791, %v7810_v54   ;;  %v8453_v36 = vcvt.s32.f32 %v1169_v55 }
 0x431   : > { %2967 = vperm.xlu0 %6790, %v7810_v54   ;;  %v11019_v54 = vmov 0  }
 0x432   : > { %11027 = vst [vmem:[#allocation87_spill] sm:$0xff] %v8453_v36 }
 0x434   : > { %3914 = vperm.xlu1 %6791, %v7817_v59  }
 0x435   : > { %2971 = vperm.xlu0 %6790, %v7817_v59  }
 0x438   : > { %3918 = vperm.xlu1 %6791, %v7815_v58  }
 0x439   : > { %2975 = vperm.xlu0 %6790, %v7815_v58   ;;  %v1309_v58 = vpop.permute.xlu1 %1308 }
 0x43a   : > { %v1355_v37 = vadd.f32 %v7877_v14, %v1309_v58  ;;  %v1356_v13 = vadd.f32 %v7880_v15, %v1309_v58  ;;  %v2168_v58 = vmul.f32 0.2, %v2104_v43 }
 0x43c   : > { %3922 = vperm.xlu1 %6791, %v7821_v61   ;;  %v1419_v11 = vmul.f32 0.2, %v1355_v37  ;;  %v1420_v42 = vmul.f32 0.2, %v1356_v13  ;;  %vm1387_vm7 = vcmp.gt.f32.partialorder %v1355_v37, 0.0  ;;  %vm1388_vm4 = vcmp.gt.f32.partialorder %v1356_v13, 0.0 }
 0x43d   : > { %2979 = vperm.xlu0 %6790, %v7821_v61   ;;  %v1165_v61 = vunpack.c.1.s8 %v8192_v38  ;;  %v2200_v38 = vsel %vm2136_vm13, %v2104_v43, %v2168_v58 }
 0x440   : > { %3926 = vperm.xlu1 %6791, %v7819_v60  }
 0x441   : > { %2983 = vperm.xlu0 %6790, %v7819_v60  }
 0x444   : > { %3930 = vperm.xlu1 %6791, %v7826_v63  }
 0x445   : > { %2987 = vperm.xlu0 %6790, %v7826_v63   ;;  %v2945_v63 = vld [vmem:[#allocation3 + $0x2] ss:$4 sm:$0x3] }
 0x446   : > { %v8408_v31 = vrot.slane %v2945_v63, %v7870_v8  ;;  %v8451_v33 = vrot.slane %v2945_v63, %v7872_v9  ;;  %v2109_v63 = vadd.f32 %v7895_v27, %v8385_v49 }
 0x448   : > { %3934 = vperm.xlu1 %6791, %v7824_v62  }
 0x449   : > { %2991 = vperm.xlu0 %6790, %v7824_v62   ;;  %v1166_v62 = vunpack.c.1.s8 %v8195_v6 }
 0x44b   : > { %v8403_v44 = vcvt.s32.f32 %v1166_v62 }
 0x44c   : > { %3938 = vperm.xlu1 %6791, %v7830_v1   ;;  %v8389_v59 = vpop.xlane.xlu0 %1491 }
 0x44d   : > { %2995 = vperm.xlu0 %6790, %v7830_v1   ;;  %v1354_v1 = vadd.f32 %v7880_v15, %v8260_v46  ;;  %11022 = vst [vmem:[#allocation82_spill] sm:$0xff] %v8403_v44  ;;  %vm1230_vm6 = vcmp.gt.f32.partialorder %v8403_v44, 0.0  ;;  %v1452_v15 = vsel %vm1388_vm4, %v1356_v13, %v1420_v42 }
 0x44f   : > { %v1418_v22 = vmul.f32 0.2, %v1354_v1  ;;  %vm1386_vm8 = vcmp.gt.f32.partialorder %v1354_v1, 0.0 }
 0x450   : > { %3942 = vperm.xlu1 %6791, %v7828_v0  }
 0x451   : > { %2999 = vperm.xlu0 %6790, %v7828_v0   ;;  %v8391_v60 = vpop.xlane.xlu1 %2242  ;;  %v1353_v0 = vadd.f32 %v7877_v14, %v8260_v46  ;;  %v1450_v57 = vsel %vm1386_vm8, %v1354_v1, %v1418_v22  ;;  %v2171_v22 = vmul.f32 0.2, %v2107_v10  ;;  %vm2139_vm8 = vcmp.gt.f32.partialorder %v2107_v10, 0.0 }
 0x452   : > { %11020 = vst [vmem:[#allocation80_spill] sm:$0xff] %v8391_v60 }
 0x453   : > { %v1417_v12 = vmul.f32 0.2, %v1353_v0  ;;  %vm1385_vm15 = vcmp.gt.f32.partialorder %v1353_v0, 0.0  ;;  %v2203_v55 = vsel %vm2139_vm8, %v2107_v10, %v2171_v22  ;;  %vm2141_vm8 = vcmp.gt.f32.partialorder %v2109_v63, 0.0 }
 0x454   : > { %3946 = vperm.xlu1 %6791, %v7836_v3  }
 0x455   : > { %3003 = vperm.xlu0 %6790, %v7836_v3   ;;  %v8401_v3 = vcvt.s32.f32 %v1165_v61  ;;  %v8414_v46 = vpop.xlane.xlu1 %1488  ;;  %v8426_v61 = vcvt.s32.f32 %v1168_v32  ;;  %v1449_v52 = vsel %vm1385_vm15, %v1353_v0, %v1417_v12  ;;  %v1357_v32 = vadd.f32 %v7877_v14, %v1314_v53 }
 0x456   : > { %v8446_v12 = vsel %vm1230_vm6, %v1450_v57, -1e+09  ;;  %v2201_v14 = vsel %vm2137_vm3, %v2105_v39, %v2169_v28  ;;  %v2170_v53 = vmul.f32 0.2, %v2106_v5  ;;  %vm2138_vm15 = vcmp.gt.f32.partialorder %v2106_v5, 0.0 }
 0x457   : > { %11021 = vst [vmem:[#allocation81_spill] sm:$0xff] %v8401_v3  ;;  %vm1229_vm14 = vcmp.gt.f32.partialorder %v8401_v3, 0.0  ;;  %11024 = vst [vmem:[#allocation84_spill] sm:$0xff] %v8426_v61  ;;  %vm10727_vm10 = vcmp.gt.f32.partialorder %v8426_v61, 0.0  ;;  %v2108_v57 = vadd.f32 %v7890_v24, %v8385_v49  ;;  %v8471_v39 = vsel %vm1230_vm6, %v2201_v14, -1e+09 }
 0x458   : > { %3950 = vperm.xlu1 %6791, %v7833_v2   ;;  %v8442_v1 = vsel %vm1229_vm14, %v1449_v52, -1e+09  ;;  %11026 = vst [vmem:[#allocation86_spill] sm:$0xff] %v8446_v12  ;;  %v3888_v52 = vld [vmem:[#allocation3 + $0x3] ss:$4 sm:$0x3]  ;;  %v2202_v58 = vsel %vm2138_vm15, %v2106_v5, %v2170_v53  ;;  %v3021_v5 = vadd.f32 %v8408_v31, %v7936_v21 }
 0x459   : > { %3007 = vperm.xlu0 %6790, %v7833_v2   ;;  %v8399_v2 = vpop.xlane.xlu0 %2239  ;;  %11025 = vst [vmem:[#allocation85_spill] sm:$0xff] %v8442_v1  ;;  %v1526_v43 = vmax.f32 %v8442_v1, %v8446_v12  ;;  %11030 = vst [vmem:[#allocation90_spill] sm:$0xff] %v8471_v39  ;;  %v8484_v27 = vrot.slane %v3888_v52, %v7870_v8  ;;  %v8487_v49 = vrot.slane %v3888_v52, %v7872_v9 }
 0x45a   : > { %vm1389_vm4 = vcmp.gt.f32.partialorder %v1357_v32, 0.0  ;;  %vm10719_vm3 = vcmp.gt.f32.partialorder %v8453_v36, 0.0  ;;  %v3022_v8 = vadd.f32 %v8451_v33, %v7936_v21  ;;  %v8505_v10 = vsel %vm10727_vm10, %v2203_v55, -1e+09 }
 0x45b   : > { %11035 = vst [vmem:[#allocation95_spill] sm:$0xff] %v8505_v10  ;;  %v2173_v53 = vmul.f32 0.2, %v2109_v63  ;;  %vm2140_vm15 = vcmp.gt.f32.partialorder %v2108_v57, 0.0  ;;  %v3965_v55 = vadd.f32 %v8487_v49, %v7921_v56 }
 0x45c   : > { %7032 = vset.pattern.permute.xlu1 %v11019_v54 }
 0x45d   : > { %7033 = vset.pattern.permute.xlu0 %v11019_v54  ;;  %v8424_v54 = vcvt.s32.f32 %v1167_v25  ;;  %v8428_v62 = vpop.xlane.xlu1 %2248  ;;  %v1170_v25 = vunpack.c.3.s8 %v8195_v6  ;;  %v1451_v6 = vsel %vm1387_vm7, %v1355_v37, %v1419_v11  ;;  %v8461_v11 = vsel %vm1229_vm14, %v2200_v38, -1e+09 }
 0x45e   : > { %11028 = vst [vmem:[#allocation88_spill] sm:$0xff] %v8461_v11  ;;  %v8479_v37 = vsel %vm10727_vm10, %v1452_v15, -1e+09  ;;  %v1422_v38 = vmul.f32 0.2, %v1358_v34  ;;  %vm1390_vm7 = vcmp.gt.f32.partialorder %v1358_v34, 0.0  ;;  %v2277_v14 = vmax.f32 %v8461_v11, %v8471_v39 }
 0x45f   : > { %v8418_v26 = vpop.xlane.xlu0 %1497  ;;  %11023 = vst [vmem:[#allocation83_spill] sm:$0xff] %v8424_v54  ;;  %vm10735_vm11 = vcmp.gt.f32.partialorder %v8424_v54, 0.0  ;;  %v8465_v28 = vcvt.s32.f32 %v1170_v25  ;;  %11032 = vst [vmem:[#allocation92_spill] sm:$0xff] %v8479_v37  ;;  %v1421_v25 = vmul.f32 0.2, %v1357_v32 }
 0x460   : > { %v8475_v24 = vsel %vm10735_vm11, %v1451_v6, -1e+09  ;;  %v8501_v9 = vsel %vm10735_vm11, %v2202_v58, -1e+09  ;;  %v2172_v15 = vmul.f32 0.2, %v2108_v57  ;;  %v3964_v58 = vadd.f32 %v8484_v27, %v7921_v56 }
 0x461   : > { %11029 = vst [vmem:[#allocation89_spill] sm:$0xff] %v8465_v28  ;;  %11031 = vst [vmem:[#allocation91_spill] sm:$0xff] %v8475_v24  ;;  %v1529_v6 = vmax.f32 %v8475_v24, %v8479_v37  ;;  %vm10718_vm13 = vcmp.gt.f32.partialorder %v8465_v28, 0.0  ;;  %v1453_v52 = vsel %vm1389_vm4, %v1357_v32, %v1421_v25  ;;  %v2280_v21 = vmax.f32 %v8501_v9, %v8505_v10 }
 0x462   : > { %11034 = vst [vmem:[#allocation94_spill] sm:$0xff] %v8501_v9  ;;  %v3085_v32 = vmul.f32 0.2, %v3021_v5  ;;  %v3086_v25 = vmul.f32 0.2, %v3022_v8  ;;  %vm3053_vm4 = vcmp.gt.f32.partialorder %v3021_v5, 0.0  ;;  %v3024_v9 = vadd.f32 %v8451_v33, %v7918_v50 }
 0x464   : > { %v3088_v24 = vmul.f32 0.2, %v3024_v9 }
 0x466   : > { %v8438_v0 = vpop.xlane.xlu1 %2245 }
 0x46b   : > { %v8430_v4 = vpop.xlane.xlu0 %1494 }
 0x470   : > { %v8463_v42 = vpop.xlane.xlu0 %1503 }
 0x471   : > { %v8481_v13 = vpop.xlane.xlu1 %2254 }
 0x472   : > { %11033 = vst [vmem:[#allocation93_spill] sm:$0xff] %v8481_v13 }
 0x476   : > { %v8507_v22 = vpop.xlane.xlu0 %1500 }
 0x478   : > { %1527 = vmax.xlane.f32.xlu0 %v1526_v43  ;;  %v1454_v43 = vsel %vm1390_vm7, %v1358_v34, %v1422_v38  ;;  %v2204_v38 = vsel %vm2140_vm15, %v2108_v57, %v2172_v15  ;;  %vm3054_vm7 = vcmp.gt.f32.partialorder %v3022_v8, 0.0  ;;  %v4029_v15 = vmul.f32 0.2, %v3965_v55 }
 0x479   : > { %v8509_v37 = vpop.xlane.xlu1 %2251  ;;  %v8523_v34 = vsel %vm10718_vm13, %v1454_v43, -1e+09  ;;  %vm3996_vm15 = vcmp.gt.f32.partialorder %v3964_v58, 0.0 }
 0x47a   : > { %11037 = vst [vmem:[#allocation97_spill] sm:$0xff] %v8523_v34 }
 0x47c   : > { %2278 = vmax.xlane.f32.xlu1 %v2277_v14  ;;  %1530 = vmax.xlane.f32.xlu0 %v1529_v6  ;;  %v8519_v14 = vsel %vm10719_vm3, %v1453_v52, -1e+09  ;;  %v2205_v6 = vsel %vm2141_vm8, %v2109_v63, %v2173_v53  ;;  %v3023_v52 = vadd.f32 %v8408_v31, %v7918_v50  ;;  %v4028_v63 = vmul.f32 0.2, %v3964_v58 }
 0x47d   : > { %11036 = vst [vmem:[#allocation96_spill] sm:$0xff] %v8519_v14  ;;  %v8525_v10 = vpop.xlane.xlu0 %1509  ;;  %v1532_v56 = vmax.f32 %v8519_v14, %v8523_v34  ;;  %v8541_v57 = vsel %vm10718_vm13, %v2205_v6, -1e+09  ;;  %v3117_v53 = vsel %vm3053_vm4, %v3021_v5, %v3085_v32  ;;  %v3118_v34 = vsel %vm3054_vm7, %v3022_v8, %v3086_v25 }
 0x47e   : > { %11038 = vst [vmem:[#allocation98_spill] sm:$0xff] %v8525_v10  ;;  %11041 = vst [vmem:[#allocation101_spill] sm:$0xff] %v8541_v57  ;;  %vm3997_vm8 = vcmp.gt.f32.partialorder %v3965_v55, 0.0  ;;  %v8547_v14 = vsel %vm1203_vm9, %v3117_v53, -1e+09  ;;  %v4060_v5 = vsel %vm3996_vm15, %v3964_v58, %v4028_v63  ;;  %vm3055_vm4 = vcmp.gt.f32.partialorder %v3023_v52, 0.0 }
 0x47f   : > { %11042 = vst [vmem:[#allocation102_spill] sm:$0xff] %v8547_v14  ;;  %v3087_v6 = vmul.f32 0.2, %v3023_v52  ;;  %v4061_v8 = vsel %vm3997_vm8, %v3965_v55, %v4029_v15  ;;  %vm3056_vm7 = vcmp.gt.f32.partialorder %v3024_v9, 0.0  ;;  %v8865_v10 = vld [vmem:[#allocation2 + $0xf8] sm:$0xff] }
 0x480   : > { %2281 = vmax.xlane.f32.xlu0 %v2280_v21  ;;  %v8537_v21 = vsel %vm10719_vm3, %v2204_v38, -1e+09  ;;  %v8551_v38 = vsel %vm1204_vm12, %v3118_v34, -1e+09  ;;  %v8565_v34 = vsel %vm1204_vm12, %v4061_v8, -1e+09  ;;  %v3120_v55 = vsel %vm3056_vm7, %v3024_v9, %v3088_v24 }
 0x481   : > { %v8533_v43 = vpop.xlane.xlu1 %2260  ;;  %11040 = vst [vmem:[#allocation100_spill] sm:$0xff] %v8537_v21  ;;  %v2283_v50 = vmax.f32 %v8537_v21, %v8541_v57  ;;  %11043 = vst [vmem:[#allocation103_spill] sm:$0xff] %v8551_v38  ;;  %v3181_v25 = vmax.f32 %v8547_v14, %v8551_v38  ;;  %v3119_v58 = vsel %vm3055_vm4, %v3023_v52, %v3087_v6  ;;  %v8579_v30 = vsel %vm1206_vm2, %v3120_v55, -1e+09 }
 0x482   : > { %11039 = vst [vmem:[#allocation99_spill] sm:$0xff] %v8533_v43  ;;  %11047 = vst [vmem:[#allocation107_spill] sm:$0xff] %v8565_v34 }
 0x483   : > { %v8553_v39 = vpop.xlane.xlu0 %1506  ;;  %11051 = vst [vmem:[#allocation111_spill] sm:$0xff] %v8579_v30  ;;  %11125 = vst [vmem:[#allocation137_spill] sm:$0xff] %v8865_v10 }
 0x484   : > { %1533 = vmax.xlane.f32.xlu0 %v1532_v56  ;;  %11044 = vst [vmem:[#allocation104_spill] sm:$0xff] %v8553_v39  ;;  %v8561_v56 = vsel %vm1203_vm9, %v4060_v5, -1e+09 }
 0x485   : > { %11046 = vst [vmem:[#allocation106_spill] sm:$0xff] %v8561_v56  ;;  %v4124_v15 = vmax.f32 %v8561_v56, %v8565_v34  ;;  %v11061_v56 = vld [vmem:[#allocation22_spill] sm:$0xff] }
 0x486   : > { %v8555_v32 = vpop.xlane.xlu1 %2257  ;;  %v3027_v38 = vadd.f32 %v8408_v31, %v11061_v56  ;;  %v3028_v14 = vadd.f32 %v8451_v33, %v11061_v56 }
 0x487   : > { %11045 = vst [vmem:[#allocation105_spill] sm:$0xff] %v8555_v32  ;;  %v8776_v32 = vld [vmem:[#allocation2 + $0xa8] sm:$0xff] }
 0x488   : > { %2284 = vmax.xlane.f32.xlu0 %v2283_v50  ;;  %v8575_v50 = vsel %vm1205_vm1, %v3119_v58, -1e+09  ;;  %vm3059_vm10 = vcmp.gt.f32.partialorder %v3027_v38, 0.0  ;;  %vm3060_vm11 = vcmp.gt.f32.partialorder %v3028_v14, 0.0 }
 0x489   : > { %11050 = vst [vmem:[#allocation110_spill] sm:$0xff] %v8575_v50  ;;  %v3184_v52 = vmax.f32 %v8575_v50, %v8579_v30  ;;  %v3971_v50 = vadd.f32 %v8487_v49, %v7979_v48 }
 0x48a   : > { %v8567_v53 = vpop.xlane.xlu0 %1512 }
 0x48b   : > { %11048 = vst [vmem:[#allocation108_spill] sm:$0xff] %v8567_v53  ;;  %vm4003_vm3 = vcmp.gt.f32.partialorder %v3971_v50, 0.0  ;;  %v8774_v53 = vld [vmem:[#allocation2 + $0xa0] sm:$0xff] }
 0x48c   : > { %3182 = vmax.xlane.f32.xlu0 %v3181_v25  ;;  %v8569_v63 = vpop.xlane.xlu1 %2263  ;;  %v3970_v25 = vadd.f32 %v8484_v27, %v7979_v48  ;;  %v6812_v39 = vpack.i.bf16 %v8776_v32, %v8774_v53 }
 0x48d   : > { %11049 = vst [vmem:[#allocation109_spill] sm:$0xff] %v8569_v63 }
 0x48e   : > { %v4034_v34 = vmul.f32 0.2, %v3970_v25  ;;  %vm4002_vm13 = vcmp.gt.f32.partialorder %v3970_v25, 0.0 }
 0x490   : > { %4125 = vmax.xlane.f32.xlu0 %v4124_v15  ;;  %v8581_v35 = vpop.xlane.xlu0 %1515  ;;  %v11060_v15 = vld [vmem:[#allocation30_spill] sm:$0xff] }
 0x491   : > { %11052 = vst [vmem:[#allocation112_spill] sm:$0xff] %v8581_v35  ;;  %v3968_v30 = vadd.f32 %v8484_v27, %v11060_v15 }
 0x493   : > { %vm4000_vm9 = vcmp.gt.f32.partialorder %v3968_v30, 0.0 }
 0x494   : > { %v8585_v24 = vpop.xlane.xlu1 %2266  ;;  %3185 = vmax.xlane.f32.xlu0 %v3184_v52  ;;  %v3969_v52 = vadd.f32 %v8487_v49, %v11060_v15  ;;  %v4032_v15 = vmul.f32 0.2, %v3968_v30 }
 0x495   : > { %11053 = vst [vmem:[#allocation113_spill] sm:$0xff] %v8585_v24  ;;  %v8587_v9 = vpop.xlane.xlu0 %1518  ;;  %v3092_v24 = vmul.f32 0.2, %v3028_v14 }
 0x496   : > { %11054 = vst [vmem:[#allocation114_spill] sm:$0xff] %v8587_v9  ;;  %vm4001_vm12 = vcmp.gt.f32.partialorder %v3969_v52, 0.0  ;;  %v4033_v36 = vmul.f32 0.2, %v3969_v52  ;;  %v4064_v45 = vsel %vm4000_vm9, %v3968_v30, %v4032_v15 }
 0x498   : > { %v4065_v9 = vsel %vm4001_vm12, %v3969_v52, %v4033_v36 }
 0x49a   : > { %v8589_v6 = vpop.xlane.xlu1 %2269 }
 0x49b   : > { %11055 = vst [vmem:[#allocation115_spill] sm:$0xff] %v8589_v6  ;;  %v8591_v5 = vpop.xlane.xlu0 %1521 }
 0x49c   : > { %11056 = vst [vmem:[#allocation116_spill] sm:$0xff] %v8591_v5  ;;  %v3091_v5 = vmul.f32 0.2, %v3027_v38 }
 0x49e   : > { %v3123_v36 = vsel %vm3059_vm10, %v3027_v38, %v3091_v5 }
 0x49f   : > { %v8593_v8 = vpop.xlane.xlu1 %2272 }
 0x4a0   : > { %11057 = vst [vmem:[#allocation117_spill] sm:$0xff] %v8593_v8  ;;  %v8597_v58 = vpop.xlane.xlu0 %1524  ;;  %v4035_v8 = vmul.f32 0.2, %v3971_v50 }
 0x4a1   : > { %11058 = vst [vmem:[#allocation118_spill] sm:$0xff] %v8597_v58 }
 0x4a2   : > { %v4067_v30 = vsel %vm4003_vm3, %v3971_v50, %v4035_v8  ;;  %v3124_v50 = vsel %vm3060_vm11, %v3028_v14, %v3092_v24  ;;  %v11072_v8 = vld [vmem:[#allocation18_spill] sm:$0xff] }
 0x4a4   : > { %v8599_v55 = vpop.xlane.xlu1 %2275 }
 0x4a5   : > { %11059 = vst [vmem:[#allocation119_spill] sm:$0xff] %v8599_v55 }
 0x4a8   : > { %v3895_v57 = vpop.permute.xlu1 %3894  ;;  %v2956_v21 = vpop.permute.xlu0 %2955 }
 0x4a9   : > { %v3966_v11 = vadd.f32 %v8484_v27, %v3895_v57  ;;  %v3967_v12 = vadd.f32 %v8487_v49, %v3895_v57  ;;  %v3025_v28 = vadd.f32 %v8408_v31, %v2956_v21  ;;  %v3026_v48 = vadd.f32 %v8451_v33, %v2956_v21 }
 0x4ab   : > { %vm3998_vm15 = vcmp.gt.f32.partialorder %v3966_v11, 0.0  ;;  %vm3999_vm8 = vcmp.gt.f32.partialorder %v3967_v12, 0.0  ;;  %v4030_v1 = vmul.f32 0.2, %v3966_v11  ;;  %v4031_v55 = vmul.f32 0.2, %v3967_v12 }
 0x4ac   : > { %vm3057_vm4 = vcmp.gt.f32.partialorder %v3025_v28, 0.0  ;;  %vm3058_vm7 = vcmp.gt.f32.partialorder %v3026_v48, 0.0  ;;  %v3089_v56 = vmul.f32 0.2, %v3025_v28  ;;  %v3090_v58 = vmul.f32 0.2, %v3026_v48  ;;  %v2964_v57 = vpop.permute.xlu0 %2963  ;;  %v3907_v35 = vpop.permute.xlu1 %3906 }
 0x4ad   : > { %v4062_v61 = vsel %vm3998_vm15, %v3966_v11, %v4030_v1  ;;  %v4063_v54 = vsel %vm3999_vm8, %v3967_v12, %v4031_v55  ;;  %v4066_v1 = vsel %vm4002_vm13, %v3970_v25, %v4034_v34  ;;  %v3029_v12 = vadd.f32 %v8408_v31, %v2964_v57  ;;  %v11077_v55 = vld [vmem:[#allocation19_spill] sm:$0xff] }
 0x4ae   : > { %v3121_v6 = vsel %vm3057_vm4, %v3025_v28, %v3089_v56  ;;  %v3122_v21 = vsel %vm3058_vm7, %v3026_v48, %v3090_v58  ;;  %v8619_v63 = vsel %vm1205_vm1, %v4062_v61, -1e+09  ;;  %v8623_v44 = vsel %vm1206_vm2, %v4063_v54, -1e+09  ;;  %v11067_v54 = vld [vmem:[#allocation21_spill] sm:$0xff] }
 0x4af   : > { %11062 = vst [vmem:[#allocation30_spill] sm:$0xff] %v8619_v63  ;;  %11063 = vst [vmem:[#allocation22_spill] sm:$0xff] %v8623_v44  ;;  %v8629_v28 = vsel %vm1207_vm5, %v4064_v45, -1e+09  ;;  %v3030_v17 = vadd.f32 %v8451_v33, %v2964_v57  ;;  %v4127_v61 = vmax.f32 %v8619_v63, %v8623_v44  ;;  %v8637_v18 = vsel %vm1207_vm5, %v3121_v6, -1e+09 }
 0x4b0   : > { %11065 = vst [vmem:[#allocation20_spill] sm:$0xff] %v8629_v28  ;;  %11066 = vst [vmem:[#allocation120_spill] sm:$0xff] %v8637_v18  ;;  %vm11068_vm1 = vcmp.gt.f32.partialorder %v11067_v54, 0.0  ;;  %v3972_v25 = vadd.f32 %v8484_v27, %v3907_v35  ;;  %v3973_v45 = vadd.f32 %v8487_v49, %v3907_v35  ;;  %vm11073_vm5 = vcmp.gt.f32.partialorder %v11072_v8, 0.0  ;;  %v2968_v52 = vpop.permute.xlu0 %2967 }
 0x4b1   : > { %v8641_v34 = vsel %vm11068_vm1, %v3122_v21, -1e+09  ;;  %vm11070_vm2 = vmmov %vm11068_vm1  ;;  %4128 = vmax.xlane.f32.xlu0 %v4127_v61  ;;  %v8653_v6 = vsel %vm11073_vm5, %v3123_v36, -1e+09  ;;  %vm11078_vm3 = vcmp.gt.f32.partialorder %v11077_v55, 0.0  ;;  %vm3061_vm13 = vcmp.gt.f32.partialorder %v3029_v12, 0.0 }
 0x4b2   : > { %11069 = vst [vmem:[#allocation21_spill] sm:$0xff] %v8641_v34  ;;  %v8647_v38 = vsel %vm11070_vm2, %v4065_v9, -1e+09  ;;  %v3187_v5 = vmax.f32 %v8637_v18, %v8641_v34  ;;  %11074 = vst [vmem:[#allocation18_spill] sm:$0xff] %v8653_v6  ;;  %v8661_v35 = vsel %vm11078_vm3, %v4067_v30, -1e+09  ;;  %v3031_v57 = vadd.f32 %v8408_v31, %v2968_v52 }
 0x4b3   : > { %11071 = vst [vmem:[#allocation121_spill] sm:$0xff] %v8647_v38  ;;  %vm11075_vm10 = vmmov %vm11073_vm5  ;;  %v4130_v14 = vmax.f32 %v8629_v28, %v8647_v38  ;;  %v3093_v9 = vmul.f32 0.2, %v3029_v12  ;;  %v3094_v15 = vmul.f32 0.2, %v3030_v17  ;;  %vm3062_vm9 = vcmp.gt.f32.partialorder %v3030_v17, 0.0 }
 0x4b4   : > { %v8657_v58 = vsel %vm11075_vm10, %v4066_v1, -1e+09  ;;  %11079 = vst [vmem:[#allocation19_spill] sm:$0xff] %v8661_v35  ;;  %vm11080_vm11 = vmmov %vm11078_vm3  ;;  %v4036_v48 = vmul.f32 0.2, %v3972_v25  ;;  %3188 = vmax.xlane.f32.xlu1 %v3187_v5  ;;  %vm4004_vm12 = vcmp.gt.f32.partialorder %v3972_v25, 0.0  ;;  %v3032_v1 = vadd.f32 %v8451_v33, %v2968_v52 }
 0x4b5   : > { %11076 = vst [vmem:[#allocation122_spill] sm:$0xff] %v8657_v58  ;;  %v8667_v24 = vsel %vm11080_vm11, %v3124_v50, -1e+09  ;;  %v4037_v56 = vmul.f32 0.2, %v3973_v45  ;;  %vm4005_vm15 = vcmp.gt.f32.partialorder %v3973_v45, 0.0  ;;  %4131 = vmax.xlane.f32.xlu0 %v4130_v14  ;;  %v4133_v11 = vmax.f32 %v8657_v58, %v8661_v35 }
 0x4b6   : > { %11081 = vst [vmem:[#allocation123_spill] sm:$0xff] %v8667_v24  ;;  %v3190_v21 = vmax.f32 %v8653_v6, %v8667_v24  ;;  %v3125_v36 = vsel %vm3061_vm13, %v3029_v12, %v3093_v9  ;;  %v3126_v30 = vsel %vm3062_vm9, %v3030_v17, %v3094_v15  ;;  %v4068_v61 = vsel %vm4004_vm12, %v3972_v25, %v4036_v48  ;;  %v11082_v5 = vld [vmem:[#allocation29_spill] sm:$0xff]  ;;  %v11085_v55 = vld [vmem:[#allocation31_spill] sm:$0xff] }
 0x4b7   : > { %v4069_v54 = vsel %vm4005_vm15, %v3973_v45, %v4037_v56  ;;  %v3095_v50 = vmul.f32 0.2, %v3031_v57  ;;  %vm11083_vm8 = vcmp.gt.f32.partialorder %v11082_v5, 0.0  ;;  %vm11086_vm4 = vcmp.gt.f32.partialorder %v11085_v55, 0.0  ;;  %v11092_v15 = vld [vmem:[#allocation23_spill] sm:$0xff]  ;;  %v11095_v56 = vld [vmem:[#allocation26_spill] sm:$0xff]  ;;  %v2972_v5 = vpop.permute.xlu0 %2971 }
 0x4b8   : > { %3191 = vmax.xlane.f32.xlu1 %v3190_v21  ;;  %v8677_v8 = vsel %vm11083_vm8, %v3125_v36, -1e+09  ;;  %v8681_v14 = vsel %vm11086_vm4, %v3126_v30, -1e+09  ;;  %v3096_v24 = vmul.f32 0.2, %v3032_v1  ;;  %vm11088_vm7 = vmmov %vm11083_vm8 }
 0x4b9   : > { %4134 = vmax.xlane.f32.xlu0 %v4133_v11  ;;  %11084 = vst [vmem:[#allocation29_spill] sm:$0xff] %v8677_v8  ;;  %11087 = vst [vmem:[#allocation31_spill] sm:$0xff] %v8681_v14  ;;  %v3193_v52 = vmax.f32 %v8677_v8, %v8681_v14  ;;  %v8687_v12 = vsel %vm11088_vm7, %v4068_v61, -1e+09  ;;  %vm3063_vm2 = vcmp.gt.f32.partialorder %v3031_v57, 0.0  ;;  %vm3064_vm5 = vcmp.gt.f32.partialorder %v3032_v1, 0.0  ;;  %v3911_v14 = vpop.permute.xlu1 %3910 }
 0x4ba   : > { %11089 = vst [vmem:[#allocation124_spill] sm:$0xff] %v8687_v12  ;;  %vm11090_vm1 = vmmov %vm11086_vm4  ;;  %v3127_v45 = vsel %vm3063_vm2, %v3031_v57, %v3095_v50  ;;  %v3128_v9 = vsel %vm3064_vm5, %v3032_v1, %v3096_v24  ;;  %vm11093_vm10 = vcmp.gt.f32.partialorder %v11092_v15, 0.0  ;;  %vm11096_vm3 = vcmp.gt.f32.partialorder %v11095_v56, 0.0  ;;  %v2574_v36 = vld [vmem:[#allocation2 + $0x80] sm:$0xff]  ;;  %v2575_v30 = vld [vmem:[#allocation2 + $0x88] sm:$0xff] }
 0x4bb   : > { %v8691_v17 = vsel %vm11090_vm1, %v4069_v54, -1e+09  ;;  %v8697_v48 = vsel %vm11093_vm10, %v3127_v45, -1e+09  ;;  %v8701_v21 = vsel %vm11096_vm3, %v3128_v9, -1e+09  ;;  %v6792_v61 = vpack.i.bf16 %v2575_v30, %v2574_v36  ;;  %v8725_v1 = vpop.permute.xlu0 %2975  ;;  %vm11101_vm9 = vmmov %vm11093_vm10 }
 0x4bc   : > { %11091 = vst [vmem:[#allocation125_spill] sm:$0xff] %v8691_v17  ;;  %3194 = vmax.xlane.f32.xlu1 %v3193_v52  ;;  %v4136_v25 = vmax.f32 %v8687_v12, %v8691_v17  ;;  %11094 = vst [vmem:[#allocation23_spill] sm:$0xff] %v8697_v48  ;;  %v3196_v11 = vmax.f32 %v8697_v48, %v8701_v21  ;;  %v8706_v24 = vld [vmem:[#allocation2 + $0x20] sm:$0xff]  ;;  %v8708_v57 = vld [vmem:[#allocation2 + $0x28] sm:$0xff]  ;;  %v3975_v35 = vadd.f32 %v8487_v49, %v3911_v14 }
 0x4bd   : > { %11097 = vst [vmem:[#allocation26_spill] sm:$0xff] %v8701_v21  ;;  %v2558_v54 = vld [vmem:[#allocation2] sm:$0xff]  ;;  %v2559_v50 = vld [vmem:[#allocation2 + $0x8] sm:$0xff]  ;;  %v8712_v52 = vld [vmem:[#allocation2 + $0x90] sm:$0xff]  ;;  %vm11135_vm10 = vcmp.gt.f32.partialorder %v11134_v41, 0.0 }
 0x4be   : > { %4137 = vmax.xlane.f32.xlu0 %v4136_v25  ;;  %v6797_v55 = vpack.i.bf16 %v2559_v50, %v2558_v54  ;;  %v8714_v25 = vld [vmem:[#allocation2 + $0x98] sm:$0xff]  ;;  %v8716_v45 = vld [vmem:[#allocation2 + $0xb0] sm:$0xff]  ;;  %v11099_v17 = vld [vmem:[#allocation17_spill] sm:$0xff]  ;;  %v6503_v38 = vpack.c.bf16 %v2559_v50, %v2558_v54  ;;  %v4039_v34 = vmul.f32 0.2, %v3975_v35  ;;  %vm4007_vm13 = vcmp.gt.f32.partialorder %v3975_v35, 0.0 }
 0x4bf   : > { %v8718_v9 = vld [vmem:[#allocation2 + $0xb8] sm:$0xff]  ;;  %v11098_v21 = vld [vmem:[#allocation15_spill] sm:$0xff]  ;;  %v1536_v12 = vsub.f32 %v11099_v17, %v8414_v46  ;;  %v8734_v58 = vpop.permute.xlu0 %2979  ;;  %vm11103_vm12 = vmmov %vm11096_vm3 }
 0x4c0   : > { %v1535_v48 = vsub.f32 %v11098_v21, %v8414_v46  ;;  %v4071_v21 = vsel %vm4007_vm13, %v3975_v35, %v4039_v34  ;;  %v3915_v35 = vpop.permute.xlu1 %3914 }
 0x4c1   : > { %v1569_v6 = vmul.f32 1.442695, %v1536_v12  ;;  %v3976_v50 = vadd.f32 %v8484_v27, %v3915_v35 }
 0x4c2   : > { %3197 = vmax.xlane.f32.xlu0 %v3196_v11  ;;  %v6802_v11 = vpack.i.bf16 %v8714_v25, %v8712_v52  ;;  %v1567_v8 = vmul.f32 1.442695, %v1535_v48 }
 0x4c3   : > { %v8736_v17 = vpop.permute.xlu0 %2983  ;;  %v4040_v18 = vmul.f32 0.2, %v3976_v50  ;;  %vm4008_vm4 = vcmp.gt.f32.partialorder %v3976_v50, 0.0 }
 0x4c4   : > { %7034 = vpow2.f32 %v1567_v8  ;;  %v8746_v8 = vsel %vm11103_vm12, %v4071_v21, -1e+09  ;;  %v2560_v21 = vld [vmem:[#allocation2 + $0x10] sm:$0xff] }
 0x4c5   : > { %7036 = vpow2.f32 %v1569_v6  ;;  %11104 = vst [vmem:[#allocation17_spill] sm:$0xff] %v8746_v8  ;;  %v3033_v6 = vadd.f32 %v8408_v31, %v2972_v5 }
 0x4c7   : > { %vm3065_vm15 = vcmp.gt.f32.partialorder %v3033_v6, 0.0 }
 0x4cd   : > { %6793 = vrot.lane.b32.xlu1 %v6792_v61, %s7526_s8  ;;  %v6501_v61 = vpack.c.bf16 %v2575_v30, %v2574_v36  ;;  %v3034_v36 = vadd.f32 %v8451_v33, %v2972_v5 }
 0x4ce   : > { %v8754_v30 = vpop.eup %7034 }
 0x4cf   : > { %6502 = vmatprep.subr.bf16.mxu1 %v6501_v61  ;;  %v8758_v54 = vpop.eup %7036  ;;  %v3977_v61 = vadd.f32 %v8487_v49, %v3915_v35  ;;  %v3098_v5 = vmul.f32 0.2, %v3034_v36  ;;  %vm3066_vm8 = vcmp.gt.f32.partialorder %v3034_v36, 0.0 }
 0x4d0   : > { %6504 = vmatpush3.bf16.msra.mxu1 %v6503_v38  ;;  %v8750_v38 = vpop.permute.xlu0 %2987 }
 0x4d1   : > { %v4041_v44 = vmul.f32 0.2, %v3977_v61  ;;  %v3130_v3 = vsel %vm3066_vm8, %v3034_v36, %v3098_v5  ;;  %vm4009_vm7 = vcmp.gt.f32.partialorder %v3977_v61, 0.0 }
 0x4d8   : > { %6798 = vrot.lane.b32.xlu0 %v6797_v55, %s7526_s8  ;;  %v3974_v55 = vadd.f32 %v8484_v27, %v3911_v14 }
 0x4da   : > { %v4038_v28 = vmul.f32 0.2, %v3974_v55  ;;  %vm4006_vm11 = vcmp.gt.f32.partialorder %v3974_v55, 0.0 }
 0x4dc   : > { %6803 = vrot.lane.b32.xlu0 %v6802_v11, %s7526_s8  ;;  %v4070_v48 = vsel %vm4006_vm11, %v3974_v55, %v4038_v28  ;;  %v11100_v11 = vld [vmem:[#allocation14_spill] sm:$0xff]  ;;  %v11105_v28 = vld [vmem:[#allocation16_spill] sm:$0xff]  ;;  %v3097_v55 = vmul.f32 0.2, %v3033_v6 }
 0x4dd   : > { %v2286_v14 = vsub.f32 %v11100_v11, %v8399_v2  ;;  %v8742_v12 = vsel %vm11101_vm9, %v4070_v48, -1e+09  ;;  %v2287_v34 = vsub.f32 %v11105_v28, %v8399_v2  ;;  %v8762_v11 = vpop.permute.xlu0 %2991  ;;  %v1631_v28 = vadd.f32 %v8758_v54, %v8754_v30  ;;  %vm11145_vm9 = vmmov %vm11135_vm10 }
 0x4de   : > { %11102 = vst [vmem:[#allocation15_spill] sm:$0xff] %v8742_v12  ;;  %v4139_v15 = vmax.f32 %v8742_v12, %v8746_v8  ;;  %11106 = vst [vmem:[#allocation14_spill] sm:$0xff] %v8762_v11  ;;  %v2561_v8 = vld [vmem:[#allocation2 + $0x18] sm:$0xff]  ;;  %v8766_v12 = vld [vmem:[#allocation2 + $0x30] sm:$0xff]  ;;  %v3129_v63 = vsel %vm3065_vm15, %v3033_v6, %v3097_v55  ;;  %v6513_v55 = vpack.c.bf16 %v8718_v9, %v8716_v45 }
 0x4df   : > { %v2318_v56 = vmul.f32 1.442695, %v2286_v14  ;;  %v2320_v48 = vmul.f32 1.442695, %v2287_v34  ;;  %v8768_v14 = vld [vmem:[#allocation2 + $0x38] sm:$0xff]  ;;  %v6505_v34 = vpack.c.bf16 %v8714_v25, %v8712_v52  ;;  %v6511_v52 = vpack.c.bf16 %v8708_v57, %v8706_v24  ;;  %v11109_v6 = vld [vmem:[#allocation37_spill] sm:$0xff] }
 0x4e0   : > { %vm11110_vm1 = vcmp.gt.f32.partialorder %v11109_v6, 0.0  ;;  %v8816_v25 = vld [vmem:[#allocation2 + $0xc0] sm:$0xff]  ;;  %v8818_v6 = vld [vmem:[#allocation2 + $0xc8] sm:$0xff] }
 0x4e1   : > { %7038 = vpow2.f32 %v2318_v56  ;;  %6506 = vmatprep.subr.bf16.mxu1 %v6505_v34  ;;  %v6509_v56 = vpack.c.bf16 %v8776_v32, %v8774_v53  ;;  %v8788_v36 = vsel %vm11110_vm1, %v3130_v3, -1e+09  ;;  %v8792_v5 = vpop.permute.xlu0 %2995  ;;  %v4073_v34 = vsel %vm4009_vm7, %v3977_v61, %v4041_v44  ;;  %vm11114_vm2 = vmmov %vm11110_vm1 }
 0x4e2   : > { %7040 = vpow2.f32 %v2320_v48  ;;  %11111 = vst [vmem:[#allocation36_spill] sm:$0xff] %v8788_v36  ;;  %11112 = vst [vmem:[#allocation37_spill] sm:$0xff] %v8792_v5  ;;  %v4072_v48 = vsel %vm4008_vm4, %v3976_v50, %v4040_v18  ;;  %v8804_v3 = vsel %vm11114_vm2, %v4073_v34, -1e+09  ;;  %v8824_v34 = vld [vmem:[#allocation2 + $0x40] sm:$0xff]  ;;  %vm11164_vm1 = vcmp.gt.f32.partialorder %v8069_v23, 0.0 }
 0x4e3   : > { %v8800_v35 = vsel %vm1215_vm0, %v4072_v48, -1e+09  ;;  %11115 = vst [vmem:[#allocation127_spill] sm:$0xff] %v8804_v3  ;;  %v6517_v48 = vpack.c.bf16 %v8818_v6, %v8816_v25  ;;  %vm11166_vm2 = vcmp.gt.f32.partialorder %v8109_v29, 0.0  ;;  %v11174_v23 = vld [vmem:[#allocation33_spill] sm:$0xff] }
 0x4e4   : > { %11113 = vst [vmem:[#allocation126_spill] sm:$0xff] %v8800_v35  ;;  %v4142_v50 = vmax.f32 %v8800_v35, %v8804_v3  ;;  %v3919_v35 = vpop.permute.xlu1 %3918 }
 0x4e5   : > { %v8808_v44 = vpop.permute.xlu0 %2999 }
 0x4e6   : > { %11117 = vst [vmem:[#allocation129_spill] sm:$0xff] %v8808_v44  ;;  %v8863_v44 = vld [vmem:[#allocation2 + $0xf0] sm:$0xff] }
 0x4e7   : > { %11124 = vst [vmem:[#allocation136_spill] sm:$0xff] %v8863_v44 }
 0x4eb   : > { %v8806_v18 = vpop.eup %7038 }
 0x4ec   : > { %11116 = vst [vmem:[#allocation128_spill] sm:$0xff] %v8806_v18  ;;  %v8812_v61 = vpop.eup %7040 }
 0x4f1   : > { %4140 = vmax.xlane.f32.xlu1 %v4139_v15  ;;  %v6507_v15 = vpack.c.bf16 %v2561_v8, %v2560_v21 }
 0x4f3   : > { %6508 = vmatpush3.bf16.msra.mxu1 %v6507_v15 }
 0x4f4   : > { %6510 = vmatprep.subr.bf16.mxu1 %v6509_v56  ;;  %v6807_v56 = vpack.i.bf16 %v2561_v8, %v2560_v21  ;;  %v8831_v8 = vld [vmem:[#allocation2 + $0xd8] sm:$0xff]  ;;  %v8833_v21 = vld [vmem:[#allocation2 + $0x50] sm:$0xff] }
 0x4f5   : > { %1632 = vadd.xlane.f32.xlu1 %v1631_v28  ;;  %v8784_v28 = vsel %vm1215_vm0, %v3129_v63, -1e+09  ;;  %v6515_v63 = vpack.c.bf16 %v8768_v14, %v8766_v12 }
 0x4f6   : > { %11108 = vst [vmem:[#allocation16_spill] sm:$0xff] %v8784_v28  ;;  %v3199_v15 = vmax.f32 %v8784_v28, %v8788_v36  ;;  %v8843_v28 = vld [vmem:[#allocation2 + $0xe0] sm:$0xff] }
 0x4f7   : > { %6512 = vmatpush3.bf16.msra.mxu1 %v6511_v52  ;;  %v2382_v52 = vadd.f32 %v8812_v61, %v8806_v18 }
 0x4f8   : > { %6514 = vmatprep.subr.bf16.mxu1 %v6513_v55  ;;  %v8820_v55 = vpop.permute.xlu0 %3003 }
 0x4f9   : > { %11118 = vst [vmem:[#allocation130_spill] sm:$0xff] %v8820_v55  ;;  %v8851_v55 = vpop.permute.xlu1 %3922 }
 0x4fb   : > { %3200 = vmax.xlane.f32.xlu0 %v3199_v15  ;;  %6516 = vmatpush3.bf16.msra.mxu1 %v6515_v63  ;;  %v8826_v15 = vld [vmem:[#allocation2 + $0x48] sm:$0xff]  ;;  %v8828_v63 = vld [vmem:[#allocation2 + $0xd0] sm:$0xff] }
 0x4fc   : > { %6518 = vmatprep.subr.bf16.mxu1 %v6517_v48  ;;  %v6521_v3 = vpack.c.bf16 %v8831_v8, %v8828_v63  ;;  %v8849_v48 = vpop.permute.xlu0 %3007 }
 0x4fd   : > { %11120 = vst [vmem:[#allocation132_spill] sm:$0xff] %v8849_v48  ;;  %v8873_v48 = vld [vmem:[#allocation2 + $0x78] sm:$0xff] }
 0x4fe   : > { %11127 = vst [vmem:[#allocation139_spill] sm:$0xff] %v8873_v48 }
 0x4ff   : > { %4143 = vmax.xlane.f32.xlu0 %v4142_v50  ;;  %v8835_v50 = vld [vmem:[#allocation2 + $0x58] sm:$0xff] }
 0x500   : > { %v6523_v36 = vpack.c.bf16 %v8835_v50, %v8833_v21 }
 0x503   : > { %2383 = vadd.xlane.f32.xlu0 %v2382_v52  ;;  %v6519_v52 = vpack.c.bf16 %v8826_v15, %v8824_v34 }
 0x505   : > { %6520 = vmatpush3.bf16.msra.mxu1 %v6519_v52  ;;  %v8853_v19 = vpop.xlane.xlu0 %1527  ;;  %v8855_v52 = vld [vmem:[#allocation2 + $0x60] sm:$0xff] }
 0x506   : > { %6808 = vrot.lane.b32.xlu1 %v6807_v56, %s7526_s8  ;;  %v8845_v56 = vld [vmem:[#allocation2 + $0xe8] sm:$0xff]  ;;  %6522 = vmatprep.subr.bf16.mxu1 %v6521_v3  ;;  %11121 = vst [vmem:[#allocation133_spill] sm:$0xff] %v8853_v19  ;;  %11122 = vst [vmem:[#allocation134_spill] sm:$0xff] %v8855_v52  ;;  %v6527_v3 = vpack.c.bf16 %v8857_v51, %v8855_v52  ;;  %v8871_v19 = vld [vmem:[#allocation2 + $0x70] sm:$0xff] }
 0x507   : > { %11119 = vst [vmem:[#allocation131_spill] sm:$0xff] %v8845_v56  ;;  %v6525_v18 = vpack.c.bf16 %v8845_v56, %v8843_v28  ;;  %11126 = vst [vmem:[#allocation138_spill] sm:$0xff] %v8871_v19  ;;  %v6531_v43 = vpack.c.bf16 %v8873_v48, %v8871_v19 }
 0x509   : > { %6524 = vmatpush3.bf16.msra.mxu1 %v6523_v36  ;;  %v6529_v36 = vpack.c.bf16 %v8865_v10, %v8863_v44  ;;  %v8875_v5 = vpop.xlane.xlu0 %1530  ;;  %v3035_v10 = vadd.f32 %v8408_v31, %v8725_v1 }
 0x50a   : > { %6526 = vmatprep.subr.bf16.mxu1 %v6525_v18  ;;  %v8869_v18 = vpop.permute.xlu1 %3926  ;;  %11128 = vst [vmem:[#allocation140_spill] sm:$0xff] %v8875_v5 }
 0x50b   : > { %v3099_v5 = vmul.f32 0.2, %v3035_v10  ;;  %vm3067_vm0 = vcmp.gt.f32.partialorder %v3035_v10, 0.0 }
 0x50d   : > { %6528 = vmatpush3.bf16.msra.mxu1 %v6527_v3  ;;  %v3036_v3 = vadd.f32 %v8451_v33, %v8725_v1  ;;  %v8887_v44 = vpop.xlane.xlu0 %2281  ;;  %v3131_v19 = vsel %vm3067_vm0, %v3035_v10, %v3099_v5  ;;  %v11133_v1 = vld [vmem:[#allocation11_spill] sm:$0xff]  ;;  %vm11168_vm0 = vmmov %vm11164_vm1 }
 0x50e   : > { %6530 = vmatprep.subr.bf16.mxu1 %v6529_v36  ;;  %v8885_v36 = vpop.permute.xlu1 %3930  ;;  %11129 = vst [vmem:[#allocation141_spill] sm:$0xff] %v8887_v44  ;;  %v1538_v52 = vsub.f32 %v11133_v1, %v8389_v59  ;;  %v8900_v44 = vsel %vm11135_vm10, %v3131_v19, -1e+09  ;;  %vm1679_vm10 = vcmp.gt.f32.partialorder %v8414_v46, -1e+08 }
 0x50f   : > { %v3100_v13 = vmul.f32 0.2, %v3036_v3  ;;  %vm3068_vm5 = vcmp.gt.f32.partialorder %v3036_v3, 0.0 }
 0x511   : > { %6532 = vmatpush3.bf16.msra.mxu1 %v6531_v43  ;;  %v8892_v32 = vpop.xlane.xlu0 %1533  ;;  %v11132_v43 = vld [vmem:[#allocation10_spill] sm:$0xff]  ;;  %v3132_v51 = vsel %vm3068_vm5, %v3036_v3, %v3100_v13  ;;  %v3979_v3 = vadd.f32 %v8487_v49, %v3919_v35  ;;  %vm11170_vm5 = vmmov %vm11166_vm2 }
 0x512   : > { %v8890_v48 = vpop.permute.xlu1 %3934  ;;  %11131 = vst [vmem:[#allocation143_spill] sm:$0xff] %v8892_v32  ;;  %v1537_v53 = vsub.f32 %v11132_v43, %v8389_v59  ;;  %11136 = vst [vmem:[#allocation10_spill] sm:$0xff] %v8900_v44  ;;  %v1573_v32 = vmul.f32 1.442695, %v1538_v52 }
 0x513   : > { %11130 = vst [vmem:[#allocation142_spill] sm:$0xff] %v8890_v48  ;;  %v4043_v43 = vmul.f32 0.2, %v3979_v3  ;;  %vm4011_vm13 = vcmp.gt.f32.partialorder %v3979_v3, 0.0 }
 0x514   : > { %v1571_v11 = vmul.f32 1.442695, %v1537_v53 }
 0x515   : > { %v8908_v56 = vpop.xlane.xlu0 %2284  ;;  %v4075_v19 = vsel %vm4011_vm13, %v3979_v3, %v4043_v43  ;;  %vm2430_vm13 = vcmp.gt.f32.partialorder %v8399_v2, -1e+08 }
 0x516   : > { %v8906_v48 = vpop.permute.xlu1 %3938  ;;  %11140 = vst [vmem:[#allocation32_spill] sm:$0xff] %v8908_v56  ;;  %7042 = vpow2.f32 %v1571_v11 }
 0x517   : > { %7044 = vpow2.f32 %v1573_v32 }
 0x519   : > { %6813 = vrot.lane.b32.xlu0 %v6812_v39, %s7526_s8  ;;  %v11137_v39 = vld [vmem:[#allocation35_spill] sm:$0xff]  ;;  %v8916_v5 = vpop.xlane.xlu0 %3182 }
 0x51a   : > { %vm11138_vm3 = vcmp.gt.f32.partialorder %v11137_v39, 0.0  ;;  %v8912_v10 = vpop.permute.xlu1 %3942  ;;  %11141 = vst [vmem:[#allocation35_spill] sm:$0xff] %v8916_v5  ;;  %v11160_v39 = vld [vmem:[#allocation39_spill] sm:$0xff] }
 0x51b   : > { %v8904_v7 = vsel %vm11138_vm3, %v3132_v51, -1e+09  ;;  %v3978_v51 = vadd.f32 %v8484_v27, %v3919_v35  ;;  %vm11147_vm12 = vmmov %vm11138_vm3 }
 0x51c   : > { %11139 = vst [vmem:[#allocation11_spill] sm:$0xff] %v8904_v7  ;;  %v3202_v13 = vmax.f32 %v8900_v44, %v8904_v7 }
 0x51d   : > { %v4042_v52 = vmul.f32 0.2, %v3978_v51  ;;  %vm4010_vm11 = vcmp.gt.f32.partialorder %v3978_v51, 0.0  ;;  %v8922_v11 = vpop.xlane.xlu0 %4125 }
 0x51e   : > { %v8920_v53 = vpop.permute.xlu1 %3946  ;;  %11142 = vst [vmem:[#allocation144_spill] sm:$0xff] %v8922_v11  ;;  %v8940_v11 = vsel %vm11147_vm12, %v4075_v19, -1e+09 }
 0x51f   : > { %11148 = vst [vmem:[#allocation148_spill] sm:$0xff] %v8940_v11 }
 0x520   : > { %v8924_v32 = vpop.eup %7042 }
 0x521   : > { %v8926_v1 = vpop.eup %7044  ;;  %v8932_v35 = vpop.xlane.xlu0 %3185 }
 0x522   : > { %v8928_v7 = vpop.permute.xlu1 %3950  ;;  %v1634_v44 = vadd.f32 %v8926_v1, %v8924_v32  ;;  %11144 = vst [vmem:[#allocation146_spill] sm:$0xff] %v8932_v35 }
 0x523   : > { %11143 = vst [vmem:[#allocation145_spill] sm:$0xff] %v8928_v7 }
 0x526   : > { %v8946_v3 = vpop.xlane.xlu1 %2278 }
 0x527   : > { %11150 = vst [vmem:[#allocation149_spill] sm:$0xff] %v8946_v3 }
 0x52a   : > { %3203 = vmax.xlane.f32.xlu1 %v3202_v13  ;;  %v4074_v13 = vsel %vm4010_vm11, %v3978_v51, %v4042_v52  ;;  %v11149_v51 = vpack.i.bf16 %v8708_v57, %v8706_v24  ;;  %v11156_v24 = vld [vmem:[#allocation12_spill] sm:$0xff] }
 0x52b   : > { %v8936_v5 = vsel %vm11145_vm9, %v4074_v13, -1e+09  ;;  %v2288_v57 = vsub.f32 %v11156_v24, %v8391_v60 }
 0x52c   : > { %11146 = vst [vmem:[#allocation147_spill] sm:$0xff] %v8936_v5  ;;  %v4145_v52 = vmax.f32 %v8936_v5, %v8940_v11 }
 0x538   : > { %1635 = vadd.xlane.f32.xlu0 %v1634_v44 }
 0x53b   : > { %6818 = vrot.lane.b32.xlu1 %v11149_v51, %s7526_s8  ;;  %v11157_v51 = vld [vmem:[#allocation13_spill] sm:$0xff] }
 0x53c   : > { %4146 = vmax.xlane.f32.xlu0 %v4145_v52  ;;  %v2289_v11 = vsub.f32 %v11157_v51, %v8391_v60  ;;  %v2322_v52 = vmul.f32 1.442695, %v2288_v57 }
 0x53e   : > { %v8950_v43 = vpop.xlane.xlu0 %4128  ;;  %v2324_v35 = vmul.f32 1.442695, %v2289_v11  ;;  %7046 = vpow2.f32 %v2322_v52  ;;  %v11163_v11 = vpack.i.bf16 %v8718_v9, %v8716_v45 }
 0x53f   : > { %11151 = vst [vmem:[#allocation150_spill] sm:$0xff] %v8950_v43 }
 0x540   : > { %7048 = vpow2.f32 %v2324_v35 }
 0x541   : > { %v8952_v41 = vpop.xlane.xlu1 %3188 }
 0x542   : > { %11152 = vst [vmem:[#allocation151_spill] sm:$0xff] %v8952_v41  ;;  %v8956_v19 = vpop.xlane.xlu0 %4131  ;;  %v11159_v41 = vld [vmem:[#allocation38_spill] sm:$0xff] }
 0x543   : > { %11153 = vst [vmem:[#allocation152_spill] sm:$0xff] %v8956_v19  ;;  %v1539_v43 = vsub.f32 %v11159_v41, %v8430_v4  ;;  %v1540_v19 = vsub.f32 %v11160_v39, %v8430_v4 }
 0x545   : > { %v8958_v44 = vpop.xlane.xlu1 %3191  ;;  %v1575_v24 = vmul.f32 1.442695, %v1539_v43  ;;  %v1577_v7 = vmul.f32 1.442695, %v1540_v19 }
 0x546   : > { %11154 = vst [vmem:[#allocation153_spill] sm:$0xff] %v8958_v44  ;;  %v8960_v13 = vpop.xlane.xlu0 %4134 }
 0x547   : > { %11155 = vst [vmem:[#allocation154_spill] sm:$0xff] %v8960_v13  ;;  %7050 = vpow2.f32 %v1575_v24  ;;  %v3037_v24 = vadd.f32 %v8408_v31, %v8734_v58 }
 0x548   : > { %7052 = vpow2.f32 %v1577_v7 }
 0x549   : > { %v8966_v5 = vpop.xlane.xlu1 %3194  ;;  %vm3069_vm15 = vcmp.gt.f32.partialorder %v3037_v24, 0.0 }
 0x54a   : > { %11158 = vst [vmem:[#allocation12_spill] sm:$0xff] %v8966_v5 }
 0x54b   : > { %v8972_v56 = vpop.xlane.xlu0 %4137 }
 0x54c   : > { %11161 = vst [vmem:[#allocation13_spill] sm:$0xff] %v8972_v56 }
 0x54d   : > { %v6794_v44 = vpop.permute.xlu1 %6793 }
 0x54e   : > { %v6796_v13 = vunpack.i.h.bf16 %v6794_v44  ;;  %v6795_v3 = vunpack.i.l.bf16 %v6794_v44  ;;  %v8980_v44 = vpop.eup %7046 }
 0x54f   : > { %v8974_v60 = vpop.xlane.xlu0 %3197  ;;  %v8982_v35 = vpop.eup %7048 }
 0x550   : > { %v6533_v51 = vpack.c.bf16 %v6796_v13, %v6795_v3  ;;  %11162 = vst [vmem:[#allocation38_spill] sm:$0xff] %v8974_v60  ;;  %v2385_v7 = vadd.f32 %v8982_v35, %v8980_v44 }
 0x551   : > { %v8984_v52 = vpop.eup %7050 }
 0x552   : > { %6534 = vmatprep.subr.bf16.mxu0 %v6533_v51  ;;  %6823 = vrot.lane.b32.xlu0 %v11163_v11, %s7526_s8  ;;  %v8988_v45 = vpop.eup %7052  ;;  %v3038_v51 = vadd.f32 %v8451_v33, %v8734_v58  ;;  %v3981_v11 = vadd.f32 %v8487_v49, %v8851_v55 }
 0x553   : > { %v6799_v41 = vpop.permute.xlu0 %6798  ;;  %v1637_v9 = vadd.f32 %v8988_v45, %v8984_v52 }
 0x554   : > { %v6801_v39 = vunpack.i.h.bf16 %v6799_v41  ;;  %v6800_v57 = vunpack.i.l.bf16 %v6799_v41  ;;  %v3101_v41 = vmul.f32 0.2, %v3037_v24  ;;  %vm3070_vm8 = vcmp.gt.f32.partialorder %v3038_v51, 0.0 }
 0x555   : > { %vm4013_vm7 = vcmp.gt.f32.partialorder %v3981_v11, 0.0 }
 0x556   : > { %v6535_v56 = vpack.c.bf16 %v6801_v39, %v6800_v57  ;;  %v3102_v39 = vmul.f32 0.2, %v3038_v51 }
 0x557   : > { %v6804_v43 = vpop.permute.xlu0 %6803 }
 0x558   : > { %v6806_v3 = vunpack.i.h.bf16 %v6804_v43  ;;  %v6805_v19 = vunpack.i.l.bf16 %v6804_v43  ;;  %6536 = vmatpush3.bf16.msra.mxu0 %v6535_v56  ;;  %v3980_v56 = vadd.f32 %v8484_v27, %v8851_v55  ;;  %v4045_v43 = vmul.f32 0.2, %v3981_v11 }
 0x55a   : > { %v6537_v13 = vpack.c.bf16 %v6806_v3, %v6805_v19  ;;  %v4044_v57 = vmul.f32 0.2, %v3980_v56  ;;  %v3133_v3 = vsel %vm3069_vm15, %v3037_v24, %v3101_v41  ;;  %v3134_v19 = vsel %vm3070_vm8, %v3038_v51, %v3102_v39  ;;  %v11175_v39 = vld [vmem:[#allocation34_spill] sm:$0xff] }
 0x55b   : > { %vm4012_vm4 = vcmp.gt.f32.partialorder %v3980_v56, 0.0  ;;  %v9002_v58 = vsel %vm11164_vm1, %v3133_v3, -1e+09  ;;  %v4077_v55 = vsel %vm4013_vm7, %v3981_v11, %v4045_v43  ;;  %v11172_v51 = vpack.i.bf16 %v8768_v14, %v8766_v12  ;;  %v11176_v43 = vld [vmem:[#allocation27_spill] sm:$0xff]  ;;  %v11177_v12 = vld [vmem:[#allocation28_spill] sm:$0xff] }
 0x55c   : > { %6538 = vmatprep.subr.bf16.mxu0 %v6537_v13  ;;  %11165 = vst [vmem:[#allocation39_spill] sm:$0xff] %v9002_v58  ;;  %v9006_v13 = vsel %vm11166_vm2, %v3134_v19, -1e+09  ;;  %v9016_v24 = vsel %vm11170_vm5, %v4077_v55, -1e+09  ;;  %v2290_v41 = vsub.f32 %v11174_v23, %v8438_v0  ;;  %v2291_v29 = vsub.f32 %v11175_v39, %v8438_v0 }
 0x55d   : > { %11167 = vst [vmem:[#allocation155_spill] sm:$0xff] %v9006_v13  ;;  %11171 = vst [vmem:[#allocation157_spill] sm:$0xff] %v9016_v24  ;;  %v1541_v3 = vsub.f32 %v11176_v43, %v8418_v26  ;;  %v1542_v14 = vsub.f32 %v11177_v12, %v8418_v26  ;;  %vm11181_vm15 = vcmp.gt.f32.partialorder %v8059_v40, 0.0  ;;  %vm11183_vm8 = vcmp.gt.f32.partialorder %v8071_v16, 0.0  ;;  %v11191_v40 = vld [vmem:[#allocation24_spill] sm:$0xff] }
 0x55e   : > { %v2326_v19 = vmul.f32 1.442695, %v2290_v41  ;;  %v11179_v41 = vpack.i.bf16 %v8818_v6, %v8816_v25  ;;  %vm11187_vm7 = vmmov %vm11183_vm8  ;;  %vm1680_vm1 = vcmp.gt.f32.partialorder %v8389_v59, -1e+08 }
 0x55f   : > { %2386 = vadd.xlane.f32.xlu1 %v2385_v7  ;;  %v4076_v7 = vsel %vm4012_vm4, %v3980_v56, %v4044_v57  ;;  %vm11185_vm4 = vmmov %vm11181_vm15 }
 0x560   : > { %v9012_v60 = vsel %vm11168_vm0, %v4076_v7, -1e+09  ;;  %v2328_v7 = vmul.f32 1.442695, %v2291_v29 }
 0x561   : > { %11169 = vst [vmem:[#allocation156_spill] sm:$0xff] %v9012_v60  ;;  %v4148_v56 = vmax.f32 %v9012_v60, %v9016_v24  ;;  %v1581_v24 = vmul.f32 1.442695, %v1542_v14 }
 0x563   : > { %1638 = vadd.xlane.f32.xlu1 %v1637_v9  ;;  %v3205_v9 = vmax.f32 %v9002_v58, %v9006_v13 }
 0x571   : > { %3206 = vmax.xlane.f32.xlu0 %v3205_v9 }
 0x574   : > { %6828 = vrot.lane.b32.xlu1 %v11172_v51, %s7526_s8 }
 0x575   : > { %4149 = vmax.xlane.f32.xlu0 %v4148_v56  ;;  %v1579_v56 = vmul.f32 1.442695, %v1541_v3 }
 0x57e   : > { %v9024_v11 = vpop.xlane.xlu1 %4140 }
 0x57f   : > { %11173 = vst [vmem:[#allocation158_spill] sm:$0xff] %v9024_v11 }
 0x582   : > { %v1633_v57 = vpop.xlane.xlu1 %1632 }
 0x583   : > { %7054 = vrcp.f32 %v1633_v57 }
 0x584   : > { %7056 = vpow2.f32 %v2326_v19 }
 0x585   : > { %7058 = vpow2.f32 %v2328_v7 }
 0x586   : > { %v6809_v55 = vpop.permute.xlu1 %6808  ;;  %7060 = vpow2.f32 %v1579_v56  ;;  %v3982_v56 = vadd.f32 %v8484_v27, %v8869_v18 }
 0x587   : > { %v6811_v9 = vunpack.i.h.bf16 %v6809_v55  ;;  %v6810_v51 = vunpack.i.l.bf16 %v6809_v55  ;;  %7062 = vpow2.f32 %v1581_v24  ;;  %v3039_v55 = vadd.f32 %v8408_v31, %v8736_v17 }
 0x588   : > { %v9034_v60 = vpop.xlane.xlu0 %3200  ;;  %vm4014_vm9 = vcmp.gt.f32.partialorder %v3982_v56, 0.0 }
 0x589   : > { %v6539_v23 = vpack.c.bf16 %v6811_v9, %v6810_v51  ;;  %11178 = vst [vmem:[#allocation33_spill] sm:$0xff] %v9034_v60  ;;  %v3040_v9 = vadd.f32 %v8451_v33, %v8736_v17  ;;  %vm3071_vm3 = vcmp.gt.f32.partialorder %v3039_v55, 0.0  ;;  %v4046_v17 = vmul.f32 0.2, %v3982_v56 }
 0x58b   : > { %6540 = vmatpush3.bf16.msra.mxu0 %v6539_v23  ;;  %6833 = vrot.lane.b32.xlu0 %v11179_v41, %s7526_s8  ;;  %v3983_v23 = vadd.f32 %v8487_v49, %v8869_v18  ;;  %v3103_v41 = vmul.f32 0.2, %v3039_v55  ;;  %vm3072_vm11 = vcmp.gt.f32.partialorder %v3040_v9, 0.0 }
 0x58c   : > { %v9040_v39 = vpop.xlane.xlu0 %4143 }
 0x58d   : > { %11180 = vst [vmem:[#allocation34_spill] sm:$0xff] %v9040_v39  ;;  %v7055_v29 = vpop.eup %7054  ;;  %vm4015_vm12 = vcmp.gt.f32.partialorder %v3983_v23, 0.0 }
 0x58e   : > { %v1697_v57 = vmul.f32 %v7055_v29, %v8758_v54  ;;  %v1696_v43 = vmul.f32 %v7055_v29, %v8754_v30  ;;  %v9045_v3 = vpop.eup %7056  ;;  %v3104_v29 = vmul.f32 0.2, %v3040_v9 }
 0x58f   : > { %v9047_v12 = vpop.eup %7058 }
 0x590   : > { %5607 = vmatprep.mubr.msk.f32.mxu1 %vm1679_vm10, %v1697_v57  ;;  %v2384_v19 = vpop.xlane.xlu0 %2383  ;;  %v9049_v24 = vpop.eup %7060  ;;  %v2388_v6 = vadd.f32 %v9047_v12, %v9045_v3 }
 0x591   : > { %5608 = vmatmul.mubr.msk.f32.vlgmr.msra.gmra.mrb[0].mxu1 %vm1679_vm10, %v1696_v43  ;;  %7064 = vrcp.f32 %v2384_v19  ;;  %v9053_v14 = vpop.eup %7062  ;;  %v4047_v43 = vmul.f32 0.2, %v3983_v23  ;;  %v3135_v19 = vsel %vm3071_vm3, %v3039_v55, %v3103_v41  ;;  %v11189_v55 = vpack.i.bf16 %v8826_v15, %v8824_v34  ;;  %v11192_v41 = vld [vmem:[#allocation25_spill] sm:$0xff] }
 0x592   : > { %v1640_v7 = vadd.f32 %v9053_v14, %v9049_v24  ;;  %v9074_v18 = vsel %vm11181_vm15, %v3135_v19, -1e+09  ;;  %v2293_v16 = vsub.f32 %v11192_v41, %v8428_v62  ;;  %v11193_v19 = vld [vmem:[#allocation46_spill] sm:$0xff]  ;;  %vm11197_vm3 = vcmp.gt.f32.partialorder %v8154_v47, 0.0 }
 0x593   : > { %11182 = vst [vmem:[#allocation27_spill] sm:$0xff] %v9074_v18  ;;  %v1543_v34 = vsub.f32 %v11193_v19, %v8507_v22  ;;  %vm1681_vm15 = vcmp.gt.f32.partialorder %v8430_v4, -1e+08 }
 0x594   : > { %v6814_v25 = vpop.permute.xlu0 %6813  ;;  %v2332_v15 = vmul.f32 1.442695, %v2293_v16 }
 0x595   : > { %v6816_v54 = vunpack.i.h.bf16 %v6814_v25  ;;  %v6815_v30 = vunpack.i.l.bf16 %v6814_v25  ;;  %v3136_v25 = vsel %vm3072_vm11, %v3040_v9, %v3104_v29  ;;  %vm11199_vm11 = vcmp.gt.f32.partialorder %v8173_v20, 0.0 }
 0x597   : > { %v6541_v46 = vpack.c.bf16 %v6816_v54, %v6815_v30  ;;  %v4079_v54 = vsel %vm4015_vm12, %v3983_v23, %v4047_v43  ;;  %v2292_v23 = vsub.f32 %v11191_v40, %v8428_v62  ;;  %vm11203_vm12 = vmmov %vm11199_vm11 }
 0x598   : > { %2389 = vadd.xlane.f32.xlu1 %v2388_v6  ;;  %v4078_v6 = vsel %vm4014_vm9, %v3982_v56, %v4046_v17  ;;  %vm11201_vm9 = vmmov %vm11197_vm3 }
 0x599   : > { %6542 = vmatprep.subr.bf16.mxu0 %v6541_v46  ;;  %v9084_v46 = vsel %vm11185_vm4, %v4078_v6, -1e+09  ;;  %v2330_v43 = vmul.f32 1.442695, %v2292_v23 }
 0x59a   : > { %11186 = vst [vmem:[#allocation159_spill] sm:$0xff] %v9084_v46 }
 0x59b   : > { %v9061_v51 = vpop.eup %7064  ;;  %7066 = vpow2.f32 %v2330_v43 }
 0x59c   : > { %1641 = vadd.xlane.f32.xlu1 %v1640_v7  ;;  %v2448_v57 = vmul.f32 %v9061_v51, %v8812_v61  ;;  %v9078_v61 = vsel %vm11183_vm8, %v3136_v25, -1e+09  ;;  %v9088_v7 = vsel %vm11187_vm7, %v4079_v54, -1e+09  ;;  %v11194_v25 = vld [vmem:[#allocation47_spill] sm:$0xff]  ;;  %7068 = vpow2.f32 %v2332_v15 }
 0x59d   : > { %11184 = vst [vmem:[#allocation28_spill] sm:$0xff] %v9078_v61  ;;  %v3208_v30 = vmax.f32 %v9074_v18, %v9078_v61  ;;  %11188 = vst [vmem:[#allocation160_spill] sm:$0xff] %v9088_v7  ;;  %v4151_v9 = vmax.f32 %v9084_v46, %v9088_v7  ;;  %v1544_v6 = vsub.f32 %v11194_v25, %v8507_v22 }
 0x59e   : > { %5639 = vmatprep.mubr.msk.f32.mxu0 %vm2430_vm13, %v2448_v57 }
 0x5a5   : > { %v9110_v23 = vpop.eup %7066 }
 0x5a6   : > { %v9114_v16 = vpop.eup %7068 }
 0x5aa   : > { %3209 = vmax.xlane.f32.xlu0 %v3208_v30  ;;  %v1583_v30 = vmul.f32 1.442695, %v1543_v34 }
 0x5ac   : > { %7070 = vpow2.f32 %v1583_v30  ;;  %v3042_v30 = vadd.f32 %v8451_v33, %v8750_v38 }
 0x5ad   : > { %6838 = vrot.lane.b32.xlu1 %v11189_v55, %s7526_s8  ;;  %v1585_v55 = vmul.f32 1.442695, %v1544_v6 }
 0x5ae   : > { %4152 = vmax.xlane.f32.xlu0 %v4151_v9  ;;  %v11195_v9 = vpack.i.bf16 %v8831_v8, %v8828_v63  ;;  %vm3074_vm0 = vcmp.gt.f32.partialorder %v3042_v30, 0.0 }
 0x5af   : > { %7072 = vpow2.f32 %v1585_v55  ;;  %v3985_v55 = vadd.f32 %v8487_v49, %v8885_v36 }
 0x5b1   : > { %vm4017_vm10 = vcmp.gt.f32.partialorder %v3985_v55, 0.0 }
 0x5b7   : > { %v9096_v56 = vpop.xlane.xlu1 %3203 }
 0x5b8   : > { %11190 = vst [vmem:[#allocation161_spill] sm:$0xff] %v9096_v56  ;;  %v11253_v56 = vld [vmem:[#allocation56_spill] sm:$0xff] }
 0x5bb   : > { %v6819_v29 = vpop.permute.xlu1 %6818 }
 0x5bc   : > { %v6821_v57 = vunpack.i.h.bf16 %v6819_v29  ;;  %v6820_v17 = vunpack.i.l.bf16 %v6819_v29  ;;  %v9116_v29 = vpop.eup %7070 }
 0x5bd   : > { %v9120_v43 = vpop.eup %7072 }
 0x5be   : > { %v6543_v54 = vpack.c.bf16 %v6821_v57, %v6820_v17  ;;  %v2391_v17 = vadd.f32 %v9114_v16, %v9110_v23  ;;  %v1643_v25 = vadd.f32 %v9120_v43, %v9116_v29 }
 0x5c0   : > { %6544 = vmatpush3.bf16.msra.mxu0 %v6543_v54  ;;  %v3041_v54 = vadd.f32 %v8408_v31, %v8750_v38 }
 0x5c2   : > { %vm3073_vm2 = vcmp.gt.f32.partialorder %v3041_v54, 0.0 }
 0x5c4   : > { %6843 = vrot.lane.b32.xlu0 %v11195_v9, %s7526_s8  ;;  %v3105_v9 = vmul.f32 0.2, %v3041_v54 }
 0x5c5   : > { %v1636_v40 = vpop.xlane.xlu0 %1635 }
 0x5c6   : > { %7074 = vrcp.f32 %v1636_v40  ;;  %v4049_v40 = vmul.f32 0.2, %v3985_v55 }
 0x5c9   : > { %v9112_v41 = vpop.xlane.xlu0 %4146 }
 0x5ca   : > { %11196 = vst [vmem:[#allocation24_spill] sm:$0xff] %v9112_v41  ;;  %v11252_v41 = vld [vmem:[#allocation105_spill] sm:$0xff] }
 0x5cb   : > { %v2298_v60 = vsub.f32 %v11253_v56, %v11252_v41 }
 0x5cd   : > { %v6824_v57 = vpop.permute.xlu0 %6823 }
 0x5ce   : > { %v6826_v19 = vunpack.i.h.bf16 %v6824_v57  ;;  %v6825_v34 = vunpack.i.l.bf16 %v6824_v57  ;;  %v3137_v57 = vsel %vm3073_vm2, %v3041_v54, %v3105_v9 }
 0x5cf   : > { %v9137_v38 = vsel %vm11197_vm3, %v3137_v57, -1e+09  ;;  %v11208_v57 = vld [vmem:[#allocation41_spill] sm:$0xff]  ;;  %vm1682_vm3 = vcmp.gt.f32.partialorder %v8418_v26, -1e+08 }
 0x5d0   : > { %v7075_v63 = vpop.eup %7074  ;;  %v6545_v8 = vpack.c.bf16 %v6826_v19, %v6825_v34  ;;  %11198 = vst [vmem:[#allocation25_spill] sm:$0xff] %v9137_v38 }
 0x5d1   : > { %2392 = vadd.xlane.f32.xlu1 %v2391_v17  ;;  %v1700_v15 = vmul.f32 %v7075_v63, %v8926_v1  ;;  %v1699_v6 = vmul.f32 %v7075_v63, %v8924_v32  ;;  %v3984_v1 = vadd.f32 %v8484_v27, %v8885_v36  ;;  %v3106_v32 = vmul.f32 0.2, %v3042_v30 }
 0x5d2   : > { %6546 = vmatprep.subr.bf16.mxu0 %v6545_v8  ;;  %v4081_v36 = vsel %vm4017_vm10, %v3985_v55, %v4049_v40  ;;  %v6847_v63 = vpack.i.bf16 %v8835_v50, %v8833_v21  ;;  %v11205_v50 = vld [vmem:[#allocation48_spill] sm:$0xff] }
 0x5d3   : > { %5609 = vmatprep.mubr.msk.f32.mxu1 %vm1680_vm1, %v1700_v15  ;;  %v4048_v59 = vmul.f32 0.2, %v3984_v1  ;;  %v3138_v17 = vsel %vm3074_vm0, %v3042_v30, %v3106_v32  ;;  %vm4016_vm5 = vcmp.gt.f32.partialorder %v3984_v1, 0.0  ;;  %v2294_v47 = vsub.f32 %v11205_v50, %v8509_v37  ;;  %v11206_v30 = vld [vmem:[#allocation49_spill] sm:$0xff]  ;;  %v11207_v32 = vld [vmem:[#allocation40_spill] sm:$0xff] }
 0x5d4   : > { %5610 = vmatmul.mubr.msk.f32.gmra.mrb[2].mxu1 %vm1680_vm1, %v1699_v6  ;;  %v9141_v19 = vsel %vm11199_vm11, %v3138_v17, -1e+09  ;;  %v1546_v17 = vsub.f32 %v11208_v57, %v8463_v42 }
 0x5d5   : > { %1644 = vadd.xlane.f32.xlu1 %v1643_v25  ;;  %11200 = vst [vmem:[#allocation46_spill] sm:$0xff] %v9141_v19  ;;  %v4080_v34 = vsel %vm4016_vm5, %v3984_v1, %v4048_v59  ;;  %v3211_v8 = vmax.f32 %v9137_v38, %v9141_v19  ;;  %v9153_v25 = vsel %vm11203_vm12, %v4081_v36, -1e+09  ;;  %v2295_v1 = vsub.f32 %v11206_v30, %v8509_v37 }
 0x5d6   : > { %v9149_v15 = vsel %vm11201_vm9, %v4080_v34, -1e+09  ;;  %11204 = vst [vmem:[#allocation162_spill] sm:$0xff] %v9153_v25  ;;  %v1545_v59 = vsub.f32 %v11207_v32, %v8463_v42  ;;  %v2334_v40 = vmul.f32 1.442695, %v2294_v47 }
 0x5d7   : > { %11202 = vst [vmem:[#allocation47_spill] sm:$0xff] %v9149_v15  ;;  %v4154_v6 = vmax.f32 %v9149_v15, %v9153_v25  ;;  %v2336_v34 = vmul.f32 1.442695, %v2295_v1  ;;  %v11220_v25 = vld [vmem:[#allocation134_spill] sm:$0xff]  ;;  %v11221_v15 = vld [vmem:[#allocation135_spill] sm:$0xff] }
 0x5d8   : > { %v6857_v19 = vpack.i.bf16 %v11221_v15, %v11220_v25  ;;  %v11226_v25 = vld [vmem:[#allocation93_spill] sm:$0xff] }
 0x5e3   : > { %3212 = vmax.xlane.f32.xlu0 %v3211_v8 }
 0x5e6   : > { %6848 = vrot.lane.b32.xlu1 %v6847_v63, %s7526_s8  ;;  %v1587_v63 = vmul.f32 1.442695, %v1545_v59 }
 0x5e7   : > { %4155 = vmax.xlane.f32.xlu0 %v4154_v6  ;;  %v1589_v6 = vmul.f32 1.442695, %v1546_v17  ;;  %v11212_v17 = vld [vmem:[#allocation14_spill] sm:$0xff] }
 0x5ec   : > { %v9158_v54 = vpop.xlane.xlu1 %2386 }
 0x5f0   : > { %v1639_v21 = vpop.xlane.xlu1 %1638 }
 0x5f1   : > { %7076 = vrcp.f32 %v1639_v21  ;;  %v11209_v21 = vld [vmem:[#allocation131_spill] sm:$0xff] }
 0x5f2   : > { %7078 = vpow2.f32 %v2334_v40  ;;  %v6852_v50 = vpack.i.bf16 %v11209_v21, %v8843_v28 }
 0x5f3   : > { %7080 = vpow2.f32 %v2336_v34  ;;  %v3043_v34 = vadd.f32 %v8408_v31, %v11212_v17 }
 0x5f4   : > { %v6829_v20 = vpop.permute.xlu1 %6828  ;;  %7082 = vpow2.f32 %v1587_v63  ;;  %v11213_v63 = vld [vmem:[#allocation142_spill] sm:$0xff] }
 0x5f5   : > { %v6831_v55 = vunpack.i.h.bf16 %v6829_v20  ;;  %v6830_v9 = vunpack.i.l.bf16 %v6829_v20  ;;  %7084 = vpow2.f32 %v1589_v6  ;;  %v3987_v6 = vadd.f32 %v8487_v49, %v11213_v63 }
 0x5f6   : > { %v3107_v21 = vmul.f32 0.2, %v3043_v34  ;;  %vm3075_vm8 = vcmp.gt.f32.partialorder %v3043_v34, 0.0 }
 0x5f7   : > { %v6547_v36 = vpack.c.bf16 %v6831_v55, %v6830_v9  ;;  %vm4019_vm1 = vcmp.gt.f32.partialorder %v3987_v6, 0.0 }
 0x5f9   : > { %6548 = vmatpush3.bf16.msra.mxu0 %v6547_v36  ;;  %v3044_v36 = vadd.f32 %v8451_v33, %v11212_v17 }
 0x5fb   : > { %v7077_v8 = vpop.eup %7076  ;;  %vm3076_vm4 = vcmp.gt.f32.partialorder %v3044_v36, 0.0 }
 0x5fc   : > { %v1703_v30 = vmul.f32 %v7077_v8, %v8988_v45  ;;  %v1702_v20 = vmul.f32 %v7077_v8, %v8984_v52  ;;  %v9176_v1 = vpop.eup %7078  ;;  %v3986_v8 = vadd.f32 %v8484_v27, %v11213_v63 }
 0x5fd   : > { %6853 = vrot.lane.b32.xlu0 %v6852_v50, %s7526_s8  ;;  %v9180_v9 = vpop.eup %7080  ;;  %v3108_v50 = vmul.f32 0.2, %v3044_v36 }
 0x5fe   : > { %5611 = vmatprep.mubr.msk.f32.mxu1 %vm1681_vm15, %v1703_v30  ;;  %v9174_v47 = vpop.xlane.xlu0 %3206  ;;  %v9182_v28 = vpop.eup %7082  ;;  %v2394_v4 = vadd.f32 %v9180_v9, %v9176_v1  ;;  %v4050_v30 = vmul.f32 0.2, %v3986_v8  ;;  %vm4018_vm7 = vcmp.gt.f32.partialorder %v3986_v8, 0.0 }
 0x5ff   : > { %5612 = vmatmul.mubr.msk.f32.gmra.mrb[4].mxu1 %vm1681_vm15, %v1702_v20  ;;  %11210 = vst [vmem:[#allocation48_spill] sm:$0xff] %v9174_v47  ;;  %v9186_v52 = vpop.eup %7084  ;;  %v4051_v20 = vmul.f32 0.2, %v3987_v6  ;;  %v11247_v47 = vld [vmem:[#allocation63_spill] sm:$0xff] }
 0x600   : > { %v1646_v57 = vadd.f32 %v9186_v52, %v9182_v28  ;;  %v4082_v17 = vsel %vm4018_vm7, %v3986_v8, %v4050_v30  ;;  %v11228_v30 = vld [vmem:[#allocation43_spill] sm:$0xff] }
 0x601   : > { %v4083_v63 = vsel %vm4019_vm1, %v3987_v6, %v4051_v20  ;;  %v2297_v20 = vsub.f32 %v11228_v30, %v11226_v25  ;;  %v11233_v30 = vld [vmem:[#allocation137_spill] sm:$0xff] }
 0x602   : > { %v9178_v55 = vpop.xlane.xlu0 %4149 }
 0x603   : > { %11211 = vst [vmem:[#allocation49_spill] sm:$0xff] %v9178_v55 }
 0x606   : > { %v6834_v45 = vpop.permute.xlu0 %6833 }
 0x607   : > { %v6836_v32 = vunpack.i.h.bf16 %v6834_v45  ;;  %v6835_v59 = vunpack.i.l.bf16 %v6834_v45  ;;  %v3139_v45 = vsel %vm3075_vm8, %v3043_v34, %v3107_v21  ;;  %v11227_v21 = vld [vmem:[#allocation42_spill] sm:$0xff] }
 0x609   : > { %v6549_v40 = vpack.c.bf16 %v6836_v32, %v6835_v59  ;;  %v11214_v32 = vld [vmem:[#allocation44_spill] sm:$0xff] }
 0x60a   : > { %2395 = vadd.xlane.f32.xlu1 %v2394_v4  ;;  %v3140_v4 = vsel %vm3076_vm4, %v3044_v36, %v3108_v50  ;;  %vm11215_vm2 = vcmp.gt.f32.partialorder %v11214_v32, 0.0  ;;  %v2296_v50 = vsub.f32 %v11227_v21, %v11226_v25  ;;  %vm11248_vm4 = vcmp.gt.f32.partialorder %v11247_v47, 0.0 }
 0x60b   : > { %6550 = vmatprep.subr.bf16.mxu0 %v6549_v40  ;;  %v9200_v59 = vsel %vm11215_vm2, %v3139_v45, -1e+09  ;;  %v11217_v40 = vld [vmem:[#allocation45_spill] sm:$0xff]  ;;  %vm11222_vm5 = vmmov %vm11215_vm2 }
 0x60c   : > { %11216 = vst [vmem:[#allocation40_spill] sm:$0xff] %v9200_v59  ;;  %vm11218_vm0 = vcmp.gt.f32.partialorder %v11217_v40, 0.0  ;;  %v9212_v34 = vsel %vm11222_vm5, %v4082_v17, -1e+09  ;;  %v11229_v40 = vld [vmem:[#allocation104_spill] sm:$0xff] }
 0x60d   : > { %11223 = vst [vmem:[#allocation131_spill] sm:$0xff] %v9212_v34  ;;  %vm11224_vm10 = vmmov %vm11218_vm0 }
 0x60e   : > { %1647 = vadd.xlane.f32.xlu1 %v1646_v57  ;;  %v9204_v57 = vsel %vm11218_vm0, %v3140_v4, -1e+09  ;;  %v9216_v36 = vsel %vm11224_vm10, %v4083_v63, -1e+09  ;;  %v2340_v63 = vmul.f32 1.442695, %v2297_v20  ;;  %vm11257_vm0 = vmmov %vm11248_vm4 }
 0x60f   : > { %11219 = vst [vmem:[#allocation41_spill] sm:$0xff] %v9204_v57  ;;  %v3214_v38 = vmax.f32 %v9200_v59, %v9204_v57  ;;  %11225 = vst [vmem:[#allocation14_spill] sm:$0xff] %v9216_v36  ;;  %v4157_v8 = vmax.f32 %v9212_v34, %v9216_v36  ;;  %v11232_v59 = vld [vmem:[#allocation136_spill] sm:$0xff] }
 0x610   : > { %v6862_v7 = vpack.i.bf16 %v11233_v30, %v11232_v59  ;;  %v3988_v30 = vadd.f32 %v8484_v27, %v8906_v48 }
 0x612   : > { %vm4020_vm12 = vcmp.gt.f32.partialorder %v3988_v30, 0.0 }
 0x61c   : > { %3215 = vmax.xlane.f32.xlu0 %v3214_v38  ;;  %v2338_v38 = vmul.f32 1.442695, %v2296_v50 }
 0x61f   : > { %6858 = vrot.lane.b32.xlu1 %v6857_v19, %s7526_s8  ;;  %v11230_v19 = vld [vmem:[#allocation54_spill] sm:$0xff] }
 0x620   : > { %4158 = vmax.xlane.f32.xlu0 %v4157_v8  ;;  %v1547_v17 = vsub.f32 %v11230_v19, %v11229_v40  ;;  %v11231_v8 = vld [vmem:[#allocation55_spill] sm:$0xff]  ;;  %v11236_v19 = vld [vmem:[#allocation37_spill] sm:$0xff] }
 0x621   : > { %v1548_v36 = vsub.f32 %v11231_v8, %v11229_v40  ;;  %v11237_v8 = vld [vmem:[#allocation98_spill] sm:$0xff] }
 0x623   : > { %v1593_v21 = vmul.f32 1.442695, %v1548_v36 }
 0x625   : > { %v9221_v6 = vpop.xlane.xlu1 %2389 }
 0x629   : > { %v1642_v15 = vpop.xlane.xlu1 %1641 }
 0x62a   : > { %7086 = vrcp.f32 %v1642_v15  ;;  %v1591_v15 = vmul.f32 1.442695, %v1547_v17  ;;  %v3045_v17 = vadd.f32 %v8408_v31, %v11236_v19 }
 0x62b   : > { %7088 = vpow2.f32 %v2338_v38 }
 0x62c   : > { %7090 = vpow2.f32 %v2340_v63  ;;  %v3046_v63 = vadd.f32 %v8451_v33, %v11236_v19  ;;  %vm3077_vm11 = vcmp.gt.f32.partialorder %v3045_v17, 0.0 }
 0x62d   : > { %v6839_v45 = vpop.permute.xlu1 %6838  ;;  %7092 = vpow2.f32 %v1591_v15  ;;  %v11238_v15 = vld [vmem:[#allocation50_spill] sm:$0xff] }
 0x62e   : > { %v6841_v4 = vunpack.i.h.bf16 %v6839_v45  ;;  %v6840_v32 = vunpack.i.l.bf16 %v6839_v45  ;;  %7094 = vpow2.f32 %v1593_v21  ;;  %v1549_v21 = vsub.f32 %v11238_v15, %v11237_v8 }
 0x62f   : > { %vm3078_vm9 = vcmp.gt.f32.partialorder %v3046_v63, 0.0 }
 0x630   : > { %v6551_v34 = vpack.c.bf16 %v6841_v4, %v6840_v32 }
 0x632   : > { %6552 = vmatpush3.bf16.msra.mxu0 %v6551_v34 }
 0x634   : > { %v7087_v57 = vpop.eup %7086 }
 0x635   : > { %v1706_v45 = vmul.f32 %v7087_v57, %v9053_v14  ;;  %v1705_v50 = vmul.f32 %v7087_v57, %v9049_v24  ;;  %v9239_v20 = vpop.eup %7088 }
 0x636   : > { %6863 = vrot.lane.b32.xlu0 %v6862_v7, %s7526_s8  ;;  %v9243_v4 = vpop.eup %7090 }
 0x637   : > { %5613 = vmatprep.mubr.msk.f32.mxu1 %vm1682_vm3, %v1706_v45  ;;  %v9237_v34 = vpop.xlane.xlu0 %3209  ;;  %v9245_v59 = vpop.eup %7092  ;;  %v2397_v26 = vadd.f32 %v9243_v4, %v9239_v20  ;;  %v3989_v45 = vadd.f32 %v8487_v49, %v8906_v48  ;;  %v11241_v48 = vld [vmem:[#allocation99_spill] sm:$0xff] }
 0x638   : > { %5614 = vmatmul.mubr.msk.f32.gmra.mrb[6].mxu1 %vm1682_vm3, %v1705_v50  ;;  %11234 = vst [vmem:[#allocation142_spill] sm:$0xff] %v9237_v34  ;;  %v9249_v24 = vpop.eup %7094  ;;  %v3109_v50 = vmul.f32 0.2, %v3045_v17  ;;  %v11242_v34 = vld [vmem:[#allocation52_spill] sm:$0xff] }
 0x639   : > { %v1649_v38 = vadd.f32 %v9249_v24, %v9245_v59  ;;  %v4053_v19 = vmul.f32 0.2, %v3989_v45  ;;  %vm4021_vm15 = vcmp.gt.f32.partialorder %v3989_v45, 0.0  ;;  %v2300_v55 = vsub.f32 %v11242_v34, %v11241_v48  ;;  %v11250_v34 = vld [vmem:[#allocation138_spill] sm:$0xff] }
 0x63b   : > { %v9241_v36 = vpop.xlane.xlu0 %4152 }
 0x63c   : > { %11235 = vst [vmem:[#allocation44_spill] sm:$0xff] %v9241_v36  ;;  %v3141_v36 = vsel %vm3077_vm11, %v3045_v17, %v3109_v50 }
 0x63f   : > { %v6844_v14 = vpop.permute.xlu0 %6843 }
 0x640   : > { %v6846_v57 = vunpack.i.h.bf16 %v6844_v14  ;;  %v6845_v32 = vunpack.i.l.bf16 %v6844_v14  ;;  %v3110_v14 = vmul.f32 0.2, %v3046_v63 }
 0x642   : > { %v6553_v7 = vpack.c.bf16 %v6846_v57, %v6845_v32  ;;  %v1595_v32 = vmul.f32 1.442695, %v1549_v21  ;;  %v3142_v61 = vsel %vm3078_vm9, %v3046_v63, %v3110_v14  ;;  %v11244_v21 = vld [vmem:[#allocation62_spill] sm:$0xff]  ;;  %v4085_v14 = vsel %vm4021_vm15, %v3989_v45, %v4053_v19 }
 0x643   : > { %2398 = vadd.xlane.f32.xlu1 %v2397_v26  ;;  %v11239_v26 = vld [vmem:[#allocation51_spill] sm:$0xff]  ;;  %vm11245_vm8 = vcmp.gt.f32.partialorder %v11244_v21, 0.0  ;;  %v9279_v39 = vsel %vm11248_vm4, %v3142_v61, -1e+09  ;;  %v11254_v61 = vld [vmem:[#allocation57_spill] sm:$0xff]  ;;  %v11260_v19 = vld [vmem:[#allocation58_spill] sm:$0xff] }
 0x644   : > { %6554 = vmatprep.subr.bf16.mxu0 %v6553_v7  ;;  %v1550_v57 = vsub.f32 %v11239_v26, %v11237_v8  ;;  %v4052_v7 = vmul.f32 0.2, %v3988_v30  ;;  %v11243_v26 = vld [vmem:[#allocation53_spill] sm:$0xff]  ;;  %7096 = vpow2.f32 %v1595_v32  ;;  %v9275_v58 = vsel %vm11245_vm8, %v3141_v36, -1e+09  ;;  %11249 = vst [vmem:[#allocation134_spill] sm:$0xff] %v9279_v39  ;;  %vm11255_vm2 = vmmov %vm11245_vm8 }
 0x645   : > { %v2301_v13 = vsub.f32 %v11243_v26, %v11241_v48  ;;  %11246 = vst [vmem:[#allocation45_spill] sm:$0xff] %v9275_v58  ;;  %v2346_v26 = vmul.f32 1.442695, %v2300_v55  ;;  %v3217_v36 = vmax.f32 %v9275_v58, %v9279_v39  ;;  %v2299_v11 = vsub.f32 %v11254_v61, %v11252_v41  ;;  %v11261_v21 = vld [vmem:[#allocation59_spill] sm:$0xff]  ;;  %v11270_v39 = vld [vmem:[#allocation112_spill] sm:$0xff]  ;;  %v11274_v48 = vld [vmem:[#allocation66_spill] sm:$0xff] }
 0x646   : > { %v1597_v18 = vmul.f32 1.442695, %v1550_v57  ;;  %v4084_v50 = vsel %vm4020_vm12, %v3988_v30, %v4052_v7  ;;  %v11251_v57 = vld [vmem:[#allocation139_spill] sm:$0xff]  ;;  %v3991_v55 = vadd.f32 %v8487_v49, %v8912_v10  ;;  %v11259_v7 = vld [vmem:[#allocation108_spill] sm:$0xff]  ;;  %vm1683_vm12 = vcmp.gt.f32.partialorder %v8507_v22, -1e+08 }
 0x647   : > { %1650 = vadd.xlane.f32.xlu1 %v1649_v38  ;;  %v11240_v38 = vld [vmem:[#allocation129_spill] sm:$0xff]  ;;  %v2348_v32 = vmul.f32 1.442695, %v2301_v13  ;;  %v9291_v30 = vsel %vm11255_vm2, %v4084_v50, -1e+09  ;;  %v3990_v13 = vadd.f32 %v8484_v27, %v8912_v10  ;;  %v1552_v50 = vsub.f32 %v11261_v21, %v11259_v7  ;;  %v11267_v21 = vld [vmem:[#allocation60_spill] sm:$0xff] }
 0x648   : > { %v3047_v46 = vadd.f32 %v8408_v31, %v11240_v38  ;;  %v3048_v15 = vadd.f32 %v8451_v33, %v11240_v38  ;;  %7098 = vpow2.f32 %v1597_v18  ;;  %v6867_v38 = vpack.i.bf16 %v11251_v57, %v11250_v34  ;;  %11256 = vst [vmem:[#allocation135_spill] sm:$0xff] %v9291_v30  ;;  %v11271_v58 = vld [vmem:[#allocation64_spill] sm:$0xff] }
 0x649   : > { %v9295_v18 = vsel %vm11257_vm0, %v4085_v14, -1e+09  ;;  %v1551_v34 = vsub.f32 %v11260_v19, %v11259_v7  ;;  %7100 = vpow2.f32 %v2346_v26  ;;  %v2342_v14 = vmul.f32 1.442695, %v2298_v60  ;;  %v11266_v19 = vld [vmem:[#allocation109_spill] sm:$0xff]  ;;  %v11281_v10 = vld [vmem:[#allocation68_spill] sm:$0xff] }
 0x64a   : > { %v3111_v17 = vmul.f32 0.2, %v3047_v46  ;;  %v3112_v63 = vmul.f32 0.2, %v3048_v15  ;;  %vm3079_vm7 = vcmp.gt.f32.partialorder %v3047_v46, 0.0  ;;  %vm3080_vm1 = vcmp.gt.f32.partialorder %v3048_v15, 0.0 }
 0x64b   : > { %11258 = vst [vmem:[#allocation93_spill] sm:$0xff] %v9295_v18  ;;  %v4160_v47 = vmax.f32 %v9291_v30, %v9295_v18  ;;  %7102 = vpow2.f32 %v2348_v32  ;;  %v2302_v26 = vsub.f32 %v11267_v21, %v11266_v19  ;;  %vm4022_vm5 = vcmp.gt.f32.partialorder %v3990_v13, 0.0 }
 0x64c   : > { %v3143_v45 = vsel %vm3079_vm7, %v3047_v46, %v3111_v17  ;;  %v3144_v56 = vsel %vm3080_vm1, %v3048_v15, %v3112_v63  ;;  %v2344_v15 = vmul.f32 1.442695, %v2299_v11  ;;  %v4054_v17 = vmul.f32 0.2, %v3990_v13  ;;  %v11269_v11 = vld [vmem:[#allocation130_spill] sm:$0xff] }
 0x64d   : > { %v9310_v61 = vsel %vm1229_vm14, %v3143_v45, -1e+09  ;;  %v9314_v46 = vsel %vm1230_vm6, %v3144_v56, -1e+09  ;;  %v4055_v63 = vmul.f32 0.2, %v3991_v55  ;;  %7104 = vpow2.f32 %v2342_v14 }
 0x64e   : > { %11263 = vst [vmem:[#allocation42_spill] sm:$0xff] %v9310_v61  ;;  %11265 = vst [vmem:[#allocation43_spill] sm:$0xff] %v9314_v46  ;;  %vm4023_vm10 = vcmp.gt.f32.partialorder %v3991_v55, 0.0  ;;  %v1601_v60 = vmul.f32 1.442695, %v1552_v50  ;;  %v11268_v45 = vld [vmem:[#allocation61_spill] sm:$0xff]  ;;  %v3220_v56 = vmax.f32 %v9310_v61, %v9314_v46  ;;  %7106 = vpow2.f32 %v2344_v15 }
 0x64f   : > { %v2303_v18 = vsub.f32 %v11268_v45, %v11266_v19  ;;  %v4086_v50 = vsel %vm4022_vm5, %v3990_v13, %v4054_v17  ;;  %v4087_v21 = vsel %vm4023_vm10, %v3991_v55, %v4055_v63  ;;  %v2350_v45 = vmul.f32 1.442695, %v2302_v26  ;;  %v11272_v14 = vld [vmem:[#allocation65_spill] sm:$0xff]  ;;  %v11280_v26 = vld [vmem:[#allocation114_spill] sm:$0xff] }
 0x650   : > { %v1553_v46 = vsub.f32 %v11271_v58, %v11270_v39  ;;  %v1554_v5 = vsub.f32 %v11272_v14, %v11270_v39  ;;  %v11273_v15 = vld [vmem:[#allocation113_spill] sm:$0xff]  ;;  %v9342_v13 = vsel %vm1229_vm14, %v4086_v50, -1e+09  ;;  %v9346_v58 = vsel %vm1230_vm6, %v4087_v21, -1e+09 }
 0x651   : > { %v2352_v61 = vmul.f32 1.442695, %v2303_v18  ;;  %v2304_v41 = vsub.f32 %v11274_v48, %v11273_v15  ;;  %11275 = vst [vmem:[#allocation104_spill] sm:$0xff] %v9342_v13  ;;  %11276 = vst [vmem:[#allocation54_spill] sm:$0xff] %v9346_v58  ;;  %v11278_v48 = vld [vmem:[#allocation67_spill] sm:$0xff]  ;;  %v4163_v50 = vmax.f32 %v9342_v13, %v9346_v58  ;;  %v3992_v21 = vadd.f32 %v8484_v27, %v8920_v53  ;;  %v11283_v58 = vld [vmem:[#allocation69_spill] sm:$0xff] }
 0x652   : > { %v1603_v17 = vmul.f32 1.442695, %v1553_v46  ;;  %v2305_v63 = vsub.f32 %v11278_v48, %v11273_v15  ;;  %v1605_v57 = vmul.f32 1.442695, %v1554_v5  ;;  %v3993_v46 = vadd.f32 %v8487_v49, %v8920_v53 }
 0x653   : > { %vm1984_vm14 = vcmask 261120   ;;  %v1556_v13 = vsub.f32 %v11283_v58, %v11280_v26  ;;  %v11289_v58 = vld [vmem:[#allocation83_spill] sm:$0xff]  ;;  %vm4024_vm15 = vcmp.gt.f32.partialorder %v3992_v21, 0.0 }
 0x654   : > { %vm11290_vm6 = vcmp.gt.f32.partialorder %v11289_v58, 0.0  ;;  %vm4025_vm8 = vcmp.gt.f32.partialorder %v3993_v46, 0.0 }
 0x655   : > { %3218 = vmax.xlane.f32.xlu0 %v3217_v36  ;;  %v1599_v36 = vmul.f32 1.442695, %v1551_v34  ;;  %v3050_v34 = vadd.f32 %v8451_v33, %v11269_v11  ;;  %vm11306_vm4 = vmmov %vm11290_vm6 }
 0x657   : > { %7108 = vpow2.f32 %v1599_v36  ;;  %v3114_v18 = vmul.f32 0.2, %v3050_v34  ;;  %vm3082_vm11 = vcmp.gt.f32.partialorder %v3050_v34, 0.0 }
 0x658   : > { %6868 = vrot.lane.b32.xlu1 %v6867_v38, %s7526_s8  ;;  %v9316_v38 = vpop.eup %7096  ;;  %7110 = vpow2.f32 %v1601_v60  ;;  %v1555_v60 = vsub.f32 %v11281_v10, %v11280_v26 }
 0x659   : > { %4161 = vmax.xlane.f32.xlu0 %v4160_v47  ;;  %v9324_v32 = vpop.eup %7098  ;;  %v3049_v47 = vadd.f32 %v8408_v31, %v11269_v11  ;;  %v3146_v10 = vsel %vm3082_vm11, %v3050_v34, %v3114_v18  ;;  %v11287_v34 = vld [vmem:[#allocation70_spill] sm:$0xff] }
 0x65a   : > { %v1652_v19 = vadd.f32 %v9324_v32, %v9316_v38  ;;  %v9348_v55 = vpop.eup %7100  ;;  %v1607_v7 = vmul.f32 1.442695, %v1555_v60 }
 0x65b   : > { %v3113_v11 = vmul.f32 0.2, %v3049_v47  ;;  %vm3081_vm3 = vcmp.gt.f32.partialorder %v3049_v47, 0.0  ;;  %11277 = vst [vmem:[#allocation55_spill] sm:$0xff] %v9348_v55  ;;  %v9352_v36 = vpop.eup %7102 }
 0x65c   : > { %11279 = vst [vmem:[#allocation136_spill] sm:$0xff] %v9352_v36  ;;  %v9364_v15 = vpop.eup %7104 }
 0x65d   : > { %3221 = vmax.xlane.f32.xlu0 %v3220_v56  ;;  %11282 = vst [vmem:[#allocation137_spill] sm:$0xff] %v9364_v15  ;;  %v9368_v53 = vpop.eup %7106 }
 0x65e   : > { %v9328_v30 = vpop.xlane.xlu1 %2392  ;;  %11284 = vst [vmem:[#allocation37_spill] sm:$0xff] %v9368_v53 }
 0x661   : > { %1653 = vadd.xlane.f32.xlu0 %v1652_v19  ;;  %v2354_v19 = vmul.f32 1.442695, %v2304_v41  ;;  %v2356_v41 = vmul.f32 1.442695, %v2305_v63 }
 0x662   : > { %v1645_v56 = vpop.xlane.xlu1 %1644 }
 0x663   : > { %7112 = vrcp.f32 %v1645_v56  ;;  %v3145_v56 = vsel %vm3081_vm3, %v3049_v47, %v3113_v11  ;;  %v2403_v11 = vadd.f32 %v9352_v36, %v9348_v55 }
 0x664   : > { %7114 = vpow2.f32 %v2350_v45  ;;  %v5877_v45 = vpop.f32.mrb[0].mxu1 }
 0x665   : > { %7116 = vpow2.f32 %v2352_v61  ;;  %v5878_v48 = vpop.f32.mrb[1].mxu1  ;;  %4164 = vmax.xlane.f32.xlu0 %v4163_v50  ;;  %v9372_v50 = vpop.eup %7108 }
 0x666   : > { %v6849_v14 = vpop.permute.xlu1 %6848  ;;  %7118 = vpow2.f32 %v1603_v17  ;;  %v5879_v39 = vadd.f32 %v5878_v48, %v5877_v45  ;;  %11285 = vst [vmem:[#allocation50_spill] sm:$0xff] %v9372_v50  ;;  %v11288_v17 = vld [vmem:[#allocation71_spill] sm:$0xff]  ;;  %v9381_v45 = vsel %vm11290_vm6, %v3145_v56, -1e+09  ;;  %v9387_v48 = vpop.eup %7110  ;;  %v11295_v56 = vld [vmem:[#allocation116_spill] sm:$0xff] }
 0x667   : > { %v6851_v5 = vunpack.i.h.bf16 %v6849_v14  ;;  %v6850_v61 = vunpack.i.l.bf16 %v6849_v14  ;;  %7120 = vpow2.f32 %v1605_v57  ;;  %v11286_v14 = vld [vmem:[#allocation115_spill] sm:$0xff]  ;;  %11291 = vst [vmem:[#allocation51_spill] sm:$0xff] %v9381_v45  ;;  %v11292_v57 = vld [vmem:[#allocation84_spill] sm:$0xff] }
 0x668   : > { %v2306_v18 = vsub.f32 %v11287_v34, %v11286_v14  ;;  %v2307_v63 = vsub.f32 %v11288_v17, %v11286_v14  ;;  %1985 = vst.msk [vmem:[#allocation4] sm:$0xff] %vm1984_vm14, %v5879_v39  ;;  %vm11293_vm9 = vcmp.gt.f32.partialorder %v11292_v57, 0.0  ;;  %7122 = vpow2.f32 %v2354_v19  ;;  %v11296_v17 = vld [vmem:[#allocation72_spill] sm:$0xff] }
 0x669   : > { %v6555_v47 = vpack.c.bf16 %v6851_v5, %v6850_v61  ;;  %v9385_v60 = vsel %vm11293_vm9, %v3146_v10, -1e+09  ;;  %v4056_v5 = vmul.f32 0.2, %v3992_v21  ;;  %v4057_v61 = vmul.f32 0.2, %v3993_v46  ;;  %2404 = vadd.xlane.f32.xlu0 %v2403_v11  ;;  %vm11308_vm7 = vmmov %vm11293_vm9 }
 0x66a   : > { %11294 = vst [vmem:[#allocation129_spill] sm:$0xff] %v9385_v60  ;;  %7124 = vpow2.f32 %v2356_v41  ;;  %v1609_v34 = vmul.f32 1.442695, %v1556_v13  ;;  %v1557_v14 = vsub.f32 %v11296_v17, %v11295_v56  ;;  %v11297_v10 = vld [vmem:[#allocation73_spill] sm:$0xff]  ;;  %v3223_v19 = vmax.f32 %v9381_v45, %v9385_v60 }
 0x66b   : > { %6556 = vmatpush3.bf16.msra.mxu0 %v6555_v47  ;;  %7126 = vpow2.f32 %v1607_v7  ;;  %v1558_v26 = vsub.f32 %v11297_v10, %v11295_v56  ;;  %v2358_v47 = vmul.f32 1.442695, %v2306_v18  ;;  %v2360_v11 = vmul.f32 1.442695, %v2307_v63  ;;  %v11300_v7 = vld [vmem:[#allocation132_spill] sm:$0xff]  ;;  %v11301_v18 = vld [vmem:[#allocation117_spill] sm:$0xff] }
 0x66c   : > { %v3051_v8 = vadd.f32 %v8408_v31, %v11300_v7  ;;  %v3052_v17 = vadd.f32 %v8451_v33, %v11300_v7  ;;  %v4088_v10 = vsel %vm4024_vm15, %v3992_v21, %v4056_v5  ;;  %v4089_v60 = vsel %vm4025_vm8, %v3993_v46, %v4057_v61  ;;  %v11302_v63 = vld [vmem:[#allocation74_spill] sm:$0xff]  ;;  %v11304_v46 = vld [vmem:[#allocation145_spill] sm:$0xff] }
 0x66d   : > { %v7113_v39 = vpop.eup %7112  ;;  %3224 = vmax.xlane.f32.xlu0 %v3223_v19  ;;  %7128 = vpow2.f32 %v1609_v34  ;;  %v2308_v45 = vsub.f32 %v11302_v63, %v11301_v18  ;;  %v1655_v33 = vadd.f32 %v9387_v48, %v9372_v50  ;;  %v3994_v5 = vadd.f32 %v8484_v27, %v11304_v46 }
 0x66e   : > { %v9396_v55 = vpop.eup %7114  ;;  %v1709_v41 = vmul.f32 %v7113_v39, %v9120_v43  ;;  %v1708_v13 = vmul.f32 %v7113_v39, %v9116_v29  ;;  %v1611_v29 = vmul.f32 1.442695, %v1557_v14  ;;  %v1613_v43 = vmul.f32 1.442695, %v1558_v26  ;;  %v11303_v39 = vld [vmem:[#allocation75_spill] sm:$0xff] }
 0x66f   : > { %11298 = vst [vmem:[#allocation52_spill] sm:$0xff] %v9396_v55  ;;  %v9400_v36 = vpop.eup %7116  ;;  %v2309_v31 = vsub.f32 %v11303_v39, %v11301_v18  ;;  %7130 = vpow2.f32 %v2358_v47  ;;  %v9426_v26 = vsel %vm11306_vm4, %v4088_v10, -1e+09  ;;  %v9430_v14 = vsel %vm11308_vm7, %v4089_v60, -1e+09  ;;  %v11312_v60 = vld [vmem:[#allocation77_spill] sm:$0xff] }
 0x670   : > { %11299 = vst [vmem:[#allocation53_spill] sm:$0xff] %v9400_v36  ;;  %5615 = vmatprep.mubr.msk.f32.mxu1 %vm1683_vm12, %v1709_v41  ;;  %v9418_v21 = vpop.eup %7118  ;;  %v9422_v61 = vpop.xlane.xlu0 %3212  ;;  %11307 = vst [vmem:[#allocation63_spill] sm:$0xff] %v9426_v26  ;;  %7132 = vpow2.f32 %v2360_v11  ;;  %v3995_v34 = vadd.f32 %v8487_v49, %v11304_v46  ;;  %v3115_v19 = vmul.f32 0.2, %v3051_v8  ;;  %v3116_v47 = vmul.f32 0.2, %v3052_v17 }
 0x671   : > { %5616 = vmatmul.mubr.msk.f32.gmra.mrb[8].mxu1 %vm1683_vm12, %v1708_v13  ;;  %11305 = vst [vmem:[#allocation62_spill] sm:$0xff] %v9422_v61  ;;  %11309 = vst [vmem:[#allocation138_spill] sm:$0xff] %v9430_v14  ;;  %v9432_v22 = vpop.eup %7120  ;;  %1656 = vadd.xlane.f32.xlu0 %v1655_v33  ;;  %v2362_v27 = vmul.f32 1.442695, %v2308_v45  ;;  %v11310_v41 = vld [vmem:[#allocation118_spill] sm:$0xff]  ;;  %v11311_v13 = vld [vmem:[#allocation76_spill] sm:$0xff]  ;;  %7134 = vpow2.f32 %v1611_v29  ;;  %v4166_v11 = vmax.f32 %v9426_v26, %v9430_v14 }
 0x672   : > { %v1559_v7 = vsub.f32 %v11311_v13, %v11310_v41  ;;  %vm3083_vm1 = vcmp.gt.f32.partialorder %v3051_v8, 0.0  ;;  %vm3084_vm2 = vcmp.gt.f32.partialorder %v3052_v17, 0.0  ;;  %v9438_v58 = vpop.eup %7122  ;;  %v2364_v57 = vmul.f32 1.442695, %v2309_v31  ;;  %v11315_v14 = vld [vmem:[#allocation78_spill] sm:$0xff] }
 0x673   : > { %v1560_v10 = vsub.f32 %v11312_v60, %v11310_v41  ;;  %7136 = vpow2.f32 %v1613_v43  ;;  %v4058_v63 = vmul.f32 0.2, %v3994_v5  ;;  %v2400_v39 = vadd.f32 %v9368_v53, %v9364_v15  ;;  %v11314_v60 = vld [vmem:[#allocation119_spill] sm:$0xff]  ;;  %v11326_v15 = vld [vmem:[#allocation149_spill] sm:$0xff] }
 0x674   : > { %v9444_v49 = vpop.eup %7124  ;;  %v9446_v45 = vpop.xlane.xlu0 %4155  ;;  %vm4026_vm0 = vcmp.gt.f32.partialorder %v3994_v5, 0.0  ;;  %v4059_v29 = vmul.f32 0.2, %v3995_v34  ;;  %v3147_v31 = vsel %vm3083_vm1, %v3051_v8, %v3115_v19  ;;  %v3148_v46 = vsel %vm3084_vm2, %v3052_v17, %v3116_v47  ;;  %v11318_v8 = vld [vmem:[#allocation85_spill] sm:$0xff]  ;;  %v11319_v47 = vld [vmem:[#allocation87_spill] sm:$0xff] }
 0x675   : > { %11313 = vst [vmem:[#allocation139_spill] sm:$0xff] %v9446_v45  ;;  %v9450_v33 = vpop.eup %7126  ;;  %4167 = vmax.xlane.f32.xlu0 %v4166_v11  ;;  %7138 = vpow2.f32 %v2362_v27  ;;  %v1615_v13 = vmul.f32 1.442695, %v1559_v7  ;;  %v2310_v43 = vsub.f32 %v11315_v14, %v11314_v60  ;;  %vm4027_vm5 = vcmp.gt.f32.partialorder %v3995_v34, 0.0  ;;  %v11316_v45 = vld [vmem:[#allocation79_spill] sm:$0xff]  ;;  %v11317_v11 = vld [vmem:[#allocation133_spill] sm:$0xff] }
 0x676   : > { %7140 = vpow2.f32 %v2364_v57  ;;  %v1617_v26 = vmul.f32 1.442695, %v1560_v10  ;;  %v2311_v61 = vsub.f32 %v11316_v45, %v11314_v60  ;;  %v2406_v18 = vadd.f32 %v9400_v36, %v9396_v55  ;;  %v11322_v14 = vld [vmem:[#allocation89_spill] sm:$0xff]  ;;  %v11325_v10 = vld [vmem:[#allocation86_spill] sm:$0xff] }
 0x677   : > { %v9460_v41 = vpop.eup %7128  ;;  %v1561_v19 = vsub.f32 %v11318_v8, %v11317_v11  ;;  %vm11320_vm10 = vcmp.gt.f32.partialorder %v11319_v47, 0.0  ;;  %vm11323_vm3 = vcmp.gt.f32.partialorder %v11322_v14, 0.0  ;;  %v4090_v57 = vsel %vm4026_vm0, %v3994_v5, %v4058_v63  ;;  %v11328_v63 = vld [vmem:[#allocation90_spill] sm:$0xff]  ;;  %v11338_v14 = vld [vmem:[#allocation95_spill] sm:$0xff] }
 0x678   : > { %v6854_v17 = vpop.permute.xlu0 %6853  ;;  %v9466_v27 = vsel %vm11320_vm10, %v3147_v31, -1e+09  ;;  %v9470_v7 = vsel %vm11323_vm3, %v3148_v46, -1e+09  ;;  %v1562_v45 = vsub.f32 %v11325_v10, %v11317_v11  ;;  %v4091_v55 = vsel %vm4027_vm5, %v3995_v34, %v4059_v29  ;;  %v11327_v31 = vld [vmem:[#allocation88_spill] sm:$0xff]  ;;  %vm11331_vm11 = vmmov %vm11320_vm10  ;;  %v11337_v47 = vld [vmem:[#allocation94_spill] sm:$0xff] }
 0x679   : > { %11321 = vst [vmem:[#allocation56_spill] sm:$0xff] %v9466_v27  ;;  %11324 = vst [vmem:[#allocation57_spill] sm:$0xff] %v9470_v7  ;;  %v6856_v60 = vunpack.i.h.bf16 %v6854_v17  ;;  %v6855_v56 = vunpack.i.l.bf16 %v6854_v17  ;;  %2407 = vadd.xlane.f32.xlu0 %v2406_v18  ;;  %v9475_v36 = vpop.eup %7130  ;;  %7142 = vpow2.f32 %v1615_v13  ;;  %v2366_v8 = vmul.f32 1.442695, %v2310_v43  ;;  %v11329_v13 = vld [vmem:[#allocation140_spill] sm:$0xff]  ;;  %v11330_v43 = vld [vmem:[#allocation91_spill] sm:$0xff] }
 0x67a   : > { %v2312_v53 = vsub.f32 %v11327_v31, %v11326_v15  ;;  %v1658_v46 = vadd.f32 %v9432_v22, %v9418_v21  ;;  %v9481_v50 = vpop.eup %7132  ;;  %v2368_v5 = vmul.f32 1.442695, %v2311_v61  ;;  %v2313_v10 = vsub.f32 %v11328_v63, %v11326_v15  ;;  %vm11333_vm6 = vmmov %vm11323_vm3  ;;  %v11335_v15 = vld [vmem:[#allocation92_spill] sm:$0xff] }
 0x67b   : > { %v3226_v18 = vmax.f32 %v9466_v27, %v9470_v7  ;;  %v6557_v34 = vpack.c.bf16 %v6856_v60, %v6855_v56  ;;  %v1619_v29 = vmul.f32 1.442695, %v1561_v19  ;;  %v1563_v17 = vsub.f32 %v11330_v43, %v11329_v13  ;;  %v9497_v61 = vpop.eup %7134  ;;  %v11336_v19 = vld [vmem:[#allocation141_spill] sm:$0xff] }
 0x67c   : > { %2401 = vadd.xlane.f32.xlu1 %v2400_v39  ;;  %v9491_v39 = vsel %vm11331_vm11, %v4090_v57, -1e+09  ;;  %v9495_v31 = vsel %vm11333_vm6, %v4091_v55, -1e+09  ;;  %7144 = vpow2.f32 %v1617_v26  ;;  %v1621_v63 = vmul.f32 1.442695, %v1562_v45 }
 0x67d   : > { %11332 = vst [vmem:[#allocation58_spill] sm:$0xff] %v9491_v39  ;;  %11334 = vst [vmem:[#allocation59_spill] sm:$0xff] %v9495_v31  ;;  %v1564_v7 = vsub.f32 %v11335_v15, %v11329_v13  ;;  %3227 = vmax.xlane.f32.xlu0 %v3226_v18  ;;  %6558 = vmatprep.subr.bf16.mxu0 %v6557_v34  ;;  %v9501_v56 = vpop.eup %7136  ;;  %7146 = vpow2.f32 %v2366_v8  ;;  %v2370_v60 = vmul.f32 1.442695, %v2312_v53  ;;  %v2372_v55 = vmul.f32 1.442695, %v2313_v10 }
 0x67e   : > { %v2314_v57 = vsub.f32 %v11337_v47, %v11336_v19  ;;  %7148 = vpow2.f32 %v2368_v5  ;;  %v2315_v43 = vsub.f32 %v11338_v14, %v11336_v19  ;;  %v4169_v26 = vmax.f32 %v9491_v39, %v9495_v31  ;;  %v3517_v13 = vld [vmem:[#allocation2 + $0x80] sm:$0xff] }
 0x67f   : > { %v9509_v45 = vpop.eup %7138  ;;  %7150 = vpow2.f32 %v1619_v29  ;;  %v1623_v15 = vmul.f32 1.442695, %v1563_v17  ;;  %v2409_v8 = vadd.f32 %v9444_v49, %v9438_v58  ;;  %v1625_v18 = vmul.f32 1.442695, %v1564_v7 }
 0x680   : > { %1659 = vadd.xlane.f32.xlu1 %v1658_v46  ;;  %v9513_v53 = vpop.eup %7140  ;;  %7152 = vpow2.f32 %v1621_v63  ;;  %v2374_v46 = vmul.f32 1.442695, %v2314_v57  ;;  %v2376_v5 = vmul.f32 1.442695, %v2315_v43  ;;  %v1661_v10 = vadd.f32 %v9460_v41, %v9450_v33 }
 0x681   : > { %4170 = vmax.xlane.f32.xlu0 %v4169_v26  ;;  %7154 = vpow2.f32 %v2370_v60  ;;  %v2412_v29 = vadd.f32 %v9481_v50, %v9475_v36  ;;  %v1664_v17 = vadd.f32 %v9501_v56, %v9497_v61  ;;  %v2415_v60 = vadd.f32 %v9513_v53, %v9509_v45 }
 0x682   : > { %7156 = vpow2.f32 %v2372_v55  ;;  %vm1684_vm9 = vcmp.gt.f32.partialorder %v8463_v42, -1e+08  ;;  %vm1685_vm15 = vcmp.gt.f32.partialorder %v11229_v40, -1e+08  ;;  %vm2433_vm8 = vcmp.gt.f32.partialorder %v8428_v62, -1e+08 }
 0x683   : > { %v9517_v34 = vpop.eup %7142  ;;  %7158 = vpow2.f32 %v1623_v15  ;;  %vm2434_vm4 = vcmp.gt.f32.partialorder %v8509_v37, -1e+08  ;;  %vm2435_vm7 = vcmp.gt.f32.partialorder %v11226_v25, -1e+08 }
 0x684   : > { %2410 = vadd.xlane.f32.xlu1 %v2409_v8  ;;  %7160 = vpow2.f32 %v1625_v18 }
 0x685   : > { %1662 = vadd.xlane.f32.xlu0 %v1661_v10  ;;  %7162 = vpow2.f32 %v2374_v46 }
 0x686   : > { %v9521_v7 = vpop.eup %7144  ;;  %7164 = vpow2.f32 %v2376_v5 }
 0x687   : > { %v9525_v63 = vpop.eup %7146  ;;  %v1667_v14 = vadd.f32 %v9521_v7, %v9517_v34 }
 0x688   : > { %2413 = vadd.xlane.f32.xlu1 %v2412_v29  ;;  %v9529_v47 = vpop.eup %7148 }
 0x689   : > { %1665 = vadd.xlane.f32.xlu0 %v1664_v17  ;;  %v9531_v57 = vpop.eup %7150  ;;  %v2418_v26 = vadd.f32 %v9529_v47, %v9525_v63 }
 0x68a   : > { %v9533_v55 = vpop.eup %7152 }
 0x68b   : > { %v9537_v43 = vpop.eup %7154  ;;  %v1670_v46 = vadd.f32 %v9533_v55, %v9531_v57 }
 0x68c   : > { %2416 = vadd.xlane.f32.xlu1 %v2415_v60  ;;  %11339 = vst [vmem:[#allocation81_spill] sm:$0xff] %v9537_v43  ;;  %v9541_v15 = vpop.eup %7156 }
 0x68d   : > { %11340 = vst [vmem:[#allocation82_spill] sm:$0xff] %v9541_v15  ;;  %1668 = vadd.xlane.f32.xlu0 %v1667_v14  ;;  %v9543_v8 = vpop.eup %7158  ;;  %v2421_v10 = vadd.f32 %v9541_v15, %v9537_v43  ;;  %v3501_v43 = vld [vmem:[#allocation2] sm:$0xff]  ;;  %v3502_v15 = vld [vmem:[#allocation2 + $0x8] sm:$0xff] }
 0x68e   : > { %11341 = vst [vmem:[#allocation60_spill] sm:$0xff] %v9543_v8  ;;  %v9545_v18 = vpop.eup %7160 }
 0x68f   : > { %11342 = vst [vmem:[#allocation61_spill] sm:$0xff] %v9545_v18  ;;  %v9549_v5 = vpop.eup %7162  ;;  %v1673_v17 = vadd.f32 %v9545_v18, %v9543_v8  ;;  %v3518_v8 = vld [vmem:[#allocation2 + $0x88] sm:$0xff] }
 0x690   : > { %2419 = vadd.xlane.f32.xlu1 %v2418_v26  ;;  %11343 = vst [vmem:[#allocation130_spill] sm:$0xff] %v9549_v5  ;;  %v9553_v29 = vpop.eup %7164 }
 0x691   : > { %1671 = vadd.xlane.f32.xlu0 %v1670_v46  ;;  %v2424_v60 = vadd.f32 %v9553_v29, %v9549_v5  ;;  %v6877_v46 = vpack.i.bf16 %v3502_v15, %v3501_v43  ;;  %v11347_v43 = vld [vmem:[#allocation96_spill] sm:$0xff] }
 0x694   : > { %2422 = vadd.xlane.f32.xlu1 %v2421_v10 }
 0x695   : > { %1674 = vadd.xlane.f32.xlu0 %v1673_v17 }
 0x697   : > { %v9559_v14 = vpop.xlane.xlu1 %2395 }
 0x698   : > { %2425 = vadd.xlane.f32.xlu1 %v2424_v60 }
 0x69b   : > { %v1648_v26 = vpop.xlane.xlu1 %1647 }
 0x69c   : > { %7166 = vrcp.f32 %v1648_v26 }
 0x69f   : > { %v6859_v31 = vpop.permute.xlu1 %6858 }
 0x6a0   : > { %v6861_v39 = vunpack.i.h.bf16 %v6859_v31  ;;  %v6860_v27 = vunpack.i.l.bf16 %v6859_v31  ;;  %v6872_v31 = vpack.i.bf16 %v3518_v8, %v3517_v13 }
 0x6a2   : > { %v6559_v19 = vpack.c.bf16 %v6861_v39, %v6860_v27 }
 0x6a4   : > { %6560 = vmatpush3.bf16.msra.mxu0 %v6559_v19 }
 0x6a6   : > { %v7167_v10 = vpop.eup %7166 }
 0x6a7   : > { %v1712_v18 = vmul.f32 %v7167_v10, %v9186_v52  ;;  %v1711_v17 = vmul.f32 %v7167_v10, %v9182_v28  ;;  %v5880_v60 = vpop.f32.mrb[2].mxu1  ;;  %v11346_v52 = vld [vmem:[#allocation143_spill] sm:$0xff] }
 0x6a8   : > { %v5881_v27 = vpop.f32.mrb[3].mxu1  ;;  %v1565_v13 = vsub.f32 %v11347_v43, %v11346_v52 }
 0x6a9   : > { %6878 = vrot.lane.b32.xlu1 %v6877_v46, %s7527_s15  ;;  %5617 = vmatprep.mubr.msk.f32.mxu1 %vm1684_vm9, %v1712_v18  ;;  %v5882_v39 = vadd.f32 %v5881_v27, %v5880_v60  ;;  %v9565_v19 = vpop.xlane.xlu0 %3215  ;;  %v11348_v18 = vld [vmem:[#allocation97_spill] sm:$0xff]  ;;  %v11350_v27 = vld [vmem:[#allocation100_spill] sm:$0xff] }
 0x6aa   : > { %5618 = vmatmul.mubr.msk.f32.gmra.mrb[10].mxu1 %vm1684_vm9, %v1711_v17  ;;  %11344 = vst [vmem:[#allocation64_spill] sm:$0xff] %v9565_v19  ;;  %v1566_v26 = vsub.f32 %v11348_v18, %v11346_v52  ;;  %v1627_v17 = vmul.f32 1.442695, %v1565_v13 }
 0x6ab   : > { %1986 = vst.msk [vmem:[#allocation4 + $0x8] sm:$0xff] %vm1984_vm14, %v5882_v39  ;;  %6873 = vrot.lane.b32.xlu0 %v6872_v31, %s7527_s15 }
 0x6ac   : > { %v1629_v60 = vmul.f32 1.442695, %v1566_v26  ;;  %7168 = vpow2.f32 %v1627_v17 }
 0x6ad   : > { %6883 = vrot.lane.b32.xlu1 %v6872_v31, %s7528_s22  ;;  %v9570_v28 = vpop.xlane.xlu0 %4158  ;;  %v11349_v31 = vld [vmem:[#allocation32_spill] sm:$0xff] }
 0x6ae   : > { %11345 = vst [vmem:[#allocation65_spill] sm:$0xff] %v9570_v28  ;;  %7170 = vpow2.f32 %v1629_v60  ;;  %v2316_v39 = vsub.f32 %v11350_v27, %v11349_v31 }
 0x6b0   : > { %v2378_v19 = vmul.f32 1.442695, %v2316_v39 }
 0x6b1   : > { %6888 = vrot.lane.b32.xlu1 %v6877_v46, %s7528_s22  ;;  %v6864_v42 = vpop.permute.xlu0 %6863  ;;  %v11351_v46 = vld [vmem:[#allocation101_spill] sm:$0xff] }
 0x6b2   : > { %v6866_v15 = vunpack.i.h.bf16 %v6864_v42  ;;  %v6865_v8 = vunpack.i.l.bf16 %v6864_v42  ;;  %v2317_v28 = vsub.f32 %v11351_v46, %v11349_v31  ;;  %7172 = vpow2.f32 %v2378_v19  ;;  %v3520_v46 = vld [vmem:[#allocation2 + $0x98] sm:$0xff] }
 0x6b3   : > { %v11353_v31 = vld [vmem:[#allocation128_spill] sm:$0xff] }
 0x6b4   : > { %v6561_v10 = vpack.c.bf16 %v6866_v15, %v6865_v8  ;;  %v2380_v5 = vmul.f32 1.442695, %v2317_v28 }
 0x6b6   : > { %6562 = vmatprep.subr.bf16.mxu0 %v6561_v10  ;;  %v9581_v43 = vpop.eup %7168  ;;  %7174 = vpow2.f32 %v2380_v5 }
 0x6b7   : > { %7176 = vrcp.f32 %v9158_v54  ;;  %v3519_v54 = vld [vmem:[#allocation2 + $0x90] sm:$0xff] }
 0x6b8   : > { %v9583_v42 = vpop.eup %7170 }
 0x6b9   : > { %v1676_v13 = vadd.f32 %v9583_v42, %v9581_v43 }
 0x6bc   : > { %v9587_v15 = vpop.eup %7172 }
 0x6bd   : > { %11352 = vst [vmem:[#allocation66_spill] sm:$0xff] %v9587_v15 }
 0x6c0   : > { %v9589_v8 = vpop.eup %7174 }
 0x6c1   : > { %v2427_v19 = vadd.f32 %v9589_v8, %v9587_v15 }
 0x6ca   : > { %1677 = vadd.xlane.f32.xlu0 %v1676_v13  ;;  %v7177_v13 = vpop.eup %7176 }
 0x6d0   : > { %v2399_v18 = vpop.xlane.xlu1 %2398 }
 0x6d2   : > { %v5883_v26 = vpop.f32.mrb[4].mxu1 }
 0x6d3   : > { %v5884_v10 = vpop.f32.mrb[5].mxu1 }
 0x6d4   : > { %v5885_v28 = vadd.f32 %v5884_v10, %v5883_v26  ;;  %v1651_v5 = vpop.xlane.xlu1 %1650  ;;  %v2447_v26 = vmul.f32 %v9061_v51, %v11353_v31  ;;  %v6892_v10 = vpack.i.bf16 %v3520_v46, %v3519_v54 }
 0x6d5   : > { %7178 = vrcp.f32 %v1651_v5  ;;  %2428 = vadd.xlane.f32.xlu1 %v2427_v19  ;;  %v3504_v5 = vld [vmem:[#allocation2 + $0x18] sm:$0xff] }
 0x6d6   : > { %7180 = vrcp.f32 %v9221_v6  ;;  %1987 = vst.msk [vmem:[#allocation4 + $0x10] sm:$0xff] %vm1984_vm14, %v5885_v28  ;;  %v2451_v6 = vmul.f32 %v7177_v13, %v8982_v35  ;;  %v3503_v28 = vld [vmem:[#allocation2 + $0x10] sm:$0xff]  ;;  %v2450_v35 = vmul.f32 %v7177_v13, %v8980_v44 }
 0x6d7   : > { %7182 = vrcp.f32 %v9328_v30  ;;  %v11354_v30 = vld [vmem:[#allocation80_spill] sm:$0xff]  ;;  %v6897_v51 = vpack.i.bf16 %v3504_v5, %v3503_v28 }
 0x6d8   : > { %v6869_v17 = vpop.permute.xlu1 %6868  ;;  %7184 = vrcp.f32 %v9559_v14  ;;  %vm2431_vm12 = vcmp.gt.f32.partialorder %v11354_v30, -1e+08 }
 0x6d9   : > { %v6871_v60 = vunpack.i.h.bf16 %v6869_v17  ;;  %v6870_v27 = vunpack.i.l.bf16 %v6869_v17  ;;  %7186 = vrcp.f32 %v2399_v18 }
 0x6db   : > { %v6563_v39 = vpack.c.bf16 %v6871_v60, %v6870_v27 }
 0x6dd   : > { %6564 = vmatpush3.bf16.msra.mxu0 %v6563_v39  ;;  %v11360_v39 = vld [vmem:[#allocation103_spill] sm:$0xff] }
 0x6df   : > { %v7179_v19 = vpop.eup %7178 }
 0x6e0   : > { %v7181_v15 = vpop.eup %7180  ;;  %5640 = vmatmul.mubr.msk.f32.vlgmr.msra.gmra.mrb[16].mxu0 %vm2430_vm13, %v2447_v26  ;;  %v1715_v17 = vmul.f32 %v7179_v19, %v9249_v24  ;;  %v1714_v60 = vmul.f32 %v7179_v19, %v9245_v59  ;;  %6893 = vrot.lane.b32.xlu0 %v6892_v10, %s7527_s15  ;;  %vm2432_vm13 = vcmp.gt.f32.partialorder %v8438_v0, -1e+08  ;;  %v11363_v19 = vld [vmem:[#allocation106_spill] sm:$0xff] }
 0x6e1   : > { %5641 = vmatprep.mubr.msk.f32.mxu0 %vm2431_vm12, %v2451_v6  ;;  %v2454_v2 = vmul.f32 %v7181_v15, %v9047_v12  ;;  %v7183_v14 = vpop.eup %7182  ;;  %v2453_v40 = vmul.f32 %v7181_v15, %v9045_v3  ;;  %v11358_v3 = vld [vmem:[#allocation35_spill] sm:$0xff] }
 0x6e2   : > { %5619 = vmatprep.mubr.msk.f32.mxu1 %vm1685_vm15, %v1715_v17  ;;  %v9610_v31 = vpop.xlane.xlu0 %3218  ;;  %v2457_v59 = vmul.f32 %v7183_v14, %v9114_v16  ;;  %v7185_v44 = vpop.eup %7184  ;;  %v2456_v0 = vmul.f32 %v7183_v14, %v9110_v23  ;;  %v11359_v16 = vld [vmem:[#allocation102_spill] sm:$0xff]  ;;  %v3230_v62 = vsub.f32 %v11360_v39, %v11358_v3 }
 0x6e3   : > { %5620 = vmatmul.mubr.msk.f32.gmra.mrb[12].mxu1 %vm1685_vm15, %v1714_v60  ;;  %11355 = vst [vmem:[#allocation67_spill] sm:$0xff] %v9610_v31  ;;  %v2460_v12 = vmul.f32 %v7185_v44, %v9180_v9  ;;  %v7187_v18 = vpop.eup %7186  ;;  %v3229_v15 = vsub.f32 %v11359_v16, %v11358_v3  ;;  %v2459_v54 = vmul.f32 %v7185_v44, %v9176_v1 }
 0x6e4   : > { %5642 = vmatmul.mubr.msk.f32.gmra.mrb[18].mxu0 %vm2431_vm12, %v2450_v35  ;;  %6903 = vrot.lane.b32.xlu0 %v6892_v10, %s7528_s22  ;;  %v2463_v46 = vmul.f32 %v7187_v18, %v9243_v4  ;;  %v3263_v13 = vmul.f32 1.442695, %v3230_v62  ;;  %v2462_v37 = vmul.f32 %v7187_v18, %v9239_v20  ;;  %v11362_v10 = vld [vmem:[#allocation144_spill] sm:$0xff]  ;;  %v11364_v4 = vld [vmem:[#allocation107_spill] sm:$0xff] }
 0x6e5   : > { %5643 = vmatprep.mubr.msk.f32.mxu0 %vm2432_vm13, %v2454_v2  ;;  %v3261_v9 = vmul.f32 1.442695, %v3229_v15  ;;  %v4172_v1 = vsub.f32 %v11363_v19, %v11362_v10  ;;  %v4173_v6 = vsub.f32 %v11364_v4, %v11362_v10  ;;  %v3521_v4 = vld [vmem:[#allocation2 + $0xa0] sm:$0xff] }
 0x6e6   : > { %6898 = vrot.lane.b32.xlu1 %v6897_v51, %s7527_s15  ;;  %v9617_v24 = vpop.xlane.xlu0 %4161 }
 0x6e7   : > { %11356 = vst [vmem:[#allocation68_spill] sm:$0xff] %v9617_v24  ;;  %v4204_v5 = vmul.f32 1.442695, %v4172_v1  ;;  %v4206_v25 = vmul.f32 1.442695, %v4173_v6  ;;  %v3522_v6 = vld [vmem:[#allocation2 + $0xa8] sm:$0xff] }
 0x6e8   : > { %5644 = vmatmul.mubr.msk.f32.gmra.mrb[20].mxu0 %vm2432_vm13, %v2453_v40 }
 0x6e9   : > { %5645 = vmatprep.mubr.msk.f32.mxu0 %vm2433_vm8, %v2457_v59 }
 0x6ea   : > { %6908 = vrot.lane.b32.xlu1 %v6897_v51, %s7528_s22  ;;  %v9623_v27 = vpop.xlane.xlu0 %3221  ;;  %v11366_v51 = vld [vmem:[#allocation98_spill] sm:$0xff] }
 0x6eb   : > { %11357 = vst [vmem:[#allocation69_spill] sm:$0xff] %v9623_v27  ;;  %vm1686_vm1 = vcmp.gt.f32.partialorder %v11366_v51, -1e+08  ;;  %v6912_v51 = vpack.i.bf16 %v3522_v6, %v3521_v4 }
 0x6ec   : > { %5646 = vmatmul.mubr.msk.f32.gmra.mrb[22].mxu0 %vm2433_vm8, %v2456_v0  ;;  %vm1692_vm8 = vcmp.gt.f32.partialorder %v11317_v11, -1e+08 }
 0x6ed   : > { %5647 = vmatprep.mubr.msk.f32.mxu0 %vm2434_vm4, %v2460_v12 }
 0x6ee   : > { %v1654_v23 = vpop.xlane.xlu0 %1653 }
 0x6ef   : > { %7188 = vrcp.f32 %v1654_v23  ;;  %v11369_v23 = vld [vmem:[#allocation50_spill] sm:$0xff] }
 0x6f0   : > { %5648 = vmatmul.mubr.msk.f32.gmra.mrb[24].mxu0 %vm2434_vm4, %v2459_v54  ;;  %7190 = vpow2.f32 %v3261_v9 }
 0x6f1   : > { %5649 = vmatprep.mubr.msk.f32.mxu0 %vm2435_vm7, %v2463_v46  ;;  %7192 = vpow2.f32 %v3263_v13  ;;  %v11370_v13 = vld [vmem:[#allocation108_spill] sm:$0xff] }
 0x6f2   : > { %v9634_v26 = vpop.xlane.xlu0 %4164  ;;  %7194 = vpow2.f32 %v4204_v5  ;;  %vm1687_vm2 = vcmp.gt.f32.partialorder %v11370_v13, -1e+08 }
 0x6f3   : > { %11361 = vst [vmem:[#allocation70_spill] sm:$0xff] %v9634_v26  ;;  %7196 = vpow2.f32 %v4206_v25  ;;  %v11372_v25 = vld [vmem:[#allocation37_spill] sm:$0xff] }
 0x6f4   : > { %5650 = vmatmul.mubr.msk.f32.gmra.mrb[26].mxu0 %vm2435_vm7, %v2462_v37 }
 0x6f6   : > { %v2405_v28 = vpop.xlane.xlu0 %2404 }
 0x6f9   : > { %v7189_v17 = vpop.eup %7188 }
 0x6fa   : > { %v9640_v30 = vpop.xlane.xlu0 %3224  ;;  %v1718_v20 = vmul.f32 %v7189_v17, %v9324_v32  ;;  %v1717_v60 = vmul.f32 %v7189_v17, %v9316_v38  ;;  %v9644_v35 = vpop.eup %7190 }
 0x6fb   : > { %11365 = vst [vmem:[#allocation71_spill] sm:$0xff] %v9640_v30  ;;  %v9647_v2 = vpop.eup %7192 }
 0x6fc   : > { %5621 = vmatprep.mubr.msk.f32.mxu1 %vm1686_vm1, %v1718_v20  ;;  %v3325_v40 = vadd.f32 %v9647_v2, %v9644_v35  ;;  %v9653_v32 = vpop.eup %7194  ;;  %v11373_v20 = vld [vmem:[#allocation137_spill] sm:$0xff] }
 0x6fd   : > { %5622 = vmatmul.mubr.msk.f32.gmra.mrb[14].mxu1 %vm1686_vm1, %v1717_v60  ;;  %v9655_v44 = vpop.eup %7196 }
 0x6fe   : > { %v1657_v14 = vpop.xlane.xlu0 %1656  ;;  %v4268_v15 = vadd.f32 %v9655_v44, %v9653_v32 }
 0x6ff   : > { %7198 = vrcp.f32 %v1657_v14 }
 0x700   : > { %7200 = vrcp.f32 %v2405_v28 }
 0x702   : > { %v9651_v59 = vpop.xlane.xlu0 %4167 }
 0x703   : > { %11367 = vst [vmem:[#allocation83_spill] sm:$0xff] %v9651_v59  ;;  %3326 = vadd.xlane.f32.xlu0 %v3325_v40 }
 0x706   : > { %v2408_v38 = vpop.xlane.xlu0 %2407 }
 0x709   : > { %v2402_v0 = vpop.xlane.xlu1 %2401  ;;  %v7199_v39 = vpop.eup %7198 }
 0x70a   : > { %7202 = vrcp.f32 %v2402_v0  ;;  %v9657_v18 = vpop.xlane.xlu0 %3227  ;;  %v1721_v46 = vmul.f32 %v7199_v39, %v9387_v48  ;;  %v1720_v9 = vmul.f32 %v7199_v39, %v11369_v23  ;;  %v7201_v28 = vpop.eup %7200  ;;  %v11376_v23 = vld [vmem:[#allocation99_spill] sm:$0xff] }
 0x70b   : > { %v5886_v12 = vpop.f32.mrb[6].mxu1  ;;  %11368 = vst [vmem:[#allocation84_spill] sm:$0xff] %v9657_v18  ;;  %vm2437_vm5 = vcmp.gt.f32.partialorder %v11376_v23, -1e+08  ;;  %v11385_v23 = vld [vmem:[#allocation146_spill] sm:$0xff] }
 0x70c   : > { %v5887_v16 = vpop.f32.mrb[7].mxu1  ;;  %5623 = vmatprep.mubr.msk.f32.mxu1 %vm1687_vm2, %v1721_v46 }
 0x70d   : > { %v5888_v62 = vadd.f32 %v5887_v16, %v5886_v12  ;;  %v1660_v54 = vpop.xlane.xlu1 %1659  ;;  %5624 = vmatmul.mubr.msk.f32.gmra.mrb[16].mxu1 %vm1687_vm2, %v1720_v9  ;;  %v11375_v12 = vld [vmem:[#allocation136_spill] sm:$0xff] }
 0x70e   : > { %7204 = vrcp.f32 %v1660_v54  ;;  %4269 = vadd.xlane.f32.xlu1 %v4268_v15  ;;  %v9665_v37 = vpop.xlane.xlu0 %4170  ;;  %v2469_v16 = vmul.f32 %v7201_v28, %v11375_v12  ;;  %v3506_v54 = vld [vmem:[#allocation2 + $0x28] sm:$0xff]  ;;  %v11377_v9 = vld [vmem:[#allocation112_spill] sm:$0xff] }
 0x70f   : > { %1988 = vst.msk [vmem:[#allocation4 + $0x18] sm:$0xff] %vm1984_vm14, %v5888_v62  ;;  %7206 = vrcp.f32 %v2408_v38  ;;  %11371 = vst [vmem:[#allocation72_spill] sm:$0xff] %v9665_v37  ;;  %v11374_v38 = vld [vmem:[#allocation105_spill] sm:$0xff]  ;;  %vm1688_vm10 = vcmp.gt.f32.partialorder %v11377_v9, -1e+08  ;;  %v11386_v9 = vld [vmem:[#allocation110_spill] sm:$0xff] }
 0x710   : > { %vm2436_vm0 = vcmp.gt.f32.partialorder %v11374_v38, -1e+08  ;;  %v3505_v62 = vld [vmem:[#allocation2 + $0x20] sm:$0xff] }
 0x711   : > { %v2411_v19 = vpop.xlane.xlu1 %2410  ;;  %v6917_v4 = vpack.i.bf16 %v3506_v54, %v3505_v62 }
 0x712   : > { %7208 = vrcp.f32 %v2411_v19  ;;  %v1663_v1 = vpop.xlane.xlu0 %1662  ;;  %v11378_v19 = vld [vmem:[#allocation55_spill] sm:$0xff] }
 0x713   : > { %7210 = vrcp.f32 %v1663_v1  ;;  %v2468_v1 = vmul.f32 %v7201_v28, %v11378_v19  ;;  %v11388_v19 = vld [vmem:[#allocation111_spill] sm:$0xff] }
 0x714   : > { %v7203_v5 = vpop.eup %7202 }
 0x715   : > { %v2414_v48 = vpop.xlane.xlu1 %2413  ;;  %v2466_v17 = vmul.f32 %v7203_v5, %v11372_v25  ;;  %v2465_v60 = vmul.f32 %v7203_v5, %v11373_v20  ;;  %v11380_v5 = vld [vmem:[#allocation109_spill] sm:$0xff] }
 0x716   : > { %7212 = vrcp.f32 %v2414_v48  ;;  %v1666_v40 = vpop.xlane.xlu0 %1665  ;;  %vm2438_vm3 = vcmp.gt.f32.partialorder %v11380_v5, -1e+08 }
 0x717   : > { %7214 = vrcp.f32 %v1666_v40  ;;  %5651 = vmatprep.mubr.msk.f32.mxu0 %vm2436_vm0, %v2466_v17  ;;  %v11381_v17 = vld [vmem:[#allocation52_spill] sm:$0xff] }
 0x718   : > { %v7205_v14 = vpop.eup %7204  ;;  %5652 = vmatmul.mubr.msk.f32.gmra.mrb[28].mxu0 %vm2436_vm0, %v2465_v60  ;;  %vm1694_vm0 = vcmp.gt.f32.partialorder %v11346_v52, -1e+08 }
 0x719   : > { %v2417_v0 = vpop.xlane.xlu1 %2416  ;;  %v1724_v15 = vmul.f32 %v7205_v14, %v9432_v22  ;;  %v1723_v39 = vmul.f32 %v7205_v14, %v9418_v21  ;;  %v7207_v46 = vpop.eup %7206  ;;  %5653 = vmatprep.mubr.msk.f32.mxu0 %vm2437_vm5, %v2469_v16  ;;  %6913 = vrot.lane.b32.xlu0 %v6912_v51, %s7527_s15  ;;  %v11379_v22 = vld [vmem:[#allocation53_spill] sm:$0xff]  ;;  %v11383_v16 = vld [vmem:[#allocation114_spill] sm:$0xff] }
 0x71a   : > { %7216 = vrcp.f32 %v2417_v0  ;;  %v1669_v13 = vpop.xlane.xlu0 %1668  ;;  %v2472_v6 = vmul.f32 %v7207_v46, %v11379_v22  ;;  %v2471_v20 = vmul.f32 %v7207_v46, %v11381_v17  ;;  %v11382_v0 = vld [vmem:[#allocation113_spill] sm:$0xff]  ;;  %vm1689_vm6 = vcmp.gt.f32.partialorder %v11383_v16, -1e+08 }
 0x71b   : > { %5625 = vmatprep.mubr.msk.f32.mxu1 %vm1688_vm10, %v1724_v15  ;;  %7218 = vrcp.f32 %v1669_v13  ;;  %vm2439_vm11 = vcmp.gt.f32.partialorder %v11382_v0, -1e+08  ;;  %v3231_v13 = vsub.f32 %v11386_v9, %v11385_v23 }
 0x71c   : > { %5626 = vmatmul.mubr.msk.f32.gmra.mrb[18].mxu1 %vm1688_vm10, %v1723_v39  ;;  %v7209_v48 = vpop.eup %7208  ;;  %5654 = vmatmul.mubr.msk.f32.gmra.mrb[30].mxu0 %vm2437_vm5, %v2468_v1  ;;  %v3232_v1 = vsub.f32 %v11388_v19, %v11385_v23  ;;  %vm3373_vm10 = vcmp.gt.f32.partialorder %v11358_v3, -1e+08 }
 0x71d   : > { %v2420_v21 = vpop.xlane.xlu1 %2419  ;;  %5655 = vmatprep.mubr.msk.f32.mxu0 %vm2438_vm3, %v2472_v6  ;;  %6923 = vrot.lane.b32.xlu0 %v6912_v51, %s7528_s22  ;;  %v7211_v28 = vpop.eup %7210  ;;  %v2475_v14 = vmul.f32 %v7209_v48, %v9444_v49  ;;  %v2474_v49 = vmul.f32 %v7209_v48, %v9438_v58  ;;  %v11387_v58 = vld [vmem:[#allocation115_spill] sm:$0xff] }
 0x71e   : > { %7220 = vrcp.f32 %v2420_v21  ;;  %v1672_v25 = vpop.xlane.xlu0 %1671  ;;  %v1727_v38 = vmul.f32 %v7211_v28, %v9460_v41  ;;  %v1726_v12 = vmul.f32 %v7211_v28, %v9450_v33  ;;  %v11384_v41 = vld [vmem:[#allocation116_spill] sm:$0xff]  ;;  %vm2440_vm12 = vcmp.gt.f32.partialorder %v11387_v58, -1e+08  ;;  %v11390_v28 = vld [vmem:[#allocation117_spill] sm:$0xff] }
 0x71f   : > { %6918 = vrot.lane.b32.xlu1 %v6917_v4, %s7527_s15  ;;  %7222 = vrcp.f32 %v1672_v25  ;;  %vm1690_vm9 = vcmp.gt.f32.partialorder %v11384_v41, -1e+08  ;;  %vm2441_vm13 = vcmp.gt.f32.partialorder %v11390_v28, -1e+08 }
 0x720   : > { %v7213_v40 = vpop.eup %7212  ;;  %5656 = vmatmul.mubr.msk.f32.gmra.mrb[32].mxu0 %vm2438_vm3, %v2471_v20  ;;  %5627 = vmatprep.mubr.msk.f32.mxu1 %vm1689_vm6, %v1727_v38  ;;  %v3265_v20 = vmul.f32 1.442695, %v3231_v13  ;;  %v11396_v13 = vld [vmem:[#allocation140_spill] sm:$0xff]  ;;  %vm4316_vm3 = vcmp.gt.f32.partialorder %v11362_v10, -1e+08 }
 0x721   : > { %v2423_v60 = vpop.xlane.xlu1 %2422  ;;  %v7215_v51 = vpop.eup %7214  ;;  %5657 = vmatprep.mubr.msk.f32.mxu0 %vm2439_vm11, %v2475_v14  ;;  %5628 = vmatmul.mubr.msk.f32.gmra.mrb[20].mxu1 %vm1689_vm6, %v1726_v12  ;;  %v2478_v62 = vmul.f32 %v7213_v40, %v9481_v50  ;;  %v3267_v14 = vmul.f32 1.442695, %v3232_v1  ;;  %vm1693_vm7 = vcmp.gt.f32.partialorder %v11396_v13, -1e+08  ;;  %v11398_v1 = vld [vmem:[#allocation60_spill] sm:$0xff] }
 0x722   : > { %7224 = vrcp.f32 %v2423_v60  ;;  %v1675_v15 = vpop.xlane.xlu0 %1674  ;;  %v1730_v39 = vmul.f32 %v7215_v51, %v9501_v56  ;;  %v1729_v54 = vmul.f32 %v7215_v51, %v9497_v61  ;;  %v2477_v61 = vmul.f32 %v7213_v40, %v9475_v36 }
 0x723   : > { %6928 = vrot.lane.b32.xlu1 %v6917_v4, %s7528_s22  ;;  %7226 = vrcp.f32 %v1675_v15  ;;  %v11389_v4 = vld [vmem:[#allocation118_spill] sm:$0xff]  ;;  %v11391_v15 = vld [vmem:[#allocation119_spill] sm:$0xff] }
 0x724   : > { %v7217_v46 = vpop.eup %7216  ;;  %5658 = vmatmul.mubr.msk.f32.gmra.mrb[34].mxu0 %vm2439_vm11, %v2474_v49  ;;  %5629 = vmatprep.mubr.msk.f32.mxu1 %vm1690_vm9, %v1730_v39  ;;  %vm1691_vm15 = vcmp.gt.f32.partialorder %v11389_v4, -1e+08  ;;  %vm2442_vm4 = vcmp.gt.f32.partialorder %v11391_v15, -1e+08 }
 0x725   : > { %v2426_v33 = vpop.xlane.xlu1 %2425  ;;  %v7219_v56 = vpop.eup %7218  ;;  %5659 = vmatprep.mubr.msk.f32.mxu0 %vm2440_vm12, %v2478_v62  ;;  %5630 = vmatmul.mubr.msk.f32.gmra.mrb[22].mxu1 %vm1690_vm9, %v1729_v54  ;;  %v2481_v5 = vmul.f32 %v7217_v46, %v9513_v53 }
 0x726   : > { %7228 = vrcp.f32 %v2426_v33  ;;  %v6874_v50 = vpop.permute.xlu0 %6873  ;;  %v1733_v21 = vmul.f32 %v7219_v56, %v9521_v7  ;;  %v1732_v25 = vmul.f32 %v7219_v56, %v9517_v34  ;;  %v2480_v34 = vmul.f32 %v7217_v46, %v9509_v45  ;;  %v11394_v33 = vld [vmem:[#allocation61_spill] sm:$0xff]  ;;  %v11395_v46 = vld [vmem:[#allocation22_spill] sm:$0xff] }
 0x727   : > { %v6876_v22 = vunpack.i.h.bf16 %v6874_v50  ;;  %v6875_v6 = vunpack.i.l.bf16 %v6874_v50  ;;  %7230 = vpow2.f32 %v3265_v20  ;;  %v11397_v56 = vld [vmem:[#allocation82_spill] sm:$0xff] }
 0x728   : > { %v7221_v17 = vpop.eup %7220  ;;  %5660 = vmatmul.mubr.msk.f32.gmra.mrb[36].mxu0 %vm2440_vm12, %v2477_v61  ;;  %5631 = vmatprep.mubr.msk.f32.mxu1 %vm1691_vm15, %v1733_v21  ;;  %7232 = vpow2.f32 %v3267_v14  ;;  %v11399_v21 = vld [vmem:[#allocation149_spill] sm:$0xff] }
 0x729   : > { %v6879_v48 = vpop.permute.xlu1 %6878  ;;  %v7223_v60 = vpop.eup %7222  ;;  %5661 = vmatprep.mubr.msk.f32.mxu0 %vm2441_vm13, %v2481_v5  ;;  %v6565_v53 = vpack.c.bf16 %v6876_v22, %v6875_v6  ;;  %5632 = vmatmul.mubr.msk.f32.gmra.mrb[24].mxu1 %vm1691_vm15, %v1732_v25  ;;  %v2484_v12 = vmul.f32 %v7221_v17, %v9529_v47  ;;  %v11392_v47 = vld [vmem:[#allocation150_spill] sm:$0xff]  ;;  %v2483_v41 = vmul.f32 %v7221_v17, %v9525_v63  ;;  %vm2443_vm1 = vcmp.gt.f32.partialorder %v11399_v21, -1e+08  ;;  %v11400_v6 = vld [vmem:[#allocation81_spill] sm:$0xff] }
 0x72a   : > { %v6881_v36 = vunpack.i.h.bf16 %v6879_v48  ;;  %v6880_v7 = vunpack.i.l.bf16 %v6879_v48  ;;  %v1736_v38 = vmul.f32 %v7223_v60, %v9533_v55  ;;  %v1735_v51 = vmul.f32 %v7223_v60, %v9531_v57  ;;  %v11393_v57 = vld [vmem:[#allocation30_spill] sm:$0xff]  ;;  %v11401_v17 = vld [vmem:[#allocation141_spill] sm:$0xff] }
 0x72b   : > { %6566 = vmatprep.subr.bf16.mxu1 %v6565_v53  ;;  %v4174_v39 = vsub.f32 %v11393_v57, %v11392_v47  ;;  %v4175_v9 = vsub.f32 %v11395_v46, %v11392_v47  ;;  %vm2444_vm2 = vcmp.gt.f32.partialorder %v11401_v17, -1e+08  ;;  %vm4317_vm6 = vcmp.gt.f32.partialorder %v11392_v47, -1e+08 }
 0x72c   : > { %v6567_v40 = vpack.c.bf16 %v6881_v36, %v6880_v7  ;;  %v7225_v16 = vpop.eup %7224  ;;  %5662 = vmatmul.mubr.msk.f32.gmra.mrb[38].mxu0 %vm2441_vm13, %v2480_v34  ;;  %5633 = vmatprep.mubr.msk.f32.mxu1 %vm1692_vm8, %v1736_v38  ;;  %v11402_v36 = vld [vmem:[#allocation130_spill] sm:$0xff] }
 0x72d   : > { %v6884_v0 = vpop.permute.xlu1 %6883  ;;  %v7227_v49 = vpop.eup %7226  ;;  %5663 = vmatprep.mubr.msk.f32.mxu0 %vm2442_vm4, %v2484_v12  ;;  %5634 = vmatmul.mubr.msk.f32.gmra.mrb[26].mxu1 %vm1692_vm8, %v1735_v51  ;;  %v2487_v19 = vmul.f32 %v7225_v16, %v11397_v56  ;;  %v4208_v11 = vmul.f32 1.442695, %v4174_v39  ;;  %v2486_v48 = vmul.f32 %v7225_v16, %v11400_v6  ;;  %v4210_v5 = vmul.f32 1.442695, %v4175_v9  ;;  %v3524_v12 = vld [vmem:[#allocation2 + $0xb8] sm:$0xff]  ;;  %v3507_v16 = vld [vmem:[#allocation2 + $0x30] sm:$0xff] }
 0x72e   : > { %v6886_v45 = vunpack.i.h.bf16 %v6884_v0  ;;  %v6885_v55 = vunpack.i.l.bf16 %v6884_v0  ;;  %6568 = vmatpush3.bf16.msra.mxu1 %v6567_v40  ;;  %v1739_v62 = vmul.f32 %v7227_v49, %v11394_v33  ;;  %v1738_v50 = vmul.f32 %v7227_v49, %v11398_v1  ;;  %v3523_v0 = vld [vmem:[#allocation2 + $0xb0] sm:$0xff]  ;;  %v11404_v33 = vld [vmem:[#allocation120_spill] sm:$0xff] }
 0x72f   : > { %7234 = vpow2.f32 %v4208_v11  ;;  %v6932_v51 = vpack.i.bf16 %v3524_v12, %v3523_v0  ;;  %v11409_v0 = vld [vmem:[#allocation66_spill] sm:$0xff] }
 0x730   : > { %v6597_v54 = vpack.c.bf16 %v6886_v45, %v6885_v55  ;;  %v7229_v61 = vpop.eup %7228  ;;  %5664 = vmatmul.mubr.msk.f32.gmra.mrb[40].mxu0 %vm2442_vm4, %v2483_v41  ;;  %5635 = vmatprep.mubr.msk.f32.mxu1 %vm1693_vm7, %v1739_v62  ;;  %7236 = vpow2.f32 %v4210_v5  ;;  %v3508_v45 = vld [vmem:[#allocation2 + $0x38] sm:$0xff]  ;;  %v11403_v41 = vld [vmem:[#allocation151_spill] sm:$0xff] }
 0x731   : > { %v6889_v58 = vpop.permute.xlu1 %6888  ;;  %5665 = vmatprep.mubr.msk.f32.mxu0 %vm2443_vm1, %v2487_v19  ;;  %5636 = vmatmul.mubr.msk.f32.gmra.mrb[28].mxu1 %vm1693_vm7, %v1738_v50  ;;  %v2490_v25 = vmul.f32 %v7229_v61, %v9553_v29  ;;  %v9755_v20 = vpop.eup %7230  ;;  %v2489_v7 = vmul.f32 %v7229_v61, %v11402_v36  ;;  %v6937_v55 = vpack.i.bf16 %v3508_v45, %v3507_v16  ;;  %v11407_v5 = vld [vmem:[#allocation20_spill] sm:$0xff]  ;;  %v11408_v36 = vld [vmem:[#allocation121_spill] sm:$0xff]  ;;  %vm3375_vm11 = vcmp.gt.f32.partialorder %v11403_v41, -1e+08 }
 0x732   : > { %v6891_v63 = vunpack.i.h.bf16 %v6889_v58  ;;  %v6890_v4 = vunpack.i.l.bf16 %v6889_v58  ;;  %6598 = vmatprep.subr.bf16.mxu0 %v6597_v54  ;;  %v9758_v28 = vpop.eup %7232  ;;  %v3233_v62 = vsub.f32 %v11404_v33, %v11403_v41  ;;  %v11405_v54 = vld [vmem:[#allocation21_spill] sm:$0xff] }
 0x733   : > { %v3328_v60 = vadd.f32 %v9758_v28, %v9755_v20  ;;  %v3234_v46 = vsub.f32 %v11405_v54, %v11403_v41  ;;  %v3526_v54 = vld [vmem:[#allocation2 + $0xc8] sm:$0xff] }
 0x734   : > { %v6599_v22 = vpack.c.bf16 %v6891_v63, %v6890_v4  ;;  %5666 = vmatmul.mubr.msk.f32.gmra.mrb[42].mxu0 %vm2443_vm1, %v2486_v48  ;;  %v3269_v1 = vmul.f32 1.442695, %v3233_v62  ;;  %v11406_v48 = vld [vmem:[#allocation152_spill] sm:$0xff]  ;;  %v3525_v62 = vld [vmem:[#allocation2 + $0xc0] sm:$0xff] }
 0x735   : > { %5667 = vmatprep.mubr.msk.f32.mxu0 %vm2444_vm2, %v2490_v25  ;;  %v3271_v61 = vmul.f32 1.442695, %v3234_v46  ;;  %v4176_v25 = vsub.f32 %v11407_v5, %v11406_v48  ;;  %v6952_v46 = vpack.i.bf16 %v3526_v54, %v3525_v62  ;;  %vm4318_vm12 = vcmp.gt.f32.partialorder %v11406_v48, -1e+08 }
 0x736   : > { %6600 = vmatpush3.bf16.msra.mxu0 %v6599_v22 }
 0x737   : > { %v4212_v52 = vmul.f32 1.442695, %v4176_v25 }
 0x738   : > { %5668 = vmatmul.mubr.msk.f32.gmra.mrb[44].mxu0 %vm2444_vm2, %v2489_v7  ;;  %v4177_v7 = vsub.f32 %v11408_v36, %v11406_v48 }
 0x739   : > { %v9762_v14 = vpop.eup %7234 }
 0x73a   : > { %v9764_v29 = vpop.eup %7236 }
 0x73b   : > { %v4271_v38 = vadd.f32 %v9764_v29, %v9762_v14 }
 0x73c   : > { %3329 = vadd.xlane.f32.xlu0 %v3328_v60 }
 0x744   : > { %v5889_v53 = vpop.f32.mrb[8].mxu1 }
 0x745   : > { %v5890_v40 = vpop.f32.mrb[9].mxu1 }
 0x746   : > { %v5891_v34 = vadd.f32 %v5890_v40, %v5889_v53 }
 0x747   : > { %4272 = vadd.xlane.f32.xlu1 %v4271_v38 }
 0x748   : > { %1989 = vst.msk [vmem:[#allocation4 + $0x20] sm:$0xff] %vm1984_vm14, %v5891_v34  ;;  %v4214_v34 = vmul.f32 1.442695, %v4177_v7 }
 0x752   : > { %6933 = vrot.lane.b32.xlu0 %v6932_v51, %s7527_s15 }
 0x756   : > { %6943 = vrot.lane.b32.xlu0 %v6932_v51, %s7528_s22  ;;  %v11410_v51 = vld [vmem:[#allocation32_spill] sm:$0xff] }
 0x757   : > { %v1678_v15 = vpop.xlane.xlu0 %1677  ;;  %vm2445_vm5 = vcmp.gt.f32.partialorder %v11410_v51, -1e+08  ;;  %v11416_v51 = vld [vmem:[#allocation19_spill] sm:$0xff] }
 0x758   : > { %6938 = vrot.lane.b32.xlu1 %v6937_v55, %s7527_s15  ;;  %7238 = vrcp.f32 %v1678_v15 }
 0x75b   : > { %v6894_v49 = vpop.permute.xlu0 %6893 }
 0x75c   : > { %6948 = vrot.lane.b32.xlu1 %v6937_v55, %s7528_s22  ;;  %v6896_v57 = vunpack.i.h.bf16 %v6894_v49  ;;  %v6895_v39 = vunpack.i.l.bf16 %v6894_v49 }
 0x75e   : > { %v6569_v9 = vpack.c.bf16 %v6896_v57, %v6895_v39 }
 0x75f   : > { %v6904_v13 = vpop.permute.xlu0 %6903 }
 0x760   : > { %v6906_v58 = vunpack.i.h.bf16 %v6904_v13  ;;  %v6905_v56 = vunpack.i.l.bf16 %v6904_v13  ;;  %6570 = vmatprep.subr.bf16.mxu1 %v6569_v9  ;;  %v3509_v9 = vld [vmem:[#allocation2 + $0x40] sm:$0xff]  ;;  %v3510_v13 = vld [vmem:[#allocation2 + $0x48] sm:$0xff] }
 0x762   : > { %v2429_v19 = vpop.xlane.xlu1 %2428  ;;  %v7239_v50 = vpop.eup %7238  ;;  %v6601_v63 = vpack.c.bf16 %v6906_v58, %v6905_v56  ;;  %v6957_v58 = vpack.i.bf16 %v3510_v13, %v3509_v9 }
 0x763   : > { %7240 = vrcp.f32 %v2429_v19  ;;  %v1742_v4 = vmul.f32 %v7239_v50, %v9583_v42  ;;  %v1741_v21 = vmul.f32 %v7239_v50, %v9581_v43 }
 0x764   : > { %6602 = vmatprep.subr.bf16.mxu0 %v6601_v63  ;;  %7242 = vpow2.f32 %v3269_v1  ;;  %v11412_v63 = vld [vmem:[#allocation18_spill] sm:$0xff] }
 0x765   : > { %5637 = vmatprep.mubr.msk.f32.mxu1 %vm1694_vm0, %v1742_v4  ;;  %7244 = vpow2.f32 %v3271_v61  ;;  %v11411_v61 = vld [vmem:[#allocation153_spill] sm:$0xff] }
 0x766   : > { %v6899_v11 = vpop.permute.xlu1 %6898  ;;  %5638 = vmatmul.mubr.msk.f32.gmra.mrb[30].mxu1 %vm1694_vm0, %v1741_v21  ;;  %7246 = vpow2.f32 %v4212_v52  ;;  %v3235_v4 = vsub.f32 %v11412_v63, %v11411_v61  ;;  %v11413_v21 = vld [vmem:[#allocation123_spill] sm:$0xff]  ;;  %vm3376_vm9 = vcmp.gt.f32.partialorder %v11411_v61, -1e+08 }
 0x767   : > { %v6901_v22 = vunpack.i.h.bf16 %v6899_v11  ;;  %v6900_v6 = vunpack.i.l.bf16 %v6899_v11  ;;  %7248 = vpow2.f32 %v4214_v34  ;;  %v3236_v11 = vsub.f32 %v11413_v21, %v11411_v61  ;;  %v11414_v34 = vld [vmem:[#allocation154_spill] sm:$0xff] }
 0x768   : > { %v3273_v36 = vmul.f32 1.442695, %v3235_v4 }
 0x769   : > { %v6571_v17 = vpack.c.bf16 %v6901_v22, %v6900_v6 }
 0x76a   : > { %v6909_v42 = vpop.permute.xlu1 %6908 }
 0x76b   : > { %v6911_v60 = vunpack.i.h.bf16 %v6909_v42  ;;  %v6910_v43 = vunpack.i.l.bf16 %v6909_v42  ;;  %6572 = vmatpush3.bf16.msra.mxu1 %v6571_v17  ;;  %v3275_v42 = vmul.f32 1.442695, %v3236_v11 }
 0x76d   : > { %v7241_v53 = vpop.eup %7240  ;;  %v6603_v40 = vpack.c.bf16 %v6911_v60, %v6910_v43 }
 0x76e   : > { %v2493_v38 = vmul.f32 %v7241_v53, %v9589_v8  ;;  %v2492_v12 = vmul.f32 %v7241_v53, %v11409_v0  ;;  %v9787_v16 = vpop.eup %7242 }
 0x76f   : > { %6604 = vmatpush3.bf16.msra.mxu0 %v6603_v40  ;;  %v9789_v45 = vpop.eup %7244 }
 0x770   : > { %5669 = vmatprep.mubr.msk.f32.mxu0 %vm2445_vm5, %v2493_v38  ;;  %v3331_v55 = vadd.f32 %v9789_v45, %v9787_v16  ;;  %v9793_v15 = vpop.eup %7246  ;;  %v11415_v38 = vld [vmem:[#allocation122_spill] sm:$0xff] }
 0x771   : > { %5670 = vmatmul.mubr.msk.f32.gmra.mrb[46].mxu0 %vm2445_vm5, %v2492_v12  ;;  %v9795_v8 = vpop.eup %7248  ;;  %v4178_v0 = vsub.f32 %v11415_v38, %v11414_v34 }
 0x772   : > { %v4274_v33 = vadd.f32 %v9795_v8, %v9793_v15 }
 0x775   : > { %3332 = vadd.xlane.f32.xlu0 %v3331_v55  ;;  %v4179_v55 = vsub.f32 %v11416_v51, %v11414_v34  ;;  %v3512_v51 = vld [vmem:[#allocation2 + $0x58] sm:$0xff] }
 0x776   : > { %v11467_v34 = vld [vmem:[#allocation156_spill] sm:$0xff] }
 0x777   : > { %v4218_v54 = vmul.f32 1.442695, %v4179_v55 }
 0x77d   : > { %v5892_v49 = vpop.f32.mrb[10].mxu1 }
 0x77e   : > { %v5893_v57 = vpop.f32.mrb[11].mxu1 }
 0x77f   : > { %v5894_v39 = vadd.f32 %v5893_v57, %v5892_v49 }
 0x780   : > { %4275 = vadd.xlane.f32.xlu1 %v4274_v33  ;;  %v4216_v33 = vmul.f32 1.442695, %v4178_v0 }
 0x781   : > { %1990 = vst.msk [vmem:[#allocation4 + $0x28] sm:$0xff] %vm1984_vm14, %v5894_v39 }
 0x78b   : > { %6953 = vrot.lane.b32.xlu0 %v6952_v46, %s7527_s15 }
 0x78f   : > { %6963 = vrot.lane.b32.xlu0 %v6952_v46, %s7528_s22 }
 0x790   : > { %v3327_v56 = vpop.xlane.xlu0 %3326 }
 0x791   : > { %6958 = vrot.lane.b32.xlu1 %v6957_v58, %s7527_s15  ;;  %7250 = vrcp.f32 %v3327_v56 }
 0x794   : > { %v6914_v19 = vpop.permute.xlu0 %6913 }
 0x795   : > { %6968 = vrot.lane.b32.xlu1 %v6957_v58, %s7528_s22  ;;  %v6916_v1 = vunpack.i.h.bf16 %v6914_v19  ;;  %v6915_v50 = vunpack.i.l.bf16 %v6914_v19 }
 0x797   : > { %v6573_v22 = vpack.c.bf16 %v6916_v1, %v6915_v50 }
 0x798   : > { %v6924_v6 = vpop.permute.xlu0 %6923 }
 0x799   : > { %v6926_v5 = vunpack.i.h.bf16 %v6924_v6  ;;  %v6925_v25 = vunpack.i.l.bf16 %v6924_v6  ;;  %6574 = vmatprep.subr.bf16.mxu1 %v6573_v22 }
 0x79b   : > { %v4270_v17 = vpop.xlane.xlu1 %4269  ;;  %v9808_v7 = vpop.eup %7250  ;;  %v6605_v60 = vpack.c.bf16 %v6926_v5, %v6925_v25 }
 0x79c   : > { %7252 = vrcp.f32 %v4270_v17  ;;  %v3391_v43 = vmul.f32 %v9808_v7, %v9647_v2 }
 0x79d   : > { %6606 = vmatprep.subr.bf16.mxu0 %v6605_v60  ;;  %7254 = vpow2.f32 %v3273_v36  ;;  %v3527_v60 = vld [vmem:[#allocation2 + $0xd0] sm:$0xff] }
 0x79e   : > { %5671 = vmatprep.mubr.msk.f32.mxu1 %vm3373_vm10, %v3391_v43  ;;  %7256 = vpow2.f32 %v3275_v42  ;;  %v3528_v43 = vld [vmem:[#allocation2 + $0xd8] sm:$0xff] }
 0x79f   : > { %v6919_v53 = vpop.permute.xlu1 %6918  ;;  %7258 = vpow2.f32 %v4216_v33 }
 0x7a0   : > { %v6921_v52 = vunpack.i.h.bf16 %v6919_v53  ;;  %v6920_v40 = vunpack.i.l.bf16 %v6919_v53  ;;  %7260 = vpow2.f32 %v4218_v54 }
 0x7a2   : > { %v6575_v12 = vpack.c.bf16 %v6921_v52, %v6920_v40  ;;  %v6972_v40 = vpack.i.bf16 %v3528_v43, %v3527_v60 }
 0x7a3   : > { %v6929_v49 = vpop.permute.xlu1 %6928 }
 0x7a4   : > { %v6931_v2 = vunpack.i.h.bf16 %v6929_v49  ;;  %v6930_v57 = vunpack.i.l.bf16 %v6929_v49  ;;  %6576 = vmatpush3.bf16.msra.mxu1 %v6575_v12  ;;  %v3511_v12 = vld [vmem:[#allocation2 + $0x50] sm:$0xff] }
 0x7a6   : > { %v9819_v39 = vpop.eup %7252  ;;  %v6607_v62 = vpack.c.bf16 %v6931_v2, %v6930_v57  ;;  %v6977_v2 = vpack.i.bf16 %v3512_v51, %v3511_v12 }
 0x7a7   : > { %v4334_v46 = vmul.f32 %v9819_v39, %v9655_v44  ;;  %v9826_v9 = vpop.eup %7254 }
 0x7a8   : > { %6608 = vmatpush3.bf16.msra.mxu0 %v6607_v62  ;;  %v9828_v13 = vpop.eup %7256 }
 0x7a9   : > { %5703 = vmatprep.mubr.msk.f32.mxu0 %vm4316_vm3, %v4334_v46  ;;  %v3334_v58 = vadd.f32 %v9828_v13, %v9826_v9  ;;  %v9832_v19 = vpop.eup %7258 }
 0x7aa   : > { %11417 = vst [vmem:[#allocation73_spill] sm:$0xff] %v9832_v19  ;;  %v9834_v1 = vpop.eup %7260 }
 0x7ab   : > { %v4277_v6 = vadd.f32 %v9834_v1, %v9832_v19 }
 0x7ae   : > { %3335 = vadd.xlane.f32.xlu0 %v3334_v58 }
 0x7b3   : > { %v5957_v56 = vpop.f32.mrb[16].mxu0 }
 0x7b4   : > { %v5958_v44 = vpop.f32.mrb[17].mxu0 }
 0x7b5   : > { %v9836_v50 = vadd.f32 %v5958_v44, %v5957_v56  ;;  %v11422_v56 = vld [vmem:[#allocation12_spill] sm:$0xff]  ;;  %v11423_v44 = vld [vmem:[#allocation29_spill] sm:$0xff] }
 0x7b6   : > { %v5895_v63 = vpop.f32.mrb[12].mxu1 }
 0x7b7   : > { %v5896_v4 = vpop.f32.mrb[13].mxu1  ;;  %v5960_v21 = vpop.f32.mrb[18].mxu0 }
 0x7b8   : > { %v5897_v11 = vadd.f32 %v5896_v4, %v5895_v63  ;;  %v5961_v22 = vpop.f32.mrb[19].mxu0  ;;  %v3237_v63 = vsub.f32 %v11423_v44, %v11422_v56  ;;  %v11424_v4 = vld [vmem:[#allocation31_spill] sm:$0xff] }
 0x7b9   : > { %v9840_v5 = vadd.f32 %v5961_v22, %v5960_v21  ;;  %4278 = vadd.xlane.f32.xlu1 %v4277_v6  ;;  %v3238_v21 = vsub.f32 %v11424_v4, %v11422_v56 }
 0x7ba   : > { %1991 = vst.msk [vmem:[#allocation4 + $0x30] sm:$0xff] %vm1984_vm14, %v5897_v11 }
 0x7bb   : > { %v5963_v25 = vpop.f32.mrb[20].mxu0 }
 0x7bc   : > { %v5964_v17 = vpop.f32.mrb[21].mxu0 }
 0x7bd   : > { %v9843_v36 = vadd.f32 %v5964_v17, %v5963_v25 }
 0x7bf   : > { %11418 = vst [vmem:[#allocation132_spill] sm:$0xff] %v9843_v36  ;;  %v5966_v42 = vpop.f32.mrb[22].mxu0 }
 0x7c0   : > { %v5967_v53 = vpop.f32.mrb[23].mxu0 }
 0x7c1   : > { %v9845_v52 = vadd.f32 %v5967_v53, %v5966_v42  ;;  %v3277_v42 = vmul.f32 1.442695, %v3237_v63  ;;  %v3279_v53 = vmul.f32 1.442695, %v3238_v21 }
 0x7c3   : > { %11419 = vst [vmem:[#allocation74_spill] sm:$0xff] %v9845_v52  ;;  %v5969_v38 = vpop.f32.mrb[24].mxu0  ;;  %7262 = vpow2.f32 %v3277_v42 }
 0x7c4   : > { %v5970_v0 = vpop.f32.mrb[25].mxu0  ;;  %6973 = vrot.lane.b32.xlu0 %v6972_v40, %s7527_s15  ;;  %7264 = vpow2.f32 %v3279_v53 }
 0x7c5   : > { %v9847_v55 = vadd.f32 %v5970_v0, %v5969_v38 }
 0x7c7   : > { %11420 = vst [vmem:[#allocation75_spill] sm:$0xff] %v9847_v55  ;;  %v5972_v49 = vpop.f32.mrb[26].mxu0 }
 0x7c8   : > { %v5973_v57 = vpop.f32.mrb[27].mxu0  ;;  %6983 = vrot.lane.b32.xlu0 %v6972_v40, %s7528_s22 }
 0x7c9   : > { %v9850_v33 = vadd.f32 %v5973_v57, %v5972_v49  ;;  %v9853_v62 = vpop.xlane.xlu0 %3329  ;;  %v11425_v49 = vld [vmem:[#allocation13_spill] sm:$0xff] }
 0x7ca   : > { %6978 = vrot.lane.b32.xlu1 %v6977_v2, %s7527_s15 }
 0x7cb   : > { %11421 = vst [vmem:[#allocation145_spill] sm:$0xff] %v9850_v33 }
 0x7cd   : > { %v6934_v54 = vpop.permute.xlu0 %6933 }
 0x7ce   : > { %6988 = vrot.lane.b32.xlu1 %v6977_v2, %s7528_s22  ;;  %v6936_v46 = vunpack.i.h.bf16 %v6934_v54  ;;  %v6935_v58 = vunpack.i.l.bf16 %v6934_v54  ;;  %v11426_v2 = vld [vmem:[#allocation124_spill] sm:$0xff]  ;;  %v11427_v54 = vld [vmem:[#allocation125_spill] sm:$0xff] }
 0x7cf   : > { %v4180_v57 = vsub.f32 %v11426_v2, %v11425_v49 }
 0x7d0   : > { %v6577_v11 = vpack.c.bf16 %v6936_v46, %v6935_v58  ;;  %v5898_v6 = vpop.f32.mrb[14].mxu1  ;;  %v4181_v46 = vsub.f32 %v11427_v54, %v11425_v49 }
 0x7d1   : > { %v6944_v22 = vpop.permute.xlu0 %6943  ;;  %v5899_v60 = vpop.f32.mrb[15].mxu1  ;;  %v4220_v21 = vmul.f32 1.442695, %v4180_v57 }
 0x7d2   : > { %v6946_v25 = vunpack.i.h.bf16 %v6944_v22  ;;  %v6945_v17 = vunpack.i.l.bf16 %v6944_v22  ;;  %6578 = vmatprep.subr.bf16.mxu1 %v6577_v11  ;;  %v5900_v38 = vadd.f32 %v5899_v60, %v5898_v6  ;;  %v4222_v11 = vmul.f32 1.442695, %v4181_v46  ;;  %v9868_v6 = vpop.eup %7262 }
 0x7d3   : > { %11428 = vst [vmem:[#allocation76_spill] sm:$0xff] %v9868_v6  ;;  %7266 = vpow2.f32 %v4220_v21 }
 0x7d4   : > { %v9861_v43 = vpop.xlane.xlu1 %4272  ;;  %v6609_v40 = vpack.c.bf16 %v6946_v25, %v6945_v17  ;;  %1992 = vst.msk [vmem:[#allocation4 + $0x38] sm:$0xff] %vm1984_vm14, %v5900_v38  ;;  %v9870_v25 = vpop.eup %7264  ;;  %7268 = vpow2.f32 %v4222_v11 }
 0x7d5   : > { %v3337_v53 = vadd.f32 %v9870_v25, %v9868_v6 }
 0x7d6   : > { %6610 = vmatprep.subr.bf16.mxu0 %v6609_v40 }
 0x7d8   : > { %v6939_v0 = vpop.permute.xlu1 %6938 }
 0x7d9   : > { %v6941_v12 = vunpack.i.h.bf16 %v6939_v0  ;;  %v6940_v51 = vunpack.i.l.bf16 %v6939_v0 }
 0x7da   : > { %v11528_v48 = vld [vmem:[#allocation76_spill] sm:$0xff] }
 0x7db   : > { %v6579_v58 = vpack.c.bf16 %v6941_v12, %v6940_v51 }
 0x7dc   : > { %v6949_v44 = vpop.permute.xlu1 %6948 }
 0x7dd   : > { %v6951_v63 = vunpack.i.h.bf16 %v6949_v44  ;;  %v6950_v4 = vunpack.i.l.bf16 %v6949_v44  ;;  %6580 = vmatpush3.bf16.msra.mxu1 %v6579_v58  ;;  %v9875_v40 = vpop.eup %7266 }
 0x7de   : > { %11429 = vst [vmem:[#allocation77_spill] sm:$0xff] %v9875_v40  ;;  %v9877_v0 = vpop.eup %7268 }
 0x7df   : > { %v6611_v22 = vpack.c.bf16 %v6951_v63, %v6950_v4  ;;  %11430 = vst [vmem:[#allocation78_spill] sm:$0xff] %v9877_v0  ;;  %v4280_v46 = vadd.f32 %v9877_v0, %v9875_v40 }
 0x7e0   : > { %v5901_v17 = vpop.f32.mrb[16].mxu1 }
 0x7e1   : > { %6612 = vmatpush3.bf16.msra.mxu0 %v6611_v22  ;;  %v5902_v42 = vpop.f32.mrb[17].mxu1 }
 0x7e2   : > { %v5903_v60 = vadd.f32 %v5902_v42, %v5901_v17  ;;  %v3529_v17 = vld [vmem:[#allocation2 + $0xe0] sm:$0xff]  ;;  %v3530_v42 = vld [vmem:[#allocation2 + $0xe8] sm:$0xff] }
 0x7e4   : > { %1993 = vst.msk [vmem:[#allocation4 + $0x40] sm:$0xff] %vm1984_vm14, %v5903_v60 }
 0x7e7   : > { %3338 = vadd.xlane.f32.xlu0 %v3337_v53 }
 0x7eb   : > { %v5975_v38 = vpop.f32.mrb[28].mxu0 }
 0x7ec   : > { %v5976_v12 = vpop.f32.mrb[29].mxu0 }
 0x7ed   : > { %v9879_v51 = vadd.f32 %v5976_v12, %v5975_v38 }
 0x7ef   : > { %11431 = vst [vmem:[#allocation79_spill] sm:$0xff] %v9879_v51  ;;  %v5904_v2 = vpop.f32.mrb[18].mxu1  ;;  %v5978_v57 = vpop.f32.mrb[30].mxu0 }
 0x7f0   : > { %v5905_v54 = vpop.f32.mrb[19].mxu1  ;;  %v5979_v44 = vpop.f32.mrb[31].mxu0 }
 0x7f1   : > { %v5906_v58 = vadd.f32 %v5905_v54, %v5904_v2  ;;  %v9883_v63 = vadd.f32 %v5979_v44, %v5978_v57  ;;  %v6992_v2 = vpack.i.bf16 %v3530_v42, %v3529_v17  ;;  %v3514_v44 = vld [vmem:[#allocation2 + $0x68] sm:$0xff] }
 0x7f2   : > { %4281 = vadd.xlane.f32.xlu1 %v4280_v46 }
 0x7f3   : > { %11432 = vst [vmem:[#allocation133_spill] sm:$0xff] %v9883_v63  ;;  %1994 = vst.msk [vmem:[#allocation4 + $0x48] sm:$0xff] %vm1984_vm14, %v5906_v58  ;;  %v5981_v4 = vpop.f32.mrb[32].mxu0  ;;  %v3513_v58 = vld [vmem:[#allocation2 + $0x60] sm:$0xff] }
 0x7f4   : > { %v5982_v21 = vpop.f32.mrb[33].mxu0  ;;  %v5907_v22 = vpop.f32.mrb[20].mxu1 }
 0x7f5   : > { %v9886_v11 = vadd.f32 %v5982_v21, %v5981_v4  ;;  %v5908_v60 = vpop.f32.mrb[21].mxu1 }
 0x7f6   : > { %v5909_v38 = vadd.f32 %v5908_v60, %v5907_v22  ;;  %v6997_v60 = vpack.i.bf16 %v3514_v44, %v3513_v58 }
 0x7f7   : > { %11433 = vst [vmem:[#allocation85_spill] sm:$0xff] %v9886_v11  ;;  %v5984_v53 = vpop.f32.mrb[34].mxu0 }
 0x7f8   : > { %v5985_v12 = vpop.f32.mrb[35].mxu0  ;;  %1995 = vst.msk [vmem:[#allocation4 + $0x50] sm:$0xff] %vm1984_vm14, %v5909_v38  ;;  %v5910_v57 = vpop.f32.mrb[22].mxu1 }
 0x7f9   : > { %v9888_v51 = vadd.f32 %v5985_v12, %v5984_v53  ;;  %v5911_v54 = vpop.f32.mrb[23].mxu1 }
 0x7fa   : > { %v5912_v63 = vadd.f32 %v5911_v54, %v5910_v57 }
 0x7fb   : > { %11434 = vst [vmem:[#allocation87_spill] sm:$0xff] %v9888_v51  ;;  %v5987_v46 = vpop.f32.mrb[36].mxu0 }
 0x7fc   : > { %v5988_v4 = vpop.f32.mrb[37].mxu0  ;;  %1996 = vst.msk [vmem:[#allocation4 + $0x58] sm:$0xff] %vm1984_vm14, %v5912_v63  ;;  %v5913_v22 = vpop.f32.mrb[24].mxu1 }
 0x7fd   : > { %v9891_v21 = vadd.f32 %v5988_v4, %v5987_v46  ;;  %6993 = vrot.lane.b32.xlu0 %v6992_v2, %s7527_s15  ;;  %v5914_v53 = vpop.f32.mrb[25].mxu1 }
 0x7fe   : > { %v5915_v17 = vadd.f32 %v5914_v53, %v5913_v22 }
 0x7ff   : > { %11435 = vst [vmem:[#allocation89_spill] sm:$0xff] %v9891_v21  ;;  %v5990_v12 = vpop.f32.mrb[38].mxu0 }
 0x800   : > { %v5991_v42 = vpop.f32.mrb[39].mxu0  ;;  %1997 = vst.msk [vmem:[#allocation4 + $0x60] sm:$0xff] %vm1984_vm14, %v5915_v17  ;;  %v5916_v57 = vpop.f32.mrb[26].mxu1 }
 0x801   : > { %v9895_v38 = vadd.f32 %v5991_v42, %v5990_v12  ;;  %7003 = vrot.lane.b32.xlu0 %v6992_v2, %s7528_s22  ;;  %v5917_v46 = vpop.f32.mrb[27].mxu1  ;;  %v11438_v42 = vld [vmem:[#allocation38_spill] sm:$0xff] }
 0x802   : > { %v9899_v54 = vpop.xlane.xlu0 %3332  ;;  %v5918_v63 = vadd.f32 %v5917_v46, %v5916_v57  ;;  %v11440_v57 = vld [vmem:[#allocation26_spill] sm:$0xff] }
 0x803   : > { %11436 = vst [vmem:[#allocation86_spill] sm:$0xff] %v9895_v38  ;;  %6998 = vrot.lane.b32.xlu1 %v6997_v60, %s7527_s15  ;;  %v5993_v4 = vpop.f32.mrb[40].mxu0  ;;  %v11439_v38 = vld [vmem:[#allocation23_spill] sm:$0xff]  ;;  %v3240_v46 = vsub.f32 %v11440_v57, %v11438_v42 }
 0x804   : > { %v5994_v21 = vpop.f32.mrb[41].mxu0  ;;  %1998 = vst.msk [vmem:[#allocation4 + $0x68] sm:$0xff] %vm1984_vm14, %v5918_v63  ;;  %v5919_v44 = vpop.f32.mrb[28].mxu1  ;;  %v3239_v51 = vsub.f32 %v11439_v38, %v11438_v42 }
 0x805   : > { %v9902_v58 = vadd.f32 %v5994_v21, %v5993_v4  ;;  %v5920_v2 = vpop.f32.mrb[29].mxu1  ;;  %v3283_v38 = vmul.f32 1.442695, %v3240_v46 }
 0x806   : > { %v6954_v22 = vpop.permute.xlu0 %6953  ;;  %v5921_v11 = vadd.f32 %v5920_v2, %v5919_v44 }
 0x807   : > { %11437 = vst [vmem:[#allocation88_spill] sm:$0xff] %v9902_v58  ;;  %7008 = vrot.lane.b32.xlu1 %v6997_v60, %s7528_s22  ;;  %v6956_v53 = vunpack.i.h.bf16 %v6954_v22  ;;  %v6955_v12 = vunpack.i.l.bf16 %v6954_v22  ;;  %v5996_v17 = vpop.f32.mrb[42].mxu0  ;;  %v3281_v22 = vmul.f32 1.442695, %v3239_v51 }
 0x808   : > { %v5997_v33 = vpop.f32.mrb[43].mxu0  ;;  %1999 = vst.msk [vmem:[#allocation4 + $0x70] sm:$0xff] %vm1984_vm14, %v5921_v11  ;;  %v11443_v11 = vld [vmem:[#allocation158_spill] sm:$0xff] }
 0x809   : > { %v6581_v21 = vpack.c.bf16 %v6956_v53, %v6955_v12  ;;  %v9910_v4 = vadd.f32 %v5997_v33, %v5996_v17  ;;  %7270 = vpow2.f32 %v3281_v22  ;;  %v11444_v17 = vld [vmem:[#allocation15_spill] sm:$0xff] }
 0x80a   : > { %v6964_v63 = vpop.permute.xlu0 %6963  ;;  %7272 = vpow2.f32 %v3283_v38  ;;  %v4182_v57 = vsub.f32 %v11444_v17, %v11443_v11 }
 0x80b   : > { %11441 = vst [vmem:[#allocation90_spill] sm:$0xff] %v9910_v4  ;;  %v6966_v58 = vunpack.i.h.bf16 %v6964_v63  ;;  %v6965_v60 = vunpack.i.l.bf16 %v6964_v63  ;;  %v5999_v55 = vpop.f32.mrb[44].mxu0  ;;  %6582 = vmatprep.subr.bf16.mxu1 %v6581_v21  ;;  %v11445_v63 = vld [vmem:[#allocation17_spill] sm:$0xff] }
 0x80c   : > { %v6000_v52 = vpop.f32.mrb[45].mxu0  ;;  %v4183_v21 = vsub.f32 %v11445_v63, %v11443_v11 }
 0x80d   : > { %v9913_v36 = vpop.xlane.xlu1 %4275  ;;  %v6613_v44 = vpack.c.bf16 %v6966_v58, %v6965_v60  ;;  %v9915_v2 = vadd.f32 %v6000_v52, %v5999_v55  ;;  %v4224_v58 = vmul.f32 1.442695, %v4182_v57 }
 0x80e   : > { %v4226_v52 = vmul.f32 1.442695, %v4183_v21 }
 0x80f   : > { %11442 = vst [vmem:[#allocation91_spill] sm:$0xff] %v9915_v2  ;;  %6614 = vmatprep.subr.bf16.mxu0 %v6613_v44  ;;  %7274 = vpow2.f32 %v4224_v58  ;;  %v11453_v2 = vld [vmem:[#allocation161_spill] sm:$0xff] }
 0x810   : > { %7276 = vpow2.f32 %v4226_v52 }
 0x811   : > { %v6959_v53 = vpop.permute.xlu1 %6958 }
 0x812   : > { %v6961_v33 = vunpack.i.h.bf16 %v6959_v53  ;;  %v6960_v12 = vunpack.i.l.bf16 %v6959_v53 }
 0x813   : > { %v9921_v46 = vpop.eup %7270 }
 0x814   : > { %v6583_v51 = vpack.c.bf16 %v6961_v33, %v6960_v12  ;;  %11446 = vst [vmem:[#allocation92_spill] sm:$0xff] %v9921_v46  ;;  %v9923_v60 = vpop.eup %7272  ;;  %v3515_v33 = vld [vmem:[#allocation2 + $0x70] sm:$0xff]  ;;  %v3516_v12 = vld [vmem:[#allocation2 + $0x78] sm:$0xff] }
 0x815   : > { %v6969_v4 = vpop.permute.xlu1 %6968  ;;  %11447 = vst [vmem:[#allocation94_spill] sm:$0xff] %v9923_v60  ;;  %v3340_v22 = vadd.f32 %v9923_v60, %v9921_v46  ;;  %v7017_v17 = vpack.i.bf16 %v3516_v12, %v3515_v33  ;;  %v11458_v60 = vld [vmem:[#allocation147_spill] sm:$0xff] }
 0x816   : > { %v6971_v40 = vunpack.i.h.bf16 %v6969_v4  ;;  %v6970_v49 = vunpack.i.l.bf16 %v6969_v4  ;;  %6584 = vmatpush3.bf16.msra.mxu1 %v6583_v51 }
 0x818   : > { %v6615_v55 = vpack.c.bf16 %v6971_v40, %v6970_v49  ;;  %v3531_v49 = vld [vmem:[#allocation2 + $0xf0] sm:$0xff]  ;;  %v3532_v40 = vld [vmem:[#allocation2 + $0xf8] sm:$0xff] }
 0x819   : > { %v9927_v38 = vpop.eup %7274  ;;  %v7012_v53 = vpack.i.bf16 %v3532_v40, %v3531_v49  ;;  %v11452_v40 = vld [vmem:[#allocation36_spill] sm:$0xff] }
 0x81a   : > { %6616 = vmatpush3.bf16.msra.mxu0 %v6615_v55  ;;  %11448 = vst [vmem:[#allocation95_spill] sm:$0xff] %v9927_v38  ;;  %v9929_v44 = vpop.eup %7276 }
 0x81b   : > { %11449 = vst [vmem:[#allocation143_spill] sm:$0xff] %v9929_v44  ;;  %v4283_v4 = vadd.f32 %v9929_v44, %v9927_v38  ;;  %v11454_v38 = vld [vmem:[#allocation10_spill] sm:$0xff] }
 0x81c   : > { %v3243_v11 = vsub.f32 %v11454_v38, %v11453_v2 }
 0x820   : > { %3341 = vadd.xlane.f32.xlu0 %v3340_v22  ;;  %v11450_v22 = vld [vmem:[#allocation33_spill] sm:$0xff] }
 0x821   : > { %v3242_v33 = vsub.f32 %v11452_v40, %v11450_v22 }
 0x823   : > { %v3287_v0 = vmul.f32 1.442695, %v3242_v33  ;;  %v11462_v33 = vld [vmem:[#allocation127_spill] sm:$0xff] }
 0x82b   : > { %4284 = vadd.xlane.f32.xlu1 %v4283_v4  ;;  %v11451_v4 = vld [vmem:[#allocation16_spill] sm:$0xff] }
 0x82c   : > { %v3241_v49 = vsub.f32 %v11451_v4, %v11450_v22  ;;  %v11457_v22 = vld [vmem:[#allocation24_spill] sm:$0xff] }
 0x82d   : > { %v4186_v38 = vsub.f32 %v11458_v60, %v11457_v22 }
 0x836   : > { %7013 = vrot.lane.b32.xlu0 %v7012_v53, %s7527_s15 }
 0x839   : > { %v5922_v57 = vpop.f32.mrb[30].mxu1 }
 0x83a   : > { %7023 = vrot.lane.b32.xlu0 %v7012_v53, %s7528_s22  ;;  %v5923_v63 = vpop.f32.mrb[31].mxu1 }
 0x83b   : > { %v5924_v21 = vadd.f32 %v5923_v63, %v5922_v57  ;;  %v9935_v51 = vpop.xlane.xlu0 %3335 }
 0x83c   : > { %7018 = vrot.lane.b32.xlu1 %v7017_v17, %s7527_s15 }
 0x83d   : > { %2000 = vst.msk [vmem:[#allocation4 + $0x78] sm:$0xff] %vm1984_vm14, %v5924_v21  ;;  %vm3374_vm14 = vcmp.gt.f32.partialorder %v11385_v23, -1e+08 }
 0x83f   : > { %v6974_v58 = vpop.permute.xlu0 %6973 }
 0x840   : > { %7028 = vrot.lane.b32.xlu1 %v7017_v17, %s7528_s22  ;;  %v6976_v52 = vunpack.i.h.bf16 %v6974_v58  ;;  %v6975_v55 = vunpack.i.l.bf16 %v6974_v58  ;;  %v3285_v17 = vmul.f32 1.442695, %v3241_v49  ;;  %v11456_v58 = vld [vmem:[#allocation11_spill] sm:$0xff] }
 0x841   : > { %v3244_v42 = vsub.f32 %v11456_v58, %v11453_v2  ;;  %v11461_v58 = vld [vmem:[#allocation126_spill] sm:$0xff]  ;;  %v11465_v2 = vld [vmem:[#allocation155_spill] sm:$0xff] }
 0x842   : > { %v6585_v53 = vpack.c.bf16 %v6976_v52, %v6975_v55  ;;  %v3289_v52 = vmul.f32 1.442695, %v3243_v11  ;;  %7278 = vpow2.f32 %v3285_v17  ;;  %v11464_v17 = vld [vmem:[#allocation39_spill] sm:$0xff] }
 0x843   : > { %v6984_v57 = vpop.permute.xlu0 %6983  ;;  %v3291_v55 = vmul.f32 1.442695, %v3244_v42  ;;  %7280 = vpow2.f32 %v3287_v0  ;;  %v4232_v42 = vmul.f32 1.442695, %v4186_v38 }
 0x844   : > { %v6002_v12 = vpop.f32.mrb[46].mxu0  ;;  %v6986_v44 = vunpack.i.h.bf16 %v6984_v57  ;;  %v6985_v21 = vunpack.i.l.bf16 %v6984_v57  ;;  %6586 = vmatprep.subr.bf16.mxu1 %v6585_v53  ;;  %7282 = vpow2.f32 %v3289_v52  ;;  %v11468_v52 = vld [vmem:[#allocation157_spill] sm:$0xff] }
 0x845   : > { %v6003_v63 = vpop.f32.mrb[47].mxu0  ;;  %7284 = vpow2.f32 %v3291_v55 }
 0x846   : > { %v9946_v46 = vadd.f32 %v6003_v63, %v6002_v12  ;;  %v9950_v4 = vpop.xlane.xlu1 %4278  ;;  %v6617_v40 = vpack.c.bf16 %v6986_v44, %v6985_v21  ;;  %v11459_v12 = vld [vmem:[#allocation148_spill] sm:$0xff]  ;;  %v11460_v63 = vld [vmem:[#allocation34_spill] sm:$0xff]  ;;  %7286 = vpow2.f32 %v4232_v42 }
 0x847   : > { %v4187_v53 = vsub.f32 %v11459_v12, %v11457_v22  ;;  %v4185_v44 = vsub.f32 %v11462_v33, %v11460_v63  ;;  %v11463_v21 = vld [vmem:[#allocation48_spill] sm:$0xff] }
 0x848   : > { %11455 = vst [vmem:[#allocation96_spill] sm:$0xff] %v9946_v46  ;;  %6618 = vmatprep.subr.bf16.mxu0 %v6617_v40  ;;  %v4184_v46 = vsub.f32 %v11461_v58, %v11460_v63  ;;  %v3245_v60 = vsub.f32 %v11464_v17, %v11463_v21  ;;  %v3246_v12 = vsub.f32 %v11465_v2, %v11463_v21  ;;  %v11466_v58 = vld [vmem:[#allocation49_spill] sm:$0xff]  ;;  %v11470_v17 = vld [vmem:[#allocation27_spill] sm:$0xff]  ;;  %v11471_v2 = vld [vmem:[#allocation28_spill] sm:$0xff] }
 0x849   : > { %v4234_v0 = vmul.f32 1.442695, %v4187_v53  ;;  %v4188_v56 = vsub.f32 %v11467_v34, %v11466_v58  ;;  %v4230_v33 = vmul.f32 1.442695, %v4185_v44  ;;  %v4189_v55 = vsub.f32 %v11468_v52, %v11466_v58  ;;  %v11473_v44 = vld [vmem:[#allocation44_spill] sm:$0xff]  ;;  %v11481_v58 = vld [vmem:[#allocation47_spill] sm:$0xff] }
 0x84a   : > { %v6979_v19 = vpop.permute.xlu1 %6978  ;;  %v4228_v6 = vmul.f32 1.442695, %v4184_v46  ;;  %v3295_v63 = vmul.f32 1.442695, %v3246_v12  ;;  %v11476_v42 = vld [vmem:[#allocation160_spill] sm:$0xff]  ;;  %v11477_v12 = vld [vmem:[#allocation62_spill] sm:$0xff] }
 0x84b   : > { %v6981_v49 = vunpack.i.h.bf16 %v6979_v19  ;;  %v6980_v57 = vunpack.i.l.bf16 %v6979_v19  ;;  %7288 = vpow2.f32 %v4234_v0  ;;  %v4236_v34 = vmul.f32 1.442695, %v4188_v56  ;;  %v11479_v56 = vld [vmem:[#allocation46_spill] sm:$0xff] }
 0x84c   : > { %v9972_v46 = vpop.eup %7278  ;;  %7290 = vpow2.f32 %v4228_v6 }
 0x84d   : > { %v6587_v11 = vpack.c.bf16 %v6981_v49, %v6980_v57  ;;  %v3293_v49 = vmul.f32 1.442695, %v3245_v60  ;;  %v11469_v57 = vld [vmem:[#allocation142_spill] sm:$0xff]  ;;  %11472 = vst [vmem:[#allocation97_spill] sm:$0xff] %v9972_v46  ;;  %v9976_v52 = vpop.eup %7280  ;;  %7292 = vpow2.f32 %v4230_v33  ;;  %v4191_v60 = vsub.f32 %v11476_v42, %v11473_v44 }
 0x84e   : > { %v6989_v40 = vpop.permute.xlu1 %6988  ;;  %v3247_v53 = vsub.f32 %v11470_v17, %v11469_v57  ;;  %11475 = vst [vmem:[#allocation100_spill] sm:$0xff] %v9976_v52  ;;  %v11482_v42 = vld [vmem:[#allocation162_spill] sm:$0xff] }
 0x84f   : > { %v6991_v22 = vunpack.i.h.bf16 %v6989_v40  ;;  %v6990_v19 = vunpack.i.l.bf16 %v6989_v40  ;;  %6588 = vmatpush3.bf16.msra.mxu1 %v6587_v11  ;;  %v3248_v40 = vsub.f32 %v11471_v2, %v11469_v57  ;;  %v11474_v11 = vld [vmem:[#allocation159_spill] sm:$0xff]  ;;  %7294 = vpow2.f32 %v3293_v49 }
 0x850   : > { %v4190_v21 = vsub.f32 %v11474_v11, %v11473_v44  ;;  %v3297_v0 = vmul.f32 1.442695, %v3247_v53  ;;  %7296 = vpow2.f32 %v3295_v63  ;;  %v3250_v2 = vsub.f32 %v11479_v56, %v11477_v12  ;;  %v11484_v44 = vld [vmem:[#allocation40_spill] sm:$0xff] }
 0x851   : > { %v6619_v38 = vpack.c.bf16 %v6991_v22, %v6990_v19  ;;  %v4238_v22 = vmul.f32 1.442695, %v4189_v55  ;;  %v11478_v19 = vld [vmem:[#allocation25_spill] sm:$0xff]  ;;  %v3299_v6 = vmul.f32 1.442695, %v3248_v40  ;;  %7298 = vpow2.f32 %v4236_v34  ;;  %v11480_v55 = vld [vmem:[#allocation139_spill] sm:$0xff] }
 0x852   : > { %v3249_v17 = vsub.f32 %v11478_v19, %v11477_v12  ;;  %v4240_v33 = vmul.f32 1.442695, %v4190_v21  ;;  %v4192_v57 = vsub.f32 %v11481_v58, %v11480_v55  ;;  %v3343_v49 = vadd.f32 %v9976_v52, %v9972_v46  ;;  %v11483_v40 = vld [vmem:[#allocation64_spill] sm:$0xff]  ;;  %v11485_v21 = vld [vmem:[#allocation41_spill] sm:$0xff] }
 0x853   : > { %6620 = vmatpush3.bf16.msra.mxu0 %v6619_v38  ;;  %v9982_v38 = vpop.eup %7282  ;;  %7300 = vpow2.f32 %v4238_v22  ;;  %v4242_v53 = vmul.f32 1.442695, %v4191_v60  ;;  %v4193_v19 = vsub.f32 %v11482_v42, %v11480_v55  ;;  %v3251_v56 = vsub.f32 %v11484_v44, %v11483_v40  ;;  %v11487_v22 = vld [vmem:[#allocation65_spill] sm:$0xff]  ;;  %v11488_v60 = vld [vmem:[#allocation131_spill] sm:$0xff]  ;;  %v11493_v55 = vld [vmem:[#allocation134_spill] sm:$0xff] }
 0x854   : > { %v9986_v11 = vpop.eup %7284  ;;  %7302 = vpow2.f32 %v3297_v0  ;;  %v3301_v63 = vmul.f32 1.442695, %v3249_v17  ;;  %v3303_v34 = vmul.f32 1.442695, %v3250_v2  ;;  %v3252_v12 = vsub.f32 %v11485_v21, %v11483_v40 }
 0x855   : > { %7304 = vpow2.f32 %v3299_v6  ;;  %v9998_v58 = vpop.eup %7286  ;;  %v4244_v46 = vmul.f32 1.442695, %v4192_v57  ;;  %v4194_v52 = vsub.f32 %v11488_v60, %v11487_v22  ;;  %v3346_v0 = vadd.f32 %v9986_v11, %v9982_v38  ;;  %v11490_v6 = vld [vmem:[#allocation14_spill] sm:$0xff] }
 0x856   : > { %11486 = vst [vmem:[#allocation101_spill] sm:$0xff] %v9998_v58  ;;  %7306 = vpow2.f32 %v4240_v33  ;;  %v10004_v17 = vpop.eup %7288  ;;  %v4246_v44 = vmul.f32 1.442695, %v4193_v19  ;;  %v4195_v2 = vsub.f32 %v11490_v6, %v11487_v22  ;;  %v3305_v42 = vmul.f32 1.442695, %v3251_v56  ;;  %v11492_v33 = vld [vmem:[#allocation45_spill] sm:$0xff] }
 0x857   : > { %11489 = vst [vmem:[#allocation128_spill] sm:$0xff] %v10004_v17  ;;  %7308 = vpow2.f32 %v4242_v53  ;;  %v3253_v57 = vsub.f32 %v11492_v33, %v9610_v31  ;;  %v3307_v60 = vmul.f32 1.442695, %v3252_v12  ;;  %v3254_v40 = vsub.f32 %v11493_v55, %v9610_v31  ;;  %v11495_v6 = vld [vmem:[#allocation135_spill] sm:$0xff] }
 0x858   : > { %7310 = vpow2.f32 %v3301_v63  ;;  %v4248_v19 = vmul.f32 1.442695, %v4194_v52  ;;  %v4196_v22 = vsub.f32 %v11495_v6, %v9617_v24  ;;  %v4289_v63 = vadd.f32 %v10004_v17, %v9998_v58 }
 0x859   : > { %3344 = vadd.xlane.f32.xlu0 %v3343_v49  ;;  %v10008_v49 = vpop.eup %7290  ;;  %7312 = vpow2.f32 %v3303_v34  ;;  %v11496_v34 = vld [vmem:[#allocation93_spill] sm:$0xff]  ;;  %v3309_v55 = vmul.f32 1.442695, %v3253_v57  ;;  %v3311_v58 = vmul.f32 1.442695, %v3254_v40  ;;  %v11502_v40 = vld [vmem:[#allocation54_spill] sm:$0xff] }
 0x85a   : > { %11491 = vst [vmem:[#allocation80_spill] sm:$0xff] %v10008_v49  ;;  %v10012_v21 = vpop.eup %7292  ;;  %7314 = vpow2.f32 %v4244_v46  ;;  %v4197_v12 = vsub.f32 %v11496_v34, %v9617_v24  ;;  %v11498_v46 = vld [vmem:[#allocation42_spill] sm:$0xff]  ;;  %v4252_v34 = vmul.f32 1.442695, %v4196_v22  ;;  %v11504_v22 = vld [vmem:[#allocation51_spill] sm:$0xff] }
 0x85b   : > { %v10016_v53 = vpop.eup %7294  ;;  %7316 = vpow2.f32 %v4246_v44  ;;  %v3255_v52 = vsub.f32 %v11498_v46, %v9623_v27  ;;  %v4286_v6 = vadd.f32 %v10012_v21, %v10008_v49  ;;  %v11499_v44 = vld [vmem:[#allocation43_spill] sm:$0xff] }
 0x85c   : > { %11494 = vst [vmem:[#allocation35_spill] sm:$0xff] %v10016_v53  ;;  %v10022_v56 = vpop.eup %7296  ;;  %7318 = vpow2.f32 %v3305_v42  ;;  %v11501_v42 = vld [vmem:[#allocation104_spill] sm:$0xff]  ;;  %v4254_v24 = vmul.f32 1.442695, %v4197_v12 }
 0x85d   : > { %3347 = vadd.xlane.f32.xlu0 %v3346_v0  ;;  %v4250_v0 = vmul.f32 1.442695, %v4195_v2  ;;  %v10026_v33 = vpop.eup %7298  ;;  %7320 = vpow2.f32 %v3307_v60  ;;  %v3256_v2 = vsub.f32 %v11499_v44, %v9623_v27  ;;  %v4198_v57 = vsub.f32 %v11501_v42, %v9634_v26 }
 0x85e   : > { %11497 = vst [vmem:[#allocation102_spill] sm:$0xff] %v10026_v33  ;;  %v10032_v31 = vpop.eup %7300  ;;  %7322 = vpow2.f32 %v4248_v19  ;;  %v4199_v60 = vsub.f32 %v11502_v40, %v9634_v26  ;;  %v3313_v44 = vmul.f32 1.442695, %v3255_v52  ;;  %v3257_v19 = vsub.f32 %v11504_v22, %v9640_v30 }
 0x85f   : > { %v10036_v17 = vpop.eup %7302  ;;  %7324 = vpow2.f32 %v4250_v0  ;;  %v3315_v27 = vmul.f32 1.442695, %v3256_v2  ;;  %v11505_v0 = vld [vmem:[#allocation129_spill] sm:$0xff]  ;;  %v4256_v40 = vmul.f32 1.442695, %v4198_v57 }
 0x860   : > { %11500 = vst [vmem:[#allocation103_spill] sm:$0xff] %v10036_v17  ;;  %v10042_v46 = vpop.eup %7304  ;;  %7326 = vpow2.f32 %v3309_v55  ;;  %v3258_v12 = vsub.f32 %v11505_v0, %v9640_v30  ;;  %v11506_v55 = vld [vmem:[#allocation63_spill] sm:$0xff]  ;;  %v4258_v26 = vmul.f32 1.442695, %v4199_v60  ;;  %v3317_v0 = vmul.f32 1.442695, %v3257_v19 }
 0x861   : > { %4290 = vadd.xlane.f32.xlu0 %v4289_v63  ;;  %v3349_v63 = vadd.f32 %v10022_v56, %v10016_v53  ;;  %v10046_v49 = vpop.eup %7306  ;;  %7328 = vpow2.f32 %v3311_v58  ;;  %v4200_v52 = vsub.f32 %v11506_v55, %v9651_v59  ;;  %v11507_v58 = vld [vmem:[#allocation138_spill] sm:$0xff] }
 0x862   : > { %11503 = vst [vmem:[#allocation144_spill] sm:$0xff] %v10046_v49  ;;  %v10052_v42 = vpop.eup %7308  ;;  %7330 = vpow2.f32 %v4252_v34  ;;  %v4201_v2 = vsub.f32 %v11507_v58, %v9651_v59  ;;  %v11508_v34 = vld [vmem:[#allocation56_spill] sm:$0xff]  ;;  %v3319_v30 = vmul.f32 1.442695, %v3258_v12 }
 0x863   : > { %v10056_v53 = vpop.eup %7310  ;;  %7332 = vpow2.f32 %v4254_v24  ;;  %v3259_v57 = vsub.f32 %v11508_v34, %v9657_v18  ;;  %v11509_v24 = vld [vmem:[#allocation57_spill] sm:$0xff]  ;;  %v4260_v58 = vmul.f32 1.442695, %v4200_v52 }
 0x864   : > { %4287 = vadd.xlane.f32.xlu1 %v4286_v6  ;;  %v4292_v6 = vadd.f32 %v10032_v31, %v10026_v33  ;;  %v10062_v22 = vpop.eup %7312  ;;  %7334 = vpow2.f32 %v3313_v44  ;;  %v3260_v60 = vsub.f32 %v11509_v24, %v9657_v18  ;;  %v11510_v44 = vld [vmem:[#allocation58_spill] sm:$0xff]  ;;  %v4262_v59 = vmul.f32 1.442695, %v4201_v2 }
 0x865   : > { %3350 = vadd.xlane.f32.xlu0 %v3349_v63  ;;  %v3352_v63 = vadd.f32 %v10042_v46, %v10036_v17  ;;  %v10066_v33 = vpop.eup %7314  ;;  %7336 = vpow2.f32 %v3315_v27  ;;  %v4202_v19 = vsub.f32 %v11510_v44, %v9665_v37  ;;  %v11511_v27 = vld [vmem:[#allocation59_spill] sm:$0xff]  ;;  %v3321_v24 = vmul.f32 1.442695, %v3259_v57 }
 0x866   : > { %v10072_v55 = vpop.eup %7316  ;;  %7338 = vpow2.f32 %v4256_v40  ;;  %v4203_v12 = vsub.f32 %v11511_v27, %v9665_v37 }
 0x867   : > { %v10076_v17 = vpop.eup %7318  ;;  %7340 = vpow2.f32 %v4258_v26  ;;  %v4298_v40 = vadd.f32 %v10072_v55, %v10066_v33  ;;  %v4264_v26 = vmul.f32 1.442695, %v4202_v19 }
 0x868   : > { %4293 = vadd.xlane.f32.xlu1 %v4292_v6  ;;  %v4295_v6 = vadd.f32 %v10052_v42, %v10046_v49  ;;  %v10082_v34 = vpop.eup %7320  ;;  %7342 = vpow2.f32 %v3317_v0  ;;  %v4266_v0 = vmul.f32 1.442695, %v4203_v12 }
 0x869   : > { %3353 = vadd.xlane.f32.xlu0 %v3352_v63  ;;  %v3355_v63 = vadd.f32 %v10062_v22, %v10056_v53  ;;  %v10086_v49 = vpop.eup %7322  ;;  %7344 = vpow2.f32 %v3319_v30  ;;  %v3358_v2 = vadd.f32 %v10082_v34, %v10076_v17 }
 0x86a   : > { %11512 = vst [vmem:[#allocation106_spill] sm:$0xff] %v10086_v49  ;;  %v10090_v52 = vpop.eup %7324  ;;  %7346 = vpow2.f32 %v4260_v58 }
 0x86b   : > { %11513 = vst [vmem:[#allocation107_spill] sm:$0xff] %v10090_v52  ;;  %v10092_v44 = vpop.eup %7326  ;;  %7348 = vpow2.f32 %v4262_v59  ;;  %v4301_v30 = vadd.f32 %v10090_v52, %v10086_v49 }
 0x86c   : > { %4296 = vadd.xlane.f32.xlu1 %v4295_v6  ;;  %v3323_v6 = vmul.f32 1.442695, %v3260_v60  ;;  %11514 = vst [vmem:[#allocation98_spill] sm:$0xff] %v10092_v44  ;;  %v10096_v27 = vpop.eup %7328  ;;  %7350 = vpow2.f32 %v3321_v24 }
 0x86d   : > { %3356 = vadd.xlane.f32.xlu0 %v3355_v63  ;;  %11515 = vst [vmem:[#allocation50_spill] sm:$0xff] %v10096_v27  ;;  %v10098_v57 = vpop.eup %7330  ;;  %v3361_v19 = vadd.f32 %v10096_v27, %v10092_v44 }
 0x86e   : > { %11516 = vst [vmem:[#allocation108_spill] sm:$0xff] %v10098_v57  ;;  %v10102_v60 = vpop.eup %7332  ;;  %7352 = vpow2.f32 %v3323_v6 }
 0x86f   : > { %11517 = vst [vmem:[#allocation37_spill] sm:$0xff] %v10102_v60  ;;  %v10104_v58 = vpop.eup %7334  ;;  %7354 = vpow2.f32 %v4264_v26  ;;  %v4304_v24 = vadd.f32 %v10102_v60, %v10098_v57 }
 0x870   : > { %4299 = vadd.xlane.f32.xlu1 %v4298_v40  ;;  %11518 = vst [vmem:[#allocation137_spill] sm:$0xff] %v10104_v58  ;;  %v10108_v63 = vpop.eup %7336  ;;  %7356 = vpow2.f32 %v4266_v0 }
 0x871   : > { %3359 = vadd.xlane.f32.xlu0 %v3358_v2  ;;  %11519 = vst [vmem:[#allocation105_spill] sm:$0xff] %v10108_v63  ;;  %v10112_v12 = vpop.eup %7338  ;;  %v3364_v26 = vadd.f32 %v10108_v63, %v10104_v58  ;;  %7358 = vrcp.f32 %v9853_v62 }
 0x872   : > { %11520 = vst [vmem:[#allocation136_spill] sm:$0xff] %v10112_v12  ;;  %v10116_v40 = vpop.eup %7340  ;;  %7360 = vrcp.f32 %v9861_v43  ;;  %v3390_v43 = vmul.f32 %v9808_v7, %v9644_v35 }
 0x873   : > { %11521 = vst [vmem:[#allocation99_spill] sm:$0xff] %v10116_v40  ;;  %v10118_v6 = vpop.eup %7342  ;;  %7362 = vrcp.f32 %v9899_v54 }
 0x874   : > { %4302 = vadd.xlane.f32.xlu1 %v4301_v30  ;;  %v10110_v59 = vpop.xlane.xlu0 %3338  ;;  %11522 = vst [vmem:[#allocation112_spill] sm:$0xff] %v10118_v6  ;;  %v10122_v2 = vpop.eup %7344  ;;  %7364 = vrcp.f32 %v9913_v36 }
 0x875   : > { %3362 = vadd.xlane.f32.xlu0 %v3361_v19  ;;  %11523 = vst [vmem:[#allocation55_spill] sm:$0xff] %v10122_v2  ;;  %v10124_v0 = vpop.eup %7346  ;;  %v4307_v19 = vadd.f32 %v10116_v40, %v10112_v12  ;;  %7366 = vrcp.f32 %v9935_v51  ;;  %v4333_v51 = vmul.f32 %v9819_v39, %v9653_v32 }
 0x876   : > { %11524 = vst [vmem:[#allocation53_spill] sm:$0xff] %v10124_v0  ;;  %v10128_v57 = vpop.eup %7348  ;;  %7368 = vrcp.f32 %v9950_v4 }
 0x877   : > { %11525 = vst [vmem:[#allocation109_spill] sm:$0xff] %v10128_v57  ;;  %v10130_v60 = vpop.eup %7350  ;;  %7370 = vrcp.f32 %v10110_v59 }
 0x878   : > { %4305 = vadd.xlane.f32.xlu1 %v4304_v24  ;;  %v6994_v30 = vpop.permute.xlu0 %6993  ;;  %v3367_v24 = vadd.f32 %v10122_v2, %v10118_v6  ;;  %v10134_v58 = vpop.eup %7352 }
 0x879   : > { %v6996_v37 = vunpack.i.h.bf16 %v6994_v30  ;;  %v6995_v18 = vunpack.i.l.bf16 %v6994_v30  ;;  %3365 = vadd.xlane.f32.xlu0 %v3364_v26  ;;  %v10136_v44 = vpop.eup %7354  ;;  %v4310_v26 = vadd.f32 %v10128_v57, %v10124_v0 }
 0x87a   : > { %v10140_v12 = vpop.eup %7356 }
 0x87b   : > { %v6589_v49 = vpack.c.bf16 %v6996_v37, %v6995_v18  ;;  %v3370_v37 = vadd.f32 %v10134_v58, %v10130_v60  ;;  %v7359_v62 = vpop.eup %7358 }
 0x87c   : > { %4308 = vadd.xlane.f32.xlu1 %v4307_v19  ;;  %v7004_v63 = vpop.permute.xlu0 %7003  ;;  %v4313_v19 = vadd.f32 %v10140_v12, %v10136_v44  ;;  %v7361_v54 = vpop.eup %7360  ;;  %v3394_v36 = vmul.f32 %v7359_v62, %v9758_v28  ;;  %v3393_v35 = vmul.f32 %v7359_v62, %v9755_v20  ;;  %v11538_v62 = vld [vmem:[#allocation95_spill] sm:$0xff] }
 0x87d   : > { %v7006_v52 = vunpack.i.h.bf16 %v7004_v63  ;;  %v7005_v30 = vunpack.i.l.bf16 %v7004_v63  ;;  %3368 = vadd.xlane.f32.xlu0 %v3367_v24  ;;  %6590 = vmatprep.subr.bf16.mxu1 %v6589_v49  ;;  %v4337_v28 = vmul.f32 %v7361_v54, %v9764_v29  ;;  %v4336_v32 = vmul.f32 %v7361_v54, %v9762_v14 }
 0x87f   : > { %v4282_v40 = vpop.xlane.xlu1 %4281  ;;  %v6621_v18 = vpack.c.bf16 %v7006_v52, %v7005_v30 }
 0x880   : > { %4311 = vadd.xlane.f32.xlu1 %v4310_v26  ;;  %7372 = vrcp.f32 %v4282_v40  ;;  %v11529_v40 = vld [vmem:[#allocation73_spill] sm:$0xff] }
 0x881   : > { %3371 = vadd.xlane.f32.xlu0 %v3370_v37  ;;  %6622 = vmatprep.subr.bf16.mxu0 %v6621_v18 }
 0x883   : > { %v6999_v6 = vpop.permute.xlu1 %6998 }
 0x884   : > { %v7001_v63 = vunpack.i.h.bf16 %v6999_v6  ;;  %v7000_v24 = vunpack.i.l.bf16 %v6999_v6  ;;  %4314 = vadd.xlane.f32.xlu1 %v4313_v19 }
 0x886   : > { %v6591_v49 = vpack.c.bf16 %v7001_v63, %v7000_v24 }
 0x887   : > { %v7009_v2 = vpop.permute.xlu1 %7008 }
 0x888   : > { %v7011_v0 = vunpack.i.h.bf16 %v7009_v2  ;;  %v7010_v57 = vunpack.i.l.bf16 %v7009_v2  ;;  %6592 = vmatpush3.bf16.msra.mxu1 %v6591_v49 }
 0x88a   : > { %v6623_v27 = vpack.c.bf16 %v7011_v0, %v7010_v57 }
 0x88c   : > { %6624 = vmatpush3.bf16.msra.mxu0 %v6623_v27 }
 0x895   : > { %2881 = vrot.lane.b32.xlu1 %v9840_v5, %s7528_s22 }
 0x897   : > { %2879 = vrot.lane.b32.xlu0 %v9836_v50, %s7528_s22 }
 0x8ad   : > { %v3342_v52 = vpop.xlane.xlu0 %3341 }
 0x8ae   : > { %7374 = vrcp.f32 %v3342_v52  ;;  %v11530_v52 = vld [vmem:[#allocation94_spill] sm:$0xff] }
 0x8b1   : > { %v7014_v30 = vpop.permute.xlu0 %7013 }
 0x8b2   : > { %v7016_v26 = vunpack.i.h.bf16 %v7014_v30  ;;  %v7015_v18 = vunpack.i.l.bf16 %v7014_v30 }
 0x8b4   : > { %v6593_v37 = vpack.c.bf16 %v7016_v26, %v7015_v18  ;;  %v7363_v18 = vpop.eup %7362 }
 0x8b5   : > { %v7024_v6 = vpop.permute.xlu0 %7023  ;;  %v7365_v7 = vpop.eup %7364  ;;  %v3397_v4 = vmul.f32 %v7363_v18, %v9789_v45  ;;  %v3396_v3 = vmul.f32 %v7363_v18, %v9787_v16  ;;  %v11539_v18 = vld [vmem:[#allocation100_spill] sm:$0xff] }
 0x8b6   : > { %v7026_v19 = vunpack.i.h.bf16 %v7024_v6  ;;  %v7025_v63 = vunpack.i.l.bf16 %v7024_v6  ;;  %6594 = vmatprep.subr.bf16.mxu1 %v6593_v37  ;;  %v7367_v59 = vpop.eup %7366  ;;  %v4340_v29 = vmul.f32 %v7365_v7, %v9795_v8  ;;  %v4339_v47 = vmul.f32 %v7365_v7, %v9793_v15  ;;  %v11526_v8 = vld [vmem:[#allocation12_spill] sm:$0xff]  ;;  %v11531_v37 = vld [vmem:[#allocation78_spill] sm:$0xff] }
 0x8b7   : > { %v7369_v23 = vpop.eup %7368  ;;  %v3400_v20 = vmul.f32 %v7367_v59, %v9828_v13  ;;  %v3399_v10 = vmul.f32 %v7367_v59, %v9826_v9  ;;  %vm3377_vm15 = vcmp.gt.f32.partialorder %v11526_v8, -1e+08  ;;  %v11527_v13 = vld [vmem:[#allocation154_spill] sm:$0xff] }
 0x8b8   : > { %v4285_v2 = vpop.xlane.xlu1 %4284  ;;  %v6625_v27 = vpack.c.bf16 %v7026_v19, %v7025_v63  ;;  %v7371_v45 = vpop.eup %7370  ;;  %v4343_v16 = vmul.f32 %v7369_v23, %v9834_v1  ;;  %vm4319_vm13 = vcmp.gt.f32.partialorder %v11527_v13, -1e+08  ;;  %v4342_v9 = vmul.f32 %v7369_v23, %v11529_v40  ;;  %v11532_v1 = vld [vmem:[#allocation38_spill] sm:$0xff]  ;;  %v11533_v19 = vld [vmem:[#allocation13_spill] sm:$0xff]  ;;  %v11534_v63 = vld [vmem:[#allocation92_spill] sm:$0xff] }
 0x8b9   : > { %7376 = vrcp.f32 %v4285_v2  ;;  %v7373_v41 = vpop.eup %7372  ;;  %v3403_v14 = vmul.f32 %v7371_v45, %v9870_v25  ;;  %v3402_v61 = vmul.f32 %v7371_v45, %v11528_v48  ;;  %vm3378_vm8 = vcmp.gt.f32.partialorder %v11532_v1, -1e+08  ;;  %v11545_v48 = vld [vmem:[#allocation128_spill] sm:$0xff]  ;;  %v11546_v40 = vld [vmem:[#allocation35_spill] sm:$0xff] }
 0x8ba   : > { %6626 = vmatprep.subr.bf16.mxu0 %v6625_v27  ;;  %v7375_v39 = vpop.eup %7374  ;;  %v4346_v6 = vmul.f32 %v7373_v41, %v11531_v37  ;;  %vm4320_vm4 = vcmp.gt.f32.partialorder %v11533_v19, -1e+08  ;;  %v11535_v27 = vld [vmem:[#allocation77_spill] sm:$0xff] }
 0x8bb   : > { %v3406_v15 = vmul.f32 %v7375_v39, %v11530_v52  ;;  %v3405_v2 = vmul.f32 %v7375_v39, %v11534_v63 }
 0x8bc   : > { %v7019_v5 = vpop.permute.xlu1 %7018 }
 0x8bd   : > { %v7021_v50 = vunpack.i.h.bf16 %v7019_v5  ;;  %v7020_v57 = vunpack.i.l.bf16 %v7019_v5  ;;  %v4345_v5 = vmul.f32 %v7373_v41, %v11535_v27 }
 0x8bf   : > { %v6595_v0 = vpack.c.bf16 %v7021_v50, %v7020_v57  ;;  %v11536_v50 = vld [vmem:[#allocation143_spill] sm:$0xff] }
 0x8c0   : > { %v7029_v24 = vpop.permute.xlu1 %7028 }
 0x8c1   : > { %v7031_v49 = vunpack.i.h.bf16 %v7029_v24  ;;  %v7030_v30 = vunpack.i.l.bf16 %v7029_v24  ;;  %6596 = vmatpush3.bf16.msra.mxu1 %v6595_v0  ;;  %v11537_v0 = vld [vmem:[#allocation158_spill] sm:$0xff] }
 0x8c2   : > { %vm4321_vm7 = vcmp.gt.f32.partialorder %v11537_v0, -1e+08 }
 0x8c3   : > { %v6627_v26 = vpack.c.bf16 %v7031_v49, %v7030_v30  ;;  %v7377_v25 = vpop.eup %7376 }
 0x8c4   : > { %5672 = vmatmul.mubr.msk.f32.vlgmr.msra.gmra.mrb[32].mxu1 %vm3373_vm10, %v3390_v43  ;;  %v4349_v57 = vmul.f32 %v7377_v25, %v11536_v50  ;;  %v4348_v24 = vmul.f32 %v7377_v25, %v11538_v62  ;;  %v11549_v25 = vld [vmem:[#allocation101_spill] sm:$0xff]  ;;  %v11551_v50 = vld [vmem:[#allocation142_spill] sm:$0xff] }
 0x8c5   : > { %5673 = vmatprep.mubr.msk.f32.mxu1 %vm3374_vm14, %v3394_v36  ;;  %6628 = vmatpush3.bf16.msra.mxu0 %v6627_v26 }
 0x8c8   : > { %5674 = vmatmul.mubr.msk.f32.gmra.mrb[34].mxu1 %vm3374_vm14, %v3393_v35  ;;  %5704 = vmatmul.mubr.msk.f32.vlgmr.msra.gmra.mrb[48].mxu0 %vm4316_vm3, %v4333_v51  ;;  %v11540_v35 = vld [vmem:[#allocation97_spill] sm:$0xff]  ;;  %vm3382_vm3 = vcmp.gt.f32.partialorder %v11551_v50, -1e+08 }
 0x8c9   : > { %5675 = vmatprep.mubr.msk.f32.mxu1 %vm3375_vm11, %v3397_v4  ;;  %5705 = vmatprep.mubr.msk.f32.mxu0 %vm4317_vm6, %v4337_v28  ;;  %v11541_v4 = vld [vmem:[#allocation33_spill] sm:$0xff] }
 0x8ca   : > { %vm3379_vm1 = vcmp.gt.f32.partialorder %v11541_v4, -1e+08 }
 0x8cc   : > { %5676 = vmatmul.mubr.msk.f32.gmra.mrb[36].mxu1 %vm3375_vm11, %v3396_v3  ;;  %5706 = vmatmul.mubr.msk.f32.gmra.mrb[50].mxu0 %vm4317_vm6, %v4336_v32 }
 0x8cd   : > { %5677 = vmatprep.mubr.msk.f32.mxu1 %vm3376_vm9, %v3400_v20  ;;  %5707 = vmatprep.mubr.msk.f32.mxu0 %vm4318_vm12, %v4340_v29  ;;  %v11542_v20 = vld [vmem:[#allocation161_spill] sm:$0xff] }
 0x8ce   : > { %vm3380_vm2 = vcmp.gt.f32.partialorder %v11542_v20, -1e+08 }
 0x8d0   : > { %5678 = vmatmul.mubr.msk.f32.gmra.mrb[38].mxu1 %vm3376_vm9, %v3399_v10  ;;  %5708 = vmatmul.mubr.msk.f32.gmra.mrb[52].mxu0 %vm4318_vm12, %v4339_v47 }
 0x8d1   : > { %5679 = vmatprep.mubr.msk.f32.mxu1 %vm3377_vm15, %v3403_v14  ;;  %5709 = vmatprep.mubr.msk.f32.mxu0 %vm4319_vm13, %v4343_v16  ;;  %v11543_v16 = vld [vmem:[#allocation80_spill] sm:$0xff] }
 0x8d4   : > { %5680 = vmatmul.mubr.msk.f32.gmra.mrb[40].mxu1 %vm3377_vm15, %v3402_v61  ;;  %5710 = vmatmul.mubr.msk.f32.gmra.mrb[54].mxu0 %vm4319_vm13, %v4342_v9 }
 0x8d5   : > { %5681 = vmatprep.mubr.msk.f32.mxu1 %vm3378_vm8, %v3406_v15  ;;  %5711 = vmatprep.mubr.msk.f32.mxu0 %vm4320_vm4, %v4346_v6  ;;  %v11547_v15 = vld [vmem:[#allocation48_spill] sm:$0xff] }
 0x8d6   : > { %vm3381_vm5 = vcmp.gt.f32.partialorder %v11547_v15, -1e+08 }
 0x8d8   : > { %5682 = vmatmul.mubr.msk.f32.gmra.mrb[42].mxu1 %vm3378_vm8, %v3405_v2  ;;  %5712 = vmatmul.mubr.msk.f32.gmra.mrb[56].mxu0 %vm4320_vm4, %v4345_v5  ;;  %v11550_v2 = vld [vmem:[#allocation103_spill] sm:$0xff]  ;;  %vm2927_vm8 = vcmask 523520  }
 0x8d9   : > { %5713 = vmatprep.mubr.msk.f32.mxu0 %vm4321_vm7, %v4349_v57  ;;  %v11552_v57 = vld [vmem:[#allocation49_spill] sm:$0xff] }
 0x8da   : > { %vm4324_vm14 = vcmp.gt.f32.partialorder %v11552_v57, -1e+08 }
 0x8dc   : > { %5714 = vmatmul.mubr.msk.f32.gmra.mrb[58].mxu0 %vm4321_vm7, %v4348_v24  ;;  %v11553_v24 = vld [vmem:[#allocation102_spill] sm:$0xff] }
 0x8e6   : > { %v3345_v49 = vpop.xlane.xlu0 %3344 }
 0x8e7   : > { %7378 = vrcp.f32 %v3345_v49 }
 0x8ea   : > { %v3348_v30 = vpop.xlane.xlu0 %3347 }
 0x8eb   : > { %7380 = vrcp.f32 %v3348_v30 }
 0x8ee   : > { %v4291_v43 = vpop.xlane.xlu0 %4290 }
 0x8ef   : > { %7382 = vrcp.f32 %v4291_v43 }
 0x8f1   : > { %v4288_v54 = vpop.xlane.xlu1 %4287  ;;  %v7379_v26 = vpop.eup %7378 }
 0x8f2   : > { %7384 = vrcp.f32 %v4288_v54  ;;  %v3351_v36 = vpop.xlane.xlu0 %3350  ;;  %v3409_v51 = vmul.f32 %v7379_v26, %v11539_v18  ;;  %v3408_v7 = vmul.f32 %v7379_v26, %v11540_v35  ;;  %v11554_v26 = vld [vmem:[#allocation62_spill] sm:$0xff]  ;;  %v11556_v35 = vld [vmem:[#allocation144_spill] sm:$0xff] }
 0x8f3   : > { %7386 = vrcp.f32 %v3351_v36  ;;  %vm3383_vm11 = vcmp.gt.f32.partialorder %v11554_v26, -1e+08  ;;  %v11555_v36 = vld [vmem:[#allocation44_spill] sm:$0xff] }
 0x8f4   : > { %5683 = vmatprep.mubr.msk.f32.mxu1 %vm3379_vm1, %v3409_v51  ;;  %vm4325_vm6 = vcmp.gt.f32.partialorder %v11555_v36, -1e+08  ;;  %v11578_v36 = vld [vmem:[#allocation84_spill] sm:$0xff] }
 0x8f5   : > { %v4294_v28 = vpop.xlane.xlu1 %4293  ;;  %v7381_v59 = vpop.eup %7380  ;;  %5684 = vmatmul.mubr.msk.f32.gmra.mrb[44].mxu1 %vm3379_vm1, %v3408_v7 }
 0x8f6   : > { %7388 = vrcp.f32 %v4294_v28  ;;  %v3354_v3 = vpop.xlane.xlu0 %3353  ;;  %v3412_v32 = vmul.f32 %v7381_v59, %v9986_v11  ;;  %v3411_v23 = vmul.f32 %v7381_v59, %v9982_v38  ;;  %v11544_v11 = vld [vmem:[#allocation34_spill] sm:$0xff]  ;;  %v11557_v59 = vld [vmem:[#allocation64_spill] sm:$0xff] }
 0x8f7   : > { %7390 = vrcp.f32 %v3354_v3  ;;  %vm4322_vm0 = vcmp.gt.f32.partialorder %v11544_v11, -1e+08  ;;  %vm3384_vm9 = vcmp.gt.f32.partialorder %v11557_v59, -1e+08  ;;  %v11558_v3 = vld [vmem:[#allocation139_spill] sm:$0xff] }
 0x8f8   : > { %5685 = vmatprep.mubr.msk.f32.mxu1 %vm3380_vm2, %v3412_v32  ;;  %vm4326_vm12 = vcmp.gt.f32.partialorder %v11558_v3, -1e+08 }
 0x8f9   : > { %v4297_v29 = vpop.xlane.xlu1 %4296  ;;  %5686 = vmatmul.mubr.msk.f32.gmra.mrb[46].mxu1 %vm3380_vm2, %v3411_v23  ;;  %v7383_v45 = vpop.eup %7382 }
 0x8fa   : > { %7392 = vrcp.f32 %v4297_v29  ;;  %v3357_v10 = vpop.xlane.xlu0 %3356  ;;  %v4355_v61 = vmul.f32 %v7383_v45, %v11545_v48  ;;  %v4354_v1 = vmul.f32 %v7383_v45, %v11549_v25  ;;  %v11559_v29 = vld [vmem:[#allocation50_spill] sm:$0xff]  ;;  %v11560_v45 = vld [vmem:[#allocation107_spill] sm:$0xff] }
 0x8fb   : > { %7394 = vrcp.f32 %v3357_v10  ;;  %v11561_v10 = vld [vmem:[#allocation98_spill] sm:$0xff] }
 0x8fc   : > { %v7385_v47 = vpop.eup %7384 }
 0x8fd   : > { %v4300_v41 = vpop.xlane.xlu1 %4299  ;;  %v4352_v14 = vmul.f32 %v7385_v47, %v10012_v21  ;;  %v4351_v39 = vmul.f32 %v7385_v47, %v11543_v16  ;;  %v7387_v8 = vpop.eup %7386  ;;  %v11548_v21 = vld [vmem:[#allocation24_spill] sm:$0xff]  ;;  %v11563_v16 = vld [vmem:[#allocation65_spill] sm:$0xff] }
 0x8fe   : > { %7396 = vrcp.f32 %v4300_v41  ;;  %v3360_v38 = vpop.xlane.xlu0 %3359  ;;  %v3415_v13 = vmul.f32 %v7387_v8, %v10022_v56  ;;  %v3414_v9 = vmul.f32 %v7387_v8, %v11546_v40  ;;  %vm4323_vm10 = vcmp.gt.f32.partialorder %v11548_v21, -1e+08  ;;  %v11568_v21 = vld [vmem:[#allocation69_spill] sm:$0xff] }
 0x8ff   : > { %5715 = vmatprep.mubr.msk.f32.mxu0 %vm4322_vm0, %v4352_v14  ;;  %7398 = vrcp.f32 %v3360_v38  ;;  %v11562_v14 = vld [vmem:[#allocation67_spill] sm:$0xff]  ;;  %vm4327_vm13 = vcmp.gt.f32.partialorder %v11563_v16, -1e+08  ;;  %vm3386_vm4 = vcmp.gt.f32.partialorder %v11568_v21, -1e+08 }
 0x900   : > { %v7389_v52 = vpop.eup %7388  ;;  %5716 = vmatmul.mubr.msk.f32.gmra.mrb[60].mxu0 %vm4322_vm0, %v4351_v39  ;;  %5687 = vmatprep.mubr.msk.f32.mxu1 %vm3381_vm5, %v3415_v13  ;;  %vm3385_vm15 = vcmp.gt.f32.partialorder %v11562_v14, -1e+08  ;;  %v11565_v13 = vld [vmem:[#allocation105_spill] sm:$0xff]  ;;  %vm3388_vm0 = vcmp.gt.f32.partialorder %v11578_v36, -1e+08  ;;  %v4996_v36 = vld [vmem:[%s10586_s6 + $0x78] sm:$0xff] }
 0x901   : > { %v4303_v37 = vpop.xlane.xlu1 %4302  ;;  %5717 = vmatprep.mubr.msk.f32.mxu0 %vm4323_vm10, %v4355_v61  ;;  %v7391_v6 = vpop.eup %7390  ;;  %5688 = vmatmul.mubr.msk.f32.gmra.mrb[48].mxu1 %vm3381_vm5, %v3414_v9  ;;  %v4358_v63 = vmul.f32 %v7389_v52, %v10032_v31  ;;  %v4357_v49 = vmul.f32 %v7389_v52, %v11553_v24  ;;  %v11566_v61 = vld [vmem:[#allocation37_spill] sm:$0xff] }
 0x902   : > { %7400 = vrcp.f32 %v4303_v37  ;;  %v3363_v56 = vpop.xlane.xlu0 %3362  ;;  %v3418_v19 = vmul.f32 %v7391_v6, %v10042_v46  ;;  %v3417_v27 = vmul.f32 %v7391_v6, %v11550_v2  ;;  %v11567_v9 = vld [vmem:[#allocation137_spill] sm:$0xff]  ;;  %v11569_v37 = vld [vmem:[#allocation68_spill] sm:$0xff]  ;;  %v11572_v2 = vld [vmem:[#allocation99_spill] sm:$0xff] }
 0x903   : > { %7402 = vrcp.f32 %v3363_v56  ;;  %vm4328_vm7 = vcmp.gt.f32.partialorder %v11569_v37, -1e+08 }
 0x904   : > { %v7393_v5 = vpop.eup %7392  ;;  %5718 = vmatmul.mubr.msk.f32.gmra.mrb[62].mxu0 %vm4323_vm10, %v4354_v1  ;;  %5689 = vmatprep.mubr.msk.f32.mxu1 %vm3382_vm3, %v3418_v19  ;;  %v11570_v1 = vld [vmem:[#allocation108_spill] sm:$0xff]  ;;  %v11571_v19 = vld [vmem:[#allocation55_spill] sm:$0xff] }
 0x905   : > { %v4306_v0 = vpop.xlane.xlu1 %4305  ;;  %5719 = vmatprep.mubr.msk.f32.mxu0 %vm4324_vm14, %v4358_v63  ;;  %v7395_v62 = vpop.eup %7394  ;;  %5690 = vmatmul.mubr.msk.f32.gmra.mrb[50].mxu1 %vm3382_vm3, %v3417_v27  ;;  %v4361_v30 = vmul.f32 %v7393_v5, %v10052_v42  ;;  %v4360_v7 = vmul.f32 %v7393_v5, %v11556_v35  ;;  %v11573_v5 = vld [vmem:[#allocation112_spill] sm:$0xff]  ;;  %vm3870_vm3 = vcmask 785920  }
 0x906   : > { %7404 = vrcp.f32 %v4306_v0  ;;  %v3366_v46 = vpop.xlane.xlu0 %3365  ;;  %v3421_v31 = vmul.f32 %v7395_v62, %v10062_v22  ;;  %v3420_v43 = vmul.f32 %v7395_v62, %v10056_v53  ;;  %v11574_v0 = vld [vmem:[#allocation71_spill] sm:$0xff]  ;;  %v11575_v62 = vld [vmem:[#allocation70_spill] sm:$0xff] }
 0x907   : > { %7406 = vrcp.f32 %v3366_v46  ;;  %vm3387_vm1 = vcmp.gt.f32.partialorder %v11574_v0, -1e+08  ;;  %vm4329_vm2 = vcmp.gt.f32.partialorder %v11575_v62, -1e+08  ;;  %v4993_v0 = vld [vmem:[%s10586_s6 + $0x60] sm:$0xff]  ;;  %v4994_v62 = vld [vmem:[%s10586_s6 + $0x68] sm:$0xff] }
 0x908   : > { %v7397_v54 = vpop.eup %7396  ;;  %5720 = vmatmul.mubr.msk.f32.gmra.mrb[64].mxu0 %vm4324_vm14, %v4357_v49  ;;  %5691 = vmatprep.mubr.msk.f32.mxu1 %vm3383_vm11, %v3421_v31  ;;  %v11576_v49 = vld [vmem:[#allocation136_spill] sm:$0xff]  ;;  %vm4813_vm14 = vcmask 1048320  }
 0x909   : > { %v4309_v18 = vpop.xlane.xlu1 %4308  ;;  %5721 = vmatprep.mubr.msk.f32.mxu0 %vm4325_vm6, %v4361_v30  ;;  %v7399_v51 = vpop.eup %7398  ;;  %5692 = vmatmul.mubr.msk.f32.gmra.mrb[52].mxu1 %vm3383_vm11, %v3420_v43  ;;  %v4364_v53 = vmul.f32 %v7397_v54, %v10072_v55  ;;  %v4363_v20 = vmul.f32 %v7397_v54, %v10066_v33  ;;  %v11564_v33 = vld [vmem:[#allocation106_spill] sm:$0xff]  ;;  %v11577_v30 = vld [vmem:[#allocation109_spill] sm:$0xff] }
 0x90a   : > { %7408 = vrcp.f32 %v4309_v18  ;;  %v3369_v22 = vpop.xlane.xlu0 %3368  ;;  %v3424_v42 = vmul.f32 %v7399_v51, %v10082_v34  ;;  %v3423_v4 = vmul.f32 %v7399_v51, %v10076_v17  ;;  %v11579_v18 = vld [vmem:[#allocation83_spill] sm:$0xff]  ;;  %v11580_v51 = vld [vmem:[#allocation53_spill] sm:$0xff] }
 0x90b   : > { %7410 = vrcp.f32 %v3369_v22  ;;  %vm4330_vm5 = vcmp.gt.f32.partialorder %v11579_v18, -1e+08  ;;  %v11581_v22 = vld [vmem:[#allocation72_spill] sm:$0xff] }
 0x90c   : > { %v7401_v28 = vpop.eup %7400  ;;  %5722 = vmatmul.mubr.msk.f32.gmra.mrb[66].mxu0 %vm4325_vm6, %v4360_v7  ;;  %5693 = vmatprep.mubr.msk.f32.mxu1 %vm3384_vm9, %v3424_v42  ;;  %vm4331_vm10 = vcmp.gt.f32.partialorder %v11581_v22, -1e+08  ;;  %v4982_v42 = vld [vmem:[%s10586_s6 + $0x8] sm:$0xff] }
 0x90d   : > { %v4312_v32 = vpop.xlane.xlu1 %4311  ;;  %5723 = vmatprep.mubr.msk.f32.mxu0 %vm4326_vm12, %v4364_v53  ;;  %v7403_v23 = vpop.eup %7402  ;;  %5694 = vmatmul.mubr.msk.f32.gmra.mrb[54].mxu1 %vm3384_vm9, %v3423_v4  ;;  %v4367_v17 = vmul.f32 %v7401_v28, %v11560_v45  ;;  %v4366_v11 = vmul.f32 %v7401_v28, %v11564_v33 }
 0x90e   : > { %7412 = vrcp.f32 %v4312_v32  ;;  %v3372_v34 = vpop.xlane.xlu0 %3371  ;;  %v3427_v55 = vmul.f32 %v7403_v23, %v11559_v29  ;;  %v3426_v47 = vmul.f32 %v7403_v23, %v11561_v10  ;;  %v4985_v32 = vld [vmem:[%s10586_s6 + $0x20] sm:$0xff]  ;;  %v4986_v23 = vld [vmem:[%s10586_s6 + $0x28] sm:$0xff] }
 0x90f   : > { %7414 = vrcp.f32 %v3372_v34  ;;  %v6637_v29 = vpack.c.bf16 %v4986_v23, %v4985_v32 }
 0x910   : > { %v7405_v41 = vpop.eup %7404  ;;  %5724 = vmatmul.mubr.msk.f32.gmra.mrb[68].mxu0 %vm4326_vm12, %v4363_v20  ;;  %5695 = vmatprep.mubr.msk.f32.mxu1 %vm3385_vm15, %v3427_v55 }
 0x911   : > { %v4315_v39 = vpop.xlane.xlu1 %4314  ;;  %5725 = vmatprep.mubr.msk.f32.mxu0 %vm4327_vm13, %v4367_v17  ;;  %v7407_v8 = vpop.eup %7406  ;;  %5696 = vmatmul.mubr.msk.f32.gmra.mrb[56].mxu1 %vm3385_vm15, %v3426_v47  ;;  %v4370_v40 = vmul.f32 %v7405_v41, %v11566_v61  ;;  %v4369_v56 = vmul.f32 %v7405_v41, %v11570_v1  ;;  %v4987_v47 = vld [vmem:[%s10586_s6 + $0x30] sm:$0xff]  ;;  %v4988_v41 = vld [vmem:[%s10586_s6 + $0x38] sm:$0xff] }
 0x912   : > { %7416 = vrcp.f32 %v4315_v39  ;;  %v2880_v38 = vpop.permute.xlu0 %2879  ;;  %v3430_v48 = vmul.f32 %v7407_v8, %v11565_v13  ;;  %v3429_v52 = vmul.f32 %v7407_v8, %v11567_v9  ;;  %v6641_v39 = vpack.c.bf16 %v4988_v41, %v4987_v47  ;;  %v4989_v13 = vld [vmem:[%s10586_s6 + $0x40] sm:$0xff]  ;;  %v11582_v9 = vld [vmem:[#allocation132_spill] sm:$0xff] }
 0x913   : > { %2928 = vst.msk [vmem:[#allocation4] sm:$0xff] %vm2927_vm8, %v2880_v38  ;;  %v4992_v1 = vld [vmem:[%s10586_s6 + $0x58] sm:$0xff] }
 0x914   : > { %v7409_v15 = vpop.eup %7408  ;;  %5726 = vmatmul.mubr.msk.f32.gmra.mrb[70].mxu0 %vm4327_vm13, %v4366_v11  ;;  %5697 = vmatprep.mubr.msk.f32.mxu1 %vm3386_vm4, %v3430_v48  ;;  %v4990_v48 = vld [vmem:[%s10586_s6 + $0x48] sm:$0xff] }
 0x915   : > { %5727 = vmatprep.mubr.msk.f32.mxu0 %vm4328_vm7, %v4370_v40  ;;  %v2882_v6 = vpop.permute.xlu1 %2881  ;;  %v7411_v25 = vpop.eup %7410  ;;  %5698 = vmatmul.mubr.msk.f32.gmra.mrb[58].mxu1 %vm3386_vm4, %v3429_v52  ;;  %v4373_v27 = vmul.f32 %v7409_v15, %v11572_v2  ;;  %v4372_v46 = vmul.f32 %v7409_v15, %v11576_v49  ;;  %v6645_v52 = vpack.c.bf16 %v4990_v48, %v4989_v13  ;;  %v11589_v48 = vld [vmem:[#allocation87_spill] sm:$0xff] }
 0x916   : > { %2929 = vst.msk [vmem:[#allocation4 + $0x8] sm:$0xff] %vm2927_vm8, %v2882_v6  ;;  %v3433_v63 = vmul.f32 %v7411_v25, %v11571_v19  ;;  %v3432_v50 = vmul.f32 %v7411_v25, %v11573_v5  ;;  %v4991_v25 = vld [vmem:[%s10586_s6 + $0x50] sm:$0xff] }
 0x917   : > { %v6649_v2 = vpack.c.bf16 %v4992_v1, %v4991_v25 }
 0x918   : > { %v7413_v57 = vpop.eup %7412  ;;  %5728 = vmatmul.mubr.msk.f32.gmra.mrb[72].mxu0 %vm4328_vm7, %v4369_v56  ;;  %5699 = vmatprep.mubr.msk.f32.mxu1 %vm3387_vm1, %v3433_v63  ;;  %v11583_v63 = vld [vmem:[#allocation74_spill] sm:$0xff] }
 0x919   : > { %5729 = vmatprep.mubr.msk.f32.mxu0 %vm4329_vm2, %v4373_v27  ;;  %v7415_v24 = vpop.eup %7414  ;;  %5700 = vmatmul.mubr.msk.f32.gmra.mrb[60].mxu1 %vm3387_vm1, %v3432_v50  ;;  %v4376_v43 = vmul.f32 %v7413_v57, %v11577_v30  ;;  %v4375_v35 = vmul.f32 %v7413_v57, %v11580_v51  ;;  %v11584_v51 = vld [vmem:[#allocation75_spill] sm:$0xff] }
 0x91a   : > { %v3436_v31 = vmul.f32 %v7415_v24, %v10134_v58  ;;  %v3435_v54 = vmul.f32 %v7415_v24, %v10130_v60  ;;  %v4981_v60 = vld [vmem:[%s10586_s6] sm:$0xff] }
 0x91b   : > { %v6629_v53 = vpack.c.bf16 %v4982_v42, %v4981_v60  ;;  %v11586_v60 = vld [vmem:[#allocation79_spill] sm:$0xff]  ;;  %v11587_v42 = vld [vmem:[#allocation133_spill] sm:$0xff] }
 0x91c   : > { %v7417_v26 = vpop.eup %7416  ;;  %5730 = vmatmul.mubr.msk.f32.gmra.mrb[74].mxu0 %vm4329_vm2, %v4372_v46  ;;  %5701 = vmatprep.mubr.msk.f32.mxu1 %vm3388_vm0, %v3436_v31  ;;  %v6653_v46 = vpack.c.bf16 %v4994_v62, %v4993_v0  ;;  %v11591_v62 = vld [vmem:[#allocation86_spill] sm:$0xff] }
 0x91d   : > { %5731 = vmatprep.mubr.msk.f32.mxu0 %vm4330_vm5, %v4376_v43  ;;  %5702 = vmatmul.mubr.msk.f32.gmra.mrb[62].mxu1 %vm3388_vm0, %v3435_v54  ;;  %v4379_v7 = vmul.f32 %v7417_v26, %v10140_v12  ;;  %v4378_v58 = vmul.f32 %v7417_v26, %v10136_v44  ;;  %v4983_v12 = vld [vmem:[%s10586_s6 + $0x10] sm:$0xff]  ;;  %v4984_v44 = vld [vmem:[%s10586_s6 + $0x18] sm:$0xff] }
 0x91e   : > { %6630 = vmatprep.subr.bf16.mxu1 %v6629_v53  ;;  %v6633_v28 = vpack.c.bf16 %v4984_v44, %v4983_v12  ;;  %v4995_v26 = vld [vmem:[%s10586_s6 + $0x70] sm:$0xff] }
 0x91f   : > { %6632 = vmatpush3.bf16.msra.mxu1 %v6629_v53 }
 0x920   : > { %5732 = vmatmul.mubr.msk.f32.gmra.mrb[76].mxu0 %vm4330_vm5, %v4375_v35  ;;  %6634 = vmatprep.subr.bf16.mxu1 %v6633_v28  ;;  %v6657_v35 = vpack.c.bf16 %v4996_v36, %v4995_v26 }
 0x921   : > { %5733 = vmatprep.mubr.msk.f32.mxu0 %vm4331_vm10, %v4379_v7 }
 0x923   : > { %6636 = vmatpush3.bf16.msra.mxu1 %v6633_v28 }
 0x924   : > { %5734 = vmatmul.mubr.msk.f32.gmra.mrb[78].mxu0 %vm4331_vm10, %v4378_v58  ;;  %6638 = vmatprep.subr.bf16.mxu1 %v6637_v29  ;;  %v11585_v58 = vld [vmem:[#allocation145_spill] sm:$0xff] }
 0x927   : > { %6640 = vmatpush3.bf16.msra.mxu1 %v6637_v29 }
 0x928   : > { %6642 = vmatprep.subr.bf16.mxu1 %v6641_v39 }
 0x92b   : > { %6644 = vmatpush3.bf16.msra.mxu1 %v6641_v39 }
 0x92c   : > { %6646 = vmatprep.subr.bf16.mxu1 %v6645_v52 }
 0x92f   : > { %6648 = vmatpush3.bf16.msra.mxu1 %v6645_v52 }
 0x930   : > { %6650 = vmatprep.subr.bf16.mxu1 %v6649_v2 }
 0x933   : > { %6652 = vmatpush3.bf16.msra.mxu1 %v6649_v2 }
 0x934   : > { %6654 = vmatprep.subr.bf16.mxu1 %v6653_v46 }
 0x937   : > { %6656 = vmatpush3.bf16.msra.mxu1 %v6653_v46 }
 0x938   : > { %6658 = vmatprep.subr.bf16.mxu1 %v6657_v35 }
 0x93b   : > { %6660 = vmatpush3.bf16.msra.mxu1 %v6657_v35 }
 0x997   : > { %v6037_v4 = vpop.f32.mrb[32].mxu1 }
 0x998   : > { %v6038_v59 = vpop.f32.mrb[33].mxu1 }
 0x999   : > { %v6039_v3 = vadd.f32 %v6038_v59, %v6037_v4 }
 0x99b   : > { %v6040_v20 = vpop.f32.mrb[34].mxu1  ;;  %v6117_v34 = vpop.f32.mrb[48].mxu0  ;;  %3822 = vrot.lane.b32.xlu1 %v6039_v3, %s7527_s15 }
 0x99c   : > { %v6041_v55 = vpop.f32.mrb[35].mxu1  ;;  %v6118_v45 = vpop.f32.mrb[49].mxu0 }
 0x99d   : > { %v6042_v17 = vadd.f32 %v6041_v55, %v6040_v20  ;;  %v6119_v10 = vadd.f32 %v6118_v45, %v6117_v34 }
 0x99f   : > { %v6043_v14 = vpop.f32.mrb[36].mxu1  ;;  %v6120_v16 = vpop.f32.mrb[50].mxu0  ;;  %4765 = vrot.lane.b32.xlu1 %v6119_v10, %s7526_s8  ;;  %3824 = vrot.lane.b32.xlu0 %v6042_v17, %s7527_s15 }
 0x9a0   : > { %v6044_v8 = vpop.f32.mrb[37].mxu1  ;;  %v6121_v33 = vpop.f32.mrb[51].mxu0 }
 0x9a1   : > { %v6045_v11 = vadd.f32 %v6044_v8, %v6043_v14  ;;  %v6122_v38 = vadd.f32 %v6121_v33, %v6120_v16  ;;  %v11588_v16 = vld [vmem:[#allocation85_spill] sm:$0xff] }
 0x9a3   : > { %v6046_v61 = vpop.f32.mrb[38].mxu1  ;;  %v6123_v40 = vpop.f32.mrb[52].mxu0  ;;  %2883 = vrot.lane.b32.xlu1 %v11582_v9, %s7528_s22  ;;  %4767 = vrot.lane.b32.xlu0 %v6122_v38, %s7526_s8 }
 0x9a4   : > { %v6047_v15 = vpop.f32.mrb[39].mxu1  ;;  %v6124_v21 = vpop.f32.mrb[53].mxu0 }
 0x9a5   : > { %v6048_v37 = vadd.f32 %v6047_v15, %v6046_v61  ;;  %v6125_v6 = vadd.f32 %v6124_v21, %v6123_v40 }
 0x9a7   : > { %v6049_v56 = vpop.f32.mrb[40].mxu1  ;;  %v6126_v19 = vpop.f32.mrb[54].mxu0  ;;  %3826 = vrot.lane.b32.xlu1 %v6045_v11, %s7527_s15  ;;  %2885 = vrot.lane.b32.xlu0 %v11583_v63, %s7528_s22  ;;  %v11590_v63 = vld [vmem:[#allocation89_spill] sm:$0xff] }
 0x9a8   : > { %v6050_v27 = vpop.f32.mrb[41].mxu1  ;;  %v6127_v5 = vpop.f32.mrb[55].mxu0 }
 0x9a9   : > { %v6051_v50 = vadd.f32 %v6050_v27, %v6049_v56  ;;  %v6128_v57 = vadd.f32 %v6127_v5, %v6126_v19 }
 0x9ab   : > { %v6052_v24 = vpop.f32.mrb[42].mxu1  ;;  %v6129_v49 = vpop.f32.mrb[56].mxu0  ;;  %4769 = vrot.lane.b32.xlu1 %v6125_v6, %s7526_s8  ;;  %3828 = vrot.lane.b32.xlu0 %v6048_v37, %s7527_s15 }
 0x9ac   : > { %v6053_v31 = vpop.f32.mrb[43].mxu1  ;;  %v6130_v30 = vpop.f32.mrb[57].mxu0 }
 0x9ad   : > { %v6054_v43 = vadd.f32 %v6053_v31, %v6052_v24  ;;  %v6131_v54 = vadd.f32 %v6130_v30, %v6129_v49 }
 0x9af   : > { %v6132_v18 = vpop.f32.mrb[58].mxu0  ;;  %2887 = vrot.lane.b32.xlu1 %v11584_v51, %s7528_s22  ;;  %4771 = vrot.lane.b32.xlu0 %v6128_v57, %s7526_s8 }
 0x9b0   : > { %v6133_v7 = vpop.f32.mrb[59].mxu0 }
 0x9b1   : > { %v6134_v22 = vadd.f32 %v6133_v7, %v6132_v18  ;;  %v11592_v7 = vld [vmem:[#allocation88_spill] sm:$0xff] }
 0x9b3   : > { %3830 = vrot.lane.b32.xlu1 %v6051_v50, %s7527_s15  ;;  %2889 = vrot.lane.b32.xlu0 %v11585_v58, %s7528_s22 }
 0x9b7   : > { %4773 = vrot.lane.b32.xlu1 %v6131_v54, %s7526_s8  ;;  %3832 = vrot.lane.b32.xlu0 %v6054_v43, %s7527_s15 }
 0x9bb   : > { %2891 = vrot.lane.b32.xlu1 %v11586_v60, %s7528_s22  ;;  %4775 = vrot.lane.b32.xlu0 %v6134_v22, %s7526_s8 }
 0x9bf   : > { %2893 = vrot.lane.b32.xlu0 %v11587_v42, %s7528_s22  ;;  %v11593_v42 = vld [vmem:[#allocation90_spill] sm:$0xff] }
 0x9c8   : > { %v6055_v53 = vpop.f32.mrb[44].mxu1 }
 0x9c9   : > { %v6056_v12 = vpop.f32.mrb[45].mxu1 }
 0x9ca   : > { %v6057_v44 = vadd.f32 %v6056_v12, %v6055_v53 }
 0x9cc   : > { %v6058_v4 = vpop.f32.mrb[46].mxu1  ;;  %3834 = vrot.lane.b32.xlu1 %v6057_v44, %s7527_s15  ;;  %v11594_v44 = vld [vmem:[#allocation91_spill] sm:$0xff] }
 0x9cd   : > { %v6059_v28 = vpop.f32.mrb[47].mxu1 }
 0x9ce   : > { %v6060_v59 = vadd.f32 %v6059_v28, %v6058_v4  ;;  %v11595_v4 = vld [vmem:[#allocation96_spill] sm:$0xff] }
 0x9d0   : > { %3836 = vrot.lane.b32.xlu0 %v6060_v59, %s7527_s15 }
 0x9d3   : > { %v6135_v3 = vpop.f32.mrb[60].mxu0 }
 0x9d4   : > { %v6136_v32 = vpop.f32.mrb[61].mxu0  ;;  %v6061_v20 = vpop.f32.mrb[48].mxu1 }
 0x9d5   : > { %v6137_v23 = vadd.f32 %v6136_v32, %v6135_v3  ;;  %v6062_v34 = vpop.f32.mrb[49].mxu1 }
 0x9d6   : > { %v6063_v29 = vadd.f32 %v6062_v34, %v6061_v20  ;;  %v10375_v20 = vld [vmem:[%s469_s24] ss:$0 sm:$0xff] }
 0x9d7   : > { %v6138_v55 = vpop.f32.mrb[62].mxu0  ;;  %4777 = vrot.lane.b32.xlu1 %v6137_v23, %s7526_s8 }
 0x9d8   : > { %v6139_v45 = vpop.f32.mrb[63].mxu0  ;;  %v6064_v10 = vpop.f32.mrb[50].mxu1 }
 0x9d9   : > { %v6140_v17 = vadd.f32 %v6139_v45, %v6138_v55  ;;  %v6065_v47 = vpop.f32.mrb[51].mxu1 }
 0x9da   : > { %v6066_v41 = vadd.f32 %v6065_v47, %v6064_v10  ;;  %v5166_v10 = vld [vmem:[%s11596_s18 + $0x8] sm:$0xff]  ;;  %v5167_v47 = vld [vmem:[%s11596_s18 + $0x10] sm:$0xff] }
 0x9db   : > { %v6141_v14 = vpop.f32.mrb[64].mxu0  ;;  %2895 = vrot.lane.b32.xlu1 %v11588_v16, %s7528_s22  ;;  %4779 = vrot.lane.b32.xlu0 %v6140_v17, %s7526_s8  ;;  %v5165_v17 = vld [vmem:[%s11596_s18] sm:$0xff] }
 0x9dc   : > { %v6142_v39 = vpop.f32.mrb[65].mxu0  ;;  %v6067_v33 = vpop.f32.mrb[52].mxu1 }
 0x9dd   : > { %v6143_v8 = vadd.f32 %v6142_v39, %v6141_v14  ;;  %v6068_v11 = vpop.f32.mrb[53].mxu1  ;;  %v5168_v14 = vld [vmem:[%s11596_s18 + $0x18] sm:$0xff] }
 0x9de   : > { %v6069_v38 = vadd.f32 %v6068_v11, %v6067_v33  ;;  %v10394_v39 = vpack.c.bf16 %v5168_v14, %v5167_v47  ;;  %v5170_v33 = vld [vmem:[%s11596_s18 + $0x28] sm:$0xff] }
 0x9df   : > { %v6144_v13 = vpop.f32.mrb[66].mxu0  ;;  %3838 = vrot.lane.b32.xlu1 %v6063_v29, %s7527_s15  ;;  %2897 = vrot.lane.b32.xlu0 %v11589_v48, %s7528_s22 }
 0x9e0   : > { %v6145_v61 = vpop.f32.mrb[67].mxu0  ;;  %v6070_v9 = vpop.f32.mrb[54].mxu1 }
 0x9e1   : > { %v6146_v40 = vadd.f32 %v6145_v61, %v6144_v13  ;;  %v6071_v52 = vpop.f32.mrb[55].mxu1 }
 0x9e2   : > { %v6072_v15 = vadd.f32 %v6071_v52, %v6070_v9  ;;  %v5171_v52 = vld [vmem:[%s11596_s18 + $0x30] sm:$0xff] }
 0x9e3   : > { %v6147_v21 = vpop.f32.mrb[68].mxu0  ;;  %4781 = vrot.lane.b32.xlu1 %v6143_v8, %s7526_s8  ;;  %3840 = vrot.lane.b32.xlu0 %v6066_v41, %s7527_s15  ;;  %v10389_v41 = vpack.c.bf16 %v5166_v10, %v5165_v17  ;;  %v5169_v8 = vld [vmem:[%s11596_s18 + $0x20] sm:$0xff] }
 0x9e4   : > { %v6148_v37 = vpop.f32.mrb[69].mxu0  ;;  %v6073_v25 = vpop.f32.mrb[56].mxu1 }
 0x9e5   : > { %v6149_v6 = vadd.f32 %v6148_v37, %v6147_v21  ;;  %v6074_v1 = vpop.f32.mrb[57].mxu1  ;;  %6662 = vmatprep.subr.bf16.mxu0 %v10389_v41  ;;  %6693 = vmatprep.subr.bf16.mxu1 %v10389_v41 }
 0x9e6   : > { %v6075_v56 = vadd.f32 %v6074_v1, %v6073_v25  ;;  %6664 = vmatpush3.bf16.msra.mxu0 %v10389_v41 }
 0x9e7   : > { %v6150_v19 = vpop.f32.mrb[70].mxu0  ;;  %2899 = vrot.lane.b32.xlu1 %v11590_v63, %s7528_s22  ;;  %4783 = vrot.lane.b32.xlu0 %v6146_v40, %s7526_s8  ;;  %v10409_v40 = vpack.c.bf16 %v5170_v33, %v5169_v8 }
 0x9e8   : > { %v6151_v2 = vpop.f32.mrb[71].mxu0  ;;  %v6076_v5 = vpop.f32.mrb[58].mxu1  ;;  %6666 = vmatprep.subr.bf16.mxu0 %v10394_v39 }
 0x9e9   : > { %v6152_v27 = vadd.f32 %v6151_v2, %v6150_v19  ;;  %v6077_v50 = vpop.f32.mrb[59].mxu1 }
 0x9ea   : > { %v6078_v57 = vadd.f32 %v6077_v50, %v6076_v5  ;;  %6668 = vmatpush3.bf16.msra.mxu0 %v10394_v39 }
 0x9eb   : > { %v6153_v0 = vpop.f32.mrb[72].mxu0  ;;  %3842 = vrot.lane.b32.xlu1 %v6069_v38, %s7527_s15  ;;  %2901 = vrot.lane.b32.xlu0 %v11591_v62, %s7528_s22 }
 0x9ec   : > { %v6154_v24 = vpop.f32.mrb[73].mxu0  ;;  %v6079_v46 = vpop.f32.mrb[60].mxu1  ;;  %6670 = vmatprep.subr.bf16.mxu0 %v10409_v40 }
 0x9ed   : > { %v6155_v49 = vadd.f32 %v6154_v24, %v6153_v0  ;;  %v6080_v31 = vpop.f32.mrb[61].mxu1 }
 0x9ee   : > { %v6081_v30 = vadd.f32 %v6080_v31, %v6079_v46  ;;  %6672 = vmatpush3.bf16.msra.mxu0 %v10409_v40 }
 0x9ef   : > { %v6156_v43 = vpop.f32.mrb[74].mxu0  ;;  %4785 = vrot.lane.b32.xlu1 %v6149_v6, %s7526_s8  ;;  %3844 = vrot.lane.b32.xlu0 %v6072_v15, %s7527_s15  ;;  %v5172_v15 = vld [vmem:[%s11596_s18 + $0x38] sm:$0xff] }
 0x9f0   : > { %v6157_v54 = vpop.f32.mrb[75].mxu0  ;;  %v6082_v36 = vpop.f32.mrb[62].mxu1  ;;  %v10421_v25 = vpack.c.bf16 %v5172_v15, %v5171_v52 }
 0x9f1   : > { %v6158_v26 = vadd.f32 %v6157_v54, %v6156_v43  ;;  %v6083_v18 = vpop.f32.mrb[63].mxu1 }
 0x9f2   : > { %v6084_v51 = vadd.f32 %v6083_v18, %v6082_v36  ;;  %6674 = vmatprep.subr.bf16.mxu0 %v10421_v25 }
 0x9f3   : > { %v6159_v35 = vpop.f32.mrb[76].mxu0  ;;  %2903 = vrot.lane.b32.xlu1 %v11592_v7, %s7528_s22  ;;  %4787 = vrot.lane.b32.xlu0 %v6152_v27, %s7526_s8 }
 0x9f4   : > { %v6160_v22 = vpop.f32.mrb[77].mxu0  ;;  %6676 = vmatpush3.bf16.msra.mxu0 %v10421_v25 }
 0x9f5   : > { %v6161_v58 = vadd.f32 %v6160_v22, %v6159_v35 }
 0x9f7   : > { %v6162_v60 = vpop.f32.mrb[78].mxu0  ;;  %3846 = vrot.lane.b32.xlu1 %v6075_v56, %s7527_s15  ;;  %2905 = vrot.lane.b32.xlu0 %v11593_v42, %s7528_s22 }
 0x9f8   : > { %v6163_v53 = vpop.f32.mrb[79].mxu0 }
 0x9f9   : > { %v6164_v12 = vadd.f32 %v6163_v53, %v6162_v60 }
 0x9fb   : > { %4789 = vrot.lane.b32.xlu1 %v6155_v49, %s7526_s8  ;;  %3848 = vrot.lane.b32.xlu0 %v6078_v57, %s7527_s15 }
 0x9ff   : > { %2907 = vrot.lane.b32.xlu1 %v11594_v44, %s7528_s22  ;;  %4791 = vrot.lane.b32.xlu0 %v6158_v26, %s7526_s8 }
 0xa03   : > { %3850 = vrot.lane.b32.xlu1 %v6081_v30, %s7527_s15  ;;  %2909 = vrot.lane.b32.xlu0 %v11595_v4, %s7528_s22 }
 0xa07   : > { %4793 = vrot.lane.b32.xlu1 %v6161_v58, %s7526_s8  ;;  %3852 = vrot.lane.b32.xlu0 %v6084_v51, %s7527_s15  ;;  %s11597_s15 = sld [smem:[#allocation163_spill]] }
 0xa0b   : > { %4795 = vrot.lane.b32.xlu0 %v6164_v12, %s7526_s8 }
 0xa0d   : > { %v3823_v28 = vpop.permute.xlu1 %3822 }
 0xa0e   : > { %3871 = vst.msk [vmem:[#allocation4] sm:$0xff] %vm3870_vm3, %v3823_v28 }
 0xa11   : > { %v4766_v59 = vpop.permute.xlu1 %4765  ;;  %v3825_v3 = vpop.permute.xlu0 %3824 }
 0xa12   : > { %4814 = vst.msk [vmem:[#allocation4] sm:$0xff] %vm4813_vm14, %v4766_v59 }
 0xa13   : > { %3872 = vst.msk [vmem:[#allocation4 + $0x8] sm:$0xff] %vm3870_vm3, %v3825_v3 }
 0xa15   : > { %v2884_v32 = vpop.permute.xlu1 %2883  ;;  %v4768_v23 = vpop.permute.xlu0 %4767 }
 0xa16   : > { %2930 = vst.msk [vmem:[#allocation4 + $0x10] sm:$0xff] %vm2927_vm8, %v2884_v32 }
 0xa17   : > { %4815 = vst.msk [vmem:[#allocation4 + $0x8] sm:$0xff] %vm4813_vm14, %v4768_v23 }
 0xa19   : > { %v3827_v34 = vpop.permute.xlu1 %3826  ;;  %v2886_v29 = vpop.permute.xlu0 %2885  ;;  %v4830_v55 = vld [vmem:[#allocation4] sm:$0xff] }
 0xa1a   : > { %3873 = vst.msk [vmem:[#allocation4 + $0x10] sm:$0xff] %vm3870_vm3, %v3827_v34  ;;  %v4853_v45 = vadd.f32 %v10375_v20, %v4830_v55 }
 0xa1b   : > { %2931 = vst.msk [vmem:[#allocation4 + $0x18] sm:$0xff] %vm2927_vm8, %v2886_v29 }
 0xa1c   : > { %v4885_v16 = vmin.f32 %v4853_v45, 0.0  ;;  %vm4869_vm11 = vcmp.gt.f32.partialorder %v4853_v45, 0.0 }
 0xa1d   : > { %v4770_v11 = vpop.permute.xlu1 %4769  ;;  %v3829_v38 = vpop.permute.xlu0 %3828 }
 0xa1e   : > { %v4831_v13 = vld [vmem:[#allocation4 + $0x8] sm:$0xff]  ;;  %4816 = vst.msk [vmem:[#allocation4 + $0x10] sm:$0xff] %vm4813_vm14, %v4770_v11  ;;  %v4901_v48 = vmul.f32 1.442695, %v4885_v16 }
 0xa1f   : > { %3874 = vst.msk [vmem:[#allocation4 + $0x18] sm:$0xff] %vm3870_vm3, %v3829_v38  ;;  %v4854_v61 = vadd.f32 %v10375_v20, %v4831_v13 }
 0xa20   : > { %7418 = vpow2.f32 %v4901_v48 }
 0xa21   : > { %v4886_v9 = vmin.f32 %v4854_v61, 0.0  ;;  %v2888_v21 = vpop.permute.xlu1 %2887  ;;  %v4772_v37 = vpop.permute.xlu0 %4771  ;;  %vm4870_vm6 = vcmp.gt.f32.partialorder %v4854_v61, 0.0 }
 0xa22   : > { %2932 = vst.msk [vmem:[#allocation4 + $0x20] sm:$0xff] %vm2927_vm8, %v2888_v21 }
 0xa23   : > { %4817 = vst.msk [vmem:[#allocation4 + $0x18] sm:$0xff] %vm4813_vm14, %v4772_v37  ;;  %v4903_v6 = vmul.f32 1.442695, %v4886_v9 }
 0xa25   : > { %7420 = vpow2.f32 %v4903_v6  ;;  %v3831_v1 = vpop.permute.xlu1 %3830  ;;  %v2890_v56 = vpop.permute.xlu0 %2889  ;;  %v4832_v19 = vld [vmem:[#allocation4 + $0x10] sm:$0xff] }
 0xa26   : > { %3875 = vst.msk [vmem:[#allocation4 + $0x20] sm:$0xff] %vm3870_vm3, %v3831_v1  ;;  %v4855_v63 = vadd.f32 %v10375_v20, %v4832_v19 }
 0xa27   : > { %2933 = vst.msk [vmem:[#allocation4 + $0x28] sm:$0xff] %vm2927_vm8, %v2890_v56 }
 0xa28   : > { %v4887_v2 = vmin.f32 %v4855_v63, 0.0  ;;  %vm4871_vm9 = vcmp.gt.f32.partialorder %v4855_v63, 0.0 }
 0xa29   : > { %v4774_v27 = vpop.permute.xlu1 %4773  ;;  %v3833_v5 = vpop.permute.xlu0 %3832 }
 0xa2a   : > { %v4833_v50 = vld [vmem:[#allocation4 + $0x18] sm:$0xff]  ;;  %v7419_v57 = vpop.eup %7418  ;;  %4818 = vst.msk [vmem:[#allocation4 + $0x20] sm:$0xff] %vm4813_vm14, %v4774_v27  ;;  %v4905_v0 = vmul.f32 1.442695, %v4887_v2 }
 0xa2b   : > { %3876 = vst.msk [vmem:[#allocation4 + $0x28] sm:$0xff] %vm3870_vm3, %v3833_v5  ;;  %v4856_v62 = vadd.f32 %v10375_v20, %v4833_v50  ;;  %v5736_v24 = vadd.f32 -1.0, %v7419_v57 }
 0xa2c   : > { %7422 = vpow2.f32 %v4905_v0 }
 0xa2d   : > { %v4888_v49 = vmin.f32 %v4856_v62, 0.0  ;;  %v2892_v46 = vpop.permute.xlu1 %2891  ;;  %v4776_v31 = vpop.permute.xlu0 %4775  ;;  %v4949_v30 = vsel %vm4869_vm11, %v4853_v45, %v5736_v24  ;;  %vm4872_vm12 = vcmp.gt.f32.partialorder %v4856_v62, 0.0  ;;  %vm5326_vm11 = vcmask 7168  }
 0xa2e   : > { %2934 = vst.msk [vmem:[#allocation4 + $0x30] sm:$0xff] %vm2927_vm8, %v2892_v46  ;;  %4965 = vst [vmem:[%s7655_s7] sm:$0xff] %v4949_v30  ;;  %6357 = vmatprep.mubr.f32.mxu1 %v4949_v30 }
 0xa2f   : > { %v7421_v43 = vpop.eup %7420  ;;  %4819 = vst.msk [vmem:[#allocation4 + $0x28] sm:$0xff] %vm4813_vm14, %v4776_v31  ;;  %v4907_v54 = vmul.f32 1.442695, %v4888_v49 }
 0xa30   : > { %v5737_v26 = vadd.f32 -1.0, %v7421_v43 }
 0xa31   : > { %7424 = vpow2.f32 %v4907_v54  ;;  %v2894_v36 = vpop.permute.xlu0 %2893  ;;  %v4834_v51 = vld [vmem:[#allocation4 + $0x20] sm:$0xff] }
 0xa32   : > { %v4950_v18 = vsel %vm4870_vm6, %v4854_v61, %v5737_v26  ;;  %2935 = vst.msk [vmem:[#allocation4 + $0x38] sm:$0xff] %vm2927_vm8, %v2894_v36  ;;  %v4857_v35 = vadd.f32 %v10375_v20, %v4834_v51 }
 0xa33   : > { %4966 = vst [vmem:[%s7655_s7 + $0x8] sm:$0xff] %v4950_v18  ;;  %6358 = vmatmul.mubr.f32.vlgmr.msra.gmra.mrb[64].mxu1 %v4950_v18 }
 0xa34   : > { %6701 = vmatpush3.bf16.msra.mxu1 %v10389_v41  ;;  %v4889_v7 = vmin.f32 %v4857_v35, 0.0  ;;  %vm4873_vm15 = vcmp.gt.f32.partialorder %v4857_v35, 0.0 }
 0xa35   : > { %6694 = vmatprep.subr.bf16.mxu1 %v10394_v39 }
 0xa36   : > { %v4835_v22 = vld [vmem:[#allocation4 + $0x28] sm:$0xff]  ;;  %v7423_v58 = vpop.eup %7422  ;;  %v4909_v60 = vmul.f32 1.442695, %v4889_v7 }
 0xa37   : > { %v4858_v42 = vadd.f32 %v10375_v20, %v4835_v22  ;;  %v5738_v53 = vadd.f32 -1.0, %v7423_v58 }
 0xa38   : > { %6702 = vmatpush3.bf16.msra.mxu1 %v10394_v39  ;;  %7426 = vpow2.f32 %v4909_v60 }
 0xa39   : > { %v4890_v12 = vmin.f32 %v4858_v42, 0.0  ;;  %6695 = vmatprep.subr.bf16.mxu1 %v10409_v40  ;;  %v4951_v44 = vsel %vm4871_vm9, %v4855_v63, %v5738_v53  ;;  %vm4874_vm13 = vcmp.gt.f32.partialorder %v4858_v42, 0.0 }
 0xa3a   : > { %4967 = vst [vmem:[%s7655_s7 + $0x10] sm:$0xff] %v4951_v44  ;;  %6360 = vmatprep.mubr.f32.mxu1 %v4951_v44 }
 0xa3b   : > { %v7425_v4 = vpop.eup %7424  ;;  %v4911_v28 = vmul.f32 1.442695, %v4890_v12 }
 0xa3c   : > { %v5739_v59 = vadd.f32 -1.0, %v7425_v4  ;;  %6703 = vmatpush3.bf16.msra.mxu1 %v10409_v40 }
 0xa3d   : > { %7428 = vpow2.f32 %v4911_v28  ;;  %6696 = vmatprep.subr.bf16.mxu1 %v10421_v25 }
 0xa3e   : > { %v4952_v3 = vsel %vm4872_vm12, %v4856_v62, %v5739_v59  ;;  %v3835_v32 = vpop.permute.xlu1 %3834 }
 0xa3f   : > { %4968 = vst [vmem:[%s7655_s7 + $0x18] sm:$0xff] %v4952_v3  ;;  %6361 = vmatmul.mubr.f32.gmra.mrb[66].mxu1 %v4952_v3  ;;  %3877 = vst.msk [vmem:[#allocation4 + $0x30] sm:$0xff] %vm3870_vm3, %v3835_v32 }
 0xa40   : > { %6704 = vmatpush3.bf16.msra.mxu1 %v10421_v25 }
 0xa42   : > { %v7427_v23 = vpop.eup %7426  ;;  %v3837_v34 = vpop.permute.xlu0 %3836 }
 0xa43   : > { %v5740_v29 = vadd.f32 -1.0, %v7427_v23  ;;  %3878 = vst.msk [vmem:[#allocation4 + $0x38] sm:$0xff] %vm3870_vm3, %v3837_v34 }
 0xa45   : > { %v4953_v55 = vsel %vm4873_vm15, %v4857_v35, %v5740_v29 }
 0xa46   : > { %4969 = vst [vmem:[%s7655_s7 + $0x20] sm:$0xff] %v4953_v55  ;;  %6363 = vmatprep.mubr.f32.mxu1 %v4953_v55 }
 0xa47   : > { %v7429_v45 = vpop.eup %7428 }
 0xa48   : > { %v5741_v17 = vadd.f32 -1.0, %v7429_v45 }
 0xa49   : > { %v4778_v10 = vpop.permute.xlu1 %4777 }
 0xa4a   : > { %v4954_v47 = vsel %vm4874_vm13, %v4858_v42, %v5741_v17  ;;  %4820 = vst.msk [vmem:[#allocation4 + $0x30] sm:$0xff] %vm4813_vm14, %v4778_v10 }
 0xa4b   : > { %4970 = vst [vmem:[%s7655_s7 + $0x28] sm:$0xff] %v4954_v47  ;;  %6364 = vmatmul.mubr.f32.gmra.mrb[68].mxu1 %v4954_v47 }
 0xa4d   : > { %v2896_v41 = vpop.permute.xlu1 %2895  ;;  %v4780_v14 = vpop.permute.xlu0 %4779 }
 0xa4e   : > { %2936 = vst.msk [vmem:[#allocation4 + $0x40] sm:$0xff] %vm2927_vm8, %v2896_v41 }
 0xa4f   : > { %4821 = vst.msk [vmem:[#allocation4 + $0x38] sm:$0xff] %vm4813_vm14, %v4780_v14 }
 0xa51   : > { %v3839_v16 = vpop.permute.xlu1 %3838  ;;  %v2898_v39 = vpop.permute.xlu0 %2897  ;;  %v4836_v8 = vld [vmem:[#allocation4 + $0x30] sm:$0xff] }
 0xa52   : > { %3879 = vst.msk [vmem:[#allocation4 + $0x40] sm:$0xff] %vm3870_vm3, %v3839_v16  ;;  %v4859_v33 = vadd.f32 %v10375_v20, %v4836_v8 }
 0xa53   : > { %2937 = vst.msk [vmem:[#allocation4 + $0x48] sm:$0xff] %vm2927_vm8, %v2898_v39 }
 0xa54   : > { %v4891_v11 = vmin.f32 %v4859_v33, 0.0  ;;  %vm4875_vm4 = vcmp.gt.f32.partialorder %v4859_v33, 0.0 }
 0xa55   : > { %v4782_v38 = vpop.permute.xlu1 %4781  ;;  %v3841_v13 = vpop.permute.xlu0 %3840 }
 0xa56   : > { %v4837_v48 = vld [vmem:[#allocation4 + $0x38] sm:$0xff]  ;;  %4822 = vst.msk [vmem:[#allocation4 + $0x40] sm:$0xff] %vm4813_vm14, %v4782_v38  ;;  %v4913_v61 = vmul.f32 1.442695, %v4891_v11 }
 0xa57   : > { %3880 = vst.msk [vmem:[#allocation4 + $0x48] sm:$0xff] %vm3870_vm3, %v3841_v13  ;;  %v4860_v40 = vadd.f32 %v10375_v20, %v4837_v48 }
 0xa58   : > { %7430 = vpow2.f32 %v4913_v61 }
 0xa59   : > { %v4892_v9 = vmin.f32 %v4860_v40, 0.0  ;;  %v2900_v52 = vpop.permute.xlu1 %2899  ;;  %v4784_v15 = vpop.permute.xlu0 %4783  ;;  %vm4876_vm7 = vcmp.gt.f32.partialorder %v4860_v40, 0.0 }
 0xa5a   : > { %2938 = vst.msk [vmem:[#allocation4 + $0x50] sm:$0xff] %vm2927_vm8, %v2900_v52 }
 0xa5b   : > { %4823 = vst.msk [vmem:[#allocation4 + $0x48] sm:$0xff] %vm4813_vm14, %v4784_v15  ;;  %v4915_v21 = vmul.f32 1.442695, %v4892_v9 }
 0xa5d   : > { %7432 = vpow2.f32 %v4915_v21  ;;  %v3843_v37 = vpop.permute.xlu1 %3842  ;;  %v2902_v6 = vpop.permute.xlu0 %2901  ;;  %v4838_v25 = vld [vmem:[#allocation4 + $0x40] sm:$0xff] }
 0xa5e   : > { %3881 = vst.msk [vmem:[#allocation4 + $0x50] sm:$0xff] %vm3870_vm3, %v3843_v37  ;;  %v4861_v1 = vadd.f32 %v10375_v20, %v4838_v25 }
 0xa5f   : > { %2939 = vst.msk [vmem:[#allocation4 + $0x58] sm:$0xff] %vm2927_vm8, %v2902_v6 }
 0xa60   : > { %v4893_v56 = vmin.f32 %v4861_v1, 0.0  ;;  %vm4877_vm1 = vcmp.gt.f32.partialorder %v4861_v1, 0.0 }
 0xa61   : > { %v4786_v19 = vpop.permute.xlu1 %4785  ;;  %v3845_v63 = vpop.permute.xlu0 %3844 }
 0xa62   : > { %v4839_v2 = vld [vmem:[#allocation4 + $0x48] sm:$0xff]  ;;  %v7431_v27 = vpop.eup %7430  ;;  %4824 = vst.msk [vmem:[#allocation4 + $0x50] sm:$0xff] %vm4813_vm14, %v4786_v19  ;;  %v4917_v5 = vmul.f32 1.442695, %v4893_v56  ;;  %v5173_v19 = vld [vmem:[%s11596_s18 + $0x40] sm:$0xff] }
 0xa63   : > { %3882 = vst.msk [vmem:[#allocation4 + $0x58] sm:$0xff] %vm3870_vm3, %v3845_v63  ;;  %v4862_v50 = vadd.f32 %v10375_v20, %v4839_v2  ;;  %v5742_v57 = vadd.f32 -1.0, %v7431_v27  ;;  %v5174_v63 = vld [vmem:[%s11596_s18 + $0x48] sm:$0xff] }
 0xa64   : > { %7434 = vpow2.f32 %v4917_v5  ;;  %v6677_v27 = vpack.c.bf16 %v5174_v63, %v5173_v19  ;;  %v5175_v5 = vld [vmem:[%s11596_s18 + $0x50] sm:$0xff] }
 0xa65   : > { %v4894_v0 = vmin.f32 %v4862_v50, 0.0  ;;  %v2904_v62 = vpop.permute.xlu1 %2903  ;;  %v4788_v24 = vpop.permute.xlu0 %4787  ;;  %v4955_v49 = vsel %vm4875_vm4, %v4859_v33, %v5742_v57  ;;  %vm4878_vm2 = vcmp.gt.f32.partialorder %v4862_v50, 0.0 }
 0xa66   : > { %2940 = vst.msk [vmem:[#allocation4 + $0x60] sm:$0xff] %vm2927_vm8, %v2904_v62  ;;  %4971 = vst [vmem:[%s7655_s7 + $0x30] sm:$0xff] %v4955_v49  ;;  %6366 = vmatprep.mubr.f32.mxu1 %v4955_v49  ;;  %v5177_v62 = vld [vmem:[%s11596_s18 + $0x60] sm:$0xff]  ;;  %6678 = vmatprep.subr.bf16.mxu0 %v6677_v27 }
 0xa67   : > { %v7433_v46 = vpop.eup %7432  ;;  %4825 = vst.msk [vmem:[#allocation4 + $0x58] sm:$0xff] %vm4813_vm14, %v4788_v24  ;;  %v4919_v31 = vmul.f32 1.442695, %v4894_v0  ;;  %v5178_v24 = vld [vmem:[%s11596_s18 + $0x68] sm:$0xff]  ;;  %6697 = vmatprep.subr.bf16.mxu1 %v6677_v27  ;;  %6680 = vmatpush3.bf16.msra.mxu0 %v6677_v27 }
 0xa68   : > { %v5743_v30 = vadd.f32 -1.0, %v7433_v46  ;;  %6705 = vmatpush3.bf16.msra.mxu1 %v6677_v27 }
 0xa69   : > { %7436 = vpow2.f32 %v4919_v31  ;;  %v3847_v43 = vpop.permute.xlu1 %3846  ;;  %v2906_v54 = vpop.permute.xlu0 %2905  ;;  %v4840_v36 = vld [vmem:[#allocation4 + $0x50] sm:$0xff]  ;;  %v6685_v31 = vpack.c.bf16 %v5178_v24, %v5177_v62 }
 0xa6a   : > { %v4956_v26 = vsel %vm4876_vm7, %v4860_v40, %v5743_v30  ;;  %3883 = vst.msk [vmem:[#allocation4 + $0x60] sm:$0xff] %vm3870_vm3, %v3847_v43  ;;  %v4863_v18 = vadd.f32 %v10375_v20, %v4840_v36 }
 0xa6b   : > { %2941 = vst.msk [vmem:[#allocation4 + $0x68] sm:$0xff] %vm2927_vm8, %v2906_v54  ;;  %4972 = vst [vmem:[%s7655_s7 + $0x38] sm:$0xff] %v4956_v26  ;;  %6367 = vmatmul.mubr.f32.gmra.mrb[70].mxu1 %v4956_v26  ;;  %v5179_v54 = vld [vmem:[%s11596_s18 + $0x70] sm:$0xff]  ;;  %v5180_v26 = vld [vmem:[%s11596_s18 + $0x78] sm:$0xff] }
 0xa6c   : > { %v4895_v51 = vmin.f32 %v4863_v18, 0.0 }
 0xa6d   : > { %v4790_v35 = vpop.permute.xlu1 %4789  ;;  %v3849_v7 = vpop.permute.xlu0 %3848 }
 0xa6e   : > { %v4841_v22 = vld [vmem:[#allocation4 + $0x58] sm:$0xff]  ;;  %v7435_v58 = vpop.eup %7434  ;;  %4826 = vst.msk [vmem:[#allocation4 + $0x60] sm:$0xff] %vm4813_vm14, %v4790_v35  ;;  %v4921_v60 = vmul.f32 1.442695, %v4895_v51 }
 0xa6f   : > { %3884 = vst.msk [vmem:[#allocation4 + $0x68] sm:$0xff] %vm3870_vm3, %v3849_v7  ;;  %v4864_v42 = vadd.f32 %v10375_v20, %v4841_v22  ;;  %v5744_v53 = vadd.f32 -1.0, %v7435_v58  ;;  %v10525_v22 = vld [vmem:[%s11597_s15] ss:$0 sm:$0xff] }
 0xa70   : > { %7438 = vpow2.f32 %v4921_v60 }
 0xa71   : > { %v4896_v12 = vmin.f32 %v4864_v42, 0.0  ;;  %v2908_v44 = vpop.permute.xlu1 %2907  ;;  %v4792_v4 = vpop.permute.xlu0 %4791  ;;  %v4957_v28 = vsel %vm4877_vm1, %v4861_v1, %v5744_v53  ;;  %vm4880_vm0 = vcmp.gt.f32.partialorder %v4864_v42, 0.0 }
 0xa72   : > { %2942 = vst.msk [vmem:[#allocation4 + $0x70] sm:$0xff] %vm2927_vm8, %v2908_v44  ;;  %4973 = vst [vmem:[%s7655_s7 + $0x40] sm:$0xff] %v4957_v28  ;;  %6369 = vmatprep.mubr.f32.mxu1 %v4957_v28 }
 0xa73   : > { %v7437_v59 = vpop.eup %7436  ;;  %4827 = vst.msk [vmem:[#allocation4 + $0x68] sm:$0xff] %vm4813_vm14, %v4792_v4  ;;  %v4923_v3 = vmul.f32 1.442695, %v4896_v12 }
 0xa74   : > { %v5745_v32 = vadd.f32 -1.0, %v7437_v59 }
 0xa75   : > { %7440 = vpow2.f32 %v4923_v3  ;;  %v3851_v23 = vpop.permute.xlu1 %3850  ;;  %v2910_v34 = vpop.permute.xlu0 %2909  ;;  %v4842_v55 = vld [vmem:[#allocation4 + $0x60] sm:$0xff] }
 0xa76   : > { %v4958_v29 = vsel %vm4878_vm2, %v4862_v50, %v5745_v32  ;;  %3885 = vst.msk [vmem:[#allocation4 + $0x70] sm:$0xff] %vm3870_vm3, %v3851_v23  ;;  %v4865_v45 = vadd.f32 %v10375_v20, %v4842_v55 }
 0xa77   : > { %2943 = vst.msk [vmem:[#allocation4 + $0x78] sm:$0xff] %vm2927_vm8, %v2910_v34  ;;  %4974 = vst [vmem:[%s7655_s7 + $0x48] sm:$0xff] %v4958_v29  ;;  %6370 = vmatmul.mubr.f32.gmra.mrb[72].mxu1 %v4958_v29  ;;  %vm4879_vm8 = vcmp.gt.f32.partialorder %v4863_v18, 0.0 }
 0xa78   : > { %v4897_v17 = vmin.f32 %v4865_v45, 0.0  ;;  %vm4881_vm5 = vcmp.gt.f32.partialorder %v4865_v45, 0.0 }
 0xa79   : > { %v4794_v10 = vpop.permute.xlu1 %4793  ;;  %v3853_v47 = vpop.permute.xlu0 %3852 }
 0xa7a   : > { %v4843_v41 = vld [vmem:[#allocation4 + $0x68] sm:$0xff]  ;;  %v7439_v14 = vpop.eup %7438  ;;  %4828 = vst.msk [vmem:[#allocation4 + $0x70] sm:$0xff] %vm4813_vm14, %v4794_v10  ;;  %v4925_v16 = vmul.f32 1.442695, %v4897_v17 }
 0xa7b   : > { %3886 = vst.msk [vmem:[#allocation4 + $0x78] sm:$0xff] %vm3870_vm3, %v3853_v47  ;;  %v4866_v39 = vadd.f32 %v10375_v20, %v4843_v41  ;;  %v5746_v8 = vadd.f32 -1.0, %v7439_v14 }
 0xa7c   : > { %7442 = vpow2.f32 %v4925_v16 }
 0xa7d   : > { %v4898_v33 = vmin.f32 %v4866_v39, 0.0  ;;  %v4796_v11 = vpop.permute.xlu0 %4795  ;;  %v4959_v38 = vsel %vm4879_vm8, %v4863_v18, %v5746_v8  ;;  %vm4882_vm10 = vcmp.gt.f32.partialorder %v4866_v39, 0.0  ;;  %v6689_v18 = vpack.c.bf16 %v5180_v26, %v5179_v54 }
 0xa7e   : > { %4829 = vst.msk [vmem:[#allocation4 + $0x78] sm:$0xff] %vm4813_vm14, %v4796_v11  ;;  %4975 = vst [vmem:[%s7655_s7 + $0x50] sm:$0xff] %v4959_v38  ;;  %6372 = vmatprep.mubr.f32.mxu1 %v4959_v38 }
 0xa7f   : > { %v7441_v13 = vpop.eup %7440  ;;  %v4927_v48 = vmul.f32 1.442695, %v4898_v33 }
 0xa80   : > { %v5747_v61 = vadd.f32 -1.0, %v7441_v13 }
 0xa81   : > { %7444 = vpow2.f32 %v4927_v48  ;;  %v4844_v9 = vld [vmem:[#allocation4 + $0x70] sm:$0xff] }
 0xa82   : > { %v4960_v40 = vsel %vm4880_vm0, %v4864_v42, %v5747_v61  ;;  %v4867_v52 = vadd.f32 %v10375_v20, %v4844_v9 }
 0xa83   : > { %4976 = vst [vmem:[%s7655_s7 + $0x58] sm:$0xff] %v4960_v40  ;;  %6373 = vmatmul.mubr.f32.gmra.mrb[74].mxu1 %v4960_v40 }
 0xa84   : > { %v4899_v15 = vmin.f32 %v4867_v52, 0.0  ;;  %vm4883_vm3 = vcmp.gt.f32.partialorder %v4867_v52, 0.0 }
 0xa85   : > { %v4845_v21 = vld [vmem:[#allocation4 + $0x78] sm:$0xff] }
 0xa86   : > { %v7443_v37 = vpop.eup %7442  ;;  %v4929_v6 = vmul.f32 1.442695, %v4899_v15  ;;  %v4868_v25 = vadd.f32 %v10375_v20, %v4845_v21  ;;  %v5176_v20 = vld [vmem:[%s11596_s18 + $0x58] sm:$0xff] }
 0xa87   : > { %v5748_v1 = vadd.f32 -1.0, %v7443_v37  ;;  %v6681_v0 = vpack.c.bf16 %v5176_v20, %v5175_v5 }
 0xa88   : > { %7446 = vpow2.f32 %v4929_v6  ;;  %v4900_v56 = vmin.f32 %v4868_v25, 0.0  ;;  %vm4884_vm14 = vcmp.gt.f32.partialorder %v4868_v25, 0.0 }
 0xa89   : > { %v4961_v2 = vsel %vm4881_vm5, %v4865_v45, %v5748_v1  ;;  %6682 = vmatprep.subr.bf16.mxu0 %v6681_v0  ;;  %6698 = vmatprep.subr.bf16.mxu1 %v6681_v0 }
 0xa8a   : > { %4977 = vst [vmem:[%s7655_s7 + $0x60] sm:$0xff] %v4961_v2  ;;  %6375 = vmatprep.mubr.f32.mxu1 %v4961_v2  ;;  %v4931_v57 = vmul.f32 1.442695, %v4900_v56  ;;  %6684 = vmatpush3.bf16.msra.mxu0 %v6681_v0 }
 0xa8b   : > { %v7445_v50 = vpop.eup %7444  ;;  %6706 = vmatpush3.bf16.msra.mxu1 %v6681_v0  ;;  %6686 = vmatprep.subr.bf16.mxu0 %v6685_v31 }
 0xa8c   : > { %v5749_v49 = vadd.f32 -1.0, %v7445_v50  ;;  %7448 = vpow2.f32 %v4931_v57  ;;  %6699 = vmatprep.subr.bf16.mxu1 %v6685_v31 }
 0xa8e   : > { %v4962_v46 = vsel %vm4882_vm10, %v4866_v39, %v5749_v49  ;;  %6688 = vmatpush3.bf16.msra.mxu0 %v6685_v31 }
 0xa8f   : > { %4978 = vst [vmem:[%s7655_s7 + $0x68] sm:$0xff] %v4962_v46  ;;  %6376 = vmatmul.mubr.f32.gmra.mrb[76].mxu1 %v4962_v46  ;;  %6690 = vmatprep.subr.bf16.mxu0 %v6689_v18 }
 0xa90   : > { %6707 = vmatpush3.bf16.msra.mxu1 %v6685_v31 }
 0xa91   : > { %6700 = vmatprep.subr.bf16.mxu1 %v6689_v18 }
 0xa92   : > { %v7447_v30 = vpop.eup %7446  ;;  %6692 = vmatpush3.bf16.msra.mxu0 %v6689_v18 }
 0xa93   : > { %v5750_v43 = vadd.f32 -1.0, %v7447_v30 }
 0xa94   : > { %6708 = vmatpush3.bf16.msra.mxu1 %v6689_v18 }
 0xa95   : > { %v4963_v36 = vsel %vm4883_vm3, %v4867_v52, %v5750_v43 }
 0xa96   : > { %v7449_v51 = vpop.eup %7448  ;;  %4979 = vst [vmem:[%s7655_s7 + $0x70] sm:$0xff] %v4963_v36  ;;  %6378 = vmatprep.mubr.f32.mxu1 %v4963_v36 }
 0xa97   : > { %v5751_v35 = vadd.f32 -1.0, %v7449_v51 }
 0xa99   : > { %v4964_v7 = vsel %vm4884_vm14, %v4868_v25, %v5751_v35 }
 0xa9a   : > { %4980 = vst [vmem:[%s7655_s7 + $0x78] sm:$0xff] %v4964_v7  ;;  %6379 = vmatmul.mubr.f32.gmra.mrb[78].mxu1 %v4964_v7 }
 0xb06   : > { %v6359_v58 = vpop.f32.mrb[64].mxu1 }
 0xb07   : > { %v5076_v60 = vadd.f32 %v6359_v58, %v10525_v22  ;;  %v5070_v42 = vpop.f32.mrb[65].mxu1 }
 0xb08   : > { %v5071_v53 = vadd.f32 %v10525_v22, %v5070_v42 }
 0xb0a   : > { %7450 = vtanh.f32 %v5071_v53 }
 0xb0b   : > { %7452 = vtanh.f32 %v5076_v60 }
 0xb12   : > { %v6362_v12 = vpop.f32.mrb[66].mxu1 }
 0xb13   : > { %v5086_v44 = vadd.f32 %v6362_v12, %v10525_v22  ;;  %v5080_v4 = vpop.f32.mrb[67].mxu1 }
 0xb14   : > { %v7451_v28 = vpop.eup %7450  ;;  %v5081_v59 = vadd.f32 %v10525_v22, %v5080_v4 }
 0xb15   : > { %v7453_v3 = vpop.eup %7452  ;;  %6413 = vmatprep.mubr.f32.mxu0 %v7451_v28 }
 0xb16   : > { %7454 = vtanh.f32 %v5081_v59  ;;  %6414 = vmatmul.mubr.f32.vlgmr.msra.gmra.mrb[80].mxu0 %v7453_v3 }
 0xb17   : > { %7456 = vtanh.f32 %v5086_v44 }
 0xb1e   : > { %v6365_v32 = vpop.f32.mrb[68].mxu1 }
 0xb1f   : > { %v5096_v23 = vadd.f32 %v6365_v32, %v10525_v22  ;;  %v5090_v34 = vpop.f32.mrb[69].mxu1 }
 0xb20   : > { %v7455_v29 = vpop.eup %7454  ;;  %v5091_v55 = vadd.f32 %v10525_v22, %v5090_v34 }
 0xb21   : > { %v7457_v45 = vpop.eup %7456  ;;  %6416 = vmatprep.mubr.f32.mxu0 %v7455_v29 }
 0xb22   : > { %7458 = vtanh.f32 %v5091_v55  ;;  %6417 = vmatmul.mubr.f32.gmra.mrb[82].mxu0 %v7457_v45 }
 0xb23   : > { %7460 = vtanh.f32 %v5096_v23 }
 0xb2c   : > { %v7459_v17 = vpop.eup %7458 }
 0xb2d   : > { %v7461_v10 = vpop.eup %7460  ;;  %6419 = vmatprep.mubr.f32.mxu0 %v7459_v17 }
 0xb2e   : > { %6420 = vmatmul.mubr.f32.gmra.mrb[84].mxu0 %v7461_v10 }
 0xb3e   : > { %v6368_v47 = vpop.f32.mrb[70].mxu1 }
 0xb3f   : > { %v5106_v41 = vadd.f32 %v6368_v47, %v10525_v22  ;;  %v5100_v14 = vpop.f32.mrb[71].mxu1 }
 0xb40   : > { %v5101_v16 = vadd.f32 %v10525_v22, %v5100_v14 }
 0xb42   : > { %7462 = vtanh.f32 %v5101_v16 }
 0xb43   : > { %7464 = vtanh.f32 %v5106_v41 }
 0xb4a   : > { %v6371_v39 = vpop.f32.mrb[72].mxu1 }
 0xb4b   : > { %v5116_v8 = vadd.f32 %v6371_v39, %v10525_v22  ;;  %v5110_v33 = vpop.f32.mrb[73].mxu1 }
 0xb4c   : > { %v7463_v11 = vpop.eup %7462  ;;  %v5111_v38 = vadd.f32 %v10525_v22, %v5110_v33 }
 0xb4d   : > { %v7465_v13 = vpop.eup %7464  ;;  %6422 = vmatprep.mubr.f32.mxu0 %v7463_v11 }
 0xb4e   : > { %7466 = vtanh.f32 %v5111_v38  ;;  %6423 = vmatmul.mubr.f32.gmra.mrb[86].mxu0 %v7465_v13 }
 0xb4f   : > { %7468 = vtanh.f32 %v5116_v8 }
 0xb56   : > { %v6374_v48 = vpop.f32.mrb[74].mxu1 }
 0xb57   : > { %v5126_v61 = vadd.f32 %v6374_v48, %v10525_v22  ;;  %v5120_v40 = vpop.f32.mrb[75].mxu1 }
 0xb58   : > { %v7467_v9 = vpop.eup %7466  ;;  %v5121_v52 = vadd.f32 %v10525_v22, %v5120_v40 }
 0xb59   : > { %v7469_v15 = vpop.eup %7468  ;;  %6425 = vmatprep.mubr.f32.mxu1 %v7467_v9 }
 0xb5a   : > { %7470 = vtanh.f32 %v5121_v52  ;;  %6426 = vmatmul.mubr.f32.vlgmr.msra.gmra.mrb[80].mxu1 %v7469_v15 }
 0xb5b   : > { %7472 = vtanh.f32 %v5126_v61 }
 0xb62   : > { %v6377_v21 = vpop.f32.mrb[76].mxu1 }
 0xb63   : > { %v5136_v37 = vadd.f32 %v6377_v21, %v10525_v22  ;;  %v5130_v6 = vpop.f32.mrb[77].mxu1 }
 0xb64   : > { %v7471_v25 = vpop.eup %7470  ;;  %v5131_v1 = vadd.f32 %v10525_v22, %v5130_v6 }
 0xb65   : > { %v7473_v56 = vpop.eup %7472  ;;  %6428 = vmatprep.mubr.f32.mxu1 %v7471_v25 }
 0xb66   : > { %7474 = vtanh.f32 %v5131_v1  ;;  %6429 = vmatmul.mubr.f32.gmra.mrb[82].mxu1 %v7473_v56 }
 0xb67   : > { %7476 = vtanh.f32 %v5136_v37 }
 0xb6d   : > { %v6380_v19 = vpop.f32.mrb[78].mxu1 }
 0xb6e   : > { %v5146_v63 = vadd.f32 %v6380_v19, %v10525_v22  ;;  %v5140_v2 = vpop.f32.mrb[79].mxu1 }
 0xb6f   : > { %v5141_v5 = vadd.f32 %v10525_v22, %v5140_v2 }
 0xb70   : > { %v7475_v27 = vpop.eup %7474 }
 0xb71   : > { %v7477_v20 = vpop.eup %7476  ;;  %6431 = vmatprep.mubr.f32.mxu1 %v7475_v27  ;;  %7478 = vtanh.f32 %v5141_v5 }
 0xb72   : > { %6432 = vmatmul.mubr.f32.gmra.mrb[84].mxu1 %v7477_v20  ;;  %7480 = vtanh.f32 %v5146_v63 }
 0xb7b   : > { %v7479_v50 = vpop.eup %7478 }
 0xb7c   : > { %v7481_v57 = vpop.eup %7480  ;;  %6434 = vmatprep.mubr.f32.mxu1 %v7479_v50 }
 0xb7d   : > { %6435 = vmatmul.mubr.f32.gmra.mrb[86].mxu1 %v7481_v57 }
 0xbe9   : > { %v6415_v0 = vpop.f32.mrb[80].mxu0 }
 0xbea   : > { %v5328_v62 = vsel %vm5326_vm11, %v6415_v0, 0.0  ;;  %v5247_v24 = vpop.f32.mrb[81].mxu0 }
 0xbeb   : > { %v5327_v49 = vsel %vm5326_vm11, %v5247_v24, 0.0 }
 0xbec   : > { %v5329_v46 = vadd.f32 %v5328_v62, %v5327_v49 }
 0xbf5   : > { %v6418_v31 = vpop.f32.mrb[82].mxu0 }
 0xbf6   : > { %v5257_v30 = vpop.f32.mrb[83].mxu0  ;;  %v5332_v26 = vsel %vm5326_vm11, %v6418_v31, 0.0 }
 0xbf7   : > { %v5330_v43 = vsel %vm5326_vm11, %v5257_v30, 0.0 }
 0xbf8   : > { %v5331_v54 = vadd.f32 %v5330_v43, %v5329_v46 }
 0xbfa   : > { %v5333_v36 = vadd.f32 %v5332_v26, %v5331_v54 }
 0xc01   : > { %v6421_v18 = vpop.f32.mrb[84].mxu0 }
 0xc02   : > { %v5267_v51 = vpop.f32.mrb[85].mxu0  ;;  %v5336_v22 = vsel %vm5326_vm11, %v6421_v18, 0.0 }
 0xc03   : > { %v5334_v35 = vsel %vm5326_vm11, %v5267_v51, 0.0 }
 0xc04   : > { %v5335_v7 = vadd.f32 %v5334_v35, %v5333_v36 }
 0xc06   : > { %v5337_v58 = vadd.f32 %v5336_v22, %v5335_v7 }
 0xc21   : > { %v6424_v60 = vpop.f32.mrb[86].mxu0 }
 0xc22   : > { %v5277_v42 = vpop.f32.mrb[87].mxu0  ;;  %v5340_v44 = vsel %vm5326_vm11, %v6424_v60, 0.0 }
 0xc23   : > { %v5338_v53 = vsel %vm5326_vm11, %v5277_v42, 0.0 }
 0xc24   : > { %v5339_v12 = vadd.f32 %v5338_v53, %v5337_v58 }
 0xc26   : > { %v5341_v4 = vadd.f32 %v5340_v44, %v5339_v12 }
 0xc2d   : > { %v6427_v28 = vpop.f32.mrb[80].mxu1 }
 0xc2e   : > { %v5287_v59 = vpop.f32.mrb[81].mxu1  ;;  %v5344_v23 = vsel %vm5326_vm11, %v6427_v28, 0.0 }
 0xc2f   : > { %v5342_v3 = vsel %vm5326_vm11, %v5287_v59, 0.0 }
 0xc30   : > { %v5343_v32 = vadd.f32 %v5342_v3, %v5341_v4 }
 0xc32   : > { %v5345_v34 = vadd.f32 %v5344_v23, %v5343_v32 }
 0xc39   : > { %v6430_v29 = vpop.f32.mrb[82].mxu1 }
 0xc3a   : > { %v5297_v55 = vpop.f32.mrb[83].mxu1  ;;  %v5348_v10 = vsel %vm5326_vm11, %v6430_v29, 0.0 }
 0xc3b   : > { %v5346_v45 = vsel %vm5326_vm11, %v5297_v55, 0.0 }
 0xc3c   : > { %v5347_v17 = vadd.f32 %v5346_v45, %v5345_v34 }
 0xc3e   : > { %v5349_v47 = vadd.f32 %v5348_v10, %v5347_v17 }
 0xc45   : > { %v6433_v41 = vpop.f32.mrb[84].mxu1 }
 0xc46   : > { %v5307_v14 = vpop.f32.mrb[85].mxu1  ;;  %v5352_v8 = vsel %vm5326_vm11, %v6433_v41, 0.0 }
 0xc47   : > { %v5350_v16 = vsel %vm5326_vm11, %v5307_v14, 0.0 }
 0xc48   : > { %v5351_v39 = vadd.f32 %v5350_v16, %v5349_v47 }
 0xc4a   : > { %v5353_v33 = vadd.f32 %v5352_v8, %v5351_v39 }
 0xc50   : > { %v6436_v11 = vpop.f32.mrb[86].mxu1 }
 0xc51   : > { %v5317_v38 = vpop.f32.mrb[87].mxu1  ;;  %v5356_v61 = vsel %vm5326_vm11, %v6436_v11, 0.0 }
 0xc52   : > { %v5354_v13 = vsel %vm5326_vm11, %v5317_v38, 0.0 }
 0xc53   : > { %v5355_v48 = vadd.f32 %v5354_v13, %v5353_v33 }
 0xc55   : > { %v5357_v40 = vadd.f32 %v5356_v61, %v5355_v48 }
 0xc57   : > { %v5358_v9 = vrot.slane %v5357_v40, 4 }
 0xc59   : > { %v5359_v52 = vadd.f32 %v5358_v9, %v5357_v40 }
 0xc5b   : > { %v5360_v15 = vrot.slane %v5359_v52, 2 }
 0xc5d   : > { %v5361_v21 = vadd.f32 %v5360_v15, %v5359_v52 }
 0xc5f   : > { %v5362_v37 = vrot.slane %v5361_v21, 1 }
 0xc61   : > { %v5363_v6 = vadd.f32 %v5362_v37, %v5361_v21 }
 0xc63   : > { %5366 = vperm.xlu1 %7032, %v5363_v6  }
 0xcdc   : > { %5371 = sbr.rel (%p5569_p8) target bundleno = 3300 (0xce4), region = 64 }
 0xce2   : > { %v5367_v25 = vpop.permute.xlu1 %5366 }
 0xce3   : > { %5372 = vst [vmem:[%s7650_s11] sm:$0xff] %v5367_v25 }
 0xce4 PF: > { %p5754_p9 = scmp.eq.s32.totalorder %s7504_s13, 0 }
 0xce6   : > { %5376 = sbr.rel (%p5754_p9) target bundleno = 3310 (0xcee), region = 68 }
 0xcea   : > { %v5377_v1 = vld [vmem:[%s7650_s11] sm:$0xff] (!%p5754_p9) }
 0xceb   : > { %v5378_v56 = vadd.f32 (!%p5754_p9), %v5377_v1, %v5367_v25 }
 0xced   : > { %5379 = vst [vmem:[%s7650_s11] sm:$0xff] %v5378_v56 }
 0xcee PF: > { %s11598_s7 = sld [smem:[#allocation7_spill]]  ;;  %s11599_s13 = sld [smem:[#allocation5_spill]] }
 0xcef   : > { %s11600_s14 = sld [smem:[#allocation6_spill]]  ;;  %s11601_s15 = sld [smem:[#allocation8_spill]] }
 0xcf0   : > { %s11602_s16 = sld [smem:[#allocation9_spill]] }
 0xcf4   : > { %s21_s17 = sadd.s32 1, %s11598_s7  }
 0xcf5   : > { %p18_p10 = scmp.ge.s32.totalorder %s21_s17, 8  }
 0xcf7   :  { %20 = sbr.rel (!%p18_p10) target bundleno = 4 (0x4), region = 126 }

</bundles_post_ra>
